<compile_context>
chip_gen: v7x
topology: tpu7x:2x2x1
jax: 0.10.0
libtpu: 0.0.40
codegen_flags: <defaults>
</compile_context>

<pallas_src>
import math
import jax
import jax.numpy as jnp
from jax import lax
from jax.experimental import pallas as pl
from jax.experimental.pallas import tpu as pltpu

jax.config.update("jax_default_matmul_precision", "highest")

MAX_LENGTH = 50
SOS_TOKEN = 0
_NEG = -1e30


def _round_up(x, m):
    return (x + m - 1) // m * m


def _attn_decoder_kernel(emb_ref, wa_ref, ua_ref, bwu_ref, va_ref, bva_ref,
                         wih_ref, bih_ref, whh_ref, bhh_ref,
                         wout_ref, bout_ref, enc_ref, h0_ref,
                         logits_ref, attn_ref, hid_ref,
                         uk_ref):
    B, S, H = enc_ref.shape
    Vp = emb_ref.shape[0]
    T = logits_ref.shape[0]

    # Ua(keys) + (b_Wa + b_Ua): loop-invariant, compute once into VMEM scratch.
    enc2 = enc_ref[...].reshape(B * S, H)
    uk_ref[...] = (jnp.dot(enc2, ua_ref[...], preferred_element_type=jnp.float32)
                   .reshape(B, S, H) + bwu_ref[...])

    # Built once; reused every step for one-hot build + first-occurrence argmax.
    iota_v = lax.broadcasted_iota(jnp.int32, (B, Vp), 1)
    onehot0 = (iota_v == SOS_TOKEN).astype(jnp.float32)
    h0 = h0_ref[0]                                           # (B, H)

    def step(t, carry):
        h, onehot = carry

        # Embedding lookup (dropout = identity at eval) via one-hot matmul.
        embedded = jnp.dot(onehot, emb_ref[...],
                           preferred_element_type=jnp.float32)           # (B, H)

        # --- Bahdanau attention ------------------------------------------
        q = jnp.dot(h, wa_ref[...], preferred_element_type=jnp.float32)  # (B, H)
        e = jnp.tanh(q[:, None, :] + uk_ref[...])                        # (B, S, H)
        scores = jnp.sum(e * va_ref[...].reshape(1, 1, H), axis=-1) + bva_ref[...]  # (B, S)
        sm = scores - jnp.max(scores, axis=-1, keepdims=True)
        ew = jnp.exp(sm)
        w = ew / jnp.sum(ew, axis=-1, keepdims=True)                     # (B, S)
        context = jnp.sum(w[:, :, None] * enc_ref[...], axis=1)          # (B, H)

        # --- GRU cell, fused gates (PyTorch order r, z, n) -----------------
        x = jnp.concatenate([embedded, context], axis=-1)                # (B, 2H)
        gi = jnp.dot(x, wih_ref[...], preferred_element_type=jnp.float32) + bih_ref[...]
        gh = jnp.dot(h, whh_ref[...], preferred_element_type=jnp.float32) + bhh_ref[...]
        r = jax.nn.sigmoid(gi[:, :H] + gh[:, :H])
        z = jax.nn.sigmoid(gi[:, H:2 * H] + gh[:, H:2 * H])
        n = jnp.tanh(gi[:, 2 * H:] + r * gh[:, 2 * H:])
        h_new = (1.0 - z) * n + z * h

        # --- output Linear + log_softmax -----------------------------------
        logits = jnp.dot(h_new, wout_ref[...],
                         preferred_element_type=jnp.float32) + bout_ref[...]  # (B, Vp)
        m = jnp.max(logits, axis=-1, keepdims=True)
        sh = logits - m
        lse = jnp.log(jnp.sum(jnp.exp(sh), axis=-1, keepdims=True))
        logits_ref[t] = sh - lse
        attn_ref[t] = w

        # --- greedy next token: first-occurrence argmax (reuses m) ---------
        idx = jnp.min(jnp.where(logits == m, iota_v, Vp), axis=-1, keepdims=True)
        onehot_new = (iota_v == idx).astype(jnp.float32)
        return h_new, onehot_new

    h_final, _ = lax.fori_loop(0, T, step, (h0, onehot0))
    hid_ref[0] = h_final                                     # written exactly once


def attn_decoder_forward(params, encoder_outputs, encoder_hidden, target_tensor=None):
    """Mirrors AttnDecoderRNN.forward (greedy path).

    Returns (log_probs (B,T,V), hidden (1,B,H), attentions (B,T,S)).
    """
    # TODO(synk): target_tensor (teacher forcing) branch not implemented; greedy only.
    del target_tensor
    (emb, wa, ba, ua, bua, va, bva,
     wih, bih, whh, bhh, wout, bout) = params
    V, H = emb.shape
    B, S, _ = encoder_outputs.shape
    T = MAX_LENGTH

    # Pad batch to a sublane multiple (8) and vocab to a lane multiple (128).
    Bp = _round_up(B, 8)
    Vp = _round_up(V, 128)

    emb_p = jnp.pad(emb, ((0, Vp - V), (0, 0)))
    wout_p = jnp.pad(wout, ((0, 0), (0, Vp - V)))
    bout_p = jnp.pad(bout, ((0, 0), (0, Vp - V)), constant_values=_NEG)
    enc_p = jnp.pad(encoder_outputs, ((0, Bp - B), (0, 0), (0, 0)))
    h0_p = jnp.pad(encoder_hidden, ((0, 0), (0, Bp - B), (0, 0)))
    bwu = ba + bua   # combined Wa/Ua bias (exact: both added before tanh)

    logits_tbv, attn_tbs, hidden = pl.pallas_call(
        _attn_decoder_kernel,
        out_shape=(
            jax.ShapeDtypeStruct((T, Bp, Vp), jnp.float32),   # per-step log-probs
            jax.ShapeDtypeStruct((T, Bp, S), jnp.float32),    # per-step attn weights
            jax.ShapeDtypeStruct((1, Bp, H), jnp.float32),    # final hidden
        ),
        scratch_shapes=[pltpu.VMEM((Bp, S, H), jnp.float32)],  # Ua(keys) precompute
    )(emb_p, wa, ua, bwu, va, bva, wih, bih, whh, bhh, wout_p, bout_p, enc_p, h0_p)

    decoder_outputs = jnp.transpose(logits_tbv, (1, 0, 2))[:B, :, :V]   # (B, T, V)
    attentions = jnp.transpose(attn_tbs, (1, 0, 2))[:B]                 # (B, T, S)
    decoder_hidden = hidden[:, :B, :]                                   # (1, B, H)
    return decoder_outputs, decoder_hidden, attentions


def _ref_forward(params, encoder_outputs, encoder_hidden):
    """Pure-JAX reference replicating the PyTorch AttnDecoderRNN forward (greedy)."""
    (emb, wa, ba, ua, bua, va, bva,
     wih, bih, whh, bhh, wout, bout) = params
    B, S, H = encoder_outputs.shape
    h = encoder_hidden[0]
    tok = jnp.full((B,), SOS_TOKEN, jnp.int32)
    uk = jnp.einsum("bsh,hk->bsk", encoder_outputs, ua) + bua
    outs, attns = [], []
    for _ in range(MAX_LENGTH):
        x = emb[tok]
        q = h @ wa + ba
        e = jnp.tanh(q[:, None, :] + uk)
        scores = jnp.einsum("bsh,h->bs", e, va[0]) + bva[0, 0]
        w = jax.nn.softmax(scores, axis=-1)
        ctx = jnp.einsum("bs,bsh->bh", w, encoder_outputs)
        xc = jnp.concatenate([x, ctx], axis=-1)
        gi = xc @ wih + bih
        gh = h @ whh + bhh
        r = jax.nn.sigmoid(gi[:, :H] + gh[:, :H])
        z = jax.nn.sigmoid(gi[:, H:2 * H] + gh[:, H:2 * H])
        n = jnp.tanh(gi[:, 2 * H:] + r * gh[:, 2 * H:])
        h = (1.0 - z) * n + z * h
        logits = h @ wout + bout
        outs.append(jax.nn.log_softmax(logits, axis=-1))
        attns.append(w)
        tok = jnp.argmax(logits, axis=-1)
    return jnp.stack(outs, 1), h[None], jnp.stack(attns, 1)


def init_params(key, hidden_size, output_size):
    H, V = hidden_size, output_size
    ks = jax.random.split(key, 13)
    s = 1.0 / math.sqrt(H)
    emb = jax.random.normal(ks[0], (V, H), jnp.float32)                     # nn.Embedding
    wa = jax.random.uniform(ks[1], (H, H), jnp.float32, -s, s)              # Wa.weight.T
    ba = jax.random.uniform(ks[2], (1, H), jnp.float32, -s, s)
    ua = jax.random.uniform(ks[3], (H, H), jnp.float32, -s, s)              # Ua.weight.T
    bua = jax.random.uniform(ks[4], (1, H), jnp.float32, -s, s)
    va = jax.random.uniform(ks[5], (1, H), jnp.float32, -s, s)              # Va.weight
    bva = jax.random.uniform(ks[6], (1, 1), jnp.float32, -s, s)
    # GRU weights, transposed & gate-fused (columns = [r | z | n] blocks of H)
    wih = jax.random.uniform(ks[7], (2 * H, 3 * H), jnp.float32, -s, s)
    bih = jax.random.uniform(ks[8], (1, 3 * H), jnp.float32, -s, s)
    whh = jax.random.uniform(ks[9], (H, 3 * H), jnp.float32, -s, s)
    bhh = jax.random.uniform(ks[10], (1, 3 * H), jnp.float32, -s, s)
    # nn.Linear(hidden, output), stored transposed as (H, V)
    wout = jax.random.uniform(ks[11], (H, V), jnp.float32, -s, s)
    bout = jax.random.uniform(ks[12], (1, V), jnp.float32, -s, s)
    return (emb, wa, ba, ua, bua, va, bva, wih, bih, whh, bhh, wout, bout)


if __name__ == "__main__":
    # batch, encoder seq len, hidden_size (spec uses 128), output_size (vocab)
    B, S, H, V = 2, 8, 128, 16

    key = jax.random.PRNGKey(0)
    kp, ke, kh = jax.random.split(key, 3)
    params = init_params(kp, H, V)
    encoder_outputs = jax.random.normal(ke, (B, S, H), jnp.float32)
    encoder_hidden = jax.random.normal(kh, (1, B, H), jnp.float32)

    log_probs, hidden, attentions = attn_decoder_forward(
        params, encoder_outputs, encoder_hidden)
    log_probs = jax.block_until_ready(log_probs)
    hidden = jax.block_until_ready(hidden)
    attentions = jax.block_until_ready(attentions)

    assert log_probs.shape == (B, MAX_LENGTH, V)
    assert hidden.shape == (1, B, H)
    assert attentions.shape == (B, MAX_LENGTH, S)

    ref_lp, ref_h, ref_at = _ref_forward(params, encoder_outputs, encoder_hidden)
    assert jnp.allclose(log_probs, ref_lp, atol=1e-3, rtol=1e-3), \
        float(jnp.max(jnp.abs(log_probs - ref_lp)))
    assert jnp.allclose(hidden, ref_h, atol=1e-3, rtol=1e-3)
    assert jnp.allclose(attentions, ref_at, atol=1e-3, rtol=1e-3)

    print("KERNEL_OK")
</pallas_src>

<mosaic_0001>
module attributes {stable_mosaic.version = 11 : i64} {
  func.func @_attn_decoder_kernel(%arg0: memref<128x128xf32, #tpu.memory_space<vmem>>, %arg1: memref<128x128xf32, #tpu.memory_space<vmem>>, %arg2: memref<128x128xf32, #tpu.memory_space<vmem>>, %arg3: memref<1x128xf32, #tpu.memory_space<vmem>>, %arg4: memref<1x128xf32, #tpu.memory_space<vmem>>, %arg5: memref<1x1xf32, #tpu.memory_space<vmem>>, %arg6: memref<256x384xf32, #tpu.memory_space<vmem>>, %arg7: memref<1x384xf32, #tpu.memory_space<vmem>>, %arg8: memref<128x384xf32, #tpu.memory_space<vmem>>, %arg9: memref<1x384xf32, #tpu.memory_space<vmem>>, %arg10: memref<128x128xf32, #tpu.memory_space<vmem>>, %arg11: memref<1x128xf32, #tpu.memory_space<vmem>>, %arg12: memref<8x8x128xf32, #tpu.memory_space<vmem>>, %arg13: memref<1x8x128xf32, #tpu.memory_space<vmem>>, %arg14: memref<50x8x128xf32, #tpu.memory_space<vmem>>, %arg15: memref<50x8x8xf32, #tpu.memory_space<vmem>>, %arg16: memref<1x8x128xf32, #tpu.memory_space<vmem>>, %arg17: memref<8x8x128xf32, #tpu.memory_space<vmem>>) attributes {dimension_semantics = [], scalar_prefetch = 0 : i64, scratch_operands = 1 : i64, tpu.core_type = #tpu.core_type<tc>} {
    %c0 = arith.constant 0 : index
    %c0_0 = arith.constant 0 : index
    %c0_1 = arith.constant 0 : index
    %0 = vector.load %arg12[%c0, %c0_0, %c0_1] : memref<8x8x128xf32, #tpu.memory_space<vmem>>, vector<8x8x128xf32>
    %1 = vector.shape_cast %0 : vector<8x8x128xf32> to vector<64x128xf32>
    %c0_2 = arith.constant 0 : index
    %c0_3 = arith.constant 0 : index
    %2 = vector.load %arg2[%c0_2, %c0_3] : memref<128x128xf32, #tpu.memory_space<vmem>>, vector<128x128xf32>
    %cst = arith.constant dense<0.000000e+00> : vector<64x128xf32>
    %3 = tpu.matmul %1, %2, %cst {dimension_numbers = #tpu.dot_dimension_numbers<[1], [0], [0], [1], [0, 0, 1, 1], [], []>, precision = #tpu.contract_precision<fp32>} : vector<64x128xf32>, vector<128x128xf32>, vector<64x128xf32> -> vector<64x128xf32>
    %4 = vector.shape_cast %3 : vector<64x128xf32> to vector<8x8x128xf32>
    %c0_4 = arith.constant 0 : index
    %c0_5 = arith.constant 0 : index
    %5 = vector.load %arg3[%c0_4, %c0_5] : memref<1x128xf32, #tpu.memory_space<vmem>>, vector<1x128xf32>
    %6 = vector.shape_cast %5 : vector<1x128xf32> to vector<1x1x128xf32>
    %7 = vector.broadcast %6 : vector<1x1x128xf32> to vector<8x8x128xf32>
    %8 = arith.addf %4, %7 : vector<8x8x128xf32>
    %c0_6 = arith.constant 0 : index
    %c0_7 = arith.constant 0 : index
    %c0_8 = arith.constant 0 : index
    %9 = vector.load %arg17[%c0_6, %c0_7, %c0_8] : memref<8x8x128xf32, #tpu.memory_space<vmem>>, vector<8x8x128xf32>
    tpu.vector_store %arg17[%c0_6, %c0_7, %c0_8], %8 {strides = array<i32>} : memref<8x8x128xf32, #tpu.memory_space<vmem>>, vector<8x8x128xf32>,
    %10 = tpu.iota {dimensions = array<i32: 1>} : vector<8x128xi32>
    %c0_i32 = arith.constant 0 : i32
    %11 = vector.broadcast %c0_i32 : i32 to vector<8x128xi32>
    %12 = arith.cmpi eq, %10, %11 : vector<8x128xi32>
    %13 = arith.extui %12 : vector<8x128xi1> to vector<8x128xi32>
    %14 = arith.sitofp %13 : vector<8x128xi32> to vector<8x128xf32>
    %c0_9 = arith.constant 0 : index
    %c0_10 = arith.constant 0 : index
    %c0_11 = arith.constant 0 : index
    %15 = vector.load %arg13[%c0_9, %c0_10, %c0_11] : memref<1x8x128xf32, #tpu.memory_space<vmem>>, vector<1x8x128xf32>
    %16 = vector.shape_cast %15 : vector<1x8x128xf32> to vector<8x128xf32>
    %c0_i32_12 = arith.constant 0 : i32
    %c50_i32 = arith.constant 50 : i32
    %17 = arith.addi %c0_i32_12, %c50_i32 : i32
    %c1_i32 = arith.constant 1 : i32
    %18:2 = scf.for %arg18 = %c0_i32_12 to %17 step %c1_i32 iter_args(%arg19 = %16, %arg20 = %14) -> (vector<8x128xf32>, vector<8x128xf32>)  : i32 {
      %c0_17 = arith.constant 0 : index
      %c0_18 = arith.constant 0 : index
      %22 = vector.load %arg0[%c0_17, %c0_18] : memref<128x128xf32, #tpu.memory_space<vmem>>, vector<128x128xf32>
      %cst_19 = arith.constant dense<0.000000e+00> : vector<8x128xf32>
      %23 = tpu.matmul %arg20, %22, %cst_19 {dimension_numbers = #tpu.dot_dimension_numbers<[1], [0], [0], [1], [0, 0, 1, 1], [], []>, precision = #tpu.contract_precision<fp32>} : vector<8x128xf32>, vector<128x128xf32>, vector<8x128xf32> -> vector<8x128xf32>
      %c0_20 = arith.constant 0 : index
      %c0_21 = arith.constant 0 : index
      %24 = vector.load %arg1[%c0_20, %c0_21] : memref<128x128xf32, #tpu.memory_space<vmem>>, vector<128x128xf32>
      %cst_22 = arith.constant dense<0.000000e+00> : vector<8x128xf32>
      %25 = tpu.matmul %arg19, %24, %cst_22 {dimension_numbers = #tpu.dot_dimension_numbers<[1], [0], [0], [1], [0, 0, 1, 1], [], []>, precision = #tpu.contract_precision<fp32>} : vector<8x128xf32>, vector<128x128xf32>, vector<8x128xf32> -> vector<8x128xf32>
      %26 = vector.shape_cast %25 : vector<8x128xf32> to vector<8x1x128xf32>
      %c0_23 = arith.constant 0 : index
      %c0_24 = arith.constant 0 : index
      %c0_25 = arith.constant 0 : index
      %27 = vector.load %arg17[%c0_23, %c0_24, %c0_25] : memref<8x8x128xf32, #tpu.memory_space<vmem>>, vector<8x8x128xf32>
      %28 = vector.broadcast %26 : vector<8x1x128xf32> to vector<8x8x128xf32>
      %29 = arith.addf %28, %27 : vector<8x8x128xf32>
      %30 = math.tanh %29 : vector<8x8x128xf32>
      %c0_26 = arith.constant 0 : index
      %c0_27 = arith.constant 0 : index
      %31 = vector.load %arg4[%c0_26, %c0_27] : memref<1x128xf32, #tpu.memory_space<vmem>>, vector<1x128xf32>
      %32 = vector.shape_cast %31 : vector<1x128xf32> to vector<1x1x128xf32>
      %33 = vector.broadcast %32 : vector<1x1x128xf32> to vector<8x8x128xf32>
      %34 = arith.mulf %30, %33 : vector<8x8x128xf32>
      %cst_28 = arith.constant dense<0.000000e+00> : vector<8x8xf32>
      %35 = vector.multi_reduction <add>, %34, %cst_28 [2] : vector<8x8x128xf32> to vector<8x8xf32>
      %c0_29 = arith.constant 0 : index
      %c0_30 = arith.constant 0 : index
      %36 = vector.load %arg5[%c0_29, %c0_30] : memref<1x1xf32, #tpu.memory_space<vmem>>, vector<1x1xf32>
      %37 = vector.broadcast %36 : vector<1x1xf32> to vector<8x8xf32>
      %38 = arith.addf %35, %37 : vector<8x8xf32>
      %cst_31 = arith.constant dense<0xFF800000> : vector<8xf32>
      %39 = vector.multi_reduction <maximumf>, %38, %cst_31 [1] : vector<8x8xf32> to vector<8xf32>
      %40 = vector.shape_cast %39 : vector<8xf32> to vector<8x1xf32>
      %41 = vector.broadcast %40 : vector<8x1xf32> to vector<8x8xf32>
      %42 = arith.subf %38, %41 : vector<8x8xf32>
      %43 = math.exp %42 : vector<8x8xf32>
      %cst_32 = arith.constant dense<0.000000e+00> : vector<8xf32>
      %44 = vector.multi_reduction <add>, %43, %cst_32 [1] : vector<8x8xf32> to vector<8xf32>
      %45 = vector.shape_cast %44 : vector<8xf32> to vector<8x1xf32>
      %46 = vector.broadcast %45 : vector<8x1xf32> to vector<8x8xf32>
      %47 = arith.divf %43, %46 : vector<8x8xf32>
      %48 = vector.shape_cast %47 : vector<8x8xf32> to vector<8x8x1xf32>
      %c0_33 = arith.constant 0 : index
      %c0_34 = arith.constant 0 : index
      %c0_35 = arith.constant 0 : index
      %49 = vector.load %arg12[%c0_33, %c0_34, %c0_35] : memref<8x8x128xf32, #tpu.memory_space<vmem>>, vector<8x8x128xf32>
      %50 = vector.broadcast %48 : vector<8x8x1xf32> to vector<8x8x128xf32>
      %51 = arith.mulf %50, %49 : vector<8x8x128xf32>
      %cst_36 = arith.constant dense<0.000000e+00> : vector<8x128xf32>
      %52 = vector.multi_reduction <add>, %51, %cst_36 [1] : vector<8x8x128xf32> to vector<8x128xf32>
      %53 = tpu.concatenate %23, %52 in 1 : vector<8x128xf32>, vector<8x128xf32> -> vector<8x256xf32>
      %c0_37 = arith.constant 0 : index
      %c0_38 = arith.constant 0 : index
      %54 = vector.load %arg6[%c0_37, %c0_38] : memref<256x384xf32, #tpu.memory_space<vmem>>, vector<256x384xf32>
      %cst_39 = arith.constant dense<0.000000e+00> : vector<8x384xf32>
      %55 = tpu.matmul %53, %54, %cst_39 {dimension_numbers = #tpu.dot_dimension_numbers<[1], [0], [0], [1], [0, 0, 1, 1], [], []>, precision = #tpu.contract_precision<fp32>} : vector<8x256xf32>, vector<256x384xf32>, vector<8x384xf32> -> vector<8x384xf32>
      %c0_40 = arith.constant 0 : index
      %c0_41 = arith.constant 0 : index
      %56 = vector.load %arg7[%c0_40, %c0_41] : memref<1x384xf32, #tpu.memory_space<vmem>>, vector<1x384xf32>
      %57 = vector.broadcast %56 : vector<1x384xf32> to vector<8x384xf32>
      %58 = arith.addf %55, %57 : vector<8x384xf32>
      %c0_42 = arith.constant 0 : index
      %c0_43 = arith.constant 0 : index
      %59 = vector.load %arg8[%c0_42, %c0_43] : memref<128x384xf32, #tpu.memory_space<vmem>>, vector<128x384xf32>
      %cst_44 = arith.constant dense<0.000000e+00> : vector<8x384xf32>
      %60 = tpu.matmul %arg19, %59, %cst_44 {dimension_numbers = #tpu.dot_dimension_numbers<[1], [0], [0], [1], [0, 0, 1, 1], [], []>, precision = #tpu.contract_precision<fp32>} : vector<8x128xf32>, vector<128x384xf32>, vector<8x384xf32> -> vector<8x384xf32>
      %c0_45 = arith.constant 0 : index
      %c0_46 = arith.constant 0 : index
      %61 = vector.load %arg9[%c0_45, %c0_46] : memref<1x384xf32, #tpu.memory_space<vmem>>, vector<1x384xf32>
      %62 = vector.broadcast %61 : vector<1x384xf32> to vector<8x384xf32>
      %63 = arith.addf %60, %62 : vector<8x384xf32>
      %64 = vector.extract_strided_slice %58 {offsets = [0, 0], sizes = [8, 128], strides = [1, 1]} : vector<8x384xf32> to vector<8x128xf32>
      %65 = vector.extract_strided_slice %63 {offsets = [0, 0], sizes = [8, 128], strides = [1, 1]} : vector<8x384xf32> to vector<8x128xf32>
      %66 = arith.addf %64, %65 : vector<8x128xf32>
      %67 = arith.negf %66 : vector<8x128xf32>
      %68 = math.exp %67 : vector<8x128xf32>
      %cst_47 = arith.constant 1.000000e+00 : f32
      %69 = vector.broadcast %cst_47 : f32 to vector<8x128xf32>
      %70 = arith.addf %69, %68 : vector<8x128xf32>
      %71 = arith.divf %69, %70 : vector<8x128xf32>
      %72 = vector.extract_strided_slice %58 {offsets = [0, 128], sizes = [8, 128], strides = [1, 1]} : vector<8x384xf32> to vector<8x128xf32>
      %73 = vector.extract_strided_slice %63 {offsets = [0, 128], sizes = [8, 128], strides = [1, 1]} : vector<8x384xf32> to vector<8x128xf32>
      %74 = arith.addf %72, %73 : vector<8x128xf32>
      %75 = arith.negf %74 : vector<8x128xf32>
      %76 = math.exp %75 : vector<8x128xf32>
      %cst_48 = arith.constant 1.000000e+00 : f32
      %77 = vector.broadcast %cst_48 : f32 to vector<8x128xf32>
      %78 = arith.addf %77, %76 : vector<8x128xf32>
      %79 = arith.divf %77, %78 : vector<8x128xf32>
      %80 = vector.extract_strided_slice %58 {offsets = [0, 256], sizes = [8, 128], strides = [1, 1]} : vector<8x384xf32> to vector<8x128xf32>
      %81 = vector.extract_strided_slice %63 {offsets = [0, 256], sizes = [8, 128], strides = [1, 1]} : vector<8x384xf32> to vector<8x128xf32>
      %82 = arith.mulf %71, %81 : vector<8x128xf32>
      %83 = arith.addf %80, %82 : vector<8x128xf32>
      %84 = math.tanh %83 : vector<8x128xf32>
      %cst_49 = arith.constant 1.000000e+00 : f32
      %85 = vector.broadcast %cst_49 : f32 to vector<8x128xf32>
      %86 = arith.subf %85, %79 : vector<8x128xf32>
      %87 = arith.mulf %86, %84 : vector<8x128xf32>
      %88 = arith.mulf %79, %arg19 : vector<8x128xf32>
      %89 = arith.addf %87, %88 : vector<8x128xf32>
      %c0_50 = arith.constant 0 : index
      %c0_51 = arith.constant 0 : index
      %90 = vector.load %arg10[%c0_50, %c0_51] : memref<128x128xf32, #tpu.memory_space<vmem>>, vector<128x128xf32>
      %cst_52 = arith.constant dense<0.000000e+00> : vector<8x128xf32>
      %91 = tpu.matmul %89, %90, %cst_52 {dimension_numbers = #tpu.dot_dimension_numbers<[1], [0], [0], [1], [0, 0, 1, 1], [], []>, precision = #tpu.contract_precision<fp32>} : vector<8x128xf32>, vector<128x128xf32>, vector<8x128xf32> -> vector<8x128xf32>
      %c0_53 = arith.constant 0 : index
      %c0_54 = arith.constant 0 : index
      %92 = vector.load %arg11[%c0_53, %c0_54] : memref<1x128xf32, #tpu.memory_space<vmem>>, vector<1x128xf32>
      %93 = vector.broadcast %92 : vector<1x128xf32> to vector<8x128xf32>
      %94 = arith.addf %91, %93 : vector<8x128xf32>
      %cst_55 = arith.constant dense<0xFF800000> : vector<8xf32>
      %95 = vector.multi_reduction <maximumf>, %94, %cst_55 [1] : vector<8x128xf32> to vector<8xf32>
      %96 = vector.shape_cast %95 : vector<8xf32> to vector<8x1xf32>
      %97 = vector.broadcast %96 : vector<8x1xf32> to vector<8x128xf32>
      %98 = arith.subf %94, %97 : vector<8x128xf32>
      %99 = math.exp %98 : vector<8x128xf32>
      %cst_56 = arith.constant dense<0.000000e+00> : vector<8xf32>
      %100 = vector.multi_reduction <add>, %99, %cst_56 [1] : vector<8x128xf32> to vector<8xf32>
      %101 = vector.shape_cast %100 : vector<8xf32> to vector<8x1xf32>
      %102 = math.log %101 : vector<8x1xf32>
      %103 = vector.broadcast %102 : vector<8x1xf32> to vector<8x128xf32>
      %104 = arith.subf %98, %103 : vector<8x128xf32>
      %105 = arith.index_cast %arg18 : i32 to index
      %c0_57 = arith.constant 0 : index
      %c0_58 = arith.constant 0 : index
      %106 = vector.load %arg14[%105, %c0_57, %c0_58] : memref<50x8x128xf32, #tpu.memory_space<vmem>>, vector<1x8x128xf32>
      %107 = vector.shape_cast %106 : vector<1x8x128xf32> to vector<8x128xf32>
      %108 = vector.shape_cast %104 : vector<8x128xf32> to vector<1x8x128xf32>
      tpu.vector_store %arg14[%105, %c0_57, %c0_58], %108 {strides = array<i32>} : memref<50x8x128xf32, #tpu.memory_space<vmem>>, vector<1x8x128xf32>,
      %109 = arith.index_cast %arg18 : i32 to index
      %c0_59 = arith.constant 0 : index
      %c0_60 = arith.constant 0 : index
      %110 = vector.load %arg15[%109, %c0_59, %c0_60] : memref<50x8x8xf32, #tpu.memory_space<vmem>>, vector<1x8x8xf32>
      %111 = vector.shape_cast %110 : vector<1x8x8xf32> to vector<8x8xf32>
      %112 = vector.shape_cast %47 : vector<8x8xf32> to vector<1x8x8xf32>
      tpu.vector_store %arg15[%109, %c0_59, %c0_60], %112 {strides = array<i32>} : memref<50x8x8xf32, #tpu.memory_space<vmem>>, vector<1x8x8xf32>,
      %113 = vector.broadcast %96 : vector<8x1xf32> to vector<8x128xf32>
      %114 = arith.cmpf oeq, %94, %113 : vector<8x128xf32>
      %c128_i32 = arith.constant 128 : i32
      %115 = vector.broadcast %c128_i32 : i32 to vector<8x128xi32>
      %116 = arith.select %114, %10, %115 : vector<8x128xi1>, vector<8x128xi32>
      %cst_61 = arith.constant dense<2147483647> : vector<8xi32>
      %117 = vector.multi_reduction <minsi>, %116, %cst_61 [1] : vector<8x128xi32> to vector<8xi32>
      %118 = vector.shape_cast %117 : vector<8xi32> to vector<8x1xi32>
      %119 = vector.broadcast %118 : vector<8x1xi32> to vector<8x128xi32>
      %120 = arith.cmpi eq, %10, %119 : vector<8x128xi32>
      %121 = arith.extui %120 : vector<8x128xi1> to vector<8x128xi32>
      %122 = arith.sitofp %121 : vector<8x128xi32> to vector<8x128xf32>
      scf.yield %89, %122 : vector<8x128xf32>, vector<8x128xf32>
    }
    %c50_i32_13 = arith.constant 50 : i32
    %c0_14 = arith.constant 0 : index
    %c0_15 = arith.constant 0 : index
    %c0_16 = arith.constant 0 : index
    %19 = vector.load %arg16[%c0_14, %c0_15, %c0_16] : memref<1x8x128xf32, #tpu.memory_space<vmem>>, vector<1x8x128xf32>
    %20 = vector.shape_cast %19 : vector<1x8x128xf32> to vector<8x128xf32>
    %21 = vector.shape_cast %18#0 : vector<8x128xf32> to vector<1x8x128xf32>
    tpu.vector_store %arg16[%c0_14, %c0_15, %c0_16], %21 {strides = array<i32>} : memref<1x8x128xf32, #tpu.memory_space<vmem>>, vector<1x8x128xf32>,
    return
  }
}

</mosaic_0001>

<bundles_post_ra>
// kernel: tpu_custom_call.1
= control target key start
LH: loop header
LB: loop body
LE: loop exit
PB: predicated region body
PF: predicated region fallthrough
CT: control target
= control target key end

     0   :  { %s15452_s0 = inlined_call_operand.hbm [shape: f32[128,128], index: 0, kind: input, shape index: {}]   ;;  %s15453_s1 = inlined_call_operand.hbm [shape: f32[128,128], index: 1, kind: input, shape index: {}]   ;;  %s15454_s2 = inlined_call_operand.hbm [shape: f32[128,128], index: 2, kind: input, shape index: {}]   ;;  %s15455_s3 = inlined_call_operand.vmem [shape: f32[1,128], index: 3, kind: input, shape index: {}]   ;;  %s15456_s4 = inlined_call_operand.vmem [shape: f32[1,128], index: 4, kind: input, shape index: {}]   ;;  %s15457_s5 = inlined_call_operand.<no memory space> [shape: f32[1,1], index: 5, kind: input, shape index: {}]   ;;  %s15458_s6 = inlined_call_operand.hbm [shape: f32[256,384], index: 6, kind: input, shape index: {}]   ;;  %s15459_s7 = inlined_call_operand.vmem [shape: f32[1,384], index: 7, kind: input, shape index: {}]   ;;  %s15460_s8 = inlined_call_operand.hbm [shape: f32[128,384], index: 8, kind: input, shape index: {}]   ;;  %s15461_s9 = inlined_call_operand.vmem [shape: f32[1,384], index: 9, kind: input, shape index: {}]   ;;  %s15462_s10 = inlined_call_operand.hbm [shape: f32[128,128], index: 10, kind: input, shape index: {}]   ;;  %s15463_s11 = inlined_call_operand.vmem [shape: f32[1,128], index: 11, kind: input, shape index: {}]   ;;  %s15464_s12 = inlined_call_operand.hbm [shape: f32[8,8,128], index: 12, kind: input, shape index: {}]   ;;  %s15465_s13 = inlined_call_operand.vmem [shape: f32[1,8,128], index: 13, kind: input, shape index: {}]   ;;  %s15466_s14 = inlined_call_operand.hbm [shape: f32[50,8,128], index: 14, kind: output, shape index: {0}]   ;;  %s15467_s15 = inlined_call_operand.vmem [shape: f32[50,8,8], index: 15, kind: output, shape index: {1}]   ;;  %s15468_s16 = inlined_call_operand.hbm [shape: f32[1,8,128], index: 16, kind: output, shape index: {2}]  }
   0x1   :  { %15959 = sst [smem:[#allocation210_spill]] %s15452_s0  ;;  %v22_v0 = vstv %s15457_s5 }
   0x2   :  { %23 = vst [vmem:[#allocation3] sm:$0x1] %v22_v0 }
   0x3   :  { %24 = vsyncpa [#allocation5], 0 }
   0x4   :  { %25 = vsyncpa [#allocation8], 0 }
   0x5   :  { %26 = vsyncpa [#allocation11], 0 }
   0x6   :  { %27 = vsyncpa [#allocation14], 0 }
   0x7   :  { %28 = vsyncpa [#allocation6], 0 }
   0x8   :  { %29 = vsyncpa [#allocation18], 0  ;;  %s11499_s23 = smov [#allocation7]   ;;  %s11500_s25 = smov [#allocation10]  }
   0x9   :  { %s47_s24 = sshll.u32 %s11499_s23, 4  ;;  %s77_s26 = sshll.u32 %s11500_s25, 4  ;;  %s48_s24 = int_to_ptr.vmem [resolvable:$true] %s47_s24  ;;  %s11606_s26 = int_to_ptr.vmem [resolvable:$true] %s77_s26 }
   0xa   :  { %s11265_s29 = scalar_lea.hbm %s15453_s1, 2048 }
   0xb   :  { %p11266_p0 = scmp.ne.s32.totalorder %s15453_s1, %s11265_s29  ;;  %p11269_p1 = scmp.lt.u32.totalorder %s11265_s29, %s15453_s1 }
   0xd   :  { %p11271_p2 = pnand %p11269_p1, %p11266_p0 }
   0xf   :  { %11274 = shalt.err (!%p11271_p2)
}
  0x10   :  { %s11275_s18 = scalar_lea.vmem %s48_s24, 2048  ;;  %p11280_p4 = scmp.lt.s32.totalorder %s48_s24, %s48_s24 }
  0x11   :  { %p11276_p3 = scmp.ne.s32.totalorder %s48_s24, %s11275_s18  ;;  %p11281_p5 = scmp.lt.s32.totalorder %s11275_s18, %s11275_s18 }
  0x13   :  { %p11282_p6 = por %p11281_p5, %p11280_p4 }
  0x15   :  { %p11283_p7 = pnand %p11282_p6, %p11276_p3 }
  0x17   :  { %11286 = shalt.err (!%p11283_p7)
}
  0x18   :  { %s15470_s19 = smov 128   ;;  %s11502_s20 = smov 8  }
  0x19   :  { %53 = dma.hbm_to_vmem [thread:$0]  %s15453_s1, 2048, %s48_s24, [#allocation8], %s15470_s19, %s15470_s19, %s11502_s20  }
  0x1a   :  { %s11287_s27 = scalar_lea.hbm %s15458_s6, 12288 }
  0x1b   :  { %p11288_p8 = scmp.ne.s32.totalorder %s15458_s6, %s11287_s27  ;;  %p11291_p9 = scmp.lt.u32.totalorder %s11287_s27, %s15458_s6 }
  0x1d   :  { %p11293_p10 = pnand %p11291_p9, %p11288_p8 }
  0x1f   :  { %11296 = shalt.err (!%p11293_p10)
}
  0x20   :  { %s11297_s0 = scalar_lea.vmem %s11606_s26, 12288  ;;  %p11302_p12 = scmp.lt.s32.totalorder %s11606_s26, %s11606_s26 }
  0x21   :  { %p11298_p11 = scmp.ne.s32.totalorder %s11606_s26, %s11297_s0  ;;  %p11303_p13 = scmp.lt.s32.totalorder %s11297_s0, %s11297_s0 }
  0x23   :  { %p11304_p0 = por %p11303_p13, %p11302_p12 }
  0x25   :  { %p11305_p1 = pnand %p11304_p0, %p11298_p11 }
  0x27   :  { %11308 = shalt.err (!%p11305_p1)
}
  0x28   :  { %s11503_s1 = smov 384   ;;  %s11504_s24 = smov 24  }
  0x29   :  { %83 = dma.hbm_to_vmem [thread:$0]  %s15458_s6, 12288, %s11606_s26, [#allocation11], %s11503_s1, %s11503_s1, %s11504_s24  }
  0x2a   :  { %s11505_s21 = smov [#allocation13]   ;;  %s11506_s23 = smov [#allocation4]  }
  0x2b   :  { %s105_s22 = sshll.u32 %s11505_s21, 4  ;;  %s35_s25 = sshll.u32 %s11506_s23, 4  ;;  %s106_s22 = int_to_ptr.vmem [resolvable:$true] %s105_s22  ;;  %s11643_s25 = int_to_ptr.vmem [resolvable:$true] %s35_s25 }
  0x2c   :  { %s11309_s29 = scalar_lea.hbm %s15462_s10, 2048 }
  0x2d   :  { %p11310_p2 = scmp.ne.s32.totalorder %s15462_s10, %s11309_s29  ;;  %p11313_p3 = scmp.lt.u32.totalorder %s11309_s29, %s15462_s10 }
  0x2f   :  { %p11315_p4 = pnand %p11313_p3, %p11310_p2 }
  0x31   :  { %11318 = shalt.err (!%p11315_p4)
}
  0x32   :  { %s11319_s6 = scalar_lea.vmem %s106_s22, 2048  ;;  %p11324_p6 = scmp.lt.s32.totalorder %s106_s22, %s106_s22 }
  0x33   :  { %p11320_p5 = scmp.ne.s32.totalorder %s106_s22, %s11319_s6  ;;  %p11325_p7 = scmp.lt.s32.totalorder %s11319_s6, %s11319_s6 }
  0x35   :  { %p11326_p8 = por %p11325_p7, %p11324_p6 }
  0x37   :  { %p11327_p9 = pnand %p11326_p8, %p11320_p5 }
  0x39   :  { %11330 = shalt.err (!%p11327_p9)
}
  0x3a   :  { %s15960_s26 = smov 128   ;;  %s15961_s19 = sld [smem:[#allocation210_spill]] }
  0x3b   :  { %111 = dma.hbm_to_vmem [thread:$0]  %s15462_s10, 2048, %s106_s22, [#allocation14], %s15960_s26, %s15960_s26, %s11502_s20  }
  0x40   :  { %s11331_s27 = scalar_lea.hbm %s15961_s19, 2048 }
  0x41   :  { %p11332_p10 = scmp.ne.s32.totalorder %s15961_s19, %s11331_s27  ;;  %p11335_p11 = scmp.lt.u32.totalorder %s11331_s27, %s15961_s19 }
  0x43   :  { %p11337_p12 = pnand %p11335_p11, %p11332_p10 }
  0x45   :  { %11340 = shalt.err (!%p11337_p12)
}
  0x46   :  { %s11341_s0 = scalar_lea.vmem %s11643_s25, 2048  ;;  %p11346_p0 = scmp.lt.s32.totalorder %s11643_s25, %s11643_s25 }
  0x47   :  { %p11342_p13 = scmp.ne.s32.totalorder %s11643_s25, %s11341_s0  ;;  %p11347_p1 = scmp.lt.s32.totalorder %s11341_s0, %s11341_s0 }
  0x49   :  { %p11348_p2 = por %p11347_p1, %p11346_p0 }
  0x4b   :  { %p11349_p3 = pnand %p11348_p2, %p11342_p13 }
  0x4d   :  { %11352 = shalt.err (!%p11349_p3)
}
  0x4e   :  { %41 = dma.hbm_to_vmem [thread:$0]  %s15961_s19, 2048, %s11643_s25, [#allocation5], %s15960_s26, %s15960_s26, %s11502_s20  }
  0x4f   :  { %s11507_s6 = smov [#allocation9]   ;;  %s11508_s18 = smov [#allocation12]  }
  0x50   :  { %s59_s17 = sshll.u32 %s11507_s6, 4  ;;  %s91_s21 = sshll.u32 %s11508_s18, 4  ;;  %s60_s17 = int_to_ptr.vmem [resolvable:$true] %s59_s17  ;;  %s11680_s21 = int_to_ptr.vmem [resolvable:$true] %s91_s21 }
  0x51   :  { %s11353_s28 = scalar_lea.hbm %s15454_s2, 2048 }
  0x52   :  { %p11354_p4 = scmp.ne.s32.totalorder %s15454_s2, %s11353_s28  ;;  %p11357_p5 = scmp.lt.u32.totalorder %s11353_s28, %s15454_s2 }
  0x54   :  { %p11359_p6 = pnand %p11357_p5, %p11354_p4 }
  0x56   :  { %11362 = shalt.err (!%p11359_p6)
}
  0x57   :  { %s11363_s25 = scalar_lea.vmem %s60_s17, 2048  ;;  %p11368_p8 = scmp.lt.s32.totalorder %s60_s17, %s60_s17 }
  0x58   :  { %p11364_p7 = scmp.ne.s32.totalorder %s60_s17, %s11363_s25  ;;  %p11369_p9 = scmp.lt.s32.totalorder %s11363_s25, %s11363_s25 }
  0x5a   :  { %p11370_p10 = por %p11369_p9, %p11368_p8 }
  0x5c   :  { %p11371_p11 = pnand %p11370_p10, %p11364_p7 }
  0x5e   :  { %11374 = shalt.err (!%p11371_p11)
}
  0x5f   :  { %65 = dma.hbm_to_vmem [thread:$0]  %s15454_s2, 2048, %s60_s17, [#allocation8], %s15960_s26, %s15960_s26, %s11502_s20  }
  0x60   :  { %s11375_s18 = scalar_lea.hbm %s15460_s8, 6144 }
  0x61   :  { %p11376_p12 = scmp.ne.s32.totalorder %s15460_s8, %s11375_s18  ;;  %p11379_p13 = scmp.lt.u32.totalorder %s11375_s18, %s15460_s8 }
  0x63   :  { %p11381_p0 = pnand %p11379_p13, %p11376_p12 }
  0x65   :  { %11384 = shalt.err (!%p11381_p0)
}
  0x66   :  { %s11385_s30 = scalar_lea.vmem %s11680_s21, 6144  ;;  %p11390_p2 = scmp.lt.s32.totalorder %s11680_s21, %s11680_s21 }
  0x67   :  { %p11386_p1 = scmp.ne.s32.totalorder %s11680_s21, %s11385_s30  ;;  %p11391_p3 = scmp.lt.s32.totalorder %s11385_s30, %s11385_s30 }
  0x69   :  { %p11392_p4 = por %p11391_p3, %p11390_p2 }
  0x6b   :  { %p11393_p5 = pnand %p11392_p4, %p11386_p1 }
  0x6d   :  { %11396 = shalt.err (!%p11393_p5)
}
  0x6e   :  { %97 = dma.hbm_to_vmem [thread:$0]  %s15460_s8, 6144, %s11680_s21, [#allocation11], %s11503_s1, %s11503_s1, %s11504_s24  }
  0x6f   :  { %s11509_s5 = smov [#allocation15]   ;;  %s11397_s10 = scalar_lea.hbm %s15464_s12, 1024 }
  0x70   :  { %s119_s0 = sshll.u32 %s11509_s5, 4  ;;  %p11398_p6 = scmp.ne.s32.totalorder %s15464_s12, %s11397_s10  ;;  %s120_s0 = int_to_ptr.vmem [resolvable:$true] %s119_s0 }
  0x71   :  { %p11401_p7 = scmp.lt.u32.totalorder %s11397_s10, %s15464_s12 }
  0x73   :  { %p11403_p8 = pnand %p11401_p7, %p11398_p6 }
  0x75   :  { %11406 = shalt.err (!%p11403_p8)
}
  0x76   :  { %s11407_s27 = scalar_lea.vmem %s120_s0, 1024  ;;  %p11412_p10 = scmp.lt.s32.totalorder %s120_s0, %s120_s0 }
  0x77   :  { %p11408_p9 = scmp.ne.s32.totalorder %s120_s0, %s11407_s27  ;;  %p11413_p11 = scmp.lt.s32.totalorder %s11407_s27, %s11407_s27 }
  0x79   :  { %p11414_p12 = por %p11413_p11, %p11412_p10 }
  0x7b   :  { %p11415_p13 = pnand %p11414_p12, %p11408_p9 }
  0x7d   :  { %11418 = shalt.err (!%p11415_p13)
}
  0x7e   :  { %125 = dma.hbm_to_vmem [thread:$0]  %s15464_s12, 1024, %s120_s0, [#allocation14], %s15960_s26, %s15960_s26, %s11502_s20  }
  0x7f   :  { %11475 = dma.done.wait [#allocation5], 2048  }
  0x80   :  { %11476 = vsyncadd [#allocation5], 4294965248 }
  0x81   :  { %11477 = dma.done.wait [#allocation8], 4096  }
  0x82   :  { %11478 = vsyncadd [#allocation8], 4294963200 }
  0x83   :  { %11479 = dma.done.wait [#allocation11], 18432  }
  0x84   :  { %11480 = vsyncadd [#allocation11], 4294948864 }
  0x85   :  { %11481 = dma.done.wait [#allocation14], 3072  }
  0x86   :  { %11482 = vsyncadd [#allocation14], 4294964224  ;;  %v11735_v1 = vld [vmem:[%s15465_s13] sm:$0xff]   ;;  %v158_v3 = vld [vmem:[#allocation9 + $0x8] sm:$0xff] }
  0x87   :  { %15962 = vst [vmem:[#allocation25_spill] sm:$0xff] %v11735_v1  ;;  %v157_v2 = vld [vmem:[#allocation9] sm:$0xff]  ;;  %v177_v5 = vand.u32 4294901760, %v158_v3  ;;  %v159_v6 = vld [vmem:[#allocation9 + $0x10] sm:$0xff]  ;;  %v11737_v7 = vld [vmem:[#allocation9 + $0x18] sm:$0xff] }
  0x88   :  { %v174_v4 = vand.u32 4294901760, %v157_v2  ;;  %v11739_v8 = vld [vmem:[#allocation9 + $0x20] sm:$0xff]  ;;  %v180_v9 = vand.u32 4294901760, %v159_v6  ;;  %v183_v10 = vand.u32 4294901760, %v11737_v7  ;;  %v11742_v11 = vld [vmem:[#allocation9 + $0x28] sm:$0xff]  ;;  %v11752_v16 = vld [vmem:[#allocation9 + $0x30] sm:$0xff] }
  0x89   :  { %v186_v13 = vand.u32 4294901760, %v11739_v8  ;;  %v189_v14 = vand.u32 4294901760, %v11742_v11  ;;  %v11754_v17 = vld [vmem:[#allocation9 + $0x38] sm:$0xff]  ;;  %v149_v18 = vld [vmem:[#allocation15] sm:$0xff]  ;;  %v192_v20 = vand.u32 4294901760, %v11752_v16  ;;  %v11774_v24 = vld [vmem:[#allocation9 + $0x48] sm:$0xff]  ;;  %v11802_v36 = vsub.f32 %v158_v3, %v177_v5 }
  0x8a   :  { %v11744_v12 = vpack.c.bf16 %v177_v5, %v174_v4  ;;  %v11750_v15 = vpack.c.bf16 %v183_v10, %v180_v9  ;;  %v195_v21 = vand.u32 4294901760, %v11754_v17  ;;  %v11770_v22 = vand.u32 4294901760, %v149_v18  ;;  %v11772_v23 = vld [vmem:[#allocation9 + $0x40] sm:$0xff]  ;;  %v11791_v29 = vld [vmem:[#allocation9 + $0x50] sm:$0xff]  ;;  %v11794_v31 = vld [vmem:[#allocation9 + $0x58] sm:$0xff] }
  0x8b   :  { %v11766_v19 = vpack.c.bf16 %v189_v14, %v186_v13  ;;  %v198_v27 = vand.u32 4294901760, %v11772_v23  ;;  %v201_v28 = vand.u32 4294901760, %v11774_v24  ;;  %v150_v32 = vld [vmem:[#allocation15 + $0x8] sm:$0xff]  ;;  %v11797_v34 = vsub.f32 %v157_v2, %v174_v4  ;;  %v11813_v39 = vld [vmem:[#allocation9 + $0x60] sm:$0xff]  ;;  %v11817_v41 = vld [vmem:[#allocation9 + $0x70] sm:$0xff] }
  0x8c   :  { %9514 = vmatprep.subr.bf16.mxu1 %v11744_v12  ;;  %9610 = vmatprep.subr.bf16.mxu0 %v11744_v12  ;;  %v11777_v25 = vsub.f32 %v149_v18, %v11770_v22  ;;  %v11787_v26 = vpack.c.bf16 %v195_v21, %v192_v20  ;;  %v204_v35 = vand.u32 4294901760, %v11791_v29  ;;  %v207_v38 = vand.u32 4294901760, %v11794_v31  ;;  %v11815_v40 = vld [vmem:[#allocation9 + $0x68] sm:$0xff]  ;;  %v11821_v44 = vld [vmem:[#allocation9 + $0x78] sm:$0xff]  ;;  %v151_v47 = vld [vmem:[#allocation15 + $0x10] sm:$0xff] }
  0x8d   :  { %9516 = vmatpush3.bf16.msra.mxu1 %v11744_v12  ;;  %9612 = vmatpush3.bf16.msra.mxu0 %v11744_v12  ;;  %v11810_v37 = vpack.c.bf16 %v201_v28, %v198_v27  ;;  %v11819_v43 = vand.u32 4294901760, %v150_v32  ;;  %v11823_v45 = vsub.f32 %v159_v6, %v180_v9  ;;  %v337_v46 = vand.u32 4294901760, %v11797_v34  ;;  %v152_v60 = vld [vmem:[#allocation15 + $0x18] sm:$0xff]  ;;  %v153_v61 = vld [vmem:[#allocation15 + $0x20] sm:$0xff]  ;;  %v154_v9 = vld [vmem:[#allocation15 + $0x28] sm:$0xff] }
  0x8e   :  { %9518 = vmatprep.subr.bf16.mxu1 %v11750_v15  ;;  %9614 = vmatprep.subr.bf16.mxu0 %v11750_v15  ;;  %15963 = vst [vmem:[#allocation26_spill] sm:$0xff] %v11777_v25  ;;  %v256_v30 = vand.u32 4294901760, %v11777_v25  ;;  %v15475_v48 = vand.u32 4294901760, %v11813_v39  ;;  %v15474_v49 = vand.u32 4294901760, %v11815_v40  ;;  %v15473_v50 = vand.u32 4294901760, %v11817_v41  ;;  %v155_v18 = vld [vmem:[#allocation15 + $0x30] sm:$0xff] }
  0x8f   :  { %15964 = vst [vmem:[#allocation27_spill] sm:$0xff] %v11810_v37  ;;  %v344_v51 = vand.u32 4294901760, %v11802_v36  ;;  %v11838_v52 = vpack.c.bf16 %v207_v38, %v204_v35  ;;  %v15472_v53 = vand.u32 4294901760, %v11821_v44  ;;  %v11842_v54 = vsub.f32 %v150_v32, %v11819_v43 }
  0x90   :  { %v257_v33 = vsub.f32 %v11777_v25, %v256_v30  ;;  %8573 = vmatprep.mubr.f32.mxu0 %v256_v30  ;;  %v11847_v55 = vsub.f32 %v11737_v7, %v183_v10  ;;  %v351_v56 = vand.u32 4294901760, %v11823_v45  ;;  %v11850_v57 = vand.u32 4294901760, %v151_v47 }
  0x91   :  { %9520 = vmatpush3.bf16.msra.mxu1 %v11750_v15  ;;  %9616 = vmatpush3.bf16.msra.mxu0 %v11750_v15  ;;  %15965 = vst [vmem:[#allocation28_spill] sm:$0xff] %v11838_v52  ;;  %v338_v58 = vsub.f32 %v11797_v34, %v337_v46  ;;  %v11856_v59 = vsub.f32 %v11739_v8, %v186_v13  ;;  %v15476_v3 = vand.u32 4294901760, %v11842_v54  ;;  %v11886_v7 = vand.u32 4294901760, %v152_v60 }
  0x92   :  { %9522 = vmatprep.subr.bf16.mxu1 %v11766_v19  ;;  %9618 = vmatprep.subr.bf16.mxu0 %v11766_v19  ;;  %v258_v42 = vand.u32 4294901760, %v257_v33  ;;  %v345_v62 = vsub.f32 %v11802_v36, %v344_v51  ;;  %v11864_v63 = vsub.f32 %v11742_v11, %v189_v14  ;;  %v11872_v0 = vpack.c.bf16 %v15474_v49, %v15475_v48 }
  0x93   :  { %v11878_v2 = vpack.c.bf16 %v15472_v53, %v15473_v50  ;;  %v358_v4 = vand.u32 4294901760, %v11847_v55  ;;  %v352_v5 = vsub.f32 %v11823_v45, %v351_v56  ;;  %v11884_v6 = vsub.f32 %v151_v47, %v11850_v57 }
  0x94   :  { %8441 = vmatprep.mubr.f32.mxu1 %v258_v42  ;;  %15966 = vst [vmem:[#allocation29_spill] sm:$0xff] %v11872_v0  ;;  %v11888_v8 = vand.u32 4294901760, %v153_v61  ;;  %v339_v10 = vand.u32 4294901760, %v338_v58  ;;  %v11890_v11 = vpack.c.bf16 %v344_v51, %v337_v46  ;;  %v365_v13 = vand.u32 4294901760, %v11856_v59 }
  0x95   :  { %9524 = vmatpush3.bf16.msra.mxu1 %v11766_v19  ;;  %9620 = vmatpush3.bf16.msra.mxu0 %v11766_v19  ;;  %15967 = vst [vmem:[#allocation30_spill] sm:$0xff] %v11878_v2  ;;  %15968 = vst [vmem:[#allocation31_spill] sm:$0xff] %v11884_v6  ;;  %v11896_v14 = vsub.f32 %v11752_v16, %v192_v20  ;;  %v346_v30 = vand.u32 4294901760, %v345_v62  ;;  %v372_v32 = vand.u32 4294901760, %v11864_v63  ;;  %v276_v47 = vand.u32 4294901760, %v11884_v6 }
  0x96   :  { %9526 = vmatprep.subr.bf16.mxu1 %v11787_v26  ;;  %9622 = vmatprep.subr.bf16.mxu0 %v11787_v26  ;;  %v11904_v33 = vsub.f32 %v11754_v17, %v195_v21  ;;  %v11907_v42 = vsub.f32 %v152_v60, %v11886_v7  ;;  %v267_v16 = vsub.f32 %v11842_v54, %v15476_v3  ;;  %v11920_v17 = vand.u32 4294901760, %v154_v9 }
  0x97   :  { %v359_v20 = vsub.f32 %v11847_v55, %v358_v4  ;;  %v11918_v46 = vsub.f32 %v11772_v23, %v198_v27  ;;  %v353_v21 = vand.u32 4294901760, %v352_v5  ;;  %v11924_v51 = vsub.f32 %v153_v61, %v11888_v8 }
  0x98   :  { %15969 = vst [vmem:[#allocation32_spill] sm:$0xff] %v11907_v42  ;;  %v11926_v58 = vand.u32 4294901760, %v155_v18  ;;  %v11928_v60 = vpack.c.bf16 %v358_v4, %v351_v56  ;;  %v379_v62 = vand.u32 4294901760, %v11896_v14  ;;  %v286_v53 = vand.u32 4294901760, %v11907_v42 }
  0x99   :  { %9528 = vmatpush3.bf16.msra.mxu1 %v11787_v26  ;;  %9624 = vmatpush3.bf16.msra.mxu0 %v11787_v26  ;;  %15970 = vst [vmem:[#allocation33_spill] sm:$0xff] %v11924_v51  ;;  %v11933_v50 = vsub.f32 %v154_v9, %v11920_v17  ;;  %v9545_v23 = vpack.c.bf16 %v346_v30, %v339_v10  ;;  %v386_v61 = vand.u32 4294901760, %v11904_v33  ;;  %v268_v4 = vand.u32 4294901760, %v267_v16  ;;  %v156_v10 = vld [vmem:[#allocation15 + $0x38] sm:$0xff] }
  0x9a   :  { %9530 = vmatprep.subr.bf16.mxu1 %v11810_v37  ;;  %9626 = vmatprep.subr.bf16.mxu0 %v11810_v37  ;;  %v366_v27 = vsub.f32 %v11856_v59, %v365_v13  ;;  %v11942_v56 = vsub.f32 %v11774_v24, %v201_v28  ;;  %v360_v5 = vand.u32 4294901760, %v359_v20  ;;  %v373_v9 = vsub.f32 %v11864_v63, %v372_v32 }
  0x9b   :  { %15971 = vst [vmem:[#allocation34_spill] sm:$0xff] %v11933_v50  ;;  %v11948_v30 = vpack.c.bf16 %v372_v32, %v365_v13  ;;  %v277_v48 = vsub.f32 %v11884_v6, %v276_v47  ;;  %v296_v3 = vand.u32 4294901760, %v11924_v51  ;;  %v11953_v24 = vsub.f32 %v155_v18, %v11926_v58 }
  0x9c   :  { %v380_v28 = vsub.f32 %v11896_v14, %v379_v62  ;;  %v11959_v16 = vsub.f32 %v11791_v29, %v204_v35  ;;  %v287_v20 = vsub.f32 %v11907_v42, %v286_v53  ;;  %v306_v49 = vand.u32 4294901760, %v11933_v50 }
  0x9d   :  { %9532 = vmatpush3.bf16.msra.mxu1 %v11810_v37  ;;  %9628 = vmatpush3.bf16.msra.mxu0 %v11810_v37  ;;  %v387_v13 = vsub.f32 %v11904_v33, %v386_v61  ;;  %v400_v18 = vand.u32 4294901760, %v11942_v56  ;;  %v11970_v32 = vsub.f32 %v11794_v31, %v207_v38  ;;  %v11972_v1 = vand.u32 4294901760, %v156_v10 }
  0x9e   :  { %9534 = vmatprep.subr.bf16.mxu1 %v11838_v52  ;;  %9630 = vmatprep.subr.bf16.mxu0 %v11838_v52  ;;  %v9549_v29 = vpack.c.bf16 %v360_v5, %v353_v21  ;;  %v367_v35 = vand.u32 4294901760, %v366_v27  ;;  %v374_v42 = vand.u32 4294901760, %v373_v9  ;;  %v15972_v6 = vand.u32 4294901760, %v11918_v46 }
  0x9f   :  { %v316_v25 = vand.u32 4294901760, %v11953_v24  ;;  %v11981_v31 = vsub.f32 %v156_v10, %v11972_v1  ;;  %v15973_v38 = vand.u32 4294901760, %v11842_v54  ;;  %v381_v37 = vand.u32 4294901760, %v380_v28 }
  0xa0   :  { %v407_v21 = vand.u32 4294901760, %v11959_v16  ;;  %v288_v27 = vand.u32 4294901760, %v287_v20  ;;  %v307_v5 = vsub.f32 %v11933_v50, %v306_v49  ;;  %v414_v9 = vand.u32 4294901760, %v11970_v32 }
  0xa1   :  { %9536 = vmatpush3.bf16.msra.mxu1 %v11838_v52  ;;  %9632 = vmatpush3.bf16.msra.mxu0 %v11838_v52  ;;  %v297_v52 = vsub.f32 %v11924_v51, %v296_v3  ;;  %v326_v10 = vand.u32 4294901760, %v11981_v31  ;;  %v15974_v28 = vand.u32 4294901760, %v11813_v39  ;;  %v9653_v50 = vpack.c.bf16 %v386_v61, %v379_v62 }
  0xa2   :  { %9538 = vmatprep.subr.bf16.mxu1 %v11872_v0  ;;  %9634 = vmatprep.subr.bf16.mxu0 %v11872_v0 }
  0xa3   :  { %v11995_v20 = vsub.f32 %v11813_v39, %v15974_v28 }
  0xa5   :  { %9540 = vmatpush3.bf16.msra.mxu1 %v11872_v0  ;;  %9636 = vmatpush3.bf16.msra.mxu0 %v11872_v0  ;;  %v278_v0 = vand.u32 4294901760, %v277_v48  ;;  %v388_v48 = vand.u32 4294901760, %v387_v13  ;;  %v298_v13 = vand.u32 4294901760, %v297_v52  ;;  %v421_v52 = vand.u32 4294901760, %v11995_v20 }
  0xa6   :  { %9542 = vmatprep.subr.bf16.mxu1 %v11878_v2  ;;  %9638 = vmatprep.subr.bf16.mxu0 %v11878_v2 }
  0xa7   :  { %v9557_v39 = vpack.c.bf16 %v388_v48, %v381_v37 }
  0xa9   :  { %9544 = vmatpush3.bf16.msra.mxu1 %v11878_v2  ;;  %9640 = vmatpush3.bf16.msra.mxu0 %v11878_v2  ;;  %v394_v2 = vsub.f32 %v11918_v46, %v15972_v6  ;;  %v401_v6 = vsub.f32 %v11942_v56, %v400_v18 }
  0xaa   :  { %9546 = vmatprep.subr.bf16.mxu1 %v9545_v23  ;;  %9642 = vmatprep.subr.bf16.mxu0 %v11890_v11 }
  0xab   :  { %v395_v51 = vand.u32 4294901760, %v394_v2  ;;  %v402_v28 = vand.u32 4294901760, %v401_v6 }
  0xac   :  { %8442 = vmatmul.mubr.f32.vlgmr.msra.gmra.mrb[0].mxu1 %v268_v4  ;;  %8574 = vmatmul.mubr.f32.vlgmr.msra.gmra.mrb[0].mxu0 %v15973_v38  ;;  %v9553_v4 = vpack.c.bf16 %v374_v42, %v367_v35  ;;  %v317_v38 = vsub.f32 %v11953_v24, %v316_v25  ;;  %v308_v42 = vand.u32 4294901760, %v307_v5  ;;  %v327_v35 = vsub.f32 %v11981_v31, %v326_v10 }
  0xad   :  { %9548 = vmatpush3.bf16.msra.mxu1 %v9545_v23  ;;  %9644 = vmatpush3.bf16.msra.mxu0 %v11890_v11  ;;  %v15975_v23 = vand.u32 4294901760, %v11815_v40 }
  0xae   :  { %9550 = vmatprep.subr.bf16.mxu1 %v9549_v29  ;;  %9646 = vmatprep.subr.bf16.mxu0 %v11928_v60  ;;  %v318_v62 = vand.u32 4294901760, %v317_v38  ;;  %v328_v61 = vand.u32 4294901760, %v327_v35  ;;  %v9581_v35 = vpack.c.bf16 %v11847_v55, %v11823_v45  ;;  %v15980_v45 = vld [vmem:[#allocation26_spill] sm:$0xff]  ;;  %v15981_v55 = vld [vmem:[#allocation28_spill] sm:$0xff] }
  0xaf   :  { %v12000_v11 = vsub.f32 %v11815_v40, %v15975_v23  ;;  %8444 = vmatprep.mubr.f32.mxu1 %v278_v0  ;;  %8576 = vmatprep.mubr.f32.mxu0 %v276_v47  ;;  %v408_v40 = vsub.f32 %v11959_v16, %v407_v21  ;;  %v415_v0 = vsub.f32 %v11970_v32, %v414_v9 }
  0xb0   :  { %8445 = vmatmul.mubr.f32.gmra.mrb[2].mxu1 %v288_v27  ;;  %8577 = vmatmul.mubr.f32.gmra.mrb[2].mxu0 %v286_v53  ;;  %v15976_v53 = vand.u32 4294901760, %v11817_v41  ;;  %v15978_v27 = vand.u32 4294901760, %v11918_v46 }
  0xb1   :  { %9552 = vmatpush3.bf16.msra.mxu1 %v9549_v29  ;;  %9648 = vmatpush3.bf16.msra.mxu0 %v11928_v60  ;;  %v428_v2 = vand.u32 4294901760, %v12000_v11  ;;  %v15977_v60 = vand.u32 4294901760, %v11821_v44  ;;  %v9561_v29 = vpack.c.bf16 %v402_v28, %v395_v51  ;;  %v416_v48 = vand.u32 4294901760, %v415_v0 }
  0xb2   :  { %9554 = vmatprep.subr.bf16.mxu1 %v9553_v4  ;;  %9650 = vmatprep.subr.bf16.mxu0 %v11948_v30  ;;  %v12013_v47 = vsub.f32 %v11817_v41, %v15976_v53  ;;  %v9657_v5 = vpack.c.bf16 %v400_v18, %v15978_v27  ;;  %v409_v41 = vand.u32 4294901760, %v408_v40 }
  0xb3   :  { %v12018_v37 = vsub.f32 %v11821_v44, %v15977_v60  ;;  %8447 = vmatprep.mubr.f32.mxu1 %v298_v13  ;;  %8579 = vmatprep.mubr.f32.mxu0 %v296_v3  ;;  %v422_v44 = vsub.f32 %v11995_v20, %v421_v52  ;;  %v429_v6 = vsub.f32 %v12000_v11, %v428_v2 }
  0xb4   :  { %8448 = vmatmul.mubr.f32.gmra.mrb[4].mxu1 %v308_v42  ;;  %8580 = vmatmul.mubr.f32.gmra.mrb[4].mxu0 %v306_v49  ;;  %v435_v3 = vand.u32 4294901760, %v12013_v47  ;;  %v9565_v51 = vpack.c.bf16 %v416_v48, %v409_v41  ;;  %v9577_v42 = vpack.c.bf16 %v11802_v36, %v11797_v34  ;;  %v9585_v34 = vpack.c.bf16 %v11864_v63, %v11856_v59  ;;  %v15979_v36 = vld [vmem:[#allocation27_spill] sm:$0xff] }
  0xb5   :  { %9556 = vmatpush3.bf16.msra.mxu1 %v9553_v4  ;;  %9652 = vmatpush3.bf16.msra.mxu0 %v11948_v30  ;;  %v442_v49 = vand.u32 4294901760, %v12018_v37  ;;  %v9661_v30 = vpack.c.bf16 %v414_v9, %v407_v21  ;;  %v423_v18 = vand.u32 4294901760, %v422_v44  ;;  %v430_v4 = vand.u32 4294901760, %v429_v6 }
  0xb6   :  { %9558 = vmatprep.subr.bf16.mxu1 %v9557_v39  ;;  %9654 = vmatprep.subr.bf16.mxu0 %v9653_v50  ;;  %v436_v23 = vsub.f32 %v12013_v47, %v435_v3  ;;  %v9601_v59 = vpack.c.bf16 %v12000_v11, %v11995_v20  ;;  %v9605_v63 = vpack.c.bf16 %v12018_v37, %v12013_v47 }
  0xb7   :  { %8450 = vmatprep.mubr.f32.mxu1 %v318_v62  ;;  %8582 = vmatprep.mubr.f32.mxu0 %v316_v25  ;;  %v443_v13 = vsub.f32 %v12018_v37, %v442_v49  ;;  %v9569_v25 = vpack.c.bf16 %v430_v4, %v423_v18  ;;  %v9669_v38 = vpack.c.bf16 %v442_v49, %v435_v3  ;;  %v15989_v18 = vld [vmem:[#allocation25_spill] sm:$0xff] }
  0xb8   :  { %8451 = vmatmul.mubr.f32.gmra.mrb[6].mxu1 %v328_v61  ;;  %8583 = vmatmul.mubr.f32.gmra.mrb[6].mxu0 %v326_v10  ;;  %v437_v10 = vand.u32 4294901760, %v436_v23 }
  0xb9   :  { %9560 = vmatpush3.bf16.msra.mxu1 %v9557_v39  ;;  %9656 = vmatpush3.bf16.msra.mxu0 %v9653_v50  ;;  %v9665_v50 = vpack.c.bf16 %v428_v2, %v421_v52  ;;  %v444_v21 = vand.u32 4294901760, %v443_v13 }
  0xba   :  { %9562 = vmatprep.subr.bf16.mxu1 %v9561_v29  ;;  %9658 = vmatprep.subr.bf16.mxu0 %v9657_v5 }
  0xbb   :  { %8485 = vmatprep.mubr.f32.mxu1 %v11770_v22  ;;  %8617 = vmatprep.mubr.f32.mxu0 %v11770_v22  ;;  %v9573_v9 = vpack.c.bf16 %v444_v21, %v437_v10 }
  0xbd   :  { %9564 = vmatpush3.bf16.msra.mxu1 %v9561_v29  ;;  %9660 = vmatpush3.bf16.msra.mxu0 %v9657_v5 }
  0xbe   :  { %9566 = vmatprep.subr.bf16.mxu1 %v9565_v51  ;;  %9662 = vmatprep.subr.bf16.mxu0 %v9661_v30 }
  0xc1   :  { %9568 = vmatpush3.bf16.msra.mxu1 %v9565_v51  ;;  %9664 = vmatpush3.bf16.msra.mxu0 %v9661_v30 }
  0xc2   :  { %9570 = vmatprep.subr.bf16.mxu1 %v9569_v25  ;;  %9666 = vmatprep.subr.bf16.mxu0 %v9665_v50 }
  0xc5   :  { %9572 = vmatpush3.bf16.msra.mxu1 %v9569_v25  ;;  %9668 = vmatpush3.bf16.msra.mxu0 %v9665_v50 }
  0xc6   :  { %9574 = vmatprep.subr.bf16.mxu1 %v9573_v9  ;;  %9670 = vmatprep.subr.bf16.mxu0 %v9669_v38 }
  0xc9   :  { %9576 = vmatpush3.bf16.msra.mxu1 %v9573_v9  ;;  %9672 = vmatpush3.bf16.msra.mxu0 %v9669_v38 }
  0xca   :  { %9578 = vmatprep.subr.bf16.mxu1 %v9577_v42  ;;  %9674 = vmatprep.subr.bf16.mxu0 %v11744_v12 }
  0xcc   :  { %8486 = vmatmul.mubr.f32.vlgmr.msra.gmra.mrb[0].mxu1 %v11819_v43  ;;  %8618 = vmatmul.mubr.f32.vlgmr.msra.gmra.mrb[0].mxu0 %v11819_v43 }
  0xcd   :  { %9580 = vmatpush3.bf16.msra.mxu1 %v9577_v42  ;;  %9676 = vmatpush3.bf16.msra.mxu0 %v11744_v12  ;;  %v9589_v12 = vpack.c.bf16 %v11904_v33, %v11896_v14  ;;  %v15984_v14 = vld [vmem:[#allocation31_spill] sm:$0xff]  ;;  %v15985_v33 = vld [vmem:[#allocation32_spill] sm:$0xff] }
  0xce   :  { %9582 = vmatprep.subr.bf16.mxu1 %v9581_v35  ;;  %9678 = vmatprep.subr.bf16.mxu0 %v11750_v15 }
  0xcf   :  { %8488 = vmatprep.mubr.f32.mxu1 %v11850_v57  ;;  %8620 = vmatprep.mubr.f32.mxu0 %v11850_v57 }
  0xd0   :  { %8489 = vmatmul.mubr.f32.gmra.mrb[2].mxu1 %v11886_v7  ;;  %8621 = vmatmul.mubr.f32.gmra.mrb[2].mxu0 %v11886_v7 }
  0xd1   :  { %9584 = vmatpush3.bf16.msra.mxu1 %v9581_v35  ;;  %9680 = vmatpush3.bf16.msra.mxu0 %v11750_v15  ;;  %v9593_v15 = vpack.c.bf16 %v11942_v56, %v11918_v46  ;;  %v15986_v46 = vld [vmem:[#allocation33_spill] sm:$0xff]  ;;  %v15987_v56 = vld [vmem:[#allocation34_spill] sm:$0xff] }
  0xd2   :  { %9586 = vmatprep.subr.bf16.mxu1 %v9585_v34  ;;  %9682 = vmatprep.subr.bf16.mxu0 %v11766_v19 }
  0xd3   :  { %8491 = vmatprep.mubr.f32.mxu1 %v11888_v8  ;;  %8623 = vmatprep.mubr.f32.mxu0 %v11888_v8 }
  0xd4   :  { %8492 = vmatmul.mubr.f32.gmra.mrb[4].mxu1 %v11920_v17  ;;  %8624 = vmatmul.mubr.f32.gmra.mrb[4].mxu0 %v11920_v17 }
  0xd5   :  { %9588 = vmatpush3.bf16.msra.mxu1 %v9585_v34  ;;  %9684 = vmatpush3.bf16.msra.mxu0 %v11766_v19  ;;  %v9597_v19 = vpack.c.bf16 %v11970_v32, %v11959_v16 }
  0xd6   :  { %9590 = vmatprep.subr.bf16.mxu1 %v9589_v12  ;;  %9686 = vmatprep.subr.bf16.mxu0 %v11787_v26 }
  0xd7   :  { %8494 = vmatprep.mubr.f32.mxu1 %v11926_v58  ;;  %8626 = vmatprep.mubr.f32.mxu0 %v11926_v58 }
  0xd8   :  { %8495 = vmatmul.mubr.f32.gmra.mrb[6].mxu1 %v11972_v1  ;;  %8627 = vmatmul.mubr.f32.gmra.mrb[6].mxu0 %v11972_v1 }
  0xd9   :  { %9592 = vmatpush3.bf16.msra.mxu1 %v9589_v12  ;;  %9688 = vmatpush3.bf16.msra.mxu0 %v11787_v26  ;;  %v15982_v26 = vld [vmem:[#allocation29_spill] sm:$0xff] }
  0xda   :  { %9594 = vmatprep.subr.bf16.mxu1 %v9593_v15  ;;  %9690 = vmatprep.subr.bf16.mxu0 %v15979_v36 }
  0xdb   :  { %8529 = vmatprep.mubr.f32.mxu1 %v15980_v45  ;;  %8661 = vmatprep.mubr.f32.mxu0 %v11770_v22  ;;  %v15983_v22 = vld [vmem:[#allocation30_spill] sm:$0xff] }
  0xdd   :  { %9596 = vmatpush3.bf16.msra.mxu1 %v9593_v15  ;;  %9692 = vmatpush3.bf16.msra.mxu0 %v15979_v36 }
  0xde   :  { %9598 = vmatprep.subr.bf16.mxu1 %v9597_v19  ;;  %9694 = vmatprep.subr.bf16.mxu0 %v15981_v55 }
  0xe1   :  { %9600 = vmatpush3.bf16.msra.mxu1 %v9597_v19  ;;  %9696 = vmatpush3.bf16.msra.mxu0 %v15981_v55 }
  0xe2   :  { %9602 = vmatprep.subr.bf16.mxu1 %v9601_v59  ;;  %9698 = vmatprep.subr.bf16.mxu0 %v15982_v26 }
  0xe5   :  { %9604 = vmatpush3.bf16.msra.mxu1 %v9601_v59  ;;  %9700 = vmatpush3.bf16.msra.mxu0 %v15982_v26 }
  0xe6   :  { %9606 = vmatprep.subr.bf16.mxu1 %v9605_v63  ;;  %9702 = vmatprep.subr.bf16.mxu0 %v15983_v22 }
  0xe9   :  { %9608 = vmatpush3.bf16.msra.mxu1 %v9605_v63  ;;  %9704 = vmatpush3.bf16.msra.mxu0 %v15983_v22 }
  0xec   :  { %8530 = vmatmul.mubr.f32.vlgmr.msra.gmra.mrb[0].mxu1 %v11842_v54  ;;  %8662 = vmatmul.mubr.f32.vlgmr.msra.gmra.mrb[0].mxu0 %v11819_v43  ;;  %v15490_v43 = vlaneseq }
  0xed   :  { %8532 = vmatprep.mubr.f32.mxu1 %v15984_v14  ;;  %8664 = vmatprep.mubr.f32.mxu0 %v11850_v57  ;;  %v11510_v57 = vmov 0.0  }
  0xee   :  { %v12094_v54 = vand.u32 127, %v15490_v43 }
  0xf0   :  { %8533 = vmatmul.mubr.f32.gmra.mrb[2].mxu1 %v15985_v33  ;;  %8665 = vmatmul.mubr.f32.gmra.mrb[2].mxu0 %v11886_v7  ;;  %15988 = vst [vmem:[#allocation27_spill] sm:$0xff] %v12094_v54  ;;  %vm1140_vm0 = vcmp.eq.s32.totalorder %v12094_v54, 0 }
  0xf1   :  { %8535 = vmatprep.mubr.f32.mxu1 %v15986_v46  ;;  %8667 = vmatprep.mubr.f32.mxu0 %v11888_v8  ;;  %v7639_v7 = vsel %vm1140_vm0, 1.0, %v11510_v57  }
  0xf4   :  { %8536 = vmatmul.mubr.f32.gmra.mrb[4].mxu1 %v15987_v56  ;;  %8668 = vmatmul.mubr.f32.gmra.mrb[4].mxu0 %v11920_v17  ;;  %v7638_v17 = vld [vmem:[%s15455_s3] ss:$0 sm:$0xff]  ;;  %s12105_s3 = smov 0  }
  0xf5   :  { %8538 = vmatprep.mubr.f32.mxu1 %v11953_v24  ;;  %8670 = vmatprep.mubr.f32.mxu0 %v11926_v58 }
  0xf8   :  { %8539 = vmatmul.mubr.f32.gmra.mrb[6].mxu1 %v11981_v31  ;;  %8671 = vmatmul.mubr.f32.gmra.mrb[6].mxu0 %v11972_v1 }
 0x1bf   :  { %v8531_v8 = vpop.f32.mrb[0].mxu1  ;;  %v8663_v16 = vpop.f32.mrb[0].mxu0 }
 0x1c0   :  { %v11049_v24 = vadd.f32 %v8663_v16, %v8531_v8  ;;  %v627_v58 = vpop.f32.mrb[1].mxu1  ;;  %v1069_v32 = vpop.f32.mrb[1].mxu0 }
 0x1c1   :  { %v11050_v31 = vadd.f32 %v1069_v32, %v627_v58 }
 0x1c2   :  { %v1123_v20 = vadd.f32 %v11049_v24, %v7638_v17 }
 0x1c3   :  { %v1122_v1 = vadd.f32 %v11050_v31, %v7638_v17  ;;  %v8534_v11 = vpop.f32.mrb[2].mxu1  ;;  %v8666_v39 = vpop.f32.mrb[2].mxu0 }
 0x1c4   :  { %1131 = vst [vmem:[#allocation2 + $0x8] sm:$0xff] %v1123_v20  ;;  %v11051_v28 = vadd.f32 %v8666_v39, %v8534_v11  ;;  %v641_v40 = vpop.f32.mrb[3].mxu1  ;;  %v1081_v0 = vpop.f32.mrb[3].mxu0 }
 0x1c5   :  { %1130 = vst [vmem:[#allocation2] sm:$0xff] %v1122_v1  ;;  %v11052_v52 = vadd.f32 %v1081_v0, %v641_v40 }
 0x1c6   :  { %v1125_v2 = vadd.f32 %v11051_v28, %v7638_v17 }
 0x1c7   :  { %v1124_v53 = vadd.f32 %v11052_v52, %v7638_v17  ;;  %v8537_v47 = vpop.f32.mrb[4].mxu1  ;;  %v8669_v60 = vpop.f32.mrb[4].mxu0 }
 0x1c8   :  { %1133 = vst [vmem:[#allocation2 + $0x18] sm:$0xff] %v1125_v2  ;;  %v11053_v37 = vadd.f32 %v8669_v60, %v8537_v47  ;;  %v655_v62 = vpop.f32.mrb[5].mxu1  ;;  %v1093_v61 = vpop.f32.mrb[5].mxu0 }
 0x1c9   :  { %1132 = vst [vmem:[#allocation2 + $0x10] sm:$0xff] %v1124_v53  ;;  %v11054_v29 = vadd.f32 %v1093_v61, %v655_v62 }
 0x1ca   :  { %v1127_v27 = vadd.f32 %v11053_v37, %v7638_v17 }
 0x1cb   :  { %v1126_v5 = vadd.f32 %v11054_v29, %v7638_v17  ;;  %v8540_v41 = vpop.f32.mrb[6].mxu1  ;;  %v8672_v48 = vpop.f32.mrb[6].mxu0 }
 0x1cc   :  { %1135 = vst [vmem:[#allocation2 + $0x28] sm:$0xff] %v1127_v27  ;;  %v11055_v44 = vadd.f32 %v8672_v48, %v8540_v41  ;;  %v669_v6 = vpop.f32.mrb[7].mxu1  ;;  %v1105_v3 = vpop.f32.mrb[7].mxu0 }
 0x1cd   :  { %1134 = vst [vmem:[#allocation2 + $0x20] sm:$0xff] %v1126_v5  ;;  %v11056_v49 = vadd.f32 %v1105_v3, %v669_v6 }
 0x1ce   :  { %v1129_v51 = vadd.f32 %v11055_v44, %v7638_v17 }
 0x1cf   :  { %v1128_v30 = vadd.f32 %v11056_v49, %v7638_v17 }
 0x1d0   :  { %1137 = vst [vmem:[#allocation2 + $0x38] sm:$0xff] %v1129_v51 }
 0x1d1   :  { %1136 = vst [vmem:[#allocation2 + $0x30] sm:$0xff] %v1128_v30 }
 0x1d2 LB: > { %15990 = vst [vmem:[#allocation35_spill] sm:$0xff] %v11493_v18  ;;  %v1809_v4 = vld [vmem:[#allocation7] sm:$0xff]  ;;  %v1810_v23 = vld [vmem:[#allocation7 + $0x8] sm:$0xff]  ;;  %v1811_v13 = vld [vmem:[#allocation7 + $0x10] sm:$0xff]  ;;  %v15505_v25 = vmov 0.0|0.0   ;;  %vm11512_vm1 = vmmov 0   ;;  %s11497_s3 = sphi %s12105_s3, %s1149_s3   ;;  %v11493_v18 = vphi %v15989_v18, %v16819_v18   ;;  %v11489_v7 = vphi %v7639_v7, %v7646_v7  }
 0x1d3   : > { %9849 = vmatprep.subr.bf16.mxu1 %v15505_v25  ;;  %v1826_v50 = vand.u32 4294901760, %v1809_v4  ;;  %v1829_v10 = vand.u32 4294901760, %v1810_v23  ;;  %v1812_v21 = vld [vmem:[#allocation7 + $0x18] sm:$0xff]  ;;  %v1832_v9 = vand.u32 4294901760, %v1811_v13  ;;  %v15491_v38 = vmov 0.0   ;;  %v1813_v35 = vld [vmem:[#allocation7 + $0x20] sm:$0xff]  ;;  %9705 = vmatprep.subr.bf16.mxu0 %v15505_v25 }
 0x1d4   : > { %8915 = vmatprep.mubr.msk.f32.mxu1 %vm11512_vm1, %v15491_v38  ;;  %v1835_v42 = vand.u32 4294901760, %v1812_v21  ;;  %v1814_v34 = vld [vmem:[#allocation7 + $0x28] sm:$0xff]  ;;  %8705 = vmatprep.mubr.msk.f32.mxu0 %vm11512_vm1, %v15491_v38  ;;  %v1838_v36 = vand.u32 4294901760, %v1813_v35  ;;  %v1815_v45 = vld [vmem:[#allocation7 + $0x30] sm:$0xff]  ;;  %v1816_v55 = vld [vmem:[#allocation7 + $0x38] sm:$0xff]  ;;  %v12141_v24 = vand.u32 4294901760, %v11493_v18 }
 0x1d5   : > { %v12122_v12 = vpack.c.bf16 %v1829_v10, %v1826_v50  ;;  %v1841_v19 = vand.u32 4294901760, %v1814_v34  ;;  %v1844_v26 = vand.u32 4294901760, %v1815_v45  ;;  %v1847_v63 = vand.u32 4294901760, %v1816_v55  ;;  %v1817_v22 = vld [vmem:[#allocation7 + $0x40] sm:$0xff]  ;;  %v1818_v14 = vld [vmem:[#allocation7 + $0x48] sm:$0xff]  ;;  %v1819_v16 = vld [vmem:[#allocation7 + $0x50] sm:$0xff] }
 0x1d6   : > { %v12125_v15 = vpack.c.bf16 %v1835_v42, %v1832_v9  ;;  %v12132_v33 = vsub.f32 %v1809_v4, %v1826_v50  ;;  %v12134_v46 = vsub.f32 %v1810_v23, %v1829_v10  ;;  %v1850_v57 = vand.u32 4294901760, %v1817_v22  ;;  %v1820_v17 = vld [vmem:[#allocation7 + $0x58] sm:$0xff]  ;;  %15991 = vst [vmem:[#allocation36_spill] sm:$0xff] %v12141_v24  ;;  %v1821_v58 = vld [vmem:[#allocation7 + $0x60] sm:$0xff]  ;;  %v1822_v20 = vld [vmem:[#allocation7 + $0x68] sm:$0xff]  ;;  %s7645_s29 = sshll.u32 %s11497_s3, 3 }
 0x1d7   : > { %9851 = vmatpush3.bf16.msra.mxu1 %v12122_v12  ;;  %v12129_v59 = vpack.c.bf16 %v1841_v19, %v1838_v36  ;;  %v12137_v56 = vpack.c.bf16 %v1847_v63, %v1844_v26  ;;  %v1853_v8 = vand.u32 4294901760, %v1818_v14  ;;  %v12143_v32 = vsub.f32 %v1811_v13, %v1832_v9  ;;  %v1823_v1 = vld [vmem:[#allocation7 + $0x70] sm:$0xff]  ;;  %v1824_v11 = vld [vmem:[#allocation7 + $0x78] sm:$0xff]  ;;  %s7563_s17 = scalar_lea.vmem %s15467_s15, %s7645_s29  ;;  %s7521_s23 = scalar_lea.vmem [#allocation16], %s7645_s29 }
 0x1d8   : > { %9852 = vmatprep.subr.bf16.mxu1 %v15505_v25  ;;  %v1856_v31 = vand.u32 4294901760, %v1819_v16  ;;  %v1859_v28 = vand.u32 4294901760, %v1820_v17  ;;  %v1919_v40 = vand.u32 4294901760, %v12132_v33  ;;  %v1926_v0 = vand.u32 4294901760, %v12134_v46  ;;  %s1149_s3 = sadd.s32 1, %s11497_s3  }
 0x1d9   : > { %v12146_v39 = vpack.c.bf16 %v1853_v8, %v1850_v57  ;;  %v12150_v52 = vsub.f32 %v1812_v21, %v1835_v42  ;;  %v12152_v2 = vsub.f32 %v1813_v35, %v1838_v36  ;;  %v12154_v53 = vsub.f32 %v1814_v34, %v1841_v19  ;;  %p1146_p0 = scmp.ge.s32.totalorder %s1149_s3, 50  }
 0x1da   : > { %v12159_v47 = vsub.f32 %v11493_v18, %v12141_v24  ;;  %v1862_v60 = vand.u32 4294901760, %v1821_v58  ;;  %v1865_v37 = vand.u32 4294901760, %v1822_v20  ;;  %v1868_v62 = vand.u32 4294901760, %v1823_v1  ;;  %s11516_s27 = smov (%p1146_p0), [#allocation16]   ;;  %s11517_s1 = smov (%p1146_p0), [#allocation17]  }
 0x1db   : > { %9854 = vmatpush3.bf16.msra.mxu1 %v12125_v15  ;;  %v1871_v61 = vand.u32 4294901760, %v1824_v11  ;;  %v12161_v29 = vsub.f32 %v1815_v45, %v1844_v26  ;;  %v12163_v27 = vsub.f32 %v1816_v55, %v1847_v63  ;;  %v12165_v5 = vsub.f32 %v1817_v22, %v1850_v57  ;;  %s7590_s8 = sshll.u32 (%p1146_p0), %s11516_s27, 4  ;;  %s7605_s24 = sshll.u32 (%p1146_p0), %s11517_s1, 4  ;;  %s7591_s8 = int_to_ptr.vmem [resolvable:$true] %s7590_s8  ;;  %s7606_s24 = int_to_ptr.vmem [resolvable:$true] %s7605_s24 }
 0x1dc   : > { %9855 = vmatprep.subr.bf16.mxu1 %v15505_v25  ;;  %15992 = vst [vmem:[#allocation37_spill] sm:$0xff] %v12159_v47  ;;  %v1933_v41 = vand.u32 4294901760, %v12143_v32  ;;  %v12169_v48 = vsub.f32 %v1818_v14, %v1853_v8  ;;  %v12171_v44 = vpack.c.bf16 %v1859_v28, %v1856_v31  ;;  %v1920_v6 = vsub.f32 %v12132_v33, %v1919_v40  ;;  %s11419_s21 = scalar_lea.vmem (%p1146_p0), %s7591_s8, 6400  ;;  %p11424_p2 = scmp.lt.s32.totalorder (%p1146_p0), %s7591_s8, %s7591_s8 }
 0x1dd   : > { %v1927_v3 = vsub.f32 %v12134_v46, %v1926_v0  ;;  %v12176_v49 = vsub.f32 %v1819_v16, %v1856_v31  ;;  %v12178_v51 = vsub.f32 %v1820_v17, %v1859_v28  ;;  %v12180_v30 = vsub.f32 %v1821_v58, %v1862_v60  ;;  %p11420_p1 = scmp.ne.s32.totalorder (%p1146_p0), %s7591_s8, %s11419_s21  ;;  %p11425_p3 = scmp.lt.s32.totalorder (%p1146_p0), %s11419_s21, %s11419_s21 }
 0x1de   : > { %v12183_v4 = vand.u32 4294901760, %v12159_v47  ;;  %v12185_v23 = vpack.c.bf16 %v1865_v37, %v1862_v60  ;;  %v12187_v13 = vsub.f32 %v1822_v20, %v1865_v37  ;;  %v12189_v50 = vpack.c.bf16 %v1871_v61, %v1868_v62 }
 0x1df   : > { %9857 = vmatpush3.bf16.msra.mxu1 %v12129_v59  ;;  %v12191_v10 = vsub.f32 %v1823_v1, %v1868_v62  ;;  %v12193_v21 = vsub.f32 %v1824_v11, %v1871_v61  ;;  %v1934_v9 = vsub.f32 %v12143_v32, %v1933_v41  ;;  %v1940_v42 = vand.u32 4294901760, %v12150_v52  ;;  %p11426_p4 = por (%p1146_p0), %p11425_p3, %p11424_p2 }
 0x1e0   : > { %9858 = vmatprep.subr.bf16.mxu1 %v15505_v25  ;;  %15993 = vst [vmem:[#allocation38_spill] sm:$0xff] %v12183_v4  ;;  %v1947_v35 = vand.u32 4294901760, %v12152_v2  ;;  %v1921_v34 = vand.u32 4294901760, %v1920_v6  ;;  %v1928_v36 = vand.u32 4294901760, %v1927_v3  ;;  %v1954_v19 = vand.u32 4294901760, %v12154_v53 }
 0x1e1   : > { %v1961_v45 = vand.u32 4294901760, %v12161_v29  ;;  %v1909_v55 = vsub.f32 %v12159_v47, %v12183_v4  ;;  %v1968_v26 = vand.u32 4294901760, %v12163_v27  ;;  %v1975_v63 = vand.u32 4294901760, %v12165_v5  ;;  %p11427_p5 = pnand (%p1146_p0), %p11426_p4, %p11420_p1 }
 0x1e2   : > { %v1982_v22 = vand.u32 4294901760, %v12169_v48  ;;  %v1989_v14 = vand.u32 4294901760, %v12176_v49  ;;  %v1996_v57 = vand.u32 4294901760, %v12178_v51  ;;  %v2003_v8 = vand.u32 4294901760, %v12180_v30 }
 0x1e3   : > { %9860 = vmatpush3.bf16.msra.mxu1 %v12137_v56  ;;  %v2010_v16 = vand.u32 4294901760, %v12187_v13  ;;  %v2017_v17 = vand.u32 4294901760, %v12191_v10  ;;  %v2024_v58 = vand.u32 4294901760, %v12193_v21  ;;  %v12213_v31 = vpack.c.bf16 %v1926_v0, %v1919_v40 }
 0x1e4   : > { %9861 = vmatprep.subr.bf16.mxu1 %v15505_v25  ;;  %v12215_v20 = vpack.c.bf16 %v1940_v42, %v1933_v41  ;;  %v1941_v1 = vsub.f32 %v12150_v52, %v1940_v42  ;;  %v12219_v11 = vpack.c.bf16 %v1954_v19, %v1947_v35  ;;  %v12221_v28 = vpack.c.bf16 %v1968_v26, %v1961_v45 }
 0x1e5   : > { %v12223_v60 = vpack.c.bf16 %v1982_v22, %v1975_v63  ;;  %v12226_v37 = vpack.c.bf16 %v1996_v57, %v1989_v14  ;;  %v12228_v62 = vpack.c.bf16 %v2010_v16, %v2003_v8  ;;  %v12230_v40 = vpack.c.bf16 %v2024_v58, %v2017_v17 }
 0x1e6   : > { %v12232_v0 = vand.u32 4294901760, %v1909_v55  ;;  %v1935_v61 = vand.u32 4294901760, %v1934_v9  ;;  %v9874_v41 = vpack.c.bf16 %v1928_v36, %v1921_v34  ;;  %v1942_v6 = vand.u32 4294901760, %v1941_v1 }
 0x1e7   : > { %9863 = vmatpush3.bf16.msra.mxu1 %v12146_v39  ;;  %v1948_v3 = vsub.f32 %v12152_v2, %v1947_v35  ;;  %v1955_v42 = vsub.f32 %v12154_v53, %v1954_v19  ;;  %v1962_v43 = vsub.f32 %v12161_v29, %v1961_v45  ;;  %v1969_v9 = vsub.f32 %v12163_v27, %v1968_v26 }
 0x1e8   : > { %9864 = vmatprep.subr.bf16.mxu1 %v15505_v25  ;;  %15994 = vst [vmem:[#allocation39_spill] sm:$0xff] %v12232_v0  ;;  %v9877_v38 = vpack.c.bf16 %v1942_v6, %v1935_v61  ;;  %v15995_v54 = vmov 0.0   ;;  %v1976_v35 = vsub.f32 %v12165_v5, %v1975_v63  ;;  %v1983_v1 = vsub.f32 %v12169_v48, %v1982_v22 }
 0x1e9   : > { %v1949_v18 = vand.u32 4294901760, %v1948_v3  ;;  %v1956_v55 = vand.u32 4294901760, %v1955_v42  ;;  %v1963_v36 = vand.u32 4294901760, %v1962_v43  ;;  %v1970_v19 = vand.u32 4294901760, %v1969_v9 }
 0x1ea   : > { %v1977_v45 = vand.u32 4294901760, %v1976_v35  ;;  %v1990_v26 = vsub.f32 %v12176_v49, %v1989_v14  ;;  %v1997_v6 = vsub.f32 %v12178_v51, %v1996_v57  ;;  %v2004_v63 = vsub.f32 %v12180_v30, %v2003_v8 }
 0x1eb   : > { %9866 = vmatpush3.bf16.msra.mxu1 %v12171_v44  ;;  %v9880_v34 = vpack.c.bf16 %v1956_v55, %v1949_v18  ;;  %v9883_v61 = vpack.c.bf16 %v1970_v19, %v1963_v36  ;;  %v2011_v22 = vsub.f32 %v12187_v13, %v2010_v16  ;;  %v2018_v14 = vsub.f32 %v12191_v10, %v2017_v17  ;;  %v2519_v36 = vld [vmem:[#allocation2 + $0x18] sm:$0xff] }
 0x1ec   : > { %9867 = vmatprep.subr.bf16.mxu1 %v15505_v25  ;;  %v1991_v43 = vand.u32 4294901760, %v1990_v26  ;;  %v2005_v3 = vand.u32 4294901760, %v2004_v63  ;;  %v2025_v57 = vsub.f32 %v12193_v21, %v2024_v58  ;;  %v9901_v17 = vpack.c.bf16 %v12150_v52, %v12143_v32 }
 0x1ed   : > { %v2012_v55 = vand.u32 4294901760, %v2011_v22  ;;  %v2019_v9 = vand.u32 4294901760, %v2018_v14  ;;  %v9904_v58 = vpack.c.bf16 %v12154_v53, %v12152_v2  ;;  %v9913_v32 = vpack.c.bf16 %v12178_v51, %v12176_v49 }
 0x1ee   : > { %v2026_v35 = vand.u32 4294901760, %v2025_v57  ;;  %v9916_v52 = vpack.c.bf16 %v12187_v13, %v12180_v30  ;;  %v9919_v2 = vpack.c.bf16 %v12193_v21, %v12191_v10  ;;  %vm2669_vm2 = vcmask 1041409  }
 0x1ef   : > { %9869 = vmatpush3.bf16.msra.mxu1 %v12185_v23  ;;  %v9892_v8 = vpack.c.bf16 %v2012_v55, %v2005_v3  ;;  %vm2671_vm3 = vcmask 1042434   ;;  %vm2673_vm4 = vcmask 1043459   ;;  %vm2675_vm5 = vcmask 1044484  }
 0x1f0   : > { %9870 = vmatprep.subr.bf16.mxu1 %v15505_v25  ;;  %v9895_v16 = vpack.c.bf16 %v2026_v35, %v2019_v9  ;;  %v7640_v9 = vld [vmem:[%s15456_s4] ss:$0 sm:$0xff]  ;;  %vm2677_vm6 = vcmask 1045509   ;;  %vm2679_vm7 = vcmask 1046534   ;;  %vm2681_vm8 = vcmask 1047559  }
 0x1f1   : > { %vm2684_vm9 = vcmask 64512  }
 0x1f3   : > { %9872 = vmatpush3.bf16.msra.mxu1 %v12189_v50 }
 0x1f4   : > { %9873 = vmatprep.subr.bf16.mxu1 %v15505_v25 }
 0x1f6   : > { %8916 = vmatmul.mubr.f32.vlgmr.msra.gmra.mrb[0].mxu1 %v12232_v0 }
 0x1f7   : > { %9875 = vmatpush3.bf16.msra.mxu1 %v9874_v41  ;;  %8950 = vmatprep.mubr.msk.f32.mxu1 %vm11512_vm1, %v15995_v54  ;;  %v1984_v41 = vand.u32 4294901760, %v1983_v1 }
 0x1f8   : > { %9876 = vmatprep.subr.bf16.mxu1 %v15505_v25 }
 0x1f9   : > { %v9886_v18 = vpack.c.bf16 %v1984_v41, %v1977_v45 }
 0x1fb   : > { %9878 = vmatpush3.bf16.msra.mxu1 %v9877_v38  ;;  %v1998_v38 = vand.u32 4294901760, %v1997_v6 }
 0x1fc   : > { %9879 = vmatprep.subr.bf16.mxu1 %v15505_v25 }
 0x1fd   : > { %v9889_v42 = vpack.c.bf16 %v1998_v38, %v1991_v43  ;;  %v2521_v38 = vld [vmem:[#allocation2 + $0x28] sm:$0xff] }
 0x1ff   : > { %9881 = vmatpush3.bf16.msra.mxu1 %v9880_v34  ;;  %v9898_v34 = vpack.c.bf16 %v12134_v46, %v12132_v33  ;;  %v9907_v33 = vpack.c.bf16 %v12163_v27, %v12161_v29  ;;  %v9910_v46 = vpack.c.bf16 %v12169_v48, %v12165_v5 }
 0x200   : > { %9882 = vmatprep.subr.bf16.mxu1 %v15505_v25 }
 0x203   : > { %9884 = vmatpush3.bf16.msra.mxu1 %v9883_v61  ;;  %v2520_v61 = vld [vmem:[#allocation2 + $0x20] sm:$0xff] }
 0x204   : > { %9885 = vmatprep.subr.bf16.mxu1 %v15505_v25 }
 0x207   : > { %9887 = vmatpush3.bf16.msra.mxu1 %v9886_v18 }
 0x208   : > { %9888 = vmatprep.subr.bf16.mxu1 %v15505_v25 }
 0x20b   : > { %9890 = vmatpush3.bf16.msra.mxu1 %v9889_v42  ;;  %v2522_v42 = vld [vmem:[#allocation2 + $0x30] sm:$0xff] }
 0x20c   : > { %9891 = vmatprep.subr.bf16.mxu1 %v15505_v25 }
 0x20f   : > { %9893 = vmatpush3.bf16.msra.mxu1 %v9892_v8  ;;  %v2523_v8 = vld [vmem:[#allocation2 + $0x38] sm:$0xff] }
 0x210   : > { %9894 = vmatprep.subr.bf16.mxu1 %v15505_v25 }
 0x213   : > { %9896 = vmatpush3.bf16.msra.mxu1 %v9895_v16 }
 0x214   : > { %9897 = vmatprep.subr.bf16.mxu1 %v15505_v25 }
 0x216   : > { %8951 = vmatmul.mubr.f32.vlgmr.msra.gmra.mrb[0].mxu1 %v12141_v24 }
 0x217   : > { %9899 = vmatpush3.bf16.msra.mxu1 %v9898_v34  ;;  %8985 = vmatprep.mubr.msk.f32.mxu1 %vm11512_vm1, %v15995_v54 }
 0x218   : > { %9900 = vmatprep.subr.bf16.mxu1 %v15505_v25 }
 0x21b   : > { %9902 = vmatpush3.bf16.msra.mxu1 %v9901_v17 }
 0x21c   : > { %9903 = vmatprep.subr.bf16.mxu1 %v15505_v25 }
 0x21f   : > { %9905 = vmatpush3.bf16.msra.mxu1 %v9904_v58 }
 0x220   : > { %9906 = vmatprep.subr.bf16.mxu1 %v15505_v25 }
 0x223   : > { %9908 = vmatpush3.bf16.msra.mxu1 %v9907_v33 }
 0x224   : > { %9909 = vmatprep.subr.bf16.mxu1 %v15505_v25 }
 0x227   : > { %9911 = vmatpush3.bf16.msra.mxu1 %v9910_v46 }
 0x228   : > { %9912 = vmatprep.subr.bf16.mxu1 %v15505_v25 }
 0x22b   : > { %9914 = vmatpush3.bf16.msra.mxu1 %v9913_v32 }
 0x22c   : > { %9915 = vmatprep.subr.bf16.mxu1 %v15505_v25 }
 0x22f   : > { %9917 = vmatpush3.bf16.msra.mxu1 %v9916_v52 }
 0x230   : > { %9918 = vmatprep.subr.bf16.mxu1 %v15505_v25 }
 0x233   : > { %9920 = vmatpush3.bf16.msra.mxu1 %v9919_v2 }
 0x234   : > { %9921 = vmatprep.subr.bf16.mxu1 %v15505_v25 }
 0x236   : > { %8986 = vmatmul.mubr.f32.vlgmr.msra.gmra.mrb[0].mxu1 %v12159_v47 }
 0x237   : > { %9923 = vmatpush3.bf16.msra.mxu1 %v12122_v12  ;;  %9020 = vmatprep.mubr.msk.f32.mxu1 %vm11512_vm1, %v15995_v54 }
 0x238   : > { %9924 = vmatprep.subr.bf16.mxu1 %v15505_v25 }
 0x23b   : > { %9926 = vmatpush3.bf16.msra.mxu1 %v12125_v15 }
 0x23c   : > { %9927 = vmatprep.subr.bf16.mxu1 %v15505_v25 }
 0x23f   : > { %9929 = vmatpush3.bf16.msra.mxu1 %v12129_v59 }
 0x240   : > { %9930 = vmatprep.subr.bf16.mxu1 %v15505_v25 }
 0x243   : > { %9932 = vmatpush3.bf16.msra.mxu1 %v12137_v56 }
 0x244   : > { %9933 = vmatprep.subr.bf16.mxu1 %v15505_v25 }
 0x247   : > { %9935 = vmatpush3.bf16.msra.mxu1 %v12146_v39 }
 0x248   : > { %9936 = vmatprep.subr.bf16.mxu1 %v15505_v25 }
 0x24b   : > { %9938 = vmatpush3.bf16.msra.mxu1 %v12171_v44 }
 0x24c   : > { %9939 = vmatprep.subr.bf16.mxu1 %v15505_v25 }
 0x24f   : > { %9941 = vmatpush3.bf16.msra.mxu1 %v12185_v23 }
 0x250   : > { %9942 = vmatprep.subr.bf16.mxu1 %v15505_v25 }
 0x253   : > { %9944 = vmatpush3.bf16.msra.mxu1 %v12189_v50 }
 0x254   : > { %9945 = vmatprep.subr.bf16.mxu1 %v15505_v25 }
 0x256   : > { %9021 = vmatmul.mubr.f32.vlgmr.msra.gmra.mrb[0].mxu1 %v12183_v4 }
 0x257   : > { %9947 = vmatpush3.bf16.msra.mxu1 %v12213_v31  ;;  %9055 = vmatprep.mubr.msk.f32.mxu1 %vm11512_vm1, %v15995_v54  ;;  %v2516_v31 = vld [vmem:[#allocation2] sm:$0xff] }
 0x258   : > { %9948 = vmatprep.subr.bf16.mxu1 %v15505_v25 }
 0x25b   : > { %9950 = vmatpush3.bf16.msra.mxu1 %v12215_v20 }
 0x25c   : > { %9951 = vmatprep.subr.bf16.mxu1 %v15505_v25 }
 0x25f   : > { %9953 = vmatpush3.bf16.msra.mxu1 %v12219_v11 }
 0x260   : > { %9954 = vmatprep.subr.bf16.mxu1 %v15505_v25 }
 0x263   : > { %9956 = vmatpush3.bf16.msra.mxu1 %v12221_v28 }
 0x264   : > { %9957 = vmatprep.subr.bf16.mxu1 %v15505_v25 }
 0x267   : > { %9959 = vmatpush3.bf16.msra.mxu1 %v12223_v60  ;;  %v2517_v60 = vld [vmem:[#allocation2 + $0x8] sm:$0xff] }
 0x268   : > { %9960 = vmatprep.subr.bf16.mxu1 %v15505_v25 }
 0x26b   : > { %9962 = vmatpush3.bf16.msra.mxu1 %v12226_v37  ;;  %v2518_v37 = vld [vmem:[#allocation2 + $0x10] sm:$0xff] }
 0x26c   : > { %9963 = vmatprep.subr.bf16.mxu1 %v15505_v25 }
 0x26f   : > { %9965 = vmatpush3.bf16.msra.mxu1 %v12228_v62 }
 0x270   : > { %9966 = vmatprep.subr.bf16.mxu1 %v15505_v25 }
 0x273   : > { %9968 = vmatpush3.bf16.msra.mxu1 %v12230_v40 }
 0x274   : > { %9969 = vmatprep.subr.bf16.mxu1 %v15505_v25 }
 0x276   : > { %9056 = vmatmul.mubr.f32.vlgmr.msra.gmra.mrb[0].mxu1 %v12141_v24 }
 0x277   : > { %9971 = vmatpush3.bf16.msra.mxu1 %v12122_v12  ;;  %9090 = vmatprep.mubr.msk.f32.mxu1 %vm11512_vm1, %v15995_v54  ;;  %v11514_v12 = vmov 0  }
 0x278   : > { %9972 = vmatprep.subr.bf16.mxu1 %v15505_v25  ;;  %11200 = vset.pattern.permute.xlu0 %v11514_v12 }
 0x279   : > { %11201 = vset.pattern.permute.xlu1 %v11514_v12 }
 0x27b   : > { %9974 = vmatpush3.bf16.msra.mxu1 %v12125_v15  ;;  %v11515_v15 = vmov 1966171168  }
 0x27c   : > { %9975 = vmatprep.subr.bf16.mxu1 %v15505_v25 }
 0x27f   : > { %9977 = vmatpush3.bf16.msra.mxu1 %v12129_v59  ;;  %v2469_v59 = vunpack.c.l.s4 %v11515_v15 }
 0x280   : > { %9978 = vmatprep.subr.bf16.mxu1 %v15505_v25 }
 0x283   : > { %9980 = vmatpush3.bf16.msra.mxu1 %v12137_v56  ;;  %v2470_v56 = vunpack.c.0.s8 %v2469_v59 }
 0x284   : > { %9981 = vmatprep.subr.bf16.mxu1 %v15505_v25 }
 0x287   : > { %9983 = vmatpush3.bf16.msra.mxu1 %v12146_v39  ;;  %v15996_v39 = vlaneseq }
 0x288   : > { %9984 = vmatprep.subr.bf16.mxu1 %v15505_v25 }
 0x289   : > { %v12344_v53 = vshrl.u32 %v15996_v39, 7 }
 0x28b   : > { %9986 = vmatpush3.bf16.msra.mxu1 %v12171_v44  ;;  %v2473_v29 = vsub.s32 %v2470_v56, %v12344_v53  ;;  %v12348_v49 = vsub.s32 0, %v12344_v53 }
 0x28c   : > { %9987 = vmatprep.subr.bf16.mxu1 %v15505_v25 }
 0x28d   : > { %15997 = vst [vmem:[#allocation40_spill] sm:$0xff] %v12348_v49 }
 0x28f   : > { %9989 = vmatpush3.bf16.msra.mxu1 %v12185_v23 }
 0x290   : > { %9990 = vmatprep.subr.bf16.mxu1 %v15505_v25 }
 0x293   : > { %9992 = vmatpush3.bf16.msra.mxu1 %v12189_v50 }
 0x296   : > { %9091 = vmatmul.mubr.f32.vlgmr.msra.gmra.mrb[0].mxu1 %v12141_v24 }
 0x369   : > { %v2462_v27 = vpop.f32.mrb[0].mxu1 }
 0x36a   : > { %v2467_v5 = vcombine.high %v2462_v27, %v2462_v27  ;;  %v2474_v48 = vrot.slane %v2462_v27, %v2473_v29  ;;  %v9092_v44 = vpop.f32.mrb[1].mxu1 }
 0x36b   : > { %v1153_v44 = vld [vmem:[#allocation4 + $0x8] sm:$0xff] }
 0x36c   : > { %v2481_v51 = vrot.slane %v2467_v5, %v2473_v29  ;;  %v2482_v30 = vcombine.high %v2474_v48, %v2474_v48  ;;  %v2490_v23 = vrot.slane %v2474_v48, %v2473_v29  ;;  %v7641_v5 = vld [vmem:[#allocation3] ss:$0 sm:$0xff]  ;;  %v1152_v48 = vld [vmem:[#allocation4] sm:$0xff] }
 0x36e   : > { %v2483_v13 = vcombine.high %v2481_v51, %v2481_v51  ;;  %v2497_v50 = vrot.slane %v2481_v51, %v2473_v29  ;;  %v2504_v10 = vrot.slane %v2482_v30, %v2473_v29  ;;  %v2512_v21 = vcombine.high %v2490_v23, %v2490_v23  ;;  %v1154_v51 = vld [vmem:[#allocation4 + $0x10] sm:$0xff] }
 0x36f   : > { %v2527_v20 = vrot.slane %v2490_v23, %v12348_v49  ;;  %v1169_v30 = vand.u32 4294901760, %v1152_v48  ;;  %v1172_v23 = vand.u32 4294901760, %v1153_v44 }
 0x370   : > { %v2511_v11 = vrot.slane %v2483_v13, %v2473_v29  ;;  %v2514_v28 = vcombine.high %v2504_v10, %v2504_v10  ;;  %v2531_v62 = vrot.slane %v2504_v10, %v12348_v49  ;;  %v2513_v40 = vcombine.high %v2497_v50, %v2497_v50  ;;  %v1155_v13 = vld [vmem:[#allocation4 + $0x18] sm:$0xff] }
 0x371   : > { %v2535_v19 = vrot.slane %v2512_v21, %v12348_v49  ;;  %v2543_v1 = vrot.slane %v2497_v50, %v12348_v49  ;;  %v2564_v45 = vadd.f32 %v2527_v20, %v2516_v31  ;;  %v1175_v50 = vand.u32 4294901760, %v1154_v51  ;;  %v1156_v21 = vld [vmem:[#allocation4 + $0x20] sm:$0xff]  ;;  %v1157_v31 = vld [vmem:[#allocation4 + $0x28] sm:$0xff] }
 0x372   : > { %v2539_v41 = vrot.slane %v2514_v28, %v12348_v49  ;;  %v2565_v26 = vadd.f32 %v2531_v62, %v2517_v60  ;;  %v2515_v63 = vcombine.high %v2511_v11, %v2511_v11  ;;  %v2547_v18 = vrot.slane %v2511_v11, %v12348_v49  ;;  %v1159_v62 = vld [vmem:[#allocation4 + $0x38] sm:$0xff] }
 0x373   : > { %v2566_v6 = vadd.f32 %v2535_v19, %v2518_v37  ;;  %11202 = vtanh.f32 %v2564_v45  ;;  %v2551_v22 = vrot.slane %v2513_v40, %v12348_v49  ;;  %v2568_v3 = vadd.f32 %v2543_v1, %v2520_v61  ;;  %v1158_v37 = vld [vmem:[#allocation4 + $0x30] sm:$0xff]  ;;  %v1160_v1 = vld [vmem:[#allocation4 + $0x40] sm:$0xff]  ;;  %v1161_v45 = vld [vmem:[#allocation4 + $0x48] sm:$0xff] }
 0x374   : > { %v2567_v43 = vadd.f32 %v2539_v41, %v2519_v36  ;;  %11204 = vtanh.f32 %v2565_v26  ;;  %v2555_v55 = vrot.slane %v2515_v63, %v12348_v49  ;;  %v2569_v14 = vadd.f32 %v2547_v18, %v2521_v38  ;;  %v1163_v63 = vld [vmem:[#allocation4 + $0x58] sm:$0xff] }
 0x375   : > { %11206 = vtanh.f32 %v2566_v6  ;;  %v2570_v57 = vadd.f32 %v2551_v22, %v2522_v42  ;;  %v1178_v10 = vand.u32 4294901760, %v1155_v13  ;;  %v12361_v20 = vpack.c.bf16 %v1172_v23, %v1169_v30  ;;  %v1162_v6 = vld [vmem:[#allocation4 + $0x50] sm:$0xff] }
 0x376   : > { %11208 = vtanh.f32 %v2567_v43  ;;  %v2571_v35 = vadd.f32 %v2555_v55, %v2523_v8  ;;  %v1181_v28 = vand.u32 4294901760, %v1156_v21  ;;  %v1184_v60 = vand.u32 4294901760, %v1157_v31  ;;  %v12385_v55 = vld [vmem:[#allocation4 + $0x60] sm:$0xff] }
 0x377   : > { %11210 = vtanh.f32 %v2568_v3  ;;  %9707 = vmatpush3.bf16.msra.mxu0 %v12361_v20  ;;  %v12364_v11 = vpack.c.bf16 %v1178_v10, %v1175_v50  ;;  %v1187_v36 = vand.u32 4294901760, %v1158_v37  ;;  %v1190_v19 = vand.u32 4294901760, %v1159_v62 }
 0x378   : > { %11212 = vtanh.f32 %v2569_v14  ;;  %9708 = vmatprep.subr.bf16.mxu0 %v15505_v25  ;;  %v12368_v40 = vpack.c.bf16 %v1184_v60, %v1181_v28  ;;  %v1193_v41 = vand.u32 4294901760, %v1160_v1  ;;  %v1196_v26 = vand.u32 4294901760, %v1161_v45  ;;  %v12388_v14 = vld [vmem:[#allocation4 + $0x68] sm:$0xff] }
 0x379   : > { %11214 = vtanh.f32 %v2570_v57  ;;  %v12372_v61 = vpack.c.bf16 %v1190_v19, %v1187_v36  ;;  %v12375_v18 = vsub.f32 %v1152_v48, %v1169_v30  ;;  %v12378_v43 = vand.u32 4294901760, %v11489_v7 }
 0x37a   : > { %11216 = vtanh.f32 %v2571_v35  ;;  %v12380_v38 = vsub.f32 %v1153_v44, %v1172_v23  ;;  %v12383_v22 = vpack.c.bf16 %v1196_v26, %v1193_v41  ;;  %v1199_v3 = vand.u32 4294901760, %v1162_v6 }
 0x37b   : > { %9710 = vmatpush3.bf16.msra.mxu0 %v12364_v11  ;;  %v1202_v42 = vand.u32 4294901760, %v1163_v63  ;;  %v12390_v57 = vsub.f32 %v1154_v51, %v1175_v50  ;;  %v12392_v8 = vsub.f32 %v1155_v13, %v1178_v10  ;;  %v12397_v35 = vsub.f32 %v11489_v7, %v12378_v43 }
 0x37c   : > { %9711 = vmatprep.subr.bf16.mxu0 %v15505_v25  ;;  %v12412_v7 = vsub.f32 %v1157_v31, %v1184_v60  ;;  %v12450_v31 = vsub.f32 %v1161_v45, %v1196_v26  ;;  %v12462_v45 = vsub.f32 %v1162_v6, %v1199_v3 }
 0x37d   : > { %v11203_v16 = vpop.eup %11202 }
 0x37e   : > { %v2587_v34 = vmul.f32 %v11203_v16, %v7640_v9  ;;  %v11205_v17 = vpop.eup %11204  ;;  %v12400_v16 = vpack.c.bf16 %v1202_v42, %v1199_v3  ;;  %v1297_v10 = vand.u32 4294901760, %v12412_v7  ;;  %v15502_v6 = vand.u32 4294901760, %v12450_v31 }
 0x37f   : > { %v11207_v58 = vpop.eup %11206  ;;  %v2588_v32 = vmul.f32 %v11205_v17, %v7640_v9  ;;  %9713 = vmatpush3.bf16.msra.mxu0 %v12368_v40  ;;  %v12403_v17 = vld [vmem:[#allocation4 + $0x70] sm:$0xff] }
 0x380   : > { %2595 = vadd.xlane.f32.xlu0 %v2587_v34  ;;  %v2589_v33 = vmul.f32 %v11207_v58, %v7640_v9  ;;  %v11209_v46 = vpop.eup %11208  ;;  %9714 = vmatprep.subr.bf16.mxu0 %v15505_v25  ;;  %v1208_v34 = vand.u32 4294901760, %v12388_v14  ;;  %v12405_v58 = vld [vmem:[#allocation4 + $0x78] sm:$0xff] }
 0x381   : > { %v11211_v52 = vpop.eup %11210  ;;  %v2590_v2 = vmul.f32 %v11209_v46, %v7640_v9  ;;  %v1269_v46 = vand.u32 4294901760, %v12380_v38 }
 0x382   : > { %2599 = vadd.xlane.f32.xlu1 %v2589_v33  ;;  %v11213_v12 = vpop.eup %11212  ;;  %v2591_v15 = vmul.f32 %v11211_v52, %v7640_v9  ;;  %v1262_v33 = vand.u32 4294901760, %v12375_v18  ;;  %v1211_v52 = vand.u32 4294901760, %v12403_v17  ;;  %v12481_v3 = vsub.f32 %v12388_v14, %v1208_v34 }
 0x383   : > { %v11215_v59 = vpop.eup %11214  ;;  %v2592_v56 = vmul.f32 %v11213_v12, %v7640_v9  ;;  %9716 = vmatpush3.bf16.msra.mxu0 %v12372_v61  ;;  %v1251_v12 = vand.u32 4294901760, %v12397_v35 }
 0x384   : > { %2597 = vadd.xlane.f32.xlu0 %v2588_v32  ;;  %v11217_v39 = vpop.eup %11216  ;;  %v2593_v29 = vmul.f32 %v11215_v59, %v7640_v9  ;;  %9717 = vmatprep.subr.bf16.mxu0 %v15505_v25  ;;  %v12410_v32 = vsub.f32 %v1156_v21, %v1181_v28  ;;  %v12448_v21 = vsub.f32 %v1160_v1, %v1193_v41 }
 0x385   : > { %v2594_v27 = vmul.f32 %v11217_v39, %v7640_v9  ;;  %v1205_v9 = vand.u32 4294901760, %v12385_v55  ;;  %v1270_v39 = vsub.f32 %v12380_v38, %v1269_v46  ;;  %v1252_v44 = vsub.f32 %v12397_v35, %v1251_v12 }
 0x386   : > { %2601 = vadd.xlane.f32.xlu1 %v2590_v2  ;;  %v1214_v2 = vand.u32 4294901760, %v12405_v58  ;;  %v1290_v30 = vand.u32 4294901760, %v12410_v32  ;;  %v12464_v41 = vsub.f32 %v1163_v63, %v1202_v42  ;;  %v12493_v14 = vsub.f32 %v12403_v17, %v1211_v52 }
 0x387   : > { %9719 = vmatpush3.bf16.msra.mxu0 %v12383_v22  ;;  %v12419_v59 = vpack.c.bf16 %v1208_v34, %v1205_v9  ;;  %v1271_v13 = vand.u32 4294901760, %v1270_v39  ;;  %v1253_v28 = vand.u32 4294901760, %v1252_v44  ;;  %v15503_v44 = vand.u32 4294901760, %v12448_v21 }
 0x388   : > { %2603 = vadd.xlane.f32.xlu0 %v2591_v15  ;;  %9720 = vmatprep.subr.bf16.mxu0 %v15505_v25  ;;  %v1276_v15 = vand.u32 4294901760, %v12390_v57  ;;  %v12433_v48 = vpack.c.bf16 %v1214_v2, %v1211_v52  ;;  %v12478_v63 = vsub.f32 %v12385_v55, %v1205_v9  ;;  %v15500_v55 = vand.u32 4294901760, %v12464_v41 }
 0x389   : > { %v12496_v9 = vsub.f32 %v12405_v58, %v1214_v2  ;;  %v15498_v17 = vand.u32 4294901760, %v12481_v3  ;;  %v15497_v2 = vand.u32 4294901760, %v12493_v14 }
 0x38a   : > { %2605 = vadd.xlane.f32.xlu1 %v2592_v56  ;;  %v1263_v56 = vsub.f32 %v12375_v18, %v1262_v33  ;;  %v1277_v51 = vsub.f32 %v12390_v57, %v1276_v15 }
 0x38b   : > { %9722 = vmatpush3.bf16.msra.mxu0 %v12400_v16 }
 0x38c   : > { %2607 = vadd.xlane.f32.xlu0 %v2593_v29  ;;  %v1283_v29 = vand.u32 4294901760, %v12392_v8  ;;  %9723 = vmatprep.subr.bf16.mxu0 %v15505_v25  ;;  %v1264_v23 = vand.u32 4294901760, %v1263_v56  ;;  %v1278_v60 = vand.u32 4294901760, %v1277_v51  ;;  %v1298_v56 = vsub.f32 %v12412_v7, %v1297_v10 }
 0x38e   : > { %2609 = vadd.xlane.f32.xlu1 %v2594_v27  ;;  %v12429_v27 = vsub.f32 %v1158_v37, %v1187_v36  ;;  %v1284_v50 = vsub.f32 %v12392_v8, %v1283_v29  ;;  %v1291_v37 = vsub.f32 %v12410_v32, %v1290_v30  ;;  %v9730_v36 = vpack.c.bf16 %v1271_v13, %v1264_v23 }
 0x38f   : > { %9725 = vmatpush3.bf16.msra.mxu0 %v12419_v59  ;;  %v1299_v23 = vand.u32 4294901760, %v1298_v56  ;;  %v15499_v56 = vand.u32 4294901760, %v12478_v63 }
 0x390   : > { %9726 = vmatprep.subr.bf16.mxu0 %v15505_v25  ;;  %v1292_v26 = vand.u32 4294901760, %v1291_v37 }
 0x391   : > { %v1347_v52 = vsub.f32 %v12478_v63, %v15499_v56 }
 0x393   : > { %9728 = vmatpush3.bf16.msra.mxu0 %v12433_v48 }
 0x394   : > { %9729 = vmatprep.subr.bf16.mxu0 %v15505_v25 }
 0x396   : > { %8706 = vmatmul.mubr.f32.vlgmr.msra.gmra.mrb[0].mxu0 %v1253_v28  ;;  %v15501_v28 = vand.u32 4294901760, %v12462_v45 }
 0x397   : > { %9731 = vmatpush3.bf16.msra.mxu0 %v9730_v36  ;;  %8740 = vmatprep.mubr.msk.f32.mxu0 %vm11512_vm1, %v15995_v54  ;;  %v1326_v36 = vsub.f32 %v12450_v31, %v15502_v6 }
 0x398   : > { %9732 = vmatprep.subr.bf16.mxu0 %v15505_v25 }
 0x3a2   : > { %2618 = vperm.xlu0 %11200, %v7641_v5   ;;  %v12431_v5 = vsub.f32 %v1159_v62, %v1190_v19  ;;  %v1304_v62 = vand.u32 4294901760, %v12429_v27  ;;  %v1285_v19 = vand.u32 4294901760, %v1284_v50  ;;  %v1319_v50 = vsub.f32 %v12448_v21, %v15503_v44 }
 0x3a4   : > { %v15504_v1 = vand.u32 4294901760, %v12431_v5  ;;  %v1305_v39 = vsub.f32 %v12429_v27, %v1304_v62  ;;  %v9733_v51 = vpack.c.bf16 %v1285_v19, %v1278_v60  ;;  %v9736_v60 = vpack.c.bf16 %v1299_v23, %v1292_v26 }
 0x3a5   : > { %v1320_v34 = vand.u32 4294901760, %v1319_v50  ;;  %v1333_v19 = vsub.f32 %v12462_v45, %v15501_v28  ;;  %v15496_v50 = vand.u32 4294901760, %v12496_v9 }
 0x3a6   : > { %v1312_v13 = vsub.f32 %v12431_v5, %v15504_v1  ;;  %v1306_v42 = vand.u32 4294901760, %v1305_v39  ;;  %9734 = vmatpush3.bf16.msra.mxu0 %v9733_v51  ;;  %v1327_v39 = vand.u32 4294901760, %v1326_v36  ;;  %v1340_v51 = vsub.f32 %v12464_v41, %v15500_v55 }
 0x3a7   : > { %9735 = vmatprep.subr.bf16.mxu0 %v15505_v25  ;;  %v1334_v58 = vand.u32 4294901760, %v1333_v19  ;;  %v1361_v19 = vsub.f32 %v12493_v14, %v15497_v2 }
 0x3a8   : > { %v1313_v37 = vand.u32 4294901760, %v1312_v13  ;;  %v9742_v23 = vpack.c.bf16 %v1327_v39, %v1320_v34  ;;  %v1341_v13 = vand.u32 4294901760, %v1340_v51  ;;  %v1368_v34 = vsub.f32 %v12496_v9, %v15496_v50 }
 0x3a9   : > { %v1362_v39 = vand.u32 4294901760, %v1361_v19  ;;  %v15998_v19 = vld [vmem:[#allocation27_spill] sm:$0xff] }
 0x3aa   : > { %9737 = vmatpush3.bf16.msra.mxu0 %v9736_v60  ;;  %v9739_v26 = vpack.c.bf16 %v1313_v37, %v1306_v42  ;;  %v1354_v42 = vsub.f32 %v12481_v3, %v15498_v17  ;;  %v1348_v60 = vand.u32 4294901760, %v1347_v52  ;;  %v9745_v37 = vpack.c.bf16 %v1341_v13, %v1334_v58 }
 0x3ab   : > { %9738 = vmatprep.subr.bf16.mxu0 %v15505_v25  ;;  %v1369_v51 = vand.u32 4294901760, %v1368_v34  ;;  %v12531_v34 = vsub.s32 %v15998_v19, %v12344_v53  ;;  %v3035_v19 = vld [vmem:[#allocation10 + $0xf0] sm:$0xff] }
 0x3ac   : > { %v1355_v36 = vand.u32 4294901760, %v1354_v42 }
 0x3ad   : > { %v9751_v52 = vpack.c.bf16 %v1369_v51, %v1362_v39  ;;  %15999 = vst [vmem:[#allocation41_spill] sm:$0xff] %v12531_v34 }
 0x3ae   : > { %9740 = vmatpush3.bf16.msra.mxu0 %v9739_v26  ;;  %v9748_v26 = vpack.c.bf16 %v1355_v36, %v1348_v60 }
 0x3af   : > { %9741 = vmatprep.subr.bf16.mxu0 %v15505_v25 }
 0x3b2   : > { %9743 = vmatpush3.bf16.msra.mxu0 %v9742_v23 }
 0x3b3   : > { %9744 = vmatprep.subr.bf16.mxu0 %v15505_v25 }
 0x3b6   : > { %9746 = vmatpush3.bf16.msra.mxu0 %v9745_v37 }
 0x3b7   : > { %9747 = vmatprep.subr.bf16.mxu0 %v15505_v25 }
 0x3ba   : > { %9749 = vmatpush3.bf16.msra.mxu0 %v9748_v26 }
 0x3bb   : > { %9750 = vmatprep.subr.bf16.mxu0 %v15505_v25 }
 0x3be   : > { %9752 = vmatpush3.bf16.msra.mxu0 %v9751_v52 }
 0x3bf   : > { %9753 = vmatprep.subr.bf16.mxu0 %v15505_v25 }
 0x3c1   : > { %8741 = vmatmul.mubr.f32.vlgmr.msra.gmra.mrb[0].mxu0 %v12378_v43 }
 0x3c2   : > { %8775 = vmatprep.mubr.msk.f32.mxu0 %vm11512_vm1, %v15995_v54 }
 0x40d   : > { %v2596_v58 = vpop.xlane.xlu0 %2595 }
 0x40f   : > { %v2600_v13 = vpop.xlane.xlu1 %2599 }
 0x411   : > { %v2598_v23 = vpop.xlane.xlu0 %2597 }
 0x413   : > { %v2602_v60 = vpop.xlane.xlu1 %2601 }
 0x415   : > { %v2604_v42 = vpop.xlane.xlu0 %2603 }
 0x417   : > { %v2606_v36 = vpop.xlane.xlu1 %2605 }
 0x419   : > { %v2608_v37 = vpop.xlane.xlu0 %2607 }
 0x421   : > { %v2619_v26 = vpop.permute.xlu0 %2618 }
 0x422   : > { %v12533_v39 = vadd.f32 %v2619_v26, %v2596_v58  ;;  %v12535_v51 = vadd.f32 %v2619_v26, %v2598_v23  ;;  %v12537_v52 = vadd.f32 %v2619_v26, %v2600_v13  ;;  %v12539_v50 = vadd.f32 %v2619_v26, %v2602_v60  ;;  %v2610_v23 = vpop.xlane.xlu1 %2609 }
 0x423   : > { %v12541_v2 = vadd.f32 %v2619_v26, %v2604_v42  ;;  %v12543_v17 = vadd.f32 %v2619_v26, %v2606_v36  ;;  %v12551_v13 = vadd.f32 %v2619_v26, %v2608_v37  ;;  %v12553_v60 = vadd.f32 %v2619_v26, %v2610_v23 }
 0x424   : > { %v2640_v56 = vrot.slane %v12533_v39, %v12531_v34  ;;  %v2644_v55 = vrot.slane %v12535_v51, %v12531_v34  ;;  %v2648_v58 = vrot.slane %v12537_v52, %v12531_v34  ;;  %v2652_v42 = vrot.slane %v12539_v50, %v12531_v34 }
 0x425   : > { %v2656_v28 = vrot.slane %v12541_v2, %v12531_v34  ;;  %v2660_v44 = vrot.slane %v12543_v17, %v12531_v34  ;;  %v2664_v26 = vrot.slane %v12551_v13, %v12531_v34 }
 0x426   : > { %v2670_v36 = vsel %vm2669_vm2, %v2644_v55, %v2640_v56  ;;  %v2668_v55 = vrot.slane %v12553_v60, %v12531_v34 }
 0x427   : > { %v2672_v6 = vsel %vm2671_vm3, %v2648_v58, %v2670_v36 }
 0x428   : > { %v2674_v37 = vsel %vm2673_vm4, %v2652_v42, %v2672_v6  ;;  %v9754_v6 = vpack.c.bf16 %v12380_v38, %v12375_v18  ;;  %v9763_v42 = vpack.c.bf16 %v12431_v5, %v12429_v27  ;;  %v9808_v18 = vpack.c.bf16 %v1297_v10, %v1290_v30 }
 0x429   : > { %v2676_v23 = vsel %vm2675_vm5, %v2656_v28, %v2674_v37  ;;  %v9757_v28 = vpack.c.bf16 %v12392_v8, %v12390_v57  ;;  %v9769_v37 = vpack.c.bf16 %v12464_v41, %v12462_v45  ;;  %v16000_v38 = vand.u32 4294901760, %v12431_v5 }
 0x42a   : > { %v2678_v56 = vsel %vm2677_vm6, %v2660_v44, %v2676_v23  ;;  %9755 = vmatpush3.bf16.msra.mxu0 %v9754_v6  ;;  %v9760_v44 = vpack.c.bf16 %v12412_v7, %v12410_v32  ;;  %v9775_v23 = vpack.c.bf16 %v12496_v9, %v12493_v14  ;;  %v16001_v8 = vand.u32 4294901760, %v12448_v21 }
 0x42b   : > { %v2680_v58 = vsel %vm2679_vm7, %v2664_v26, %v2678_v56  ;;  %9756 = vmatprep.subr.bf16.mxu0 %v15505_v25  ;;  %v9772_v26 = vpack.c.bf16 %v12481_v3, %v12478_v63  ;;  %v9805_v56 = vpack.c.bf16 %v1283_v29, %v1276_v15  ;;  %v9811_v57 = vpack.c.bf16 %v16000_v38, %v1304_v62 }
 0x42c   : > { %v2682_v36 = vsel %vm2681_vm8, %v2668_v55, %v2680_v58  ;;  %v9802_v55 = vpack.c.bf16 %v1269_v46, %v1262_v33  ;;  %v16003_v46 = vand.u32 4294901760, %v12462_v45  ;;  %v16004_v32 = vand.u32 4294901760, %v12464_v41 }
 0x42d   : > { %v2685_v1 = vsel %vm2684_vm9, %v2682_v36, -inf  ;;  %v16006_v15 = vand.u32 4294901760, %v12481_v3  ;;  %v16007_v27 = vand.u32 4294901760, %v12493_v14  ;;  %v16008_v5 = vand.u32 4294901760, %v12496_v9 }
 0x42e   : > { %2686 = vmax.xlane.f32.xlu1 %v2685_v1  ;;  %9758 = vmatpush3.bf16.msra.mxu0 %v9757_v28  ;;  %v9766_v1 = vpack.c.bf16 %v12450_v31, %v12448_v21  ;;  %v9817_v7 = vpack.c.bf16 %v16004_v32, %v16003_v46 }
 0x42f   : > { %9759 = vmatprep.subr.bf16.mxu0 %v15505_v25  ;;  %v9823_v30 = vpack.c.bf16 %v16008_v5, %v16007_v27 }
 0x432   : > { %9761 = vmatpush3.bf16.msra.mxu0 %v9760_v44 }
 0x433   : > { %9762 = vmatprep.subr.bf16.mxu0 %v15505_v25 }
 0x436   : > { %9764 = vmatpush3.bf16.msra.mxu0 %v9763_v42 }
 0x437   : > { %9765 = vmatprep.subr.bf16.mxu0 %v15505_v25 }
 0x43a   : > { %9767 = vmatpush3.bf16.msra.mxu0 %v9766_v1 }
 0x43b   : > { %9768 = vmatprep.subr.bf16.mxu0 %v15505_v25 }
 0x43e   : > { %9770 = vmatpush3.bf16.msra.mxu0 %v9769_v37 }
 0x43f   : > { %9771 = vmatprep.subr.bf16.mxu0 %v15505_v25 }
 0x442   : > { %9773 = vmatpush3.bf16.msra.mxu0 %v9772_v26 }
 0x443   : > { %9774 = vmatprep.subr.bf16.mxu0 %v15505_v25 }
 0x446   : > { %9776 = vmatpush3.bf16.msra.mxu0 %v9775_v23 }
 0x447   : > { %9777 = vmatprep.subr.bf16.mxu0 %v15505_v25 }
 0x449   : > { %8776 = vmatmul.mubr.f32.vlgmr.msra.gmra.mrb[0].mxu0 %v12397_v35  ;;  %v16002_v35 = vand.u32 4294901760, %v12450_v31 }
 0x44a   : > { %9779 = vmatpush3.bf16.msra.mxu0 %v12361_v20  ;;  %8810 = vmatprep.mubr.msk.f32.mxu0 %vm11512_vm1, %v15995_v54 }
 0x44b   : > { %9780 = vmatprep.subr.bf16.mxu0 %v15505_v25  ;;  %v9814_v33 = vpack.c.bf16 %v16002_v35, %v16001_v8 }
 0x44e   : > { %9782 = vmatpush3.bf16.msra.mxu0 %v12364_v11 }
 0x44f   : > { %9783 = vmatprep.subr.bf16.mxu0 %v15505_v25 }
 0x452   : > { %9785 = vmatpush3.bf16.msra.mxu0 %v12368_v40 }
 0x453   : > { %9786 = vmatprep.subr.bf16.mxu0 %v15505_v25 }
 0x456   : > { %9788 = vmatpush3.bf16.msra.mxu0 %v12372_v61 }
 0x457   : > { %9789 = vmatprep.subr.bf16.mxu0 %v15505_v25 }
 0x45a   : > { %9791 = vmatpush3.bf16.msra.mxu0 %v12383_v22 }
 0x45b   : > { %9792 = vmatprep.subr.bf16.mxu0 %v15505_v25 }
 0x45e   : > { %9794 = vmatpush3.bf16.msra.mxu0 %v12400_v16 }
 0x45f   : > { %9795 = vmatprep.subr.bf16.mxu0 %v15505_v25 }
 0x462   : > { %9797 = vmatpush3.bf16.msra.mxu0 %v12419_v59 }
 0x463   : > { %9798 = vmatprep.subr.bf16.mxu0 %v15505_v25 }
 0x466   : > { %9800 = vmatpush3.bf16.msra.mxu0 %v12433_v48 }
 0x467   : > { %9801 = vmatprep.subr.bf16.mxu0 %v15505_v25 }
 0x469   : > { %8811 = vmatmul.mubr.f32.vlgmr.msra.gmra.mrb[0].mxu0 %v1251_v12  ;;  %v16005_v12 = vand.u32 4294901760, %v12478_v63  ;;  %v2707_v63 = vsub.s32 4, %v12344_v53 }
 0x46a   : > { %9803 = vmatpush3.bf16.msra.mxu0 %v9802_v55  ;;  %8845 = vmatprep.mubr.msk.f32.mxu0 %vm11512_vm1, %v15995_v54 }
 0x46b   : > { %9804 = vmatprep.subr.bf16.mxu0 %v15505_v25  ;;  %v9820_v29 = vpack.c.bf16 %v16006_v15, %v16005_v12 }
 0x46e   : > { %9806 = vmatpush3.bf16.msra.mxu0 %v9805_v56 }
 0x46f   : > { %9807 = vmatprep.subr.bf16.mxu0 %v15505_v25 }
 0x472   : > { %9809 = vmatpush3.bf16.msra.mxu0 %v9808_v18 }
 0x473   : > { %9810 = vmatprep.subr.bf16.mxu0 %v15505_v25 }
 0x476   : > { %9812 = vmatpush3.bf16.msra.mxu0 %v9811_v57 }
 0x477   : > { %9813 = vmatprep.subr.bf16.mxu0 %v15505_v25 }
 0x47a   : > { %9815 = vmatpush3.bf16.msra.mxu0 %v9814_v33 }
 0x47b   : > { %9816 = vmatprep.subr.bf16.mxu0 %v15505_v25 }
 0x47e   : > { %9818 = vmatpush3.bf16.msra.mxu0 %v9817_v7 }
 0x47f   : > { %9819 = vmatprep.subr.bf16.mxu0 %v15505_v25 }
 0x482   : > { %9821 = vmatpush3.bf16.msra.mxu0 %v9820_v29 }
 0x483   : > { %9822 = vmatprep.subr.bf16.mxu0 %v15505_v25 }
 0x486   : > { %9824 = vmatpush3.bf16.msra.mxu0 %v9823_v30 }
 0x487   : > { %9825 = vmatprep.subr.bf16.mxu0 %v15505_v25 }
 0x489   : > { %8846 = vmatmul.mubr.f32.vlgmr.msra.gmra.mrb[0].mxu0 %v12378_v43 }
 0x48a   : > { %9827 = vmatpush3.bf16.msra.mxu0 %v12361_v20  ;;  %8880 = vmatprep.mubr.msk.f32.mxu0 %vm11512_vm1, %v15995_v54  ;;  %v12674_v20 = vsub.s32 1, %v12344_v53 }
 0x48b   : > { %9828 = vmatprep.subr.bf16.mxu0 %v15505_v25 }
 0x48c   : > { %16009 = vst [vmem:[#allocation42_spill] sm:$0xff] %v12674_v20 }
 0x48e   : > { %9830 = vmatpush3.bf16.msra.mxu0 %v12364_v11  ;;  %v2719_v11 = vsub.s32 7, %v12344_v53 }
 0x48f   : > { %9831 = vmatprep.subr.bf16.mxu0 %v15505_v25 }
 0x492   : > { %9833 = vmatpush3.bf16.msra.mxu0 %v12368_v40  ;;  %v12680_v40 = vsub.s32 2, %v12344_v53 }
 0x493   : > { %9834 = vmatprep.subr.bf16.mxu0 %v15505_v25 }
 0x494   : > { %16010 = vst [vmem:[#allocation43_spill] sm:$0xff] %v12680_v40 }
 0x496   : > { %9836 = vmatpush3.bf16.msra.mxu0 %v12372_v61 }
 0x497   : > { %9837 = vmatprep.subr.bf16.mxu0 %v15505_v25 }
 0x49a   : > { %9839 = vmatpush3.bf16.msra.mxu0 %v12383_v22 }
 0x49b   : > { %9840 = vmatprep.subr.bf16.mxu0 %v15505_v25 }
 0x49e   : > { %9842 = vmatpush3.bf16.msra.mxu0 %v12400_v16  ;;  %v2703_v16 = vsub.s32 3, %v12344_v53 }
 0x49f   : > { %9843 = vmatprep.subr.bf16.mxu0 %v15505_v25 }
 0x4a2   : > { %9845 = vmatpush3.bf16.msra.mxu0 %v12419_v59 }
 0x4a3   : > { %9846 = vmatprep.subr.bf16.mxu0 %v15505_v25 }
 0x4a6   : > { %9848 = vmatpush3.bf16.msra.mxu0 %v12433_v48 }
 0x4a9   : > { %8881 = vmatmul.mubr.f32.vlgmr.msra.gmra.mrb[0].mxu0 %v12378_v43 }
 0x4bb   : > { %v2687_v10 = vpop.xlane.xlu1 %2686 }
 0x4bc   : > { %v2692_v61 = vrot.slane %v2687_v10, %v12348_v49  ;;  %v2696_v21 = vrot.slane %v2687_v10, %v12674_v20  ;;  %v2720_v22 = vrot.slane %v2687_v10, %v2719_v11  ;;  %v2700_v31 = vrot.slane %v2687_v10, %v12680_v40 }
 0x4bd   : > { %v2704_v3 = vrot.slane %v2687_v10, %v2703_v16 }
 0x4be   : > { %v2729_v62 = vsub.f32 %v12533_v39, %v2692_v61  ;;  %v2730_v45 = vsub.f32 %v12535_v51, %v2696_v21  ;;  %v2736_v59 = vsub.f32 %v12553_v60, %v2720_v22  ;;  %v2731_v14 = vsub.f32 %v12537_v52, %v2700_v31 }
 0x4bf   : > { %v2711_v39 = vsub.s32 5, %v12344_v53  ;;  %v2708_v51 = vrot.slane %v2687_v10, %v2707_v63  ;;  %v2732_v48 = vsub.f32 %v12539_v50, %v2704_v3  ;;  %v2715_v60 = vsub.s32 6, %v12344_v53 }
 0x4c0   : > { %v2737_v41 = vmul.f32 1.442695, %v2729_v62  ;;  %v2739_v9 = vmul.f32 1.442695, %v2730_v45  ;;  %v2751_v58 = vmul.f32 1.442695, %v2736_v59 }
 0x4c1   : > { %v2741_v36 = vmul.f32 1.442695, %v2731_v14  ;;  %v2712_v52 = vrot.slane %v2687_v10, %v2711_v39  ;;  %v2733_v6 = vsub.f32 %v12541_v2, %v2708_v51  ;;  %v2743_v43 = vmul.f32 1.442695, %v2732_v48  ;;  %v3009_v51 = vld [vmem:[#allocation10 + $0x20] sm:$0xff] }
 0x4c2   : > { %11218 = vpow2.f32 %v2737_v41  ;;  %v2716_v44 = vrot.slane %v2687_v10, %v2715_v60  ;;  %v3005_v48 = vld [vmem:[#allocation10] sm:$0xff] }
 0x4c3   : > { %11220 = vpow2.f32 %v2739_v9  ;;  %v2734_v50 = vsub.f32 %v12543_v17, %v2712_v52  ;;  %v2745_v42 = vmul.f32 1.442695, %v2733_v6  ;;  %v3122_v52 = vand.u32 4294901760, %v3009_v51  ;;  %v3008_v6 = vld [vmem:[#allocation10 + $0x18] sm:$0xff] }
 0x4c4   : > { %11222 = vpow2.f32 %v2751_v58  ;;  %v2735_v37 = vsub.f32 %v12551_v13, %v2716_v44  ;;  %v3006_v58 = vld [vmem:[#allocation10 + $0x8] sm:$0xff]  ;;  %v3012_v44 = vld [vmem:[#allocation10 + $0x38] sm:$0xff] }
 0x4c5   : > { %11224 = vpow2.f32 %v2741_v36  ;;  %v2747_v2 = vmul.f32 1.442695, %v2734_v50  ;;  %v3118_v36 = vand.u32 4294901760, %v3006_v58  ;;  %v3015_v50 = vld [vmem:[#allocation10 + $0x50] sm:$0xff] }
 0x4c6   : > { %11226 = vpow2.f32 %v2743_v43  ;;  %v2749_v17 = vmul.f32 1.442695, %v2735_v37  ;;  %v3120_v43 = vand.u32 4294901760, %v3005_v48  ;;  %v3126_v37 = vand.u32 4294901760, %v3012_v44 }
 0x4c7   : > { %11228 = vpow2.f32 %v2745_v42  ;;  %v3124_v42 = vand.u32 4294901760, %v3008_v6 }
 0x4c8   : > { %11230 = vpow2.f32 %v2747_v2  ;;  %v3130_v2 = vand.u32 4294901760, %v3015_v50 }
 0x4c9   : > { %11232 = vpow2.f32 %v2749_v17  ;;  %v3011_v17 = vld [vmem:[#allocation10 + $0x30] sm:$0xff] }
 0x4cc   : > { %v12707_v28 = vpop.eup %11218 }
 0x4cd   : > { %2762 = vperm.xlu1 %11201, %v12707_v28   ;;  %v12713_v1 = vpop.eup %11220 }
 0x4ce   : > { %v12717_v26 = vpop.eup %11222 }
 0x4cf   : > { %v12719_v23 = vpop.eup %11224  ;;  %2783 = vperm.xlu0 %11200, %v12717_v26  }
 0x4d0   : > { %v12723_v55 = vpop.eup %11226 }
 0x4d1   : > { %2765 = vperm.xlu1 %11201, %v12713_v1   ;;  %v12726_v56 = vpop.eup %11228 }
 0x4d2   : > { %v12729_v13 = vpop.eup %11230 }
 0x4d3   : > { %v12732_v18 = vpop.eup %11232 }
 0x4d5   : > { %2768 = vperm.xlu1 %11201, %v12719_v23  }
 0x4d9   : > { %2771 = vperm.xlu1 %11201, %v12723_v55  }
 0x4dd   : > { %2774 = vperm.xlu1 %11201, %v12726_v56  }
 0x4e1   : > { %2777 = vperm.xlu1 %11201, %v12729_v13  }
 0x4e5   : > { %2780 = vperm.xlu1 %11201, %v12732_v18  }
 0x54c   : > { %v2763_v38 = vpop.permute.xlu1 %2762 }
 0x54d   : > { %v2788_v7 = vrot.slane %v2763_v38, %v12531_v34  ;;  %v3014_v38 = vld [vmem:[#allocation10 + $0x48] sm:$0xff] }
 0x54e   : > { %v2784_v30 = vpop.permute.xlu0 %2783 }
 0x54f   : > { %v2816_v62 = vrot.slane %v2784_v30, %v12531_v34  ;;  %v12770_v30 = vsub.f32 %v3015_v50, %v3130_v2 }
 0x550   : > { %v2766_v57 = vpop.permute.xlu1 %2765 }
 0x551   : > { %v2792_v46 = vrot.slane %v2766_v57, %v12531_v34  ;;  %v3018_v57 = vld [vmem:[#allocation10 + $0x68] sm:$0xff]  ;;  %16019 = vst [vmem:[#allocation52_spill] sm:$0xff] %v12770_v30 }
 0x553   : > { %v2817_v27 = vsel %vm2669_vm2, %v2792_v46, %v2788_v7  ;;  %v12759_v46 = vsub.f32 %v3005_v48, %v3120_v43  ;;  %v3017_v7 = vld [vmem:[#allocation10 + $0x60] sm:$0xff] }
 0x554   : > { %v2769_v8 = vpop.permute.xlu1 %2768 }
 0x555   : > { %v2796_v32 = vrot.slane %v2769_v8, %v12531_v34  ;;  %v12753_v8 = vpack.c.bf16 %v3122_v52, %v3118_v36  ;;  %16014 = vst [vmem:[#allocation47_spill] sm:$0xff] %v12759_v46 }
 0x557   : > { %v2818_v10 = vsel %vm2671_vm3, %v2796_v32, %v2817_v27  ;;  %16011 = vst [vmem:[#allocation44_spill] sm:$0xff] %v12753_v8  ;;  %v3021_v32 = vld [vmem:[#allocation10 + $0x80] sm:$0xff]  ;;  %v12765_v27 = vpack.c.bf16 %v3130_v2, %v3126_v37  ;;  %9994 = vmatprep.subr.bf16.mxu0 %v12753_v8 }
 0x558   : > { %v2772_v35 = vpop.permute.xlu1 %2771 }
 0x559   : > { %v2800_v12 = vrot.slane %v2772_v35, %v12531_v34  ;;  %v12755_v35 = vsub.f32 %v3006_v58, %v3118_v36  ;;  %16017 = vst [vmem:[#allocation50_spill] sm:$0xff] %v12765_v27 }
 0x55b   : > { %v2819_v61 = vsel %vm2673_vm4, %v2800_v12, %v2818_v10  ;;  %16012 = vst [vmem:[#allocation45_spill] sm:$0xff] %v12755_v35  ;;  %v3020_v12 = vld [vmem:[#allocation10 + $0x78] sm:$0xff]  ;;  %v3128_v10 = vand.u32 4294901760, %v3011_v17 }
 0x55c   : > { %v2775_v33 = vpop.permute.xlu1 %2774 }
 0x55d   : > { %v2804_v29 = vrot.slane %v2775_v33, %v12531_v34  ;;  %v12757_v33 = vsub.f32 %v3009_v51, %v3122_v52 }
 0x55f   : > { %v2820_v22 = vsel %vm2675_vm5, %v2804_v29, %v2819_v61  ;;  %16013 = vst [vmem:[#allocation46_spill] sm:$0xff] %v12757_v33  ;;  %v12763_v29 = vsub.f32 %v3008_v6, %v3124_v42  ;;  %v3132_v61 = vand.u32 4294901760, %v3014_v38 }
 0x560   : > { %v2778_v15 = vpop.permute.xlu1 %2777 }
 0x561   : > { %v2808_v5 = vrot.slane %v2778_v15, %v12531_v34  ;;  %v12761_v15 = vpack.c.bf16 %v3124_v42, %v3120_v43  ;;  %16016 = vst [vmem:[#allocation49_spill] sm:$0xff] %v12763_v29 }
 0x563   : > { %v2821_v45 = vsel %vm2677_vm6, %v2808_v5, %v2820_v22  ;;  %16015 = vst [vmem:[#allocation48_spill] sm:$0xff] %v12761_v15  ;;  %v12767_v5 = vsub.f32 %v3012_v44, %v3126_v37  ;;  %9996 = vmatpush1.bf16.msra.mxu0 %v12761_v15  ;;  %v3138_v22 = vand.u32 4294901760, %v3021_v32 }
 0x564   : > { %v2781_v21 = vpop.permute.xlu1 %2780  ;;  %9998 = vmatprep.subr.bf16.mxu0 %v12765_v27 }
 0x565   : > { %v2812_v31 = vrot.slane %v2781_v21, %v12531_v34  ;;  %16018 = vst [vmem:[#allocation51_spill] sm:$0xff] %v12767_v5  ;;  %v3134_v21 = vand.u32 4294901760, %v3018_v57  ;;  %v12784_v58 = vsub.f32 %v3021_v32, %v3138_v22  ;;  %v3019_v34 = vld [vmem:[#allocation10 + $0x70] sm:$0xff] }
 0x567   : > { %v2822_v41 = vsel %vm2679_vm7, %v2812_v31, %v2821_v45  ;;  %v3136_v31 = vand.u32 4294901760, %v3017_v7  ;;  %v12774_v45 = vpack.c.bf16 %v3132_v61, %v3128_v10  ;;  %16025 = vst [vmem:[#allocation58_spill] sm:$0xff] %v12784_v58 }
 0x568   : > { %v2823_v59 = vsel %vm2681_vm8, %v2816_v62, %v2822_v41  ;;  %v3140_v62 = vand.u32 4294901760, %v3020_v12  ;;  %v12776_v41 = vsub.f32 %v3011_v17, %v3128_v10 }
 0x569   : > { %v2825_v3 = vsel %vm2684_vm9, %v2823_v59, 0.0  ;;  %16020 = vst [vmem:[#allocation53_spill] sm:$0xff] %v12774_v45  ;;  %v12778_v59 = vsub.f32 %v3014_v38, %v3132_v61  ;;  %v12786_v51 = vsub.f32 %v3017_v7, %v3136_v31  ;;  %10000 = vmatpush1.bf16.msra.mxu0 %v12774_v45  ;;  %v3024_v7 = vld [vmem:[#allocation10 + $0x98] sm:$0xff]  ;;  %v3023_v61 = vld [vmem:[#allocation10 + $0x90] sm:$0xff] }
 0x56a   : > { %2826 = vadd.xlane.f32.xlu1 %v2825_v3  ;;  %16021 = vst [vmem:[#allocation54_spill] sm:$0xff] %v12776_v41  ;;  %v12780_v3 = vsub.f32 %v3018_v57, %v3134_v21  ;;  %v12788_v48 = vsub.f32 %v3020_v12, %v3140_v62  ;;  %v12791_v36 = vpack.c.bf16 %v3140_v62, %v3136_v31  ;;  %v3027_v12 = vld [vmem:[#allocation10 + $0xb0] sm:$0xff]  ;;  %v3142_v10 = vand.u32 4294901760, %v3024_v7 }
 0x56b   : > { %16022 = vst [vmem:[#allocation55_spill] sm:$0xff] %v12778_v59  ;;  %16026 = vst [vmem:[#allocation59_spill] sm:$0xff] %v12786_v51 }
 0x56c   : > { %16023 = vst [vmem:[#allocation56_spill] sm:$0xff] %v12780_v3  ;;  %16027 = vst [vmem:[#allocation60_spill] sm:$0xff] %v12788_v48 }
 0x56d   : > { %16028 = vst [vmem:[#allocation61_spill] sm:$0xff] %v12791_v36 }
 0x57c   : > { %v12751_v14 = vpop.f32.mrb[0].mxu0 }
 0x57d   : > { %v8882_v9 = vpop.f32.mrb[1].mxu0 }
 0x57e   : > { %v12782_v9 = vpack.c.bf16 %v3138_v22, %v3134_v21  ;;  %v3144_v21 = vand.u32 4294901760, %v3023_v61 }
 0x580   : > { %16024 = vst [vmem:[#allocation57_spill] sm:$0xff] %v12782_v9  ;;  %10002 = vmatprep.subr.bf16.mxu0 %v12782_v9  ;;  %v12867_v9 = vld [vmem:[#allocation10 + $0x188] sm:$0xff] }
 0x581   : > { %10004 = vmatpush1.bf16.msra.mxu0 %v12791_v36 }
 0x5f7   : > { %v2827_v52 = vpop.xlane.xlu1 %2826 }
 0x5f8   : > { %v2832_v6 = vrot.slane %v2827_v52, %v12348_v49  ;;  %v2836_v43 = vrot.slane %v2827_v52, %v12674_v20  ;;  %v2840_v44 = vrot.slane %v2827_v52, %v12680_v40  ;;  %v2844_v50 = vrot.slane %v2827_v52, %v2703_v16  ;;  %v3038_v20 = vld [vmem:[#allocation10 + $0x108] sm:$0xff] }
 0x5f9   : > { %v2848_v37 = vrot.slane %v2827_v52, %v2707_v63  ;;  %v2852_v38 = vrot.slane %v2827_v52, %v2711_v39  ;;  %v2856_v16 = vrot.slane %v2827_v52, %v2715_v60  ;;  %v3146_v63 = vand.u32 4294901760, %v3027_v12 }
 0x5fa   : > { %11234 = vrcp.f32 %v2832_v6  ;;  %v3164_v49 = vand.u32 4294901760, %v3038_v20 }
 0x5fb   : > { %11236 = vrcp.f32 %v2836_v43  ;;  %v12809_v39 = vpack.c.bf16 %v3146_v63, %v3142_v10  ;;  %v3030_v43 = vld [vmem:[#allocation10 + $0xc8] sm:$0xff] }
 0x5fc   : > { %11238 = vrcp.f32 %v2840_v44  ;;  %v3033_v44 = vld [vmem:[#allocation10 + $0xe0] sm:$0xff]  ;;  %v3150_v60 = vand.u32 4294901760, %v3030_v43 }
 0x5fd   : > { %11240 = vrcp.f32 %v2844_v50  ;;  %16029 = vst [vmem:[#allocation62_spill] sm:$0xff] %v12809_v39  ;;  %10006 = vmatprep.subr.bf16.mxu0 %v12809_v39  ;;  %v3154_v50 = vand.u32 4294901760, %v3033_v44  ;;  %v3047_v39 = vld [vmem:[#allocation10 + $0x150] sm:$0xff] }
 0x5fe   : > { %11242 = vrcp.f32 %v2848_v37  ;;  %v3032_v37 = vld [vmem:[#allocation10 + $0xd8] sm:$0xff] }
 0x5ff   : > { %11244 = vrcp.f32 %v2852_v38  ;;  %v12818_v53 = vpack.c.bf16 %v3154_v50, %v3150_v60  ;;  %v3036_v38 = vld [vmem:[#allocation10 + $0xf8] sm:$0xff]  ;;  %v12841_v0 = vsub.f32 %v3033_v44, %v3154_v50  ;;  %v3176_v50 = vand.u32 4294901760, %v3047_v39 }
 0x600   : > { %11246 = vrcp.f32 %v2856_v16  ;;  %v12824_v16 = vsub.f32 %v3027_v12, %v3146_v63  ;;  %v3045_v63 = vld [vmem:[#allocation10 + $0x140] sm:$0xff] }
 0x601   : > { %16031 = vst [vmem:[#allocation64_spill] sm:$0xff] %v12818_v53  ;;  %16040 = vst [vmem:[#allocation73_spill] sm:$0xff] %v12841_v0  ;;  %v12961_v0 = vld [vmem:[#allocation10 + $0x1f8] sm:$0xff] }
 0x602   : > { %16034 = vst [vmem:[#allocation67_spill] sm:$0xff] %v12824_v16 }
 0x604   : > { %v11235_v42 = vpop.eup %11234 }
 0x605   : > { %v2870_v2 = vmul.f32 %v11235_v42, %v12707_v28  ;;  %v11237_v17 = vpop.eup %11236  ;;  %v3026_v28 = vld [vmem:[#allocation10 + $0xa8] sm:$0xff]  ;;  %v3029_v42 = vld [vmem:[#allocation10 + $0xc0] sm:$0xff] }
 0x606   : > { %v2872_v57 = vmul.f32 %v11237_v17, %v12713_v1  ;;  %v11239_v32 = vpop.eup %11238  ;;  %v3148_v22 = vand.u32 4294901760, %v3026_v28  ;;  %v2860_v1 = vrot.slane %v2827_v52, %v2719_v11 }
 0x607   : > { %2895 = vperm.xlu0 %11200, %v2870_v2   ;;  %v2874_v31 = vmul.f32 %v11239_v32, %v12719_v23  ;;  %v11241_v62 = vpop.eup %11240  ;;  %v3152_v23 = vand.u32 4294901760, %v3029_v42  ;;  %v3156_v2 = vand.u32 4294901760, %v3032_v37  ;;  %v12822_v32 = vsub.f32 %v3024_v7, %v3142_v10  ;;  %v3042_v10 = vld [vmem:[#allocation10 + $0x128] sm:$0xff] }
 0x608   : > { %v12813_v6 = vpack.c.bf16 %v3148_v22, %v3144_v21  ;;  %v2876_v17 = vmul.f32 %v11241_v62, %v12723_v55  ;;  %v11243_v11 = vpop.eup %11242  ;;  %11248 = vrcp.f32 %v2860_v1  ;;  %v12828_v25 = vsub.f32 %v3026_v28, %v3148_v22  ;;  %v3044_v22 = vld [vmem:[#allocation10 + $0x138] sm:$0xff] }
 0x609   : > { %v12820_v52 = vpack.c.bf16 %v3156_v2, %v3152_v23  ;;  %16033 = vst [vmem:[#allocation66_spill] sm:$0xff] %v12822_v32  ;;  %v3158_v55 = vand.u32 4294901760, %v3036_v38  ;;  %v3160_v1 = vand.u32 4294901760, %v3035_v19  ;;  %v11245_v4 = vpop.eup %11244  ;;  %v2878_v47 = vmul.f32 %v11243_v11, %v12726_v56  ;;  %v3022_v32 = vld [vmem:[#allocation10 + $0x88] sm:$0xff] }
 0x60a   : > { %16030 = vst [vmem:[#allocation63_spill] sm:$0xff] %v12813_v6  ;;  %10008 = vmatpush1.bf16.msra.mxu0 %v12813_v6  ;;  %16036 = vst [vmem:[#allocation69_spill] sm:$0xff] %v12828_v25  ;;  %v3170_v28 = vand.u32 4294901760, %v3045_v63  ;;  %v3172_v24 = vand.u32 4294901760, %v3044_v22  ;;  %v11247_v56 = vpop.eup %11246  ;;  %v12839_v11 = vsub.f32 %v3030_v43, %v3150_v60  ;;  %v12843_v54 = vsub.f32 %v3029_v42, %v3152_v23  ;;  %v3050_v43 = vld [vmem:[#allocation10 + $0x168] sm:$0xff] }
 0x60b   : > { %2900 = vperm.xlu0 %11200, %v2872_v57   ;;  %16032 = vst [vmem:[#allocation65_spill] sm:$0xff] %v12820_v52  ;;  %v3039_v57 = vld [vmem:[#allocation10 + $0x110] sm:$0xff]  ;;  %10010 = vmatprep.subr.bf16.mxu0 %v12818_v53  ;;  %v12835_v12 = vpack.c.bf16 %v3164_v49, %v3160_v1  ;;  %v2882_v44 = vmul.f32 %v11247_v56, %v12732_v18  ;;  %v3180_v42 = vand.u32 4294901760, %v3050_v43  ;;  %v12869_v18 = vld [vmem:[#allocation10 + $0x1a0] sm:$0xff] }
 0x60c   : > { %v3162_v62 = vand.u32 4294901760, %v3039_v57  ;;  %16039 = vst [vmem:[#allocation72_spill] sm:$0xff] %v12839_v11  ;;  %16041 = vst [vmem:[#allocation74_spill] sm:$0xff] %v12843_v54  ;;  %v12871_v56 = vld [vmem:[#allocation10 + $0x190] sm:$0xff]  ;;  %v12889_v45 = vsub.f32 %v3045_v63, %v3170_v28  ;;  %v12893_v27 = vsub.f32 %v3044_v22, %v3172_v24  ;;  %v12943_v54 = vld [vmem:[#allocation10 + $0x1e8] sm:$0xff]  ;;  %v16071_v25 = vand.u32 4294901760, %v12869_v18 }
 0x60d   : > { %16038 = vst [vmem:[#allocation71_spill] sm:$0xff] %v12835_v12  ;;  %v12865_v36 = vpack.c.bf16 %v3180_v42, %v3176_v50  ;;  %v16058_v15 = vand.u32 4294901760, %v12871_v56 }
 0x60e   : > { %10012 = vmatpush1.bf16.msra.mxu0 %v12820_v52  ;;  %v12833_v7 = vpack.c.bf16 %v3162_v62, %v3158_v55  ;;  %v12845_v52 = vsub.f32 %v3032_v37, %v3156_v2  ;;  %v12854_v37 = vsub.f32 %v3036_v38, %v3158_v55  ;;  %v12856_v23 = vsub.f32 %v3039_v57, %v3162_v62  ;;  %v12875_v57 = vld [vmem:[#allocation10 + $0x1a8] sm:$0xff]  ;;  %v12880_v55 = vld [vmem:[#allocation10 + $0x198] sm:$0xff] }
 0x60f   : > { %2905 = vperm.xlu0 %11200, %v2874_v31   ;;  %v12826_v31 = vsub.f32 %v3023_v61, %v3144_v21  ;;  %v3166_v61 = vand.u32 4294901760, %v3042_v10  ;;  %v3041_v21 = vld [vmem:[#allocation10 + $0x120] sm:$0xff]  ;;  %v12858_v2 = vsub.f32 %v3035_v19, %v3160_v1  ;;  %16050 = vst [vmem:[#allocation83_spill] sm:$0xff] %v12865_v36  ;;  %v4454_v1 = vand.u32 4294901760, %v12875_v57  ;;  %v3010_v19 = vld [vmem:[#allocation10 + $0x28] sm:$0xff]  ;;  %16052 = vst [vmem:[#allocation85_spill] sm:$0xff] %v12889_v45 }
 0x610   : > { %16037 = vst [vmem:[#allocation70_spill] sm:$0xff] %v12833_v7  ;;  %10014 = vmatprep.subr.bf16.mxu0 %v12833_v7  ;;  %v3168_v40 = vand.u32 4294901760, %v3041_v21  ;;  %16042 = vst [vmem:[#allocation75_spill] sm:$0xff] %v12845_v52  ;;  %v3188_v38 = vand.u32 4294901760, %v12880_v55  ;;  %v3016_v45 = vld [vmem:[#allocation10 + $0x58] sm:$0xff] }
 0x611   : > { %16035 = vst [vmem:[#allocation68_spill] sm:$0xff] %v12826_v31  ;;  %16045 = vst [vmem:[#allocation78_spill] sm:$0xff] %v12854_v37  ;;  %v12904_v8 = vpack.c.bf16 %v4454_v1, %v16058_v15  ;;  %v12980_v16 = vsub.f32 %v12875_v57, %v4454_v1  ;;  %v16081_v1 = vand.u32 4294901760, %v12943_v54 }
 0x612   : > { %10016 = vmatpush1.bf16.msra.mxu0 %v12835_v12  ;;  %v12850_v53 = vpack.c.bf16 %v3172_v24, %v3168_v40  ;;  %v11249_v60 = vpop.eup %11248  ;;  %16046 = vst [vmem:[#allocation79_spill] sm:$0xff] %v12856_v23  ;;  %16047 = vst [vmem:[#allocation80_spill] sm:$0xff] %v12858_v2  ;;  %v12860_v12 = vsub.f32 %v3038_v20, %v3164_v49  ;;  %v12878_v20 = vld [vmem:[#allocation10 + $0x180] sm:$0xff]  ;;  %v12891_v49 = vsub.f32 %v3041_v21, %v3168_v40  ;;  %v12910_v40 = vld [vmem:[#allocation10 + $0x1d0] sm:$0xff] }
 0x613   : > { %2910 = vperm.xlu0 %11200, %v2876_v17   ;;  %v2880_v17 = vmul.f32 %v11245_v4, %v12729_v13  ;;  %v3048_v4 = vld [vmem:[#allocation10 + $0x158] sm:$0xff]  ;;  %v3051_v13 = vld [vmem:[#allocation10 + $0x170] sm:$0xff]  ;;  %v2884_v62 = vmul.f32 %v11249_v60, %v12717_v26  ;;  %16054 = vst [vmem:[#allocation87_spill] sm:$0xff] %v12893_v27  ;;  %v16055_v26 = vand.u32 4294901760, %v12867_v9  ;;  %v16056_v60 = vand.u32 4294901760, %v12869_v18  ;;  %16059 = vst [vmem:[#allocation89_spill] sm:$0xff] %v12904_v8 }
 0x614   : > { %16044 = vst [vmem:[#allocation77_spill] sm:$0xff] %v12850_v53  ;;  %v3174_v7 = vand.u32 4294901760, %v3048_v4  ;;  %v3178_v6 = vand.u32 4294901760, %v3051_v13  ;;  %16048 = vst [vmem:[#allocation81_spill] sm:$0xff] %v12860_v12  ;;  %v12912_v24 = vld [vmem:[#allocation10 + $0x1c0] sm:$0xff]  ;;  %v3194_v22 = vand.u32 4294901760, %v12910_v40  ;;  %10378 = vmatprep.subr.bf16.mxu1 %v12904_v8  ;;  %v12931_v2 = vsub.f32 %v3047_v39, %v3176_v50 }
 0x615   : > { %16053 = vst [vmem:[#allocation86_spill] sm:$0xff] %v12891_v49  ;;  %v4457_v15 = vand.u32 4294901760, %v12912_v24  ;;  %v12924_v27 = vld [vmem:[#allocation10 + $0x1c8] sm:$0xff]  ;;  %v3013_v49 = vld [vmem:[#allocation10 + $0x40] sm:$0xff]  ;;  %v12933_v23 = vsub.f32 %v3050_v43, %v3180_v42  ;;  %v16069_v43 = vand.u32 4294901760, %v12867_v9  ;;  %16075 = vst [vmem:[#allocation102_spill] sm:$0xff] %v12980_v16 }
 0x616   : > { %v12929_v12 = vsub.f32 %v3051_v13, %v3178_v6  ;;  %16063 = vst [vmem:[#allocation93_spill] sm:$0xff] %v12931_v2  ;;  %v3196_v52 = vand.u32 4294901760, %v12924_v27  ;;  %v4409_v39 = vand.u32 4294901760, %v3013_v49  ;;  %v12951_v50 = vld [vmem:[#allocation10 + $0x208] sm:$0xff]  ;;  %v12953_v42 = vld [vmem:[#allocation10 + $0x1e0] sm:$0xff]  ;;  %v3028_v2 = vld [vmem:[#allocation10 + $0xb8] sm:$0xff] }
 0x617   : > { %2915 = vperm.xlu0 %11200, %v2878_v47   ;;  %v12848_v47 = vpack.c.bf16 %v3170_v28, %v3166_v61  ;;  %v4406_v28 = vand.u32 4294901760, %v3010_v19  ;;  %16064 = vst [vmem:[#allocation94_spill] sm:$0xff] %v12933_v23  ;;  %v3200_v13 = vand.u32 4294901760, %v12953_v42  ;;  %v12967_v11 = vsub.f32 %v12867_v9, %v16069_v43  ;;  %v3025_v23 = vld [vmem:[#allocation10 + $0xa0] sm:$0xff] }
 0x618   : > { %16062 = vst [vmem:[#allocation92_spill] sm:$0xff] %v12929_v12  ;;  %v12987_v43 = vsub.f32 %v12880_v55, %v3188_v38  ;;  %v4415_v55 = vand.u32 4294901760, %v3019_v34 }
 0x619   : > { %16043 = vst [vmem:[#allocation76_spill] sm:$0xff] %v12848_v47  ;;  %10018 = vmatprep.subr.bf16.mxu0 %v12848_v47  ;;  %v12887_v47 = vsub.f32 %v3042_v10, %v3166_v61  ;;  %v12908_v61 = vld [vmem:[#allocation10 + $0x1b8] sm:$0xff]  ;;  %16070 = vst [vmem:[#allocation99_spill] sm:$0xff] %v12967_v11  ;;  %v3074_v11 = vld [vmem:[#allocation10 + $0x228] sm:$0xff] }
 0x61a   : > { %10020 = vmatpush1.bf16.msra.mxu0 %v12850_v53  ;;  %v3007_v53 = vld [vmem:[#allocation10 + $0x10] sm:$0xff]  ;;  %v3190_v21 = vand.u32 4294901760, %v12908_v61  ;;  %16077 = vst [vmem:[#allocation104_spill] sm:$0xff] %v12987_v43 }
 0x61b   : > { %2920 = vperm.xlu0 %11200, %v2880_v17   ;;  %v12863_v17 = vpack.c.bf16 %v3178_v6, %v3174_v7  ;;  %16051 = vst [vmem:[#allocation84_spill] sm:$0xff] %v12887_v47  ;;  %v4403_v63 = vand.u32 4294901760, %v3007_v53  ;;  %v12927_v47 = vsub.f32 %v3048_v4, %v3174_v7  ;;  %v12945_v7 = vld [vmem:[#allocation10 + $0x200] sm:$0xff]  ;;  %v12947_v6 = vld [vmem:[#allocation10 + $0x1f0] sm:$0xff]  ;;  %v4412_v4 = vand.u32 4294901760, %v3016_v45 }
 0x61c   : > { %v12938_v8 = vpack.c.bf16 %v3194_v22, %v3190_v21  ;;  %v4463_v12 = vand.u32 4294901760, %v12947_v6  ;;  %v13006_v43 = vsub.f32 %v12908_v61, %v3190_v21  ;;  %v13022_v61 = vsub.f32 %v12924_v27, %v3196_v52 }
 0x61d   : > { %16049 = vst [vmem:[#allocation82_spill] sm:$0xff] %v12863_v17  ;;  %10022 = vmatprep.subr.bf16.mxu0 %v12863_v17  ;;  %v12900_v17 = vpack.c.bf16 %v16056_v60, %v16055_v26  ;;  %v12916_v26 = vld [vmem:[#allocation10 + $0x1d8] sm:$0xff]  ;;  %v12919_v60 = vld [vmem:[#allocation10 + $0x1b0] sm:$0xff]  ;;  %16061 = vst [vmem:[#allocation91_spill] sm:$0xff] %v12927_v47  ;;  %v4466_v47 = vand.u32 4294901760, %v12951_v50  ;;  %v12994_v57 = vpack.c.bf16 %v4412_v4, %v4409_v39 }
 0x61e   : > { %10024 = vmatpush1.bf16.msra.mxu0 %v12865_v36  ;;  %v4460_v36 = vand.u32 4294901760, %v12916_v26  ;;  %16066 = vst [vmem:[#allocation96_spill] sm:$0xff] %v12938_v8  ;;  %16085 = vst [vmem:[#allocation110_spill] sm:$0xff] %v13006_v43  ;;  %v13024_v21 = vsub.f32 %v3013_v49, %v4409_v39  ;;  %v3212_v49 = vand.u32 4294901760, %v3074_v11  ;;  %v4421_v39 = vand.u32 4294901760, %v3025_v23 }
 0x61f   : > { %2925 = vperm.xlu0 %11200, %v2882_v44   ;;  %v3184_v44 = vand.u32 4294901760, %v12878_v20  ;;  %16057 = vst [vmem:[#allocation88_spill] sm:$0xff] %v12900_v17  ;;  %10026 = vmatprep.subr.bf16.mxu0 %v12900_v17  ;;  %v12936_v17 = vpack.c.bf16 %v4406_v28, %v4403_v63  ;;  %16080 = vst [vmem:[#allocation107_spill] sm:$0xff] %v12994_v57  ;;  %v13049_v43 = vsub.f32 %v12947_v6, %v4463_v12  ;;  %v3082_v6 = vld [vmem:[#allocation10 + $0x268] sm:$0xff] }
 0x620   : > { %v12940_v37 = vpack.c.bf16 %v4460_v36, %v4457_v15  ;;  %16090 = vst [vmem:[#allocation115_spill] sm:$0xff] %v13022_v61  ;;  %16091 = vst [vmem:[#allocation116_spill] sm:$0xff] %v13024_v21 }
 0x621   : > { %v12906_v10 = vpack.c.bf16 %v3188_v38, %v3184_v44  ;;  %16065 = vst [vmem:[#allocation95_spill] sm:$0xff] %v12936_v17  ;;  %10380 = vmatpush3.bf16.msra.mxu1 %v12936_v17  ;;  %v12972_v17 = vsub.f32 %v12869_v18, %v16071_v25  ;;  %v12984_v9 = vsub.f32 %v12878_v20, %v3184_v44  ;;  %v3204_v38 = vand.u32 4294901760, %v12961_v0 }
 0x622   : > { %16067 = vst [vmem:[#allocation97_spill] sm:$0xff] %v12940_v37  ;;  %10382 = vmatprep.subr.bf16.mxu1 %v12940_v37  ;;  %v12989_v25 = vsub.f32 %v3007_v53, %v4403_v63  ;;  %v12991_v18 = vsub.f32 %v3010_v19, %v4406_v28  ;;  %v16082_v37 = vand.u32 4294901760, %v12945_v7  ;;  %v13002_v20 = vpack.c.bf16 %v4466_v47, %v4463_v12  ;;  %v3073_v53 = vld [vmem:[#allocation10 + $0x220] sm:$0xff]  ;;  %v3076_v28 = vld [vmem:[#allocation10 + $0x238] sm:$0xff] }
 0x623   : > { %16060 = vst [vmem:[#allocation90_spill] sm:$0xff] %v12906_v10  ;;  %2930 = vperm.xlu0 %11200, %v2884_v62   ;;  %v3192_v62 = vand.u32 4294901760, %v12919_v60  ;;  %10028 = vmatpush1.bf16.msra.mxu0 %v12906_v10  ;;  %16072 = vst [vmem:[#allocation100_spill] sm:$0xff] %v12972_v17  ;;  %v4418_v19 = vand.u32 4294901760, %v3022_v32  ;;  %v4472_v27 = vand.u32 4294901760, %v3076_v28  ;;  %v13059_v51 = vsub.f32 %v12961_v0, %v3204_v38 }
 0x624   : > { %10030 = vmatprep.subr.bf16.mxu0 %v12938_v8  ;;  %v16073_v8 = vand.u32 4294901760, %v12871_v56  ;;  %16076 = vst [vmem:[#allocation103_spill] sm:$0xff] %v12984_v9  ;;  %16078 = vst [vmem:[#allocation105_spill] sm:$0xff] %v12989_v25  ;;  %v13000_v17 = vpack.c.bf16 %v16082_v37, %v16081_v1  ;;  %v13009_v9 = vsub.f32 %v12910_v40, %v3194_v22  ;;  %v3079_v22 = vld [vmem:[#allocation10 + $0x250] sm:$0xff] }
 0x625   : > { %v12957_v10 = vpack.c.bf16 %v3196_v52, %v3192_v62  ;;  %16079 = vst [vmem:[#allocation106_spill] sm:$0xff] %v12991_v18  ;;  %16084 = vst [vmem:[#allocation109_spill] sm:$0xff] %v13002_v20  ;;  %v13012_v37 = vsub.f32 %v12912_v24, %v4457_v15  ;;  %v13015_v1 = vsub.f32 %v12916_v26, %v4460_v36  ;;  %10384 = vmatpush3.bf16.msra.mxu1 %v12994_v57  ;;  %v3078_v24 = vld [vmem:[#allocation10 + $0x248] sm:$0xff]  ;;  %v3081_v36 = vld [vmem:[#allocation10 + $0x260] sm:$0xff] }
 0x626   : > { %v12977_v31 = vsub.f32 %v12871_v56, %v16073_v8  ;;  %v3072_v8 = vld [vmem:[#allocation10 + $0x218] sm:$0xff]  ;;  %v3075_v56 = vld [vmem:[#allocation10 + $0x230] sm:$0xff]  ;;  %16083 = vst [vmem:[#allocation108_spill] sm:$0xff] %v13000_v17  ;;  %16086 = vst [vmem:[#allocation111_spill] sm:$0xff] %v13009_v9  ;;  %v13019_v48 = vsub.f32 %v12919_v60, %v3192_v62  ;;  %v13026_v40 = vsub.f32 %v3016_v45, %v4412_v4  ;;  %10386 = vmatprep.subr.bf16.mxu1 %v13002_v20 }
 0x627   : > { %16068 = vst [vmem:[#allocation98_spill] sm:$0xff] %v12957_v10  ;;  %10032 = vmatpush1.bf16.msra.mxu0 %v12957_v10  ;;  %v3206_v44 = vand.u32 4294901760, %v3072_v8  ;;  %v3210_v63 = vand.u32 4294901760, %v3075_v56  ;;  %v3071_v10 = vld [vmem:[#allocation10 + $0x210] sm:$0xff]  ;;  %16087 = vst [vmem:[#allocation112_spill] sm:$0xff] %v13012_v37  ;;  %v13030_v26 = vpack.c.bf16 %v3204_v38, %v3200_v13  ;;  %v13032_v15 = vpack.c.bf16 %v4418_v19, %v4415_v55 }
 0x628   : > { %16074 = vst [vmem:[#allocation101_spill] sm:$0xff] %v12977_v31  ;;  %16088 = vst [vmem:[#allocation113_spill] sm:$0xff] %v13015_v1  ;;  %10034 = vmatprep.subr.bf16.mxu0 %v13000_v17  ;;  %v4469_v62 = vand.u32 4294901760, %v3073_v53  ;;  %v3208_v52 = vand.u32 4294901760, %v3071_v10  ;;  %v4424_v45 = vand.u32 4294901760, %v3028_v2  ;;  %v3214_v4 = vand.u32 4294901760, %v3078_v24 }
 0x629   : > { %16089 = vst [vmem:[#allocation114_spill] sm:$0xff] %v13019_v48  ;;  %16092 = vst [vmem:[#allocation117_spill] sm:$0xff] %v13026_v40  ;;  %v13034_v60 = vpack.c.bf16 %v3210_v63, %v3206_v44  ;;  %10388 = vmatpush3.bf16.msra.mxu1 %v13032_v15  ;;  %v3218_v17 = vand.u32 4294901760, %v3081_v36  ;;  %v4475_v57 = vand.u32 4294901760, %v3079_v22  ;;  %v16096_v20 = vand.u32 4294901760, %v12943_v54 }
 0x62a   : > { %16093 = vst [vmem:[#allocation118_spill] sm:$0xff] %v13030_v26  ;;  %16094 = vst [vmem:[#allocation119_spill] sm:$0xff] %v13032_v15  ;;  %v16098_v48 = vand.u32 4294901760, %v12945_v7  ;;  %v13056_v15 = vsub.f32 %v12953_v42, %v3200_v13  ;;  %v13069_v12 = vpack.c.bf16 %v4472_v27, %v4469_v62  ;;  %v13075_v13 = vpack.c.bf16 %v3212_v49, %v3208_v52  ;;  %v3031_v42 = vld [vmem:[#allocation10 + $0xd0] sm:$0xff] }
 0x62b   : > { %16095 = vst [vmem:[#allocation120_spill] sm:$0xff] %v13034_v60  ;;  %10036 = vmatpush1.bf16.msra.mxu0 %v13030_v26  ;;  %v13041_v61 = vsub.f32 %v12943_v54, %v16096_v20  ;;  %16100 = vst [vmem:[#allocation123_spill] sm:$0xff] %v13049_v43  ;;  %v13052_v26 = vsub.f32 %v12951_v50, %v4466_v47  ;;  %v13061_v54 = vsub.f32 %v3019_v34, %v4415_v55  ;;  %v3077_v50 = vld [vmem:[#allocation10 + $0x240] sm:$0xff] }
 0x62c   : > { %v13046_v9 = vsub.f32 %v12945_v7, %v16098_v48  ;;  %10038 = vmatprep.subr.bf16.mxu0 %v13034_v60  ;;  %16102 = vst [vmem:[#allocation125_spill] sm:$0xff] %v13056_v15  ;;  %16103 = vst [vmem:[#allocation126_spill] sm:$0xff] %v13059_v51  ;;  %v13063_v20 = vsub.f32 %v3022_v32, %v4418_v19  ;;  %v13065_v48 = vsub.f32 %v3072_v8, %v3206_v44  ;;  %v3080_v32 = vld [vmem:[#allocation10 + $0x258] sm:$0xff]  ;;  %v3034_v8 = vld [vmem:[#allocation10 + $0xe8] sm:$0xff] }
 0x62d   : > { %16097 = vst [vmem:[#allocation121_spill] sm:$0xff] %v13041_v61  ;;  %16101 = vst [vmem:[#allocation124_spill] sm:$0xff] %v13052_v26  ;;  %v13067_v7 = vsub.f32 %v3075_v56, %v3210_v63  ;;  %v13071_v47 = vsub.f32 %v3073_v53, %v4469_v62  ;;  %v13073_v60 = vsub.f32 %v3076_v28, %v4472_v27  ;;  %10390 = vmatprep.subr.bf16.mxu1 %v13069_v12  ;;  %v3084_v19 = vld [vmem:[#allocation10 + $0x278] sm:$0xff]  ;;  %v3087_v44 = vld [vmem:[#allocation10 + $0x290] sm:$0xff] }
 0x62e   : > { %16099 = vst [vmem:[#allocation122_spill] sm:$0xff] %v13046_v9  ;;  %16104 = vst [vmem:[#allocation127_spill] sm:$0xff] %v13061_v54  ;;  %v13077_v0 = vsub.f32 %v3071_v10, %v3208_v52  ;;  %v13079_v34 = vsub.f32 %v3074_v11, %v3212_v49  ;;  %v13082_v56 = vpack.c.bf16 %v4424_v45, %v4421_v39  ;;  %v4478_v63 = vand.u32 4294901760, %v3082_v6  ;;  %v3085_v52 = vld [vmem:[#allocation10 + $0x280] sm:$0xff]  ;;  %v3098_v9 = vld [vmem:[#allocation10 + $0x2e8] sm:$0xff] }
 0x62f   : > { %16105 = vst [vmem:[#allocation128_spill] sm:$0xff] %v13063_v20  ;;  %16106 = vst [vmem:[#allocation129_spill] sm:$0xff] %v13065_v48  ;;  %v13084_v38 = vsub.f32 %v3025_v23, %v4421_v39  ;;  %v13086_v53 = vsub.f32 %v3028_v2, %v4424_v45  ;;  %v13088_v55 = vpack.c.bf16 %v3218_v17, %v3214_v4  ;;  %10040 = vmatpush1.bf16.msra.mxu0 %v13075_v13  ;;  %v3046_v48 = vld [vmem:[#allocation10 + $0x148] sm:$0xff]  ;;  %v3049_v61 = vld [vmem:[#allocation10 + $0x160] sm:$0xff] }
 0x630   : > { %16107 = vst [vmem:[#allocation130_spill] sm:$0xff] %v13067_v7  ;;  %16108 = vst [vmem:[#allocation131_spill] sm:$0xff] %v13069_v12  ;;  %v13091_v10 = vsub.f32 %v3078_v24, %v3214_v4  ;;  %v13093_v11 = vsub.f32 %v3081_v36, %v3218_v17  ;;  %v13095_v28 = vsub.f32 %v3079_v22, %v4475_v57  ;;  %10392 = vmatpush3.bf16.msra.mxu1 %v13082_v56  ;;  %v3088_v17 = vld [vmem:[#allocation10 + $0x298] sm:$0xff]  ;;  %v3083_v36 = vld [vmem:[#allocation10 + $0x270] sm:$0xff] }
 0x631   : > { %16109 = vst [vmem:[#allocation132_spill] sm:$0xff] %v13071_v47  ;;  %16110 = vst [vmem:[#allocation133_spill] sm:$0xff] %v13073_v60  ;;  %10042 = vmatprep.subr.bf16.mxu0 %v13088_v55  ;;  %v3216_v23 = vand.u32 4294901760, %v3077_v50  ;;  %v3220_v2 = vand.u32 4294901760, %v3080_v32  ;;  %v4427_v62 = vand.u32 4294901760, %v3031_v42  ;;  %v4430_v27 = vand.u32 4294901760, %v3034_v8 }
 0x632   : > { %16111 = vst [vmem:[#allocation134_spill] sm:$0xff] %v13075_v13  ;;  %16112 = vst [vmem:[#allocation135_spill] sm:$0xff] %v13077_v0  ;;  %v13099_v49 = vpack.c.bf16 %v4478_v63, %v4475_v57  ;;  %v13101_v39 = vsub.f32 %v3082_v6, %v4478_v63  ;;  %v3222_v24 = vand.u32 4294901760, %v3084_v19  ;;  %v3226_v45 = vand.u32 4294901760, %v3087_v44  ;;  %v3086_v4 = vld [vmem:[#allocation10 + $0x288] sm:$0xff]  ;;  %v3037_v12 = vld [vmem:[#allocation10 + $0x100] sm:$0xff] }
 0x633   : > { %16113 = vst [vmem:[#allocation136_spill] sm:$0xff] %v13079_v34  ;;  %16114 = vst [vmem:[#allocation137_spill] sm:$0xff] %v13082_v56  ;;  %v13103_v22 = vpack.c.bf16 %v3220_v2, %v3216_v23  ;;  %v13105_v13 = vsub.f32 %v3077_v50, %v3216_v23  ;;  %v13107_v56 = vsub.f32 %v3080_v32, %v3220_v2  ;;  %v4481_v32 = vand.u32 4294901760, %v3085_v52 }
 0x634   : > { %16115 = vst [vmem:[#allocation138_spill] sm:$0xff] %v13084_v38  ;;  %16116 = vst [vmem:[#allocation139_spill] sm:$0xff] %v13086_v53  ;;  %10394 = vmatprep.subr.bf16.mxu1 %v13099_v49  ;;  %v13112_v57 = vsub.f32 %v3031_v42, %v4427_v62  ;;  %v13114_v6 = vsub.f32 %v3034_v8, %v4430_v27  ;;  %v13116_v63 = vpack.c.bf16 %v3226_v45, %v3222_v24 }
 0x635   : > { %16117 = vst [vmem:[#allocation140_spill] sm:$0xff] %v13088_v55  ;;  %16118 = vst [vmem:[#allocation141_spill] sm:$0xff] %v13091_v10  ;;  %v13109_v55 = vpack.c.bf16 %v4430_v27, %v4427_v62  ;;  %v3090_v10 = vld [vmem:[#allocation10 + $0x2a8] sm:$0xff]  ;;  %v13118_v34 = vsub.f32 %v3084_v19, %v3222_v24  ;;  %10044 = vmatpush1.bf16.msra.mxu0 %v13103_v22  ;;  %v13122_v50 = vsub.f32 %v3087_v44, %v3226_v45  ;;  %v3089_v45 = vld [vmem:[#allocation10 + $0x2a0] sm:$0xff] }
 0x636   : > { %16119 = vst [vmem:[#allocation142_spill] sm:$0xff] %v13093_v11  ;;  %16120 = vst [vmem:[#allocation143_spill] sm:$0xff] %v13099_v49  ;;  %v3040_v11 = vld [vmem:[#allocation10 + $0x118] sm:$0xff]  ;;  %v4484_v23 = vand.u32 4294901760, %v3088_v17  ;;  %v3224_v2 = vand.u32 4294901760, %v3083_v36  ;;  %10046 = vmatprep.subr.bf16.mxu0 %v13116_v63  ;;  %v3228_v42 = vand.u32 4294901760, %v3086_v4  ;;  %v13127_v24 = vsub.f32 %v3085_v52, %v4481_v32 }
 0x637   : > { %16121 = vst [vmem:[#allocation144_spill] sm:$0xff] %v13103_v22  ;;  %16122 = vst [vmem:[#allocation145_spill] sm:$0xff] %v13105_v13  ;;  %10396 = vmatpush3.bf16.msra.mxu1 %v13109_v55  ;;  %v4433_v62 = vand.u32 4294901760, %v3037_v12  ;;  %v4436_v8 = vand.u32 4294901760, %v3040_v11  ;;  %v3230_v27 = vand.u32 4294901760, %v3090_v10  ;;  %v3091_v49 = vld [vmem:[#allocation10 + $0x2b0] sm:$0xff] }
 0x638   : > { %16123 = vst [vmem:[#allocation146_spill] sm:$0xff] %v13107_v56  ;;  %16124 = vst [vmem:[#allocation147_spill] sm:$0xff] %v13109_v55  ;;  %v3093_v56 = vld [vmem:[#allocation10 + $0x2c0] sm:$0xff]  ;;  %v3094_v13 = vld [vmem:[#allocation10 + $0x2c8] sm:$0xff]  ;;  %v13125_v19 = vpack.c.bf16 %v4484_v23, %v4481_v32  ;;  %v13129_v22 = vsub.f32 %v3088_v17, %v4484_v23  ;;  %v13131_v44 = vsub.f32 %v3083_v36, %v3224_v2  ;;  %v4487_v36 = vand.u32 4294901760, %v3091_v49 }
 0x639   : > { %16125 = vst [vmem:[#allocation148_spill] sm:$0xff] %v13116_v63  ;;  %16126 = vst [vmem:[#allocation149_spill] sm:$0xff] %v13118_v34  ;;  %v3092_v55 = vld [vmem:[#allocation10 + $0x2b8] sm:$0xff]  ;;  %v13133_v34 = vpack.c.bf16 %v3228_v42, %v3224_v2  ;;  %v13135_v63 = vsub.f32 %v3086_v4, %v3228_v42  ;;  %v13137_v0 = vpack.c.bf16 %v4436_v8, %v4433_v62  ;;  %v3234_v17 = vand.u32 4294901760, %v3093_v56 }
 0x63a   : > { %16127 = vst [vmem:[#allocation150_spill] sm:$0xff] %v13122_v50  ;;  %16128 = vst [vmem:[#allocation151_spill] sm:$0xff] %v13125_v19  ;;  %v3043_v50 = vld [vmem:[#allocation10 + $0x130] sm:$0xff]  ;;  %v13139_v7 = vsub.f32 %v3037_v12, %v4433_v62  ;;  %10398 = vmatprep.subr.bf16.mxu1 %v13125_v19  ;;  %v13142_v52 = vsub.f32 %v3040_v11, %v4436_v8  ;;  %v13144_v32 = vsub.f32 %v3090_v10, %v3230_v27  ;;  %v3097_v10 = vld [vmem:[#allocation10 + $0x2e0] sm:$0xff] }
 0x63b   : > { %16129 = vst [vmem:[#allocation152_spill] sm:$0xff] %v13127_v24  ;;  %16130 = vst [vmem:[#allocation153_spill] sm:$0xff] %v13129_v22  ;;  %10048 = vmatpush1.bf16.msra.mxu0 %v13133_v34  ;;  %10400 = vmatpush3.bf16.msra.mxu1 %v13137_v0  ;;  %v4490_v23 = vand.u32 4294901760, %v3094_v13  ;;  %v3232_v4 = vand.u32 4294901760, %v3089_v45  ;;  %v3236_v2 = vand.u32 4294901760, %v3092_v55  ;;  %v4439_v42 = vand.u32 4294901760, %v3043_v50 }
 0x63c   : > { %16131 = vst [vmem:[#allocation154_spill] sm:$0xff] %v13131_v44  ;;  %16132 = vst [vmem:[#allocation155_spill] sm:$0xff] %v13133_v34  ;;  %v3099_v12 = vld [vmem:[#allocation10 + $0x2f0] sm:$0xff]  ;;  %v13148_v62 = vpack.c.bf16 %v3234_v17, %v3230_v27  ;;  %v13150_v44 = vsub.f32 %v3093_v56, %v3234_v17  ;;  %v13152_v11 = vsub.f32 %v3091_v49, %v4487_v36  ;;  %v4442_v8 = vand.u32 4294901760, %v3046_v48  ;;  %v3100_v19 = vld [vmem:[#allocation10 + $0x2f8] sm:$0xff] }
 0x63d   : > { %16133 = vst [vmem:[#allocation156_spill] sm:$0xff] %v13135_v63  ;;  %16134 = vst [vmem:[#allocation157_spill] sm:$0xff] %v13137_v0  ;;  %v3096_v63 = vld [vmem:[#allocation10 + $0x2d8] sm:$0xff]  ;;  %v13154_v51 = vpack.c.bf16 %v4490_v23, %v4487_v36  ;;  %v13156_v34 = vsub.f32 %v3094_v13, %v4490_v23  ;;  %v13158_v0 = vpack.c.bf16 %v3236_v2, %v3232_v4  ;;  %v4493_v36 = vand.u32 4294901760, %v3097_v10 }
 0x63e   : > { %16135 = vst [vmem:[#allocation158_spill] sm:$0xff] %v13139_v7  ;;  %16136 = vst [vmem:[#allocation159_spill] sm:$0xff] %v13142_v52  ;;  %v13160_v15 = vsub.f32 %v3089_v45, %v3232_v4  ;;  %v3052_v27 = vld [vmem:[#allocation10 + $0x178] sm:$0xff]  ;;  %10050 = vmatprep.subr.bf16.mxu0 %v13148_v62  ;;  %v13163_v56 = vsub.f32 %v3092_v55, %v3236_v2  ;;  %v13165_v49 = vpack.c.bf16 %v4442_v8, %v4439_v42 }
 0x63f   : > { %16137 = vst [vmem:[#allocation160_spill] sm:$0xff] %v13144_v32  ;;  %16138 = vst [vmem:[#allocation161_spill] sm:$0xff] %v13148_v62  ;;  %v3095_v32 = vld [vmem:[#allocation10 + $0x2d0] sm:$0xff]  ;;  %v13167_v17 = vsub.f32 %v3043_v50, %v4439_v42  ;;  %10402 = vmatprep.subr.bf16.mxu1 %v13154_v51  ;;  %10052 = vmatpush1.bf16.msra.mxu0 %v13158_v0  ;;  %v3238_v13 = vand.u32 4294901760, %v3096_v63  ;;  %v3242_v45 = vand.u32 4294901760, %v3099_v12  ;;  %v4496_v23 = vand.u32 4294901760, %v3100_v19 }
 0x640   : > { %16139 = vst [vmem:[#allocation162_spill] sm:$0xff] %v13150_v44  ;;  %16140 = vst [vmem:[#allocation163_spill] sm:$0xff] %v13152_v11  ;;  %v13169_v44 = vsub.f32 %v3046_v48, %v4442_v8  ;;  %10404 = vmatpush3.bf16.msra.mxu1 %v13165_v49  ;;  %v3240_v4 = vand.u32 4294901760, %v3095_v32  ;;  %v3244_v62 = vand.u32 4294901760, %v3098_v9  ;;  %v4445_v55 = vand.u32 4294901760, %v3049_v61 }
 0x641   : > { %16141 = vst [vmem:[#allocation164_spill] sm:$0xff] %v13154_v51  ;;  %16142 = vst [vmem:[#allocation165_spill] sm:$0xff] %v13156_v34  ;;  %v4448_v2 = vand.u32 4294901760, %v3052_v27  ;;  %v13176_v50 = vsub.f32 %v3096_v63, %v3238_v13  ;;  %v13178_v48 = vsub.f32 %v3099_v12, %v3242_v45  ;;  %v13180_v42 = vpack.c.bf16 %v4496_v23, %v4493_v36 }
 0x642   : > { %16143 = vst [vmem:[#allocation166_spill] sm:$0xff] %v13158_v0  ;;  %16144 = vst [vmem:[#allocation167_spill] sm:$0xff] %v13160_v15  ;;  %v13182_v8 = vsub.f32 %v3097_v10, %v4493_v36  ;;  %v13184_v0 = vsub.f32 %v3100_v19, %v4496_v23  ;;  %v13186_v51 = vpack.c.bf16 %v3244_v62, %v3240_v4  ;;  %v15665_v10 = vand.u32 4294901760, %v12757_v33 }
 0x643   : > { %16145 = vst [vmem:[#allocation168_spill] sm:$0xff] %v13163_v56  ;;  %16146 = vst [vmem:[#allocation169_spill] sm:$0xff] %v13165_v49  ;;  %v13174_v56 = vpack.c.bf16 %v3242_v45, %v3238_v13  ;;  %v13188_v15 = vsub.f32 %v3095_v32, %v3240_v4  ;;  %10406 = vmatprep.subr.bf16.mxu1 %v13180_v42  ;;  %v13192_v49 = vsub.f32 %v3098_v9, %v3244_v62 }
 0x644   : > { %16147 = vst [vmem:[#allocation170_spill] sm:$0xff] %v13167_v17  ;;  %16148 = vst [vmem:[#allocation171_spill] sm:$0xff] %v13169_v44  ;;  %v13194_v63 = vpack.c.bf16 %v4448_v2, %v4445_v55  ;;  %v13196_v12 = vsub.f32 %v3049_v61, %v4445_v55  ;;  %v15662_v13 = vand.u32 4294901760, %v12755_v35  ;;  %v13200_v19 = vsub.f32 %v3052_v27, %v4448_v2 }
 0x645   : > { %16149 = vst [vmem:[#allocation172_spill] sm:$0xff] %v13174_v56  ;;  %16150 = vst [vmem:[#allocation173_spill] sm:$0xff] %v13176_v50  ;;  %10054 = vmatprep.subr.bf16.mxu0 %v13174_v56  ;;  %v15668_v32 = vand.u32 4294901760, %v12977_v31  ;;  %v15673_v45 = vand.u32 4294901760, %v12980_v16  ;;  %v15687_v61 = vand.u32 4294901760, %v12989_v25  ;;  %v3278_v62 = vsub.f32 %v12757_v33, %v15665_v10 }
 0x646   : > { %16151 = vst [vmem:[#allocation174_spill] sm:$0xff] %v13178_v48  ;;  %16152 = vst [vmem:[#allocation175_spill] sm:$0xff] %v13180_v42  ;;  %10056 = vmatpush1.bf16.msra.mxu0 %v13186_v51  ;;  %10408 = vmatpush3.bf16.msra.mxu1 %v13194_v63  ;;  %v3266_v9 = vsub.f32 %v12755_v35, %v15662_v13  ;;  %v15682_v23 = vand.u32 4294901760, %v12991_v18  ;;  %v15676_v33 = vand.u32 4294901760, %v13015_v1  ;;  %v15692_v35 = vand.u32 4294901760, %v13095_v28 }
 0x647   : > { %16153 = vst [vmem:[#allocation176_spill] sm:$0xff] %v13182_v8  ;;  %16154 = vst [vmem:[#allocation177_spill] sm:$0xff] %v13184_v0  ;;  %v4630_v27 = vsub.f32 %v12977_v31, %v15668_v32  ;;  %v4637_v36 = vsub.f32 %v12980_v16, %v15673_v45  ;;  %v4518_v55 = vsub.f32 %v12989_v25, %v15687_v61  ;;  %v3279_v2 = vand.u32 4294901760, %v3278_v62 }
 0x648   : > { %16155 = vst [vmem:[#allocation178_spill] sm:$0xff] %v13186_v51  ;;  %16156 = vst [vmem:[#allocation179_spill] sm:$0xff] %v13188_v15  ;;  %v3267_v4 = vand.u32 4294901760, %v3266_v9  ;;  %v4525_v10 = vsub.f32 %v12991_v18, %v15682_v23  ;;  %v15681_v45 = vand.u32 4294901760, %v13012_v37  ;;  %v13269_v23 = vand.u32 4294901760, %v12751_v14 }
 0x649   : > { %16157 = vst [vmem:[#allocation180_spill] sm:$0xff] %v13192_v49  ;;  %16158 = vst [vmem:[#allocation181_spill] sm:$0xff] %v13194_v63  ;;  %v4631_v13 = vand.u32 4294901760, %v4630_v27  ;;  %v4638_v51 = vand.u32 4294901760, %v4637_v36  ;;  %v4519_v56 = vand.u32 4294901760, %v4518_v55  ;;  %v4651_v27 = vsub.f32 %v13015_v1, %v15676_v33 }
 0x64a   : > { %16159 = vst [vmem:[#allocation182_spill] sm:$0xff] %v13196_v12  ;;  %16160 = vst [vmem:[#allocation183_spill] sm:$0xff] %v13200_v19  ;;  %v10057_v32 = vpack.c.bf16 %v3279_v2, %v3267_v4  ;;  %v4526_v42 = vand.u32 4294901760, %v4525_v10  ;;  %v4644_v62 = vsub.f32 %v13012_v37, %v15681_v45  ;;  %v15679_v36 = vand.u32 4294901760, %v13024_v21  ;;  %v2886_v37 = vld [vmem:[#allocation15 + $0x8] sm:$0xff] }
 0x64b   : > { %v10409_v63 = vpack.c.bf16 %v4638_v51, %v4631_v13  ;;  %v15677_v51 = vand.u32 4294901760, %v13026_v40  ;;  %v4652_v10 = vand.u32 4294901760, %v4651_v27  ;;  %v15678_v55 = vand.u32 4294901760, %v13049_v43  ;;  %16165 = vst [vmem:[#allocation188_spill] sm:$0xff] %v13269_v23 }
 0x64c   : > { %10058 = vmatprep.subr.bf16.mxu0 %v10057_v32  ;;  %v13228_v9 = vpack.c.bf16 %v4526_v42, %v4519_v56  ;;  %v4645_v13 = vand.u32 4294901760, %v4644_v62  ;;  %v15680_v2 = vand.u32 4294901760, %v13052_v26  ;;  %v15686_v45 = vand.u32 4294901760, %v13073_v60 }
 0x64d   : > { %10410 = vmatprep.subr.bf16.mxu1 %v10409_v63  ;;  %v4532_v63 = vsub.f32 %v13024_v21, %v15679_v36  ;;  %v4539_v56 = vsub.f32 %v13026_v40, %v15677_v51  ;;  %v4658_v62 = vsub.f32 %v13049_v43, %v15678_v55  ;;  %v15684_v51 = vand.u32 4294901760, %v13061_v54 }
 0x64e   : > { %16161 = vst [vmem:[#allocation184_spill] sm:$0xff] %v13228_v9  ;;  %v13244_v42 = vpack.c.bf16 %v4652_v10, %v4645_v13  ;;  %v4665_v27 = vsub.f32 %v13052_v26, %v15680_v2  ;;  %v15683_v13 = vand.u32 4294901760, %v13063_v20  ;;  %v15685_v2 = vand.u32 4294901760, %v13071_v47 }
 0x64f   : > { %v4533_v32 = vand.u32 4294901760, %v4532_v63  ;;  %v4540_v4 = vand.u32 4294901760, %v4539_v56  ;;  %v4659_v10 = vand.u32 4294901760, %v4658_v62  ;;  %v4546_v56 = vsub.f32 %v13061_v54, %v15684_v51 }
 0x650   : > { %16162 = vst [vmem:[#allocation185_spill] sm:$0xff] %v13244_v42  ;;  %v4666_v63 = vand.u32 4294901760, %v4665_v27  ;;  %v4672_v27 = vsub.f32 %v13071_v47, %v15685_v2  ;;  %v2891_v47 = vld [vmem:[#allocation15 + $0x30] sm:$0xff] }
 0x651   : > { %v13248_v33 = vpack.c.bf16 %v4540_v4, %v4533_v32  ;;  %v4553_v32 = vsub.f32 %v13063_v20, %v15683_v13  ;;  %v4547_v55 = vand.u32 4294901760, %v4546_v56  ;;  %v15691_v56 = vand.u32 4294901760, %v13086_v53  ;;  %v2889_v20 = vld [vmem:[#allocation15 + $0x20] sm:$0xff] }
 0x652   : > { %v13264_v4 = vpack.c.bf16 %v4666_v63, %v4659_v10  ;;  %v4679_v10 = vsub.f32 %v13073_v60, %v15686_v45  ;;  %v15690_v63 = vand.u32 4294901760, %v13084_v38 }
 0x653   : > { %16163 = vst [vmem:[#allocation186_spill] sm:$0xff] %v13248_v33  ;;  %v4554_v36 = vand.u32 4294901760, %v4553_v32  ;;  %v4673_v32 = vand.u32 4294901760, %v4672_v27  ;;  %v15693_v27 = vand.u32 4294901760, %v13101_v39 }
 0x654   : > { %16164 = vst [vmem:[#allocation187_spill] sm:$0xff] %v13264_v4  ;;  %v4680_v13 = vand.u32 4294901760, %v4679_v10  ;;  %v4560_v51 = vsub.f32 %v13084_v38, %v15690_v63  ;;  %v4686_v63 = vsub.f32 %v13095_v28, %v15692_v35 }
 0x655   : > { %v13271_v62 = vpack.c.bf16 %v4554_v36, %v4547_v55  ;;  %v4567_v36 = vsub.f32 %v13086_v53, %v15691_v56  ;;  %v13289_v55 = vsub.f32 %v12751_v14, %v13269_v23  ;;  %v4693_v56 = vsub.f32 %v13101_v39, %v15693_v27 }
 0x656   : > { %v13291_v2 = vpack.c.bf16 %v4680_v13, %v4673_v32  ;;  %v4561_v45 = vand.u32 4294901760, %v4560_v51  ;;  %v15696_v14 = vand.u32 4294901760, %v13112_v57  ;;  %v15697_v51 = vand.u32 4294901760, %v13114_v6 }
 0x657   : > { %16166 = vst [vmem:[#allocation189_spill] sm:$0xff] %v13271_v62  ;;  %16167 = vst [vmem:[#allocation190_spill] sm:$0xff] %v13289_v55  ;;  %v4568_v61 = vand.u32 4294901760, %v4567_v36  ;;  %v13305_v13 = vand.u32 4294901760, %v13289_v55  ;;  %v15698_v32 = vand.u32 4294901760, %v12759_v46  ;;  %v4687_v36 = vand.u32 4294901760, %v4686_v63 }
 0x658   : > { %16168 = vst [vmem:[#allocation191_spill] sm:$0xff] %v13291_v2  ;;  %v4581_v35 = vsub.f32 %v13114_v6, %v15697_v51  ;;  %v15701_v2 = vand.u32 4294901760, %v13127_v24  ;;  %v15704_v62 = vand.u32 4294901760, %v13129_v22 }
 0x659   : > { %v13295_v10 = vpack.c.bf16 %v4568_v61, %v4561_v45  ;;  %16170 = vst [vmem:[#allocation193_spill] sm:$0xff] %v13305_v13  ;;  %v4694_v45 = vand.u32 4294901760, %v4693_v56  ;;  %v4574_v61 = vsub.f32 %v13112_v57, %v15696_v14  ;;  %v3255_v63 = vsub.f32 %v13289_v55, %v13305_v13 }
 0x65a   : > { %v13324_v56 = vsub.f32 %v12759_v46, %v15698_v32  ;;  %v15710_v14 = vand.u32 4294901760, %v13142_v52  ;;  %v15715_v46 = vand.u32 4294901760, %v13152_v11 }
 0x65b   : > { %16169 = vst [vmem:[#allocation192_spill] sm:$0xff] %v13295_v10  ;;  %v13315_v27 = vpack.c.bf16 %v4694_v45, %v4687_v36  ;;  %v4575_v23 = vand.u32 4294901760, %v4574_v61  ;;  %v4582_v10 = vand.u32 4294901760, %v4581_v35  ;;  %v4700_v35 = vsub.f32 %v13127_v24, %v15701_v2 }
 0x65c   : > { %v4707_v36 = vsub.f32 %v13129_v22, %v15704_v62  ;;  %v15705_v45 = vand.u32 4294901760, %v13139_v7  ;;  %v13344_v55 = vand.u32 4294901760, %v3255_v63  ;;  %v16174_v62 = vand.u32 4294901760, %v12763_v29 }
 0x65d   : > { %16171 = vst [vmem:[#allocation194_spill] sm:$0xff] %v13315_v27  ;;  %v13327_v4 = vpack.c.bf16 %v4582_v10, %v4575_v23  ;;  %v4701_v10 = vand.u32 4294901760, %v4700_v35  ;;  %v4595_v32 = vsub.f32 %v13142_v52, %v15710_v14  ;;  %v16177_v14 = vand.u32 4294901760, %v12770_v30 }
 0x65e   : > { %v4708_v13 = vand.u32 4294901760, %v4707_v36  ;;  %v4588_v2 = vsub.f32 %v13139_v7, %v15705_v45  ;;  %16173 = vst [vmem:[#allocation196_spill] sm:$0xff] %v13344_v55  ;;  %v13349_v61 = vsub.f32 %v12763_v29, %v16174_v62  ;;  %v16176_v62 = vand.u32 4294901760, %v12767_v5 }
 0x65f   : > { %16172 = vst [vmem:[#allocation195_spill] sm:$0xff] %v13327_v4  ;;  %v4596_v63 = vand.u32 4294901760, %v4595_v32  ;;  %v15720_v4 = vand.u32 4294901760, %v13156_v34  ;;  %v13369_v51 = vsub.f32 %v12770_v30, %v16177_v14  ;;  %v16179_v32 = vand.u32 4294901760, %v12778_v59 }
 0x660   : > { %v13356_v36 = vpack.c.bf16 %v4708_v13, %v4701_v10  ;;  %v4589_v23 = vand.u32 4294901760, %v4588_v2  ;;  %v13364_v29 = vsub.f32 %v12767_v5, %v16176_v62  ;;  %v16178_v13 = vand.u32 4294901760, %v12776_v41 }
 0x661   : > { %v13379_v10 = vsub.f32 %v12778_v59, %v16179_v32  ;;  %v4714_v62 = vsub.f32 %v13152_v11, %v15715_v46  ;;  %v4721_v14 = vsub.f32 %v13156_v34, %v15720_v4  ;;  %v15725_v35 = vand.u32 4294901760, %v13167_v17  ;;  %v16185_v46 = vld [vmem:[#allocation59_spill] sm:$0xff]  ;;  %v16190_v59 = vld [vmem:[#allocation94_spill] sm:$0xff] }
 0x662   : > { %16175 = vst [vmem:[#allocation197_spill] sm:$0xff] %v13356_v36  ;;  %v13374_v2 = vsub.f32 %v12776_v41, %v16178_v13  ;;  %v13381_v45 = vpack.c.bf16 %v4596_v63, %v4589_v23  ;;  %v16181_v41 = vand.u32 4294901760, %v12780_v3  ;;  %v16183_v23 = vand.u32 4294901760, %v12784_v58  ;;  %v16186_v36 = vld [vmem:[#allocation60_spill] sm:$0xff] }
 0x663   : > { %v15726_v32 = vand.u32 4294901760, %v13169_v44  ;;  %v4715_v5 = vand.u32 4294901760, %v4714_v62  ;;  %v4722_v4 = vand.u32 4294901760, %v4721_v14  ;;  %v4602_v13 = vsub.f32 %v13167_v17, %v15725_v35 }
 0x664   : > { %16180 = vst [vmem:[#allocation198_spill] sm:$0xff] %v13381_v45  ;;  %v13394_v30 = vsub.f32 %v12780_v3, %v16181_v41  ;;  %v13399_v63 = vsub.f32 %v12784_v58, %v16183_v23  ;;  %v15727_v45 = vand.u32 4294901760, %v13182_v8  ;;  %v15729_v41 = vand.u32 4294901760, %v13184_v0  ;;  %v16189_v58 = vld [vmem:[#allocation93_spill] sm:$0xff] }
 0x665   : > { %v4609_v23 = vsub.f32 %v13169_v44, %v15726_v32  ;;  %v13414_v62 = vpack.c.bf16 %v4722_v4, %v4715_v5  ;;  %v4603_v14 = vand.u32 4294901760, %v4602_v13  ;;  %v16188_v33 = vand.u32 4294901760, %v16185_v46 }
 0x666   : > { %16182 = vst [vmem:[#allocation199_spill] sm:$0xff] %v13394_v30  ;;  %16184 = vst [vmem:[#allocation200_spill] sm:$0xff] %v13399_v63  ;;  %v15733_v42 = vand.u32 4294901760, %v16189_v58  ;;  %v15735_v5 = vand.u32 4294901760, %v16190_v59  ;;  %v4728_v13 = vsub.f32 %v13182_v8, %v15727_v45  ;;  %v15737_v3 = vand.u32 4294901760, %v13196_v12 }
 0x667   : > { %16187 = vst [vmem:[#allocation201_spill] sm:$0xff] %v13414_v62  ;;  %v4610_v35 = vand.u32 4294901760, %v4609_v23  ;;  %v13423_v32 = vsub.f32 %v16185_v46, %v16188_v33  ;;  %v4735_v23 = vsub.f32 %v13184_v0, %v15729_v41  ;;  %v16192_v27 = vand.u32 4294901760, %v16186_v36  ;;  %v16193_v62 = vld [vmem:[#allocation99_spill] sm:$0xff] }
 0x668   : > { %v15740_v45 = vand.u32 4294901760, %v13200_v19  ;;  %v4729_v46 = vand.u32 4294901760, %v4728_v13  ;;  %v4616_v41 = vsub.f32 %v13196_v12, %v15737_v3  ;;  %v15739_v9 = vand.u32 4294901760, %v16193_v62  ;;  %v16244_v12 = vld [vmem:[#allocation69_spill] sm:$0xff] }
 0x669   : > { %v13427_v4 = vpack.c.bf16 %v4610_v35, %v4603_v14  ;;  %v13439_v33 = vsub.f32 %v16186_v36, %v16192_v27  ;;  %v3440_v35 = vsub.f32 %v16189_v58, %v15733_v42  ;;  %v3452_v14 = vsub.f32 %v16190_v59, %v15735_v5 }
 0x66a   : > { %v4623_v42 = vsub.f32 %v13200_v19, %v15740_v45  ;;  %v4617_v5 = vand.u32 4294901760, %v4616_v41  ;;  %v3458_v13 = vsub.f32 %v16193_v62, %v15739_v9  ;;  %v16199_v41 = vld [vmem:[#allocation104_spill] sm:$0xff]  ;;  %v2885_v45 = vld [vmem:[#allocation15] sm:$0xff] }
 0x66b   : > { %16191 = vst [vmem:[#allocation202_spill] sm:$0xff] %v13427_v4  ;;  %v4736_v4 = vand.u32 4294901760, %v4735_v23  ;;  %v3441_v55 = vand.u32 4294901760, %v3440_v35  ;;  %v3453_v63 = vand.u32 4294901760, %v3452_v14  ;;  %v16196_v23 = vld [vmem:[#allocation100_spill] sm:$0xff]  ;;  %v16198_v14 = vld [vmem:[#allocation103_spill] sm:$0xff] }
 0x66c   : > { %v15743_v59 = vand.u32 4294901760, %v16196_v23  ;;  %v4624_v30 = vand.u32 4294901760, %v4623_v42  ;;  %v15748_v36 = vand.u32 4294901760, %v16198_v14  ;;  %v3459_v27 = vand.u32 4294901760, %v3458_v13  ;;  %v16202_v35 = vld [vmem:[#allocation111_spill] sm:$0xff]  ;;  %v16203_v9 = vld [vmem:[#allocation114_spill] sm:$0xff] }
 0x66d   : > { %v13456_v58 = vpack.c.bf16 %v4736_v4, %v4729_v46  ;;  %v13462_v3 = vpack.c.bf16 %v3453_v63, %v3441_v55  ;;  %v15752_v4 = vand.u32 4294901760, %v16199_v41  ;;  %v16201_v55 = vld [vmem:[#allocation110_spill] sm:$0xff]  ;;  %v15760_v13 = vand.u32 4294901760, %v16202_v35 }
 0x66e   : > { %v3470_v46 = vsub.f32 %v16196_v23, %v15743_v59  ;;  %v3464_v42 = vsub.f32 %v16198_v14, %v15748_v36  ;;  %v15759_v63 = vand.u32 4294901760, %v16201_v55  ;;  %v16205_v14 = vld [vmem:[#allocation41_spill] sm:$0xff]  ;;  %v16253_v19 = vld [vmem:[#allocation66_spill] sm:$0xff] }
 0x66f   : > { %16195 = vst [vmem:[#allocation203_spill] sm:$0xff] %v13456_v58  ;;  %16197 = vst [vmem:[#allocation204_spill] sm:$0xff] %v13462_v3  ;;  %v13473_v58 = vpack.c.bf16 %v4624_v30, %v4617_v5  ;;  %v3476_v59 = vsub.f32 %v16199_v41, %v15752_v4  ;;  %v3494_v18 = vsub.f32 %v16202_v35, %v15760_v13 }
 0x670   : > { %v3471_v31 = vand.u32 4294901760, %v3470_v46  ;;  %v3465_v5 = vand.u32 4294901760, %v3464_v42  ;;  %v3482_v36 = vsub.f32 %v16201_v55, %v15759_v63  ;;  %v16204_v46 = vld [vmem:[#allocation115_spill] sm:$0xff]  ;;  %v16207_v42 = vand.u32 4294901760, %v16203_v9 }
 0x671   : > { %16200 = vst [vmem:[#allocation205_spill] sm:$0xff] %v13473_v58  ;;  %v15765_v58 = vand.u32 4294901760, %v16204_v46  ;;  %v3477_v16 = vand.u32 4294901760, %v3476_v59  ;;  %v3495_v1 = vand.u32 4294901760, %v3494_v18 }
 0x672   : > { %v13494_v41 = vpack.c.bf16 %v3471_v31, %v3459_v27  ;;  %v3483_v25 = vand.u32 4294901760, %v3482_v36  ;;  %v3488_v23 = vsub.f32 %v16203_v9, %v16207_v42  ;;  %v16209_v31 = vld [vmem:[#allocation121_spill] sm:$0xff] }
 0x673   : > { %v3500_v63 = vsub.f32 %v16204_v46, %v15765_v58  ;;  %v13502_v35 = vpack.c.bf16 %v3477_v16, %v3465_v5  ;;  %v15768_v27 = vand.u32 4294901760, %v16209_v31  ;;  %v2887_v5 = vld [vmem:[#allocation15 + $0x10] sm:$0xff] }
 0x674   : > { %16206 = vst [vmem:[#allocation41_spill] sm:$0xff] %v13494_v41  ;;  %v3489_v18 = vand.u32 4294901760, %v3488_v23  ;;  %v16211_v41 = vld [vmem:[#allocation122_spill] sm:$0xff]  ;;  %v16213_v23 = vld [vmem:[#allocation125_spill] sm:$0xff] }
 0x675   : > { %16208 = vst [vmem:[#allocation206_spill] sm:$0xff] %v13502_v35  ;;  %v3501_v36 = vand.u32 4294901760, %v3500_v63  ;;  %v15769_v55 = vand.u32 4294901760, %v16211_v41  ;;  %v3506_v16 = vsub.f32 %v16209_v31, %v15768_v27  ;;  %v15776_v63 = vand.u32 4294901760, %v16213_v23 }
 0x677   : > { %v13514_v58 = vpack.c.bf16 %v3501_v36, %v3489_v18  ;;  %v3512_v18 = vsub.f32 %v16213_v23, %v15776_v63  ;;  %v16214_v36 = vld [vmem:[#allocation126_spill] sm:$0xff] }
 0x678   : > { %v15778_v27 = vand.u32 4294901760, %v16214_v36 }
 0x679   : > { %16212 = vst [vmem:[#allocation207_spill] sm:$0xff] %v13514_v58  ;;  %v2888_v58 = vld [vmem:[#allocation15 + $0x18] sm:$0xff] }
 0x686   : > { %v2896_v30 = vpop.permute.xlu0 %2895 }
 0x687   : > { %v2933_v3 = vmul.f32 %v2896_v30, %v2885_v45  ;;  %v7526_v4 = vrot.slane %v2896_v30, %v16205_v14  ;;  %v13507_v30 = vpack.c.bf16 %v3495_v1, %v3483_v25  ;;  %v3518_v25 = vsub.f32 %v16211_v41, %v15769_v55 }
 0x689   : > { %v2941_v13 = vrot.slane %v2933_v3, 4  ;;  %16210 = vst [vmem:[#allocation121_spill] sm:$0xff] %v13507_v30  ;;  %v3519_v21 = vand.u32 4294901760, %v3518_v25 }
 0x68a   : > { %v2901_v59 = vpop.permute.xlu0 %2900 }
 0x68b   : > { %v2942_v42 = vadd.f32 %v2941_v13, %v2933_v3  ;;  %v2934_v9 = vmul.f32 %v2901_v59, %v2886_v37  ;;  %v7530_v62 = vrot.slane %v2901_v59, %v16205_v14  ;;  %v3507_v59 = vand.u32 4294901760, %v3506_v16  ;;  %v16216_v16 = vld [vmem:[#allocation129_spill] sm:$0xff] }
 0x68c   : > { %v15783_v25 = vand.u32 4294901760, %v16216_v16 }
 0x68d   : > { %v2943_v3 = vrot.slane %v2942_v42, 2  ;;  %v2947_v37 = vrot.slane %v2934_v9, 4  ;;  %v7555_v13 = vsel %vm2669_vm2, %v7530_v62, %v7526_v4  ;;  %v13530_v30 = vpack.c.bf16 %v3519_v21, %v3507_v59  ;;  %v16217_v21 = vld [vmem:[#allocation130_spill] sm:$0xff] }
 0x68e   : > { %v2906_v45 = vpop.permute.xlu0 %2905  ;;  %v3513_v62 = vand.u32 4294901760, %v3512_v18  ;;  %v3524_v4 = vsub.f32 %v16214_v36, %v15778_v27  ;;  %v16219_v36 = vld [vmem:[#allocation135_spill] sm:$0xff] }
 0x68f   : > { %v2944_v40 = vadd.f32 %v2943_v3, %v2942_v42  ;;  %v2948_v1 = vadd.f32 %v2947_v37, %v2934_v9  ;;  %v2935_v43 = vmul.f32 %v2906_v45, %v2887_v5  ;;  %v7534_v26 = vrot.slane %v2906_v45, %v16205_v14  ;;  %16215 = vst [vmem:[#allocation208_spill] sm:$0xff] %v13530_v30 }
 0x690   : > { %v3525_v9 = vand.u32 4294901760, %v3524_v4  ;;  %v3530_v45 = vsub.f32 %v16216_v16, %v15783_v25  ;;  %v15787_v5 = vand.u32 4294901760, %v16217_v21  ;;  %v15790_v41 = vand.u32 4294901760, %v16219_v36 }
 0x691   : > { %v2945_v63 = vrot.slane %v2944_v40, 1  ;;  %v2949_v35 = vrot.slane %v2948_v1, 2  ;;  %v2953_v23 = vrot.slane %v2935_v43, 4  ;;  %v7556_v55 = vsel %vm2671_vm3, %v7534_v26, %v7555_v13 }
 0x692   : > { %v2911_v42 = vpop.permute.xlu0 %2910  ;;  %v13544_v30 = vpack.c.bf16 %v3525_v9, %v3513_v62  ;;  %v3531_v26 = vand.u32 4294901760, %v3530_v45  ;;  %v3542_v13 = vsub.f32 %v16217_v21, %v15787_v5  ;;  %v2890_v5 = vld [vmem:[#allocation15 + $0x28] sm:$0xff] }
 0x693   : > { %v2946_v37 = vadd.f32 %v2945_v63, %v2944_v40  ;;  %v2950_v59 = vadd.f32 %v2949_v35, %v2948_v1  ;;  %v2954_v18 = vadd.f32 %v2953_v23, %v2935_v43  ;;  %v2936_v27 = vmul.f32 %v2911_v42, %v2888_v58  ;;  %v16220_v58 = vld [vmem:[#allocation136_spill] sm:$0xff] }
 0x694   : > { %v7538_v54 = vrot.slane %v2911_v42, %v16205_v14  ;;  %16218 = vst [vmem:[#allocation130_spill] sm:$0xff] %v13544_v30  ;;  %v3543_v43 = vand.u32 4294901760, %v3542_v13  ;;  %v15795_v1 = vand.u32 4294901760, %v16220_v58 }
 0x695   : > { %v2951_v4 = vrot.slane %v2950_v59, 1  ;;  %v2955_v25 = vrot.slane %v2954_v18, 2  ;;  %v2959_v16 = vrot.slane %v2936_v27, 4 }
 0x696   : > { %v7557_v40 = vsel %vm2673_vm4, %v7538_v54, %v7556_v55  ;;  %v2916_v35 = vpop.permute.xlu0 %2915  ;;  %v13555_v3 = vpack.c.bf16 %v3543_v43, %v3531_v26  ;;  %v3536_v54 = vsub.f32 %v16219_v36, %v15790_v41  ;;  %v3548_v55 = vsub.f32 %v16220_v58, %v15795_v1  ;;  %v16222_v26 = vld [vmem:[#allocation141_spill] sm:$0xff] }
 0x697   : > { %v2952_v63 = vadd.f32 %v2951_v4, %v2950_v59  ;;  %v2956_v62 = vadd.f32 %v2955_v25, %v2954_v18  ;;  %v2960_v42 = vadd.f32 %v2959_v16, %v2936_v27  ;;  %v2937_v9 = vmul.f32 %v2916_v35, %v2889_v20 }
 0x698   : > { %v7542_v45 = vrot.slane %v2916_v35, %v16205_v14  ;;  %16221 = vst [vmem:[#allocation135_spill] sm:$0xff] %v13555_v3  ;;  %v3537_v16 = vand.u32 4294901760, %v3536_v54  ;;  %v3549_v18 = vand.u32 4294901760, %v3548_v55  ;;  %v15798_v4 = vand.u32 4294901760, %v16222_v26 }
 0x699   : > { %v2997_v13 = vsel %vm2669_vm2, %v2952_v63, %v2946_v37  ;;  %v2957_v23 = vrot.slane %v2956_v62, 1  ;;  %v2961_v59 = vrot.slane %v2960_v42, 2  ;;  %v2965_v25 = vrot.slane %v2937_v9, 4  ;;  %v16224_v63 = vld [vmem:[#allocation142_spill] sm:$0xff] }
 0x69a   : > { %v7558_v20 = vsel %vm2675_vm5, %v7542_v45, %v7557_v40  ;;  %v2921_v27 = vpop.permute.xlu0 %2920  ;;  %v13567_v1 = vpack.c.bf16 %v3549_v18, %v3537_v16  ;;  %v3554_v37 = vsub.f32 %v16222_v26, %v15798_v4  ;;  %v15799_v40 = vand.u32 4294901760, %v16224_v63  ;;  %v2892_v18 = vld [vmem:[#allocation15 + $0x38] sm:$0xff] }
 0x69b   : > { %v2958_v35 = vadd.f32 %v2957_v23, %v2956_v62  ;;  %v2962_v43 = vadd.f32 %v2961_v59, %v2960_v42  ;;  %v2966_v38 = vadd.f32 %v2965_v25, %v2937_v9  ;;  %v2938_v41 = vmul.f32 %v2921_v27, %v2890_v5  ;;  %v16225_v4 = vld [vmem:[#allocation145_spill] sm:$0xff] }
 0x69c   : > { %v7546_v53 = vrot.slane %v2921_v27, %v16205_v14  ;;  %16223 = vst [vmem:[#allocation136_spill] sm:$0xff] %v13567_v1  ;;  %v3555_v5 = vand.u32 4294901760, %v3554_v37  ;;  %v3566_v42 = vsub.f32 %v16224_v63, %v15799_v40 }
 0x69d   : > { %v2998_v45 = vsel %vm2671_vm3, %v2958_v35, %v2997_v13  ;;  %v2963_v54 = vrot.slane %v2962_v43, 1  ;;  %v2967_v55 = vrot.slane %v2966_v38, 2  ;;  %v2971_v60 = vrot.slane %v2938_v41, 4 }
 0x69e   : > { %v7559_v23 = vsel %vm2677_vm6, %v7546_v53, %v7558_v20  ;;  %v2926_v62 = vpop.permute.xlu0 %2925  ;;  %v3567_v35 = vand.u32 4294901760, %v3566_v42  ;;  %v15801_v53 = vand.u32 4294901760, %v16225_v4  ;;  %v16226_v20 = vld [vmem:[#allocation146_spill] sm:$0xff] }
 0x69f   : > { %v2964_v59 = vadd.f32 %v2963_v54, %v2962_v43  ;;  %v2968_v25 = vadd.f32 %v2967_v55, %v2966_v38  ;;  %v2972_v27 = vadd.f32 %v2971_v60, %v2938_v41  ;;  %v2939_v16 = vmul.f32 %v2926_v62, %v2891_v47 }
 0x6a0   : > { %v7550_v13 = vrot.slane %v2926_v62, %v16205_v14  ;;  %v15800_v37 = vand.u32 4294901760, %v16226_v20  ;;  %v13586_v60 = vpack.c.bf16 %v3567_v35, %v3555_v5  ;;  %v3560_v47 = vsub.f32 %v16225_v4, %v15801_v53 }
 0x6a1   : > { %v2999_v1 = vsel %vm2673_vm4, %v2964_v59, %v2998_v45  ;;  %v2969_v3 = vrot.slane %v2968_v25, 1  ;;  %v2973_v40 = vrot.slane %v2972_v27, 2  ;;  %v2977_v30 = vrot.slane %v2939_v16, 4 }
 0x6a2   : > { %v7560_v43 = vsel %vm2679_vm7, %v7550_v13, %v7559_v23  ;;  %v2931_v38 = vpop.permute.xlu0 %2930  ;;  %v3572_v41 = vsub.f32 %v16226_v20, %v15800_v37  ;;  %v3561_v5 = vand.u32 4294901760, %v3560_v47  ;;  %v16231_v47 = vld [vmem:[#allocation160_spill] sm:$0xff] }
 0x6a3   : > { %v2970_v54 = vadd.f32 %v2969_v3, %v2968_v25  ;;  %v2974_v55 = vadd.f32 %v2973_v40, %v2972_v27  ;;  %v2978_v45 = vadd.f32 %v2977_v30, %v2939_v16  ;;  %v2940_v62 = vmul.f32 %v2931_v38, %v2892_v18  ;;  %v16227_v25 = vld [vmem:[#allocation149_spill] sm:$0xff]  ;;  %v16228_v16 = vld [vmem:[#allocation150_spill] sm:$0xff] }
 0x6a4   : > { %v7554_v23 = vrot.slane %v2931_v38, %v16205_v14  ;;  %v3573_v42 = vand.u32 4294901760, %v3572_v41  ;;  %v15803_v27 = vand.u32 4294901760, %v16227_v25  ;;  %v15802_v18 = vand.u32 4294901760, %v16228_v16  ;;  %v16229_v41 = vld [vmem:[#allocation154_spill] sm:$0xff] }
 0x6a5   : > { %v3000_v13 = vsel %vm2675_vm5, %v2970_v54, %v2999_v1  ;;  %v2975_v35 = vrot.slane %v2974_v55, 1  ;;  %v2979_v37 = vrot.slane %v2978_v45, 2  ;;  %v2983_v3 = vrot.slane %v2940_v62, 4 }
 0x6a6   : > { %v7561_v30 = vsel %vm2681_vm8, %v7554_v23, %v7560_v43  ;;  %v13604_v40 = vpack.c.bf16 %v3573_v42, %v3561_v5  ;;  %v3578_v1 = vsub.f32 %v16227_v25, %v15803_v27  ;;  %v3590_v43 = vsub.f32 %v16228_v16, %v15802_v18  ;;  %v16230_v23 = vld [vmem:[#allocation156_spill] sm:$0xff] }
 0x6a7   : > { %v2976_v53 = vadd.f32 %v2975_v35, %v2974_v55  ;;  %v2980_v14 = vadd.f32 %v2979_v37, %v2978_v45  ;;  %v2984_v38 = vadd.f32 %v2983_v3, %v2940_v62  ;;  %7564 = vst.msk [vmem:[%s7563_s17] sm:$0xff] %vm2684_vm9, %v7561_v30  ;;  %v15806_v54 = vand.u32 4294901760, %v16229_v41  ;;  %v16288_v25 = vld [vmem:[#allocation84_spill] sm:$0xff] }
 0x6a8   : > { %v15807_v5 = vand.u32 4294901760, %v16230_v23  ;;  %v3579_v42 = vand.u32 4294901760, %v3578_v1  ;;  %v3591_v35 = vand.u32 4294901760, %v3590_v43  ;;  %v15808_v59 = vand.u32 4294901760, %v16231_v47 }
 0x6a9   : > { %v3001_v37 = vsel %vm2677_vm6, %v2976_v53, %v3000_v13  ;;  %v2981_v55 = vrot.slane %v2980_v14, 1  ;;  %v2985_v45 = vrot.slane %v2984_v38, 2  ;;  %v3584_v3 = vsub.f32 %v16229_v41, %v15806_v54  ;;  %v16232_v53 = vld [vmem:[#allocation162_spill] sm:$0xff] }
 0x6aa   : > { %v3596_v30 = vsub.f32 %v16230_v23, %v15807_v5  ;;  %v15809_v13 = vand.u32 4294901760, %v16232_v53  ;;  %v13630_v9 = vpack.c.bf16 %v3591_v35, %v3579_v42  ;;  %v3602_v5 = vsub.f32 %v16231_v47, %v15808_v59  ;;  %v16234_v42 = vld [vmem:[#allocation168_spill] sm:$0xff]  ;;  %v16361_v23 = vld [vmem:[#allocation45_spill] sm:$0xff] }
 0x6ab   : > { %v2982_v18 = vadd.f32 %v2981_v55, %v2980_v14  ;;  %v2986_v27 = vadd.f32 %v2985_v45, %v2984_v38  ;;  %v3585_v24 = vand.u32 4294901760, %v3584_v3  ;;  %v16233_v55 = vld [vmem:[#allocation167_spill] sm:$0xff]  ;;  %v15813_v35 = vand.u32 4294901760, %v16234_v42 }
 0x6ac   : > { %v3597_v62 = vand.u32 4294901760, %v3596_v30  ;;  %v3614_v14 = vsub.f32 %v16232_v53, %v15809_v13  ;;  %v15810_v45 = vand.u32 4294901760, %v16233_v55  ;;  %v15816_v1 = vand.u32 4294901760, %v13176_v50 }
 0x6ad   : > { %v3002_v43 = vsel %vm2679_vm7, %v2982_v18, %v3001_v37  ;;  %v2987_v54 = vrot.slane %v2986_v27, 1  ;;  %v3603_v18 = vand.u32 4294901760, %v3602_v5  ;;  %v15820_v5 = vand.u32 4294901760, %v13188_v15 }
 0x6ae   : > { %v13641_v38 = vpack.c.bf16 %v3597_v62, %v3585_v24  ;;  %v3615_v37 = vand.u32 4294901760, %v3614_v14  ;;  %v3608_v59 = vsub.f32 %v16233_v55, %v15810_v45  ;;  %v3620_v24 = vsub.f32 %v16234_v42, %v15813_v35 }
 0x6af   : > { %v2988_v30 = vadd.f32 %v2987_v54, %v2986_v27  ;;  %v15817_v62 = vand.u32 4294901760, %v13178_v48  ;;  %v3626_v54 = vsub.f32 %v13176_v50, %v15816_v1  ;;  %v15850_v16 = vand.u32 4294901760, %v16288_v25  ;;  %v16341_v50 = vld [vmem:[#allocation136_spill] sm:$0xff] }
 0x6b0   : > { %v13658_v27 = vpack.c.bf16 %v3615_v37, %v3603_v18  ;;  %v3609_v45 = vand.u32 4294901760, %v3608_v59  ;;  %v3621_v17 = vand.u32 4294901760, %v3620_v24  ;;  %v3321_v59 = vand.u32 4294901760, %v13423_v32 }
 0x6b1   : > { %v3003_v3 = vsel %vm2681_vm8, %v2988_v30, %v3002_v43  ;;  %v3638_v35 = vsub.f32 %v13178_v48, %v15817_v62  ;;  %v3627_v44 = vand.u32 4294901760, %v3626_v54  ;;  %v3632_v43 = vsub.f32 %v13188_v15, %v15820_v5  ;;  %v16236_v54 = vld [vmem:[#allocation67_spill] sm:$0xff] }
 0x6b2   : > { %v13664_v14 = vand.u32 4294901760, %v3003_v3  ;;  %v15827_v30 = vand.u32 4294901760, %v13192_v49  ;;  %v13679_v24 = vpack.c.bf16 %v3621_v17, %v3609_v45  ;;  %v3333_v62 = vand.u32 4294901760, %v13439_v33  ;;  %v16240_v17 = vld [vmem:[#allocation68_spill] sm:$0xff] }
 0x6b3   : > { %v3639_v1 = vand.u32 4294901760, %v3638_v35  ;;  %v3633_v8 = vand.u32 4294901760, %v3632_v43  ;;  %v16239_v18 = vand.u32 4294901760, %v13349_v61  ;;  %v16242_v33 = vand.u32 4294901760, %v13364_v29  ;;  %v16250_v45 = vld [vmem:[#allocation200_spill] sm:$0xff] }
 0x6b4   : > { %v13676_v37 = vsub.f32 %v3003_v3, %v13664_v14  ;;  %16235 = vst [vmem:[#allocation141_spill] sm:$0xff] %v13679_v24  ;;  %v3644_v5 = vsub.f32 %v13192_v49, %v15827_v30  ;;  %v16238_v3 = vand.u32 4294901760, %v13324_v56  ;;  %v16243_v43 = vand.u32 4294901760, %v13369_v51  ;;  %v16245_v30 = vld [vmem:[#allocation72_spill] sm:$0xff]  ;;  %v16252_v51 = vld [vmem:[#allocation73_spill] sm:$0xff] }
 0x6b5   : > { %v13694_v35 = vpack.c.bf16 %v3639_v1, %v3627_v44  ;;  %v16246_v61 = vand.u32 4294901760, %v13374_v2  ;;  %v16248_v44 = vld [vmem:[#allocation199_spill] sm:$0xff]  ;;  %v16251_v29 = vand.u32 4294901760, %v16250_v45  ;;  %v16254_v24 = vand.u32 4294901760, %v16253_v19 }
 0x6b6   : > { %v13687_v0 = vand.u32 4294901760, %v13676_v37  ;;  %v10059_v32 = vpack.c.bf16 %v16239_v18, %v16238_v3  ;;  %v10061_v13 = vpack.c.bf16 %v16243_v43, %v16242_v33  ;;  %v3645_v11 = vand.u32 4294901760, %v3644_v5 }
 0x6b7   : > { %16241 = vst [vmem:[#allocation68_spill] sm:$0xff] %v13694_v35  ;;  %v16247_v18 = vand.u32 4294901760, %v13379_v10  ;;  %v16249_v1 = vand.u32 4294901760, %v16248_v44  ;;  %v13713_v43 = vpack.c.bf16 %v3333_v62, %v3321_v59  ;;  %v3338_v5 = vsub.f32 %v16253_v19, %v16254_v24  ;;  %v16269_v62 = vld [vmem:[#allocation74_spill] sm:$0xff]  ;;  %v16278_v59 = vld [vmem:[#allocation184_spill] sm:$0xff]  ;;  %v16279_v44 = vld [vmem:[#allocation129_spill] sm:$0xff] }
 0x6b8   : > { %16237 = vst [vmem:[#allocation209_spill] sm:$0xff] %v13687_v0  ;;  %v3249_v56 = vsub.f32 %v13676_v37, %v13687_v0  ;;  %v16255_v0 = vand.u32 4294901760, %v16236_v54  ;;  %v13721_v34 = vpack.c.bf16 %v3645_v11, %v3633_v8  ;;  %v16262_v33 = vand.u32 4294901760, %v16244_v12  ;;  %v16276_v8 = vld [vmem:[#allocation125_spill] sm:$0xff] }
 0x6b9   : > { %v10063_v3 = vpack.c.bf16 %v16247_v18, %v16246_v61  ;;  %v10065_v35 = vpack.c.bf16 %v16251_v29, %v16249_v1  ;;  %v16257_v61 = vand.u32 4294901760, %v16240_v17  ;;  %v16263_v19 = vand.u32 4294901760, %v16245_v30  ;;  %v16270_v18 = vld [vmem:[#allocation75_spill] sm:$0xff] }
 0x6ba   : > { %v3350_v2 = vsub.f32 %v16236_v54, %v16255_v0  ;;  %16256 = vst [vmem:[#allocation199_spill] sm:$0xff] %v13721_v34  ;;  %v3250_v10 = vand.u32 4294901760, %v3249_v56  ;;  %v3356_v24 = vsub.f32 %v16244_v12, %v16262_v33  ;;  %v16268_v1 = vand.u32 4294901760, %v16252_v51  ;;  %v16273_v56 = vld [vmem:[#allocation78_spill] sm:$0xff] }
 0x6bb   : > { %v3344_v45 = vsub.f32 %v16240_v17, %v16257_v61  ;;  %v3362_v0 = vsub.f32 %v16245_v30, %v16263_v19  ;;  %v16272_v19 = vld [vmem:[#allocation196_spill] sm:$0xff]  ;;  %v15841_v11 = vand.u32 4294901760, %v16273_v56  ;;  %v16274_v61 = vld [vmem:[#allocation79_spill] sm:$0xff]  ;;  %v3339_v33 = vand.u32 4294901760, %v3338_v5 }
 0x6bc   : > { %3251 = vmatprep.mubr.f32.mxu0 %v3250_v10  ;;  %4503 = vmatprep.mubr.f32.mxu1 %v3250_v10  ;;  %v3374_v29 = vsub.f32 %v16252_v51, %v16268_v1  ;;  %v16275_v10 = vld [vmem:[#allocation122_spill] sm:$0xff]  ;;  %v3351_v30 = vand.u32 4294901760, %v3350_v2  ;;  %v16281_v2 = vand.u32 4294901760, %v16269_v62  ;;  %v16282_v46 = vand.u32 4294901760, %v16270_v18 }
 0x6bd   : > { %3257 = vmatmul.mubr.f32.vlgmr.msra.gmra.mrb[2].mxu0 %v16272_v19  ;;  %4509 = vmatmul.mubr.f32.vlgmr.msra.gmra.mrb[2].mxu1 %v16272_v19  ;;  %v16277_v1 = vld [vmem:[#allocation126_spill] sm:$0xff]  ;;  %v3345_v12 = vand.u32 4294901760, %v3344_v45  ;;  %v3357_v19 = vand.u32 4294901760, %v3356_v24  ;;  %v3363_v54 = vand.u32 4294901760, %v3362_v0  ;;  %v3386_v0 = vsub.f32 %v16273_v56, %v15841_v11  ;;  %v16286_v24 = vld [vmem:[#allocation81_spill] sm:$0xff] }
 0x6be   : > { %10060 = vmatpush1.bf16.msra.mxu0 %v10059_v32  ;;  %10412 = vmatpush3.bf16.msra.mxu1 %v16278_v59  ;;  %v16280_v59 = vld [vmem:[#allocation185_spill] sm:$0xff]  ;;  %v3375_v5 = vand.u32 4294901760, %v3374_v29  ;;  %v3368_v45 = vsub.f32 %v16269_v62, %v16281_v2  ;;  %v3380_v51 = vsub.f32 %v16270_v18, %v16282_v46  ;;  %v16284_v32 = vld [vmem:[#allocation186_spill] sm:$0xff]  ;;  %v16285_v46 = vld [vmem:[#allocation80_spill] sm:$0xff]  ;;  %v10069_v29 = vpack.c.bf16 %v3351_v30, %v3339_v33 }
 0x6bf   : > { %3648 = vmatprep.mubr.f32.mxu0 %v13664_v14  ;;  %4739 = vmatprep.mubr.f32.mxu1 %v13664_v14  ;;  %v16289_v2 = vld [vmem:[#allocation85_spill] sm:$0xff]  ;;  %v10071_v34 = vpack.c.bf16 %v3357_v19, %v3345_v12  ;;  %v3387_v53 = vand.u32 4294901760, %v3386_v0  ;;  %v16291_v30 = vand.u32 4294901760, %v16285_v46  ;;  %v16296_v0 = vld [vmem:[#allocation91_spill] sm:$0xff]  ;;  %v16298_v19 = vld [vmem:[#allocation192_spill] sm:$0xff] }
 0x6c0   : > { %10062 = vmatprep.subr.bf16.mxu0 %v10061_v13  ;;  %10414 = vmatprep.subr.bf16.mxu1 %v16280_v59  ;;  %v16283_v13 = vand.u32 4294901760, %v16274_v61  ;;  %v10073_v41 = vpack.c.bf16 %v3375_v5, %v3363_v54  ;;  %v3369_v11 = vand.u32 4294901760, %v3368_v45  ;;  %v3381_v47 = vand.u32 4294901760, %v3380_v51  ;;  %v16293_v54 = vld [vmem:[#allocation86_spill] sm:$0xff]  ;;  %v16294_v5 = vld [vmem:[#allocation87_spill] sm:$0xff]  ;;  %v16357_v55 = vld [vmem:[#allocation68_spill] sm:$0xff] }
 0x6c1   : > { %v3392_v33 = vsub.f32 %v16285_v46, %v16291_v30  ;;  %v16295_v51 = vld [vmem:[#allocation191_spill] sm:$0xff] }
 0x6c2   : > { %v3398_v59 = vsub.f32 %v16274_v61, %v16283_v13  ;;  %10064 = vmatpush1.bf16.msra.mxu0 %v10063_v3  ;;  %10416 = vmatpush3.bf16.msra.mxu1 %v16284_v32  ;;  %v16287_v13 = vld [vmem:[#allocation187_spill] sm:$0xff]  ;;  %v15853_v3 = vand.u32 4294901760, %v16289_v2 }
 0x6c3   : > { %10066 = vmatprep.subr.bf16.mxu0 %v10065_v35  ;;  %10418 = vmatprep.subr.bf16.mxu1 %v16287_v13  ;;  %v16290_v35 = vld [vmem:[#allocation189_spill] sm:$0xff]  ;;  %v16292_v13 = vand.u32 4294901760, %v16286_v24 }
 0x6c4   : > { %v3399_v20 = vand.u32 4294901760, %v3398_v59  ;;  %v3422_v45 = vsub.f32 %v16289_v2, %v15853_v3  ;;  %v16301_v3 = vld [vmem:[#allocation194_spill] sm:$0xff] }
 0x6c5   : > { %v3404_v12 = vsub.f32 %v16286_v24, %v16292_v13  ;;  %v10075_v13 = vpack.c.bf16 %v3381_v47, %v3369_v11  ;;  %v16304_v11 = vld [vmem:[#allocation195_spill] sm:$0xff] }
 0x6c6   : > { %10068 = vmatpush1.bf16.msra.mxu0 %v13713_v43  ;;  %10420 = vmatpush3.bf16.msra.mxu1 %v16290_v35  ;;  %v3410_v43 = vsub.f32 %v16288_v25, %v15850_v16  ;;  %v16297_v35 = vld [vmem:[#allocation92_spill] sm:$0xff]  ;;  %v10077_v32 = vpack.c.bf16 %v3399_v20, %v3387_v53  ;;  %v16300_v16 = vand.u32 4294901760, %v16294_v5  ;;  %v3423_v30 = vand.u32 4294901760, %v3422_v45  ;;  %v16306_v45 = vld [vmem:[#allocation198_spill] sm:$0xff] }
 0x6c7   : > { %10070 = vmatprep.subr.bf16.mxu0 %v10069_v29  ;;  %10422 = vmatprep.subr.bf16.mxu1 %v16295_v51  ;;  %v3393_v29 = vand.u32 4294901760, %v3392_v33  ;;  %v3405_v4 = vand.u32 4294901760, %v3404_v12  ;;  %v16299_v51 = vand.u32 4294901760, %v16293_v54  ;;  %v16302_v20 = vand.u32 4294901760, %v16296_v0 }
 0x6c8   : > { %v3428_v49 = vsub.f32 %v16294_v5, %v16300_v16  ;;  %v3411_v59 = vand.u32 4294901760, %v3410_v43  ;;  %v16303_v47 = vand.u32 4294901760, %v16297_v35  ;;  %v16305_v16 = vld [vmem:[#allocation197_spill] sm:$0xff] }
 0x6c9   : > { %v3416_v15 = vsub.f32 %v16293_v54, %v16299_v51  ;;  %v10079_v33 = vpack.c.bf16 %v3405_v4, %v3393_v29  ;;  %v16311_v4 = vld [vmem:[#allocation205_spill] sm:$0xff] }
 0x6ca   : > { %10072 = vmatpush1.bf16.msra.mxu0 %v10071_v34  ;;  %10424 = vmatpush3.bf16.msra.mxu1 %v16298_v19  ;;  %v3434_v34 = vsub.f32 %v16296_v0, %v16302_v20  ;;  %v3446_v53 = vsub.f32 %v16297_v35, %v16303_v47  ;;  %v3429_v19 = vand.u32 4294901760, %v3428_v49  ;;  %v16307_v20 = vld [vmem:[#allocation201_spill] sm:$0xff]  ;;  %v16310_v49 = vld [vmem:[#allocation204_spill] sm:$0xff] }
 0x6cb   : > { %10074 = vmatprep.subr.bf16.mxu0 %v10073_v41  ;;  %10426 = vmatprep.subr.bf16.mxu1 %v16301_v3  ;;  %v3417_v12 = vand.u32 4294901760, %v3416_v15  ;;  %v10081_v41 = vpack.c.bf16 %v3423_v30, %v3411_v59  ;;  %v16309_v15 = vld [vmem:[#allocation203_spill] sm:$0xff]  ;;  %v16313_v59 = vld [vmem:[#allocation102_spill] sm:$0xff]  ;;  %v16314_v30 = vld [vmem:[#allocation101_spill] sm:$0xff] }
 0x6cc   : > { %v3435_v3 = vand.u32 4294901760, %v3434_v34  ;;  %v3447_v43 = vand.u32 4294901760, %v3446_v53  ;;  %v16315_v29 = vpack.c.bf16 %v16313_v59, %v16314_v30  ;;  %v16316_v34 = vld [vmem:[#allocation188_spill] sm:$0xff]  ;;  %v16317_v53 = vld [vmem:[#allocation206_spill] sm:$0xff] }
 0x6cd   : > { %v10083_v51 = vpack.c.bf16 %v3429_v19, %v3417_v12  ;;  %v16321_v19 = vld [vmem:[#allocation121_spill] sm:$0xff] }
 0x6ce   : > { %10076 = vmatpush1.bf16.msra.mxu0 %v10075_v13  ;;  %10428 = vmatpush3.bf16.msra.mxu1 %v16304_v11  ;;  %v10085_v47 = vpack.c.bf16 %v3447_v43, %v3435_v3  ;;  %v16308_v13 = vld [vmem:[#allocation202_spill] sm:$0xff]  ;;  %v16325_v43 = vld [vmem:[#allocation207_spill] sm:$0xff] }
 0x6cf   : > { %10078 = vmatprep.subr.bf16.mxu0 %v10077_v32  ;;  %10430 = vmatprep.subr.bf16.mxu1 %v16305_v16  ;;  %v16312_v32 = vld [vmem:[#allocation41_spill] sm:$0xff]  ;;  %v16318_v11 = vld [vmem:[#allocation106_spill] sm:$0xff] }
 0x6d0   : > { %v16322_v16 = vld [vmem:[#allocation113_spill] sm:$0xff] }
 0x6d2   : > { %10080 = vmatpush1.bf16.msra.mxu0 %v10079_v33  ;;  %10432 = vmatpush3.bf16.msra.mxu1 %v16306_v45  ;;  %v16319_v33 = vld [vmem:[#allocation105_spill] sm:$0xff] }
 0x6d3   : > { %10082 = vmatprep.subr.bf16.mxu0 %v10081_v41  ;;  %10434 = vmatprep.subr.bf16.mxu1 %v16307_v20  ;;  %v16320_v12 = vpack.c.bf16 %v16318_v11, %v16319_v33  ;;  %v16323_v41 = vld [vmem:[#allocation112_spill] sm:$0xff]  ;;  %v16326_v45 = vld [vmem:[#allocation117_spill] sm:$0xff] }
 0x6d4   : > { %v16324_v3 = vpack.c.bf16 %v16322_v16, %v16323_v41 }
 0x6d6   : > { %10084 = vmatpush1.bf16.msra.mxu0 %v10083_v51  ;;  %10436 = vmatpush3.bf16.msra.mxu1 %v16308_v13  ;;  %v16327_v51 = vld [vmem:[#allocation116_spill] sm:$0xff] }
 0x6d7   : > { %10086 = vmatprep.subr.bf16.mxu0 %v10085_v47  ;;  %10438 = vmatprep.subr.bf16.mxu1 %v16309_v15  ;;  %v16328_v20 = vpack.c.bf16 %v16326_v45, %v16327_v51  ;;  %v16329_v47 = vld [vmem:[#allocation208_spill] sm:$0xff]  ;;  %v16331_v15 = vld [vmem:[#allocation123_spill] sm:$0xff] }
 0x6d8   : > { %v16330_v13 = vld [vmem:[#allocation124_spill] sm:$0xff] }
 0x6da   : > { %10088 = vmatpush1.bf16.msra.mxu0 %v16310_v49  ;;  %10440 = vmatpush3.bf16.msra.mxu1 %v16311_v4  ;;  %v16332_v49 = vpack.c.bf16 %v16330_v13, %v16331_v15  ;;  %v16333_v4 = vld [vmem:[#allocation130_spill] sm:$0xff] }
 0x6db   : > { %10090 = vmatprep.subr.bf16.mxu0 %v16312_v32  ;;  %10442 = vmatprep.subr.bf16.mxu1 %v16315_v29  ;;  %v16334_v32 = vld [vmem:[#allocation128_spill] sm:$0xff]  ;;  %v16335_v29 = vld [vmem:[#allocation127_spill] sm:$0xff] }
 0x6dd   : > { %4741 = vmatmul.mubr.f32.vlgmr.msra.gmra.mrb[4].mxu1 %v16316_v34 }
 0x6de   : > { %10092 = vmatpush1.bf16.msra.mxu0 %v16317_v53  ;;  %10444 = vmatpush3.bf16.msra.mxu1 %v16320_v12  ;;  %v16336_v53 = vpack.c.bf16 %v16334_v32, %v16335_v29  ;;  %v16337_v12 = vld [vmem:[#allocation135_spill] sm:$0xff] }
 0x6df   : > { %4876 = vmatprep.mubr.f32.mxu1 %v13676_v37  ;;  %10094 = vmatprep.subr.bf16.mxu0 %v16321_v19  ;;  %v16338_v19 = vld [vmem:[#allocation133_spill] sm:$0xff] }
 0x6e0   : > { %10446 = vmatprep.subr.bf16.mxu1 %v16324_v3  ;;  %v16339_v3 = vld [vmem:[#allocation132_spill] sm:$0xff] }
 0x6e2   : > { %10096 = vmatpush1.bf16.msra.mxu0 %v16325_v43  ;;  %10448 = vmatpush3.bf16.msra.mxu1 %v16328_v20  ;;  %v16340_v43 = vpack.c.bf16 %v16338_v19, %v16339_v3  ;;  %v16342_v20 = vld [vmem:[#allocation139_spill] sm:$0xff] }
 0x6e3   : > { %10098 = vmatprep.subr.bf16.mxu0 %v16329_v47  ;;  %10450 = vmatprep.subr.bf16.mxu1 %v16332_v49  ;;  %v16343_v47 = vld [vmem:[#allocation138_spill] sm:$0xff]  ;;  %v16345_v49 = vpack.c.bf16 %v13101_v39, %v13095_v28 }
 0x6e4   : > { %v16344_v48 = vpack.c.bf16 %v16342_v20, %v16343_v47 }
 0x6e6   : > { %10100 = vmatpush1.bf16.msra.mxu0 %v16333_v4  ;;  %10452 = vmatpush3.bf16.msra.mxu1 %v16336_v53  ;;  %v16346_v4 = vpack.c.bf16 %v13114_v6, %v13112_v57 }
 0x6e7   : > { %10102 = vmatprep.subr.bf16.mxu0 %v16337_v12  ;;  %10454 = vmatprep.subr.bf16.mxu1 %v16340_v43  ;;  %v16353_v43 = vld [vmem:[#allocation141_spill] sm:$0xff] }
 0x6ea   : > { %10104 = vmatpush1.bf16.msra.mxu0 %v16341_v50  ;;  %10456 = vmatpush3.bf16.msra.mxu1 %v16344_v48  ;;  %v16347_v50 = vld [vmem:[#allocation152_spill] sm:$0xff]  ;;  %v16349_v48 = vpack.c.bf16 %v13142_v52, %v13139_v7  ;;  %v16364_v7 = vld [vmem:[#allocation183_spill] sm:$0xff] }
 0x6eb   : > { %10106 = vmatprep.subr.bf16.mxu0 %v13586_v60  ;;  %10458 = vmatprep.subr.bf16.mxu1 %v16345_v49  ;;  %v16348_v53 = vpack.c.bf16 %v13129_v22, %v16347_v50  ;;  %v16350_v60 = vld [vmem:[#allocation165_spill] sm:$0xff]  ;;  %v16354_v49 = vld [vmem:[#allocation171_spill] sm:$0xff] }
 0x6ee   : > { %10108 = vmatpush1.bf16.msra.mxu0 %v13604_v40  ;;  %10460 = vmatpush3.bf16.msra.mxu1 %v16346_v4  ;;  %v16351_v40 = vld [vmem:[#allocation163_spill] sm:$0xff] }
 0x6ef   : > { %10110 = vmatprep.subr.bf16.mxu0 %v13630_v9  ;;  %10462 = vmatprep.subr.bf16.mxu1 %v16348_v53  ;;  %v16352_v12 = vpack.c.bf16 %v16350_v60, %v16351_v40  ;;  %v16355_v9 = vld [vmem:[#allocation170_spill] sm:$0xff]  ;;  %v16358_v53 = vld [vmem:[#allocation177_spill] sm:$0xff] }
 0x6f0   : > { %v16356_v4 = vpack.c.bf16 %v16354_v49, %v16355_v9  ;;  %v16365_v60 = vld [vmem:[#allocation182_spill] sm:$0xff]  ;;  %v16368_v40 = vld [vmem:[#allocation49_spill] sm:$0xff]  ;;  %v16371_v49 = vld [vmem:[#allocation52_spill] sm:$0xff] }
 0x6f2   : > { %10112 = vmatpush1.bf16.msra.mxu0 %v13641_v38  ;;  %10464 = vmatpush3.bf16.msra.mxu1 %v16349_v48  ;;  %v16359_v38 = vld [vmem:[#allocation176_spill] sm:$0xff]  ;;  %v16362_v48 = vld [vmem:[#allocation46_spill] sm:$0xff] }
 0x6f3   : > { %10114 = vmatprep.subr.bf16.mxu0 %v13658_v27  ;;  %10466 = vmatprep.subr.bf16.mxu1 %v16352_v12  ;;  %v16360_v42 = vpack.c.bf16 %v16358_v53, %v16359_v38  ;;  %v10121_v52 = vpack.c.bf16 %v16362_v48, %v16361_v23  ;;  %v16363_v27 = vld [vmem:[#allocation199_spill] sm:$0xff]  ;;  %v16366_v12 = vpack.c.bf16 %v16364_v7, %v16365_v60  ;;  %v16376_v7 = vld [vmem:[#allocation209_spill] sm:$0xff] }
 0x6f4   : > { %v16374_v48 = vld [vmem:[#allocation55_spill] sm:$0xff] }
 0x6f6   : > { %10116 = vmatpush1.bf16.msra.mxu0 %v16353_v43  ;;  %10468 = vmatpush3.bf16.msra.mxu1 %v16356_v4  ;;  %v16367_v43 = vld [vmem:[#allocation47_spill] sm:$0xff]  ;;  %v16369_v4 = vld [vmem:[#allocation89_spill] sm:$0xff] }
 0x6f7   : > { %10118 = vmatprep.subr.bf16.mxu0 %v16357_v55  ;;  %10470 = vmatprep.subr.bf16.mxu1 %v16360_v42  ;;  %v10123_v22 = vpack.c.bf16 %v16368_v40, %v16367_v43  ;;  %v16370_v55 = vld [vmem:[#allocation51_spill] sm:$0xff]  ;;  %v16372_v42 = vld [vmem:[#allocation190_spill] sm:$0xff] }
 0x6f8   : > { %v10125_v9 = vpack.c.bf16 %v16371_v49, %v16370_v55  ;;  %v16378_v40 = vld [vmem:[#allocation58_spill] sm:$0xff]  ;;  %v16380_v49 = vld [vmem:[#allocation59_spill] sm:$0xff]  ;;  %v16381_v55 = vld [vmem:[#allocation60_spill] sm:$0xff] }
 0x6fa   : > { %10120 = vmatpush1.bf16.msra.mxu0 %v16363_v27  ;;  %10472 = vmatpush3.bf16.msra.mxu1 %v16366_v12  ;;  %v16373_v27 = vld [vmem:[#allocation54_spill] sm:$0xff]  ;;  %v16375_v12 = vld [vmem:[#allocation95_spill] sm:$0xff] }
 0x6fb   : > { %10122 = vmatprep.subr.bf16.mxu0 %v10121_v52  ;;  %10474 = vmatprep.subr.bf16.mxu1 %v16369_v4  ;;  %v10127_v23 = vpack.c.bf16 %v16374_v48, %v16373_v27  ;;  %v16377_v52 = vld [vmem:[#allocation56_spill] sm:$0xff]  ;;  %v16379_v4 = vld [vmem:[#allocation97_spill] sm:$0xff] }
 0x6fc   : > { %v10129_v43 = vpack.c.bf16 %v16378_v40, %v16377_v52  ;;  %v16385_v27 = vld [vmem:[#allocation109_spill] sm:$0xff]  ;;  %v16387_v40 = vld [vmem:[#allocation119_spill] sm:$0xff] }
 0x6fd   : > { %3650 = vmatmul.mubr.f32.vlgmr.msra.gmra.mrb[2].mxu0 %v16316_v34  ;;  %4879 = vmatmul.mubr.f32.vlgmr.msra.gmra.mrb[6].mxu1 %v16372_v42  ;;  %v10131_v34 = vpack.c.bf16 %v16381_v55, %v16380_v49  ;;  %v16384_v42 = vld [vmem:[#allocation67_spill] sm:$0xff]  ;;  %v16391_v55 = vld [vmem:[#allocation137_spill] sm:$0xff] }
 0x6fe   : > { %10124 = vmatpush1.bf16.msra.mxu0 %v10123_v22  ;;  %3850 = vmatprep.mubr.f32.mxu0 %v13676_v37  ;;  %v16382_v22 = vld [vmem:[#allocation107_spill] sm:$0xff]  ;;  %v16383_v37 = vld [vmem:[#allocation66_spill] sm:$0xff] }
 0x6ff   : > { %10476 = vmatpush3.bf16.msra.mxu1 %v16375_v12  ;;  %4983 = vmatprep.mubr.f32.mxu1 %v16376_v7  ;;  %v10133_v48 = vpack.c.bf16 %v16384_v42, %v16383_v37  ;;  %v16386_v12 = vld [vmem:[#allocation69_spill] sm:$0xff]  ;;  %v16392_v42 = vld [vmem:[#allocation143_spill] sm:$0xff] }
 0x700   : > { %10126 = vmatprep.subr.bf16.mxu0 %v10125_v9  ;;  %10478 = vmatprep.subr.bf16.mxu1 %v16379_v4  ;;  %v10135_v7 = vpack.c.bf16 %v16386_v12, %v16240_v17  ;;  %v16388_v9 = vld [vmem:[#allocation72_spill] sm:$0xff]  ;;  %v16390_v4 = vld [vmem:[#allocation131_spill] sm:$0xff] }
 0x701   : > { %v16393_v12 = vld [vmem:[#allocation147_spill] sm:$0xff] }
 0x702   : > { %10128 = vmatpush1.bf16.msra.mxu0 %v10127_v23  ;;  %v16389_v23 = vld [vmem:[#allocation73_spill] sm:$0xff] }
 0x703   : > { %10480 = vmatpush3.bf16.msra.mxu1 %v16382_v22  ;;  %10130 = vmatprep.subr.bf16.mxu0 %v10129_v43  ;;  %v10137_v52 = vpack.c.bf16 %v16389_v23, %v16388_v9  ;;  %v10139_v43 = vpack.c.bf16 %v16270_v18, %v16269_v62  ;;  %v16394_v23 = vld [vmem:[#allocation151_spill] sm:$0xff]  ;;  %v16395_v18 = vld [vmem:[#allocation157_spill] sm:$0xff] }
 0x704   : > { %10482 = vmatprep.subr.bf16.mxu1 %v16385_v27 }
 0x706   : > { %10132 = vmatpush1.bf16.msra.mxu0 %v10131_v34  ;;  %v10141_v34 = vpack.c.bf16 %v16274_v61, %v16273_v56  ;;  %v16396_v61 = vld [vmem:[#allocation164_spill] sm:$0xff] }
 0x707   : > { %10484 = vmatpush3.bf16.msra.mxu1 %v16387_v40  ;;  %10134 = vmatprep.subr.bf16.mxu0 %v10133_v48  ;;  %v10143_v48 = vpack.c.bf16 %v16286_v24, %v16285_v46  ;;  %v16397_v24 = vld [vmem:[#allocation169_spill] sm:$0xff] }
 0x708   : > { %10486 = vmatprep.subr.bf16.mxu1 %v16390_v4 }
 0x70a   : > { %10136 = vmatpush1.bf16.msra.mxu0 %v10135_v7  ;;  %v10145_v7 = vpack.c.bf16 %v16289_v2, %v16288_v25  ;;  %v16399_v2 = vand.u32 4294901760, %v16314_v30  ;;  %v16410_v30 = vand.u32 4294901760, %v16323_v41 }
 0x70b   : > { %10488 = vmatpush3.bf16.msra.mxu1 %v16391_v55  ;;  %10138 = vmatprep.subr.bf16.mxu0 %v10137_v52  ;;  %v10147_v52 = vpack.c.bf16 %v16294_v5, %v16293_v54  ;;  %v16401_v5 = vld [vmem:[#allocation94_spill] sm:$0xff]  ;;  %v16402_v54 = vld [vmem:[#allocation93_spill] sm:$0xff] }
 0x70c   : > { %10490 = vmatprep.subr.bf16.mxu1 %v16392_v42  ;;  %v16403_v46 = vpack.c.bf16 %v16401_v5, %v16402_v54  ;;  %v16414_v5 = vld [vmem:[#allocation103_spill] sm:$0xff] }
 0x70e   : > { %10140 = vmatpush1.bf16.msra.mxu0 %v10139_v43  ;;  %v10149_v43 = vpack.c.bf16 %v16297_v35, %v16296_v0  ;;  %v16405_v35 = vld [vmem:[#allocation100_spill] sm:$0xff]  ;;  %v16406_v0 = vld [vmem:[#allocation99_spill] sm:$0xff] }
 0x70f   : > { %10492 = vmatpush3.bf16.msra.mxu1 %v16393_v12  ;;  %10142 = vmatprep.subr.bf16.mxu0 %v10141_v34  ;;  %v16398_v34 = vld [vmem:[#allocation175_spill] sm:$0xff]  ;;  %v16407_v56 = vpack.c.bf16 %v16405_v35, %v16406_v0 }
 0x710   : > { %10494 = vmatprep.subr.bf16.mxu1 %v16394_v23 }
 0x712   : > { %10144 = vmatpush1.bf16.msra.mxu0 %v10143_v48  ;;  %v16400_v48 = vand.u32 4294901760, %v16313_v59 }
 0x713   : > { %10496 = vmatpush3.bf16.msra.mxu1 %v16395_v18  ;;  %10146 = vmatprep.subr.bf16.mxu0 %v10145_v7  ;;  %v16404_v7 = vld [vmem:[#allocation181_spill] sm:$0xff] }
 0x714   : > { %10498 = vmatprep.subr.bf16.mxu1 %v16396_v61  ;;  %v10505_v25 = vpack.c.bf16 %v16400_v48, %v16399_v2  ;;  %v16411_v2 = vand.u32 4294901760, %v16322_v16  ;;  %v16412_v48 = vld [vmem:[#allocation193_spill] sm:$0xff]  ;;  %v16421_v16 = vand.u32 4294901760, %v16331_v15  ;;  %v16429_v15 = vand.u32 4294901760, %v16339_v3 }
 0x715   : > { %v16435_v3 = vand.u32 4294901760, %v13095_v28  ;;  %v16441_v28 = vand.u32 4294901760, %v16347_v50 }
 0x716   : > { %10148 = vmatpush1.bf16.msra.mxu0 %v10147_v52  ;;  %v16408_v52 = vand.u32 4294901760, %v16319_v33  ;;  %v10509_v59 = vpack.c.bf16 %v16411_v2, %v16410_v30  ;;  %v16423_v2 = vld [vmem:[#allocation115_spill] sm:$0xff] }
 0x717   : > { %10500 = vmatpush3.bf16.msra.mxu1 %v16397_v24  ;;  %10150 = vmatprep.subr.bf16.mxu0 %v10149_v43  ;;  %v16409_v43 = vand.u32 4294901760, %v16318_v11  ;;  %v16417_v11 = vand.u32 4294901760, %v16326_v45  ;;  %v16427_v45 = vand.u32 4294901760, %v16335_v29  ;;  %v16433_v29 = vand.u32 4294901760, %v16343_v47 }
 0x718   : > { %10502 = vmatprep.subr.bf16.mxu1 %v16398_v34  ;;  %v16439_v47 = vand.u32 4294901760, %v13112_v57 }
 0x719   : > { %v10507_v62 = vpack.c.bf16 %v16409_v43, %v16408_v52  ;;  %v16419_v52 = vld [vmem:[#allocation110_spill] sm:$0xff]  ;;  %v16422_v43 = vand.u32 4294901760, %v16330_v13  ;;  %v16430_v13 = vand.u32 4294901760, %v16338_v19  ;;  %v16436_v19 = vand.u32 4294901760, %v13101_v39 }
 0x71a   : > { %10152 = vmatpush1.bf16.msra.mxu0 %v16403_v46  ;;  %v16413_v46 = vld [vmem:[#allocation104_spill] sm:$0xff] }
 0x71b   : > { %10504 = vmatpush3.bf16.msra.mxu1 %v16404_v7  ;;  %10154 = vmatprep.subr.bf16.mxu0 %v16407_v56  ;;  %v16415_v54 = vpack.c.bf16 %v16413_v46, %v16414_v5  ;;  %v16416_v56 = vand.u32 4294901760, %v16327_v51  ;;  %v10513_v30 = vpack.c.bf16 %v16422_v43, %v16421_v16  ;;  %v16426_v51 = vpack.c.bf16 %v16275_v10, %v16209_v31 }
 0x71c   : > { %10506 = vmatprep.subr.bf16.mxu1 %v10505_v25  ;;  %v16418_v25 = vld [vmem:[#allocation111_spill] sm:$0xff]  ;;  %v10521_v43 = vpack.c.bf16 %v16436_v19, %v16435_v3  ;;  %v16456_v19 = vld [vmem:[#allocation165_spill] sm:$0xff] }
 0x71d   : > { %v10511_v33 = vpack.c.bf16 %v16417_v11, %v16416_v56  ;;  %v16420_v41 = vpack.c.bf16 %v16418_v25, %v16419_v52  ;;  %v16428_v56 = vand.u32 4294901760, %v16334_v32  ;;  %v16434_v32 = vand.u32 4294901760, %v16342_v20  ;;  %v16454_v3 = vld [vmem:[#allocation163_spill] sm:$0xff] }
 0x71e   : > { %4987 = vmatmul.mubr.f32.vlgmr.msra.gmra.mrb[8].mxu1 %v16412_v48  ;;  %10156 = vmatpush1.bf16.msra.mxu0 %v16415_v54  ;;  %v16424_v54 = vld [vmem:[#allocation114_spill] sm:$0xff]  ;;  %v16440_v20 = vand.u32 4294901760, %v13114_v6  ;;  %v16455_v50 = vand.u32 4294901760, %v16454_v3  ;;  %v16470_v3 = vld [vmem:[#allocation168_spill] sm:$0xff] }
 0x71f   : > { %10508 = vmatpush3.bf16.msra.mxu1 %v10507_v62  ;;  %5153 = vmatprep.mubr.f32.mxu1 %v13664_v14  ;;  %v16425_v62 = vpack.c.bf16 %v16423_v2, %v16424_v54  ;;  %v10515_v11 = vpack.c.bf16 %v16428_v56, %v16427_v45  ;;  %v10519_v16 = vpack.c.bf16 %v16434_v32, %v16433_v29  ;;  %v16442_v45 = vld [vmem:[#allocation153_spill] sm:$0xff]  ;;  %v16450_v29 = vld [vmem:[#allocation158_spill] sm:$0xff]  ;;  %v16452_v32 = vld [vmem:[#allocation159_spill] sm:$0xff] }
 0x720   : > { %10158 = vmatprep.subr.bf16.mxu0 %v16420_v41  ;;  %10510 = vmatprep.subr.bf16.mxu1 %v10509_v59  ;;  %v10517_v59 = vpack.c.bf16 %v16430_v13, %v16429_v15  ;;  %v16431_v41 = vpack.c.bf16 %v16277_v1, %v16276_v8  ;;  %v16443_v39 = vand.u32 4294901760, %v16442_v45  ;;  %v16445_v15 = vld [vmem:[#allocation145_spill] sm:$0xff]  ;;  %v16451_v57 = vand.u32 4294901760, %v16450_v29 }
 0x721   : > { %v16453_v6 = vand.u32 4294901760, %v16452_v32  ;;  %v16469_v32 = vand.u32 4294901760, %v16358_v53  ;;  %v16482_v53 = vld [vmem:[#allocation44_spill] sm:$0xff] }
 0x722   : > { %10160 = vmatpush1.bf16.msra.mxu0 %v16425_v62  ;;  %v16438_v62 = vpack.c.bf16 %v16224_v63, %v16222_v26  ;;  %v10525_v56 = vpack.c.bf16 %v16443_v39, %v16441_v28  ;;  %v16462_v28 = vld [vmem:[#allocation160_spill] sm:$0xff]  ;;  %v16464_v39 = vld [vmem:[#allocation170_spill] sm:$0xff] }
 0x723   : > { %10512 = vmatpush3.bf16.msra.mxu1 %v10511_v33  ;;  %10162 = vmatprep.subr.bf16.mxu0 %v16426_v51  ;;  %v16432_v33 = vpack.c.bf16 %v16217_v21, %v16279_v44  ;;  %v10523_v51 = vpack.c.bf16 %v16440_v20, %v16439_v47  ;;  %v16459_v47 = vld [vmem:[#allocation154_spill] sm:$0xff] }
 0x724   : > { %10514 = vmatprep.subr.bf16.mxu1 %v10513_v30  ;;  %v16437_v30 = vpack.c.bf16 %v16220_v58, %v16219_v36 }
 0x726   : > { %10164 = vmatpush1.bf16.msra.mxu0 %v16431_v41  ;;  %v16448_v41 = vld [vmem:[#allocation149_spill] sm:$0xff] }
 0x727   : > { %10516 = vmatpush3.bf16.msra.mxu1 %v10515_v11  ;;  %10166 = vmatprep.subr.bf16.mxu0 %v16432_v33  ;;  %v16444_v11 = vld [vmem:[#allocation146_spill] sm:$0xff] }
 0x728   : > { %10518 = vmatprep.subr.bf16.mxu1 %v10517_v59  ;;  %v16446_v13 = vpack.c.bf16 %v16444_v11, %v16445_v15  ;;  %v16447_v59 = vld [vmem:[#allocation150_spill] sm:$0xff] }
 0x729   : > { %v16449_v33 = vpack.c.bf16 %v16447_v59, %v16448_v41 }
 0x72a   : > { %10168 = vmatpush1.bf16.msra.mxu0 %v16437_v30 }
 0x72b   : > { %10520 = vmatpush3.bf16.msra.mxu1 %v10519_v16  ;;  %10170 = vmatprep.subr.bf16.mxu0 %v16438_v62  ;;  %v10527_v16 = vpack.c.bf16 %v16453_v6, %v16451_v57  ;;  %v16458_v62 = vld [vmem:[#allocation156_spill] sm:$0xff] }
 0x72c   : > { %10522 = vmatprep.subr.bf16.mxu1 %v10521_v43  ;;  %v16457_v43 = vand.u32 4294901760, %v16456_v19  ;;  %v16460_v20 = vpack.c.bf16 %v16458_v62, %v16459_v47  ;;  %v14185_v62 = vld [vmem:[#allocation12 + $0x160] sm:$0xff] }
 0x72e   : > { %10172 = vmatpush1.bf16.msra.mxu0 %v16446_v13  ;;  %v10529_v30 = vpack.c.bf16 %v16457_v43, %v16455_v50  ;;  %v16465_v13 = vand.u32 4294901760, %v16464_v39  ;;  %v16471_v50 = vld [vmem:[#allocation167_spill] sm:$0xff]  ;;  %v16474_v43 = vld [vmem:[#allocation173_spill] sm:$0xff] }
 0x72f   : > { %10524 = vmatpush3.bf16.msra.mxu1 %v10523_v51  ;;  %10174 = vmatprep.subr.bf16.mxu0 %v16449_v33  ;;  %v16461_v51 = vld [vmem:[#allocation162_spill] sm:$0xff]  ;;  %v16466_v33 = vld [vmem:[#allocation171_spill] sm:$0xff]  ;;  %v16472_v19 = vpack.c.bf16 %v16470_v3, %v16471_v50 }
 0x730   : > { %10526 = vmatprep.subr.bf16.mxu1 %v10525_v56  ;;  %v16463_v45 = vpack.c.bf16 %v16461_v51, %v16462_v28  ;;  %v16467_v29 = vand.u32 4294901760, %v16466_v33  ;;  %v16468_v56 = vand.u32 4294901760, %v16359_v38  ;;  %v16477_v39 = vld [vmem:[#allocation183_spill] sm:$0xff]  ;;  %v14165_v51 = vld [vmem:[#allocation12 + $0x130] sm:$0xff] }
 0x731   : > { %v16478_v33 = vand.u32 4294901760, %v16477_v39  ;;  %v16480_v38 = vld [vmem:[#allocation179_spill] sm:$0xff]  ;;  %v16491_v39 = vld [vmem:[#allocation53_spill] sm:$0xff] }
 0x732   : > { %10176 = vmatpush1.bf16.msra.mxu0 %v16460_v20  ;;  %v10531_v57 = vpack.c.bf16 %v16467_v29, %v16465_v13  ;;  %v10533_v6 = vpack.c.bf16 %v16469_v32, %v16468_v56  ;;  %v16483_v56 = vld [vmem:[#allocation89_spill] sm:$0xff]  ;;  %v16485_v32 = vld [vmem:[#allocation188_spill] sm:$0xff]  ;;  %v14167_v28 = vld [vmem:[#allocation12 + $0x148] sm:$0xff] }
 0x733   : > { %10528 = vmatpush3.bf16.msra.mxu1 %v10527_v16  ;;  %10178 = vmatprep.subr.bf16.mxu0 %v16463_v45  ;;  %v16473_v16 = vld [vmem:[#allocation174_spill] sm:$0xff]  ;;  %v16476_v45 = vand.u32 4294901760, %v16365_v60  ;;  %v16487_v60 = vld [vmem:[#allocation209_spill] sm:$0xff] }
 0x734   : > { %10530 = vmatprep.subr.bf16.mxu1 %v10529_v30  ;;  %v16475_v20 = vpack.c.bf16 %v16473_v16, %v16474_v43  ;;  %v16479_v30 = vld [vmem:[#allocation180_spill] sm:$0xff]  ;;  %v16517_v16 = vld [vmem:[#allocation134_spill] sm:$0xff] }
 0x735   : > { %v10535_v13 = vpack.c.bf16 %v16478_v33, %v16476_v45  ;;  %v16481_v29 = vpack.c.bf16 %v16479_v30, %v16480_v38  ;;  %v16490_v45 = vld [vmem:[#allocation97_spill] sm:$0xff]  ;;  %v14150_v30 = vld [vmem:[#allocation12 + $0x100] sm:$0xff] }
 0x736   : > { %10180 = vmatpush1.bf16.msra.mxu0 %v16472_v19  ;;  %v16486_v19 = vld [vmem:[#allocation48_spill] sm:$0xff]  ;;  %v16492_v33 = vld [vmem:[#allocation57_spill] sm:$0xff]  ;;  %v15887_v3 = vand.u32 4294901760, %v14150_v30 }
 0x737   : > { %10532 = vmatpush3.bf16.msra.mxu1 %v10531_v57  ;;  %10182 = vmatprep.subr.bf16.mxu0 %v16475_v20  ;;  %v16484_v57 = vld [vmem:[#allocation190_spill] sm:$0xff]  ;;  %v16488_v20 = vld [vmem:[#allocation95_spill] sm:$0xff]  ;;  %v14152_v38 = vld [vmem:[#allocation12 + $0x118] sm:$0xff] }
 0x738   : > { %10534 = vmatprep.subr.bf16.mxu1 %v10533_v6  ;;  %v16489_v6 = vld [vmem:[#allocation50_spill] sm:$0xff]  ;;  %v15886_v50 = vand.u32 4294901760, %v14152_v38 }
 0x73a   : > { %10184 = vmatpush1.bf16.msra.mxu0 %v16481_v29  ;;  %v16494_v29 = vld [vmem:[#allocation62_spill] sm:$0xff] }
 0x73b   : > { %10536 = vmatpush3.bf16.msra.mxu1 %v10535_v13  ;;  %10186 = vmatprep.subr.bf16.mxu0 %v16482_v53  ;;  %v16493_v13 = vld [vmem:[#allocation61_spill] sm:$0xff]  ;;  %v16515_v53 = vld [vmem:[#allocation120_spill] sm:$0xff] }
 0x73c   : > { %10538 = vmatprep.subr.bf16.mxu1 %v16483_v56  ;;  %v16495_v56 = vld [vmem:[#allocation63_spill] sm:$0xff] }
 0x73d   : > { %3853 = vmatmul.mubr.f32.vlgmr.msra.gmra.mrb[2].mxu0 %v16484_v57  ;;  %v16496_v57 = vld [vmem:[#allocation64_spill] sm:$0xff] }
 0x73e   : > { %5155 = vmatmul.mubr.f32.vlgmr.msra.gmra.mrb[10].mxu1 %v16485_v32  ;;  %10188 = vmatpush1.bf16.msra.mxu0 %v16486_v19  ;;  %v14140_v19 = vld [vmem:[#allocation12 + $0xe8] sm:$0xff] }
 0x73f   : > { %3990 = vmatprep.mubr.f32.mxu0 %v16487_v60  ;;  %10540 = vmatpush3.bf16.msra.mxu1 %v16488_v20  ;;  %v5269_v60 = vld [vmem:[#allocation12 + $0x28] sm:$0xff]  ;;  %v16501_v20 = vld [vmem:[#allocation77_spill] sm:$0xff] }
 0x740   : > { %5257 = vmatprep.mubr.f32.mxu1 %v13664_v14  ;;  %10190 = vmatprep.subr.bf16.mxu0 %v16489_v6  ;;  %v14138_v6 = vld [vmem:[#allocation12 + $0xd0] sm:$0xff] }
 0x741   : > { %10542 = vmatprep.subr.bf16.mxu1 %v16490_v45  ;;  %v6188_v45 = vand.u32 4294901760, %v5269_v60 }
 0x742   : > { %10192 = vmatpush1.bf16.msra.mxu0 %v16491_v39 }
 0x743   : > { %10544 = vmatpush3.bf16.msra.mxu1 %v16382_v22  ;;  %10194 = vmatprep.subr.bf16.mxu0 %v16492_v33  ;;  %v16497_v22 = vld [vmem:[#allocation65_spill] sm:$0xff] }
 0x744   : > { %10546 = vmatprep.subr.bf16.mxu1 %v16385_v27  ;;  %v16498_v27 = vld [vmem:[#allocation70_spill] sm:$0xff] }
 0x746   : > { %10196 = vmatpush1.bf16.msra.mxu0 %v16493_v13  ;;  %v16510_v13 = vmov 0.0  }
 0x747   : > { %10548 = vmatpush3.bf16.msra.mxu1 %v16387_v40  ;;  %10198 = vmatprep.subr.bf16.mxu0 %v16494_v29  ;;  %v16499_v40 = vld [vmem:[#allocation71_spill] sm:$0xff]  ;;  %v14126_v29 = vld [vmem:[#allocation12 + $0xb8] sm:$0xff] }
 0x748   : > { %10550 = vmatprep.subr.bf16.mxu1 %v16390_v4  ;;  %v16500_v4 = vld [vmem:[#allocation76_spill] sm:$0xff] }
 0x74a   : > { %10200 = vmatpush1.bf16.msra.mxu0 %v16495_v56  ;;  %v14124_v56 = vld [vmem:[#allocation12 + $0xa0] sm:$0xff] }
 0x74b   : > { %10552 = vmatpush3.bf16.msra.mxu1 %v16391_v55  ;;  %10202 = vmatprep.subr.bf16.mxu0 %v16496_v57  ;;  %v5266_v55 = vld [vmem:[#allocation12 + $0x10] sm:$0xff]  ;;  %v6203_v39 = vand.u32 4294901760, %v14124_v56 }
 0x74c   : > { %10554 = vmatprep.subr.bf16.mxu1 %v16392_v42  ;;  %v16502_v42 = vld [vmem:[#allocation82_spill] sm:$0xff]  ;;  %v16508_v57 = vld [vmem:[#allocation96_spill] sm:$0xff] }
 0x74e   : > { %10204 = vmatpush1.bf16.msra.mxu0 %v16497_v22  ;;  %v16506_v22 = vmov 0.0|0.0  }
 0x74f   : > { %10556 = vmatpush3.bf16.msra.mxu1 %v16393_v12  ;;  %10206 = vmatprep.subr.bf16.mxu0 %v16498_v27  ;;  %v6185_v12 = vand.u32 4294901760, %v5266_v55  ;;  %v16503_v27 = vld [vmem:[#allocation83_spill] sm:$0xff] }
 0x750   : > { %10558 = vmatprep.subr.bf16.mxu1 %v16394_v23  ;;  %v5272_v23 = vld [vmem:[#allocation12 + $0x40] sm:$0xff] }
 0x751   : > { %v14155_v43 = vsub.f32 %v5266_v55, %v6185_v12  ;;  %v16520_v55 = vld [vmem:[#allocation144_spill] sm:$0xff] }
 0x752   : > { %10208 = vmatpush1.bf16.msra.mxu0 %v16499_v40  ;;  %v5275_v40 = vld [vmem:[#allocation12 + $0x58] sm:$0xff] }
 0x753   : > { %10560 = vmatpush3.bf16.msra.mxu1 %v16395_v18  ;;  %10210 = vmatprep.subr.bf16.mxu0 %v16500_v4  ;;  %v16504_v18 = vld [vmem:[#allocation88_spill] sm:$0xff]  ;;  %v6191_v4 = vand.u32 4294901760, %v5272_v23 }
 0x754   : > { %10562 = vmatprep.subr.bf16.mxu1 %v16396_v61  ;;  %v14108_v61 = vpack.c.bf16 %v6188_v45, %v6185_v12 }
 0x755   : > { %v14171_v12 = vsub.f32 %v5272_v23, %v6191_v4  ;;  %v15891_v23 = vand.u32 4294901760, %v14155_v43 }
 0x756   : > { %10212 = vmatpush1.bf16.msra.mxu0 %v16501_v20  ;;  %16505 = vst [vmem:[#allocation200_spill] sm:$0xff] %v14108_v61  ;;  %v6194_v20 = vand.u32 4294901760, %v5275_v40 }
 0x757   : > { %10564 = vmatpush3.bf16.msra.mxu1 %v16397_v24  ;;  %10214 = vmatprep.subr.bf16.mxu0 %v16502_v42  ;;  %v14111_v24 = vld [vmem:[#allocation12 + $0x70] sm:$0xff]  ;;  %v14113_v42 = vld [vmem:[#allocation12 + $0x88] sm:$0xff] }
 0x758   : > { %10566 = vmatprep.subr.bf16.mxu1 %v16398_v34  ;;  %v16507_v34 = vld [vmem:[#allocation90_spill] sm:$0xff] }
 0x75a   : > { %10216 = vmatpush1.bf16.msra.mxu0 %v16503_v27  ;;  %v6200_v27 = vand.u32 4294901760, %v14113_v42 }
 0x75b   : > { %10568 = vmatpush3.bf16.msra.mxu1 %v16404_v7  ;;  %10218 = vmatprep.subr.bf16.mxu0 %v16504_v18  ;;  %v14119_v7 = vpack.c.bf16 %v6194_v20, %v6191_v4  ;;  %v6197_v18 = vand.u32 4294901760, %v14111_v24  ;;  %v14187_v4 = vld [vmem:[#allocation12 + $0x178] sm:$0xff] }
 0x75c   : > { %10761 = vmatprep.subr.bf16.mxu1 %v16506_v22  ;;  %v16534_v47 = vand.u32 4294901760, %v14187_v4 }
 0x75d   : > { %16509 = vst [vmem:[#allocation196_spill] sm:$0xff] %v14119_v7  ;;  %v14133_v33 = vpack.c.bf16 %v6200_v27, %v6197_v18 }
 0x75e   : > { %5259 = vmatmul.mubr.f32.vlgmr.msra.gmra.mrb[12].mxu1 %v16485_v32  ;;  %10220 = vmatpush1.bf16.msra.mxu0 %v16507_v34  ;;  %v16511_v34 = vld [vmem:[#allocation98_spill] sm:$0xff] }
 0x75f   : > { %10222 = vmatprep.subr.bf16.mxu0 %v16508_v57  ;;  %10763 = vmatpush3.bf16.msra.mxu1 %v14108_v61  ;;  %v16512_v57 = vld [vmem:[#allocation108_spill] sm:$0xff]  ;;  %16513 = vst [vmem:[#allocation122_spill] sm:$0xff] %v14133_v33  ;;  %v6206_v61 = vand.u32 4294901760, %v14126_v29  ;;  %v16514_v32 = vld [vmem:[#allocation118_spill] sm:$0xff] }
 0x760   : > { %10764 = vmatprep.subr.bf16.mxu1 %v16506_v22  ;;  %9125 = vmatprep.mubr.msk.f32.mxu1 %vm11512_vm1, %v16510_v13 }
 0x762   : > { %10224 = vmatpush1.bf16.msra.mxu0 %v16511_v34  ;;  %v6209_v34 = vand.u32 4294901760, %v14138_v6 }
 0x763   : > { %10226 = vmatprep.subr.bf16.mxu0 %v16512_v57  ;;  %10766 = vmatpush3.bf16.msra.mxu1 %v14119_v7  ;;  %v14145_v57 = vpack.c.bf16 %v6206_v61, %v6203_v39  ;;  %v6212_v7 = vand.u32 4294901760, %v14140_v19 }
 0x764   : > { %10767 = vmatprep.subr.bf16.mxu1 %v16506_v22 }
 0x765   : > { %16516 = vst [vmem:[#allocation125_spill] sm:$0xff] %v14145_v57 }
 0x766   : > { %10228 = vmatpush1.bf16.msra.mxu0 %v16514_v32  ;;  %v16518_v32 = vld [vmem:[#allocation140_spill] sm:$0xff] }
 0x767   : > { %10230 = vmatprep.subr.bf16.mxu0 %v16515_v53  ;;  %10769 = vmatpush3.bf16.msra.mxu1 %v14133_v33  ;;  %v14158_v53 = vsub.f32 %v5269_v60, %v6188_v45  ;;  %v14161_v33 = vpack.c.bf16 %v6212_v7, %v6209_v34  ;;  %v15890_v60 = vand.u32 4294901760, %v14165_v51  ;;  %v6279_v45 = vsub.f32 %v14155_v43, %v15891_v23 }
 0x768   : > { %10770 = vmatprep.subr.bf16.mxu1 %v16506_v22 }
 0x769   : > { %16519 = vst [vmem:[#allocation126_spill] sm:$0xff] %v14161_v33 }
 0x76a   : > { %10232 = vmatpush1.bf16.msra.mxu0 %v16517_v16  ;;  %v14176_v16 = vsub.f32 %v5275_v40, %v6194_v20  ;;  %v16523_v40 = vld [vmem:[#allocation155_spill] sm:$0xff]  ;;  %v16524_v20 = vand.u32 4294901760, %v14167_v28 }
 0x76b   : > { %10234 = vmatprep.subr.bf16.mxu0 %v16518_v32  ;;  %10772 = vmatpush3.bf16.msra.mxu1 %v14145_v57  ;;  %v16521_v32 = vld [vmem:[#allocation148_spill] sm:$0xff]  ;;  %v14183_v57 = vpack.c.bf16 %v15886_v50, %v15887_v3  ;;  %v14215_v3 = vsub.f32 %v14113_v42, %v6200_v27  ;;  %v16528_v50 = vld [vmem:[#allocation166_spill] sm:$0xff]  ;;  %v6280_v27 = vand.u32 4294901760, %v6279_v45 }
 0x76c   : > { %10773 = vmatprep.subr.bf16.mxu1 %v16506_v22  ;;  %v16538_v45 = vld [vmem:[#allocation178_spill] sm:$0xff] }
 0x76d   : > { %16522 = vst [vmem:[#allocation184_spill] sm:$0xff] %v14183_v57 }
 0x76e   : > { %10236 = vmatpush1.bf16.msra.mxu0 %v16520_v55  ;;  %v16526_v55 = vld [vmem:[#allocation161_spill] sm:$0xff] }
 0x76f   : > { %10238 = vmatprep.subr.bf16.mxu0 %v16521_v32  ;;  %10775 = vmatpush3.bf16.msra.mxu1 %v14161_v33  ;;  %v14197_v32 = vpack.c.bf16 %v16524_v20, %v15890_v60  ;;  %v14212_v60 = vsub.f32 %v14111_v24, %v6197_v18  ;;  %v16535_v18 = vld [vmem:[#allocation172_spill] sm:$0xff]  ;;  %v16536_v24 = vand.u32 4294901760, %v14171_v12 }
 0x770   : > { %10776 = vmatprep.subr.bf16.mxu1 %v16506_v22 }
 0x771   : > { %16525 = vst [vmem:[#allocation129_spill] sm:$0xff] %v14197_v32 }
 0x772   : > { %10240 = vmatpush1.bf16.msra.mxu0 %v16523_v40  ;;  %v16527_v40 = vand.u32 4294901760, %v14158_v53 }
 0x773   : > { %10242 = vmatprep.subr.bf16.mxu0 %v16526_v55  ;;  %10778 = vmatpush3.bf16.msra.mxu1 %v14183_v57  ;;  %v16529_v55 = vld [vmem:[#allocation45_spill] sm:$0xff]  ;;  %v16531_v57 = vld [vmem:[#allocation46_spill] sm:$0xff] }
 0x774   : > { %v6286_v33 = vsub.f32 %v14158_v53, %v16527_v40  ;;  %10779 = vmatprep.subr.bf16.mxu1 %v16506_v22  ;;  %v16530_v23 = vand.u32 4294901760, %v16529_v55  ;;  %v16532_v59 = vand.u32 4294901760, %v16531_v57  ;;  %v16533_v40 = vand.u32 4294901760, %v14185_v62 }
 0x775   : > { %v16537_v55 = vand.u32 4294901760, %v14176_v16  ;;  %v14238_v57 = vsub.f32 %v14124_v56, %v6203_v39  ;;  %v16545_v39 = vld [vmem:[#allocation52_spill] sm:$0xff] }
 0x776   : > { %10244 = vmatpush1.bf16.msra.mxu0 %v16528_v50  ;;  %v10249_v41 = vpack.c.bf16 %v16532_v59, %v16530_v23  ;;  %v14227_v20 = vpack.c.bf16 %v16534_v47, %v16533_v40  ;;  %v6287_v42 = vand.u32 4294901760, %v6286_v33  ;;  %v6293_v50 = vsub.f32 %v14171_v12, %v16536_v24  ;;  %v16539_v40 = vld [vmem:[#allocation47_spill] sm:$0xff] }
 0x777   : > { %10246 = vmatprep.subr.bf16.mxu0 %v16535_v18  ;;  %10781 = vmatpush3.bf16.msra.mxu1 %v14197_v32  ;;  %v6300_v59 = vsub.f32 %v14176_v16, %v16537_v55  ;;  %v14241_v47 = vsub.f32 %v14126_v29, %v6206_v61  ;;  %v16540_v24 = vand.u32 4294901760, %v16539_v40  ;;  %v16541_v18 = vld [vmem:[#allocation49_spill] sm:$0xff]  ;;  %v16543_v55 = vld [vmem:[#allocation51_spill] sm:$0xff]  ;;  %v16546_v56 = vand.u32 4294901760, %v16545_v39 }
 0x778   : > { %10782 = vmatprep.subr.bf16.mxu1 %v16506_v22  ;;  %v16542_v32 = vand.u32 4294901760, %v16541_v18  ;;  %v16544_v15 = vand.u32 4294901760, %v16543_v55  ;;  %v14256_v29 = vsub.f32 %v14138_v6, %v6209_v34  ;;  %v14259_v61 = vsub.f32 %v14140_v19, %v6212_v7  ;;  %v16551_v7 = vld [vmem:[#allocation55_spill] sm:$0xff]  ;;  %v16555_v55 = vld [vmem:[#allocation58_spill] sm:$0xff] }
 0x779   : > { %v10786_v33 = vpack.c.bf16 %v6287_v42, %v6280_v27  ;;  %v6294_v23 = vand.u32 4294901760, %v6293_v50  ;;  %v6301_v40 = vand.u32 4294901760, %v6300_v59  ;;  %v15899_v19 = vand.u32 4294901760, %v14241_v47  ;;  %v16549_v50 = vld [vmem:[#allocation54_spill] sm:$0xff]  ;;  %v16553_v59 = vld [vmem:[#allocation56_spill] sm:$0xff] }
 0x77a   : > { %10248 = vmatpush1.bf16.msra.mxu0 %v16538_v45  ;;  %v10251_v11 = vpack.c.bf16 %v16542_v32, %v16540_v24  ;;  %v10253_v63 = vpack.c.bf16 %v16546_v56, %v16544_v15  ;;  %v16547_v32 = vand.u32 4294901760, %v14212_v60  ;;  %v16548_v15 = vand.u32 4294901760, %v14215_v3 }
 0x77b   : > { %10250 = vmatprep.subr.bf16.mxu0 %v10249_v41  ;;  %10784 = vmatpush3.bf16.msra.mxu1 %v14227_v20  ;;  %v15900_v41 = vand.u32 4294901760, %v14238_v57  ;;  %v16550_v34 = vand.u32 4294901760, %v16549_v50  ;;  %v16552_v27 = vand.u32 4294901760, %v16551_v7  ;;  %v16554_v24 = vand.u32 4294901760, %v16553_v59  ;;  %v16559_v50 = vld [vmem:[#allocation39_spill] sm:$0xff] }
 0x77c   : > { %10785 = vmatprep.subr.bf16.mxu1 %v16506_v22  ;;  %v6307_v18 = vsub.f32 %v14212_v60, %v16547_v32  ;;  %v6314_v6 = vsub.f32 %v14215_v3, %v16548_v15  ;;  %v16556_v39 = vand.u32 4294901760, %v16555_v55  ;;  %v16557_v32 = vand.u32 4294901760, %v14150_v30 }
 0x77d   : > { %3994 = vmatmul.mubr.f32.vlgmr.msra.gmra.mrb[2].mxu0 %v16412_v48  ;;  %v10255_v42 = vpack.c.bf16 %v16552_v27, %v16550_v34  ;;  %v16558_v48 = vand.u32 4294901760, %v14152_v38  ;;  %v10789_v7 = vpack.c.bf16 %v6301_v40, %v6294_v23  ;;  %v15898_v34 = vand.u32 4294901760, %v14256_v29  ;;  %v16561_v23 = vld [vmem:[#allocation60_spill] sm:$0xff] }
 0x77e   : > { %10252 = vmatpush1.bf16.msra.mxu0 %v10251_v11  ;;  %4257 = vmatprep.mubr.f32.mxu0 %v13664_v14  ;;  %v10257_v56 = vpack.c.bf16 %v16556_v39, %v16554_v24  ;;  %v14284_v15 = vsub.f32 %v14150_v30, %v16557_v32  ;;  %v15897_v27 = vand.u32 4294901760, %v14259_v61  ;;  %v6308_v59 = vand.u32 4294901760, %v6307_v18 }
 0x77f   : > { %10254 = vmatprep.subr.bf16.mxu0 %v10253_v63  ;;  %v14289_v11 = vsub.f32 %v14152_v38, %v16558_v48  ;;  %9126 = vmatmul.mubr.f32.vlgmr.msra.gmra.mrb[14].mxu1 %v16559_v50  ;;  %v6315_v24 = vand.u32 4294901760, %v6314_v6  ;;  %v6321_v30 = vsub.f32 %v14238_v57, %v15900_v41  ;;  %v6328_v63 = vsub.f32 %v14241_v47, %v15899_v19  ;;  %v16564_v6 = vld [vmem:[#allocation67_spill] sm:$0xff]  ;;  %v16572_v19 = vld [vmem:[#allocation73_spill] sm:$0xff] }
 0x780   : > { %10787 = vmatpush3.bf16.msra.mxu1 %v10786_v33  ;;  %9160 = vmatprep.mubr.msk.f32.mxu1 %vm11512_vm1, %v16510_v13  ;;  %v16560_v38 = vand.u32 4294901760, %v16380_v49  ;;  %v16562_v33 = vand.u32 4294901760, %v16561_v23  ;;  %v16563_v18 = vand.u32 4294901760, %v16383_v37  ;;  %v16565_v55 = vand.u32 4294901760, %v16564_v6 }
 0x781   : > { %10788 = vmatprep.subr.bf16.mxu1 %v16506_v22  ;;  %v16566_v32 = vand.u32 4294901760, %v14165_v51  ;;  %v6342_v49 = vsub.f32 %v14259_v61, %v15897_v27  ;;  %v16567_v23 = vand.u32 4294901760, %v14167_v28  ;;  %v16568_v6 = vand.u32 4294901760, %v16240_v17 }
 0x782   : > { %10256 = vmatpush1.bf16.msra.mxu0 %v10255_v42  ;;  %v10259_v40 = vpack.c.bf16 %v16562_v33, %v16560_v38  ;;  %v10261_v39 = vpack.c.bf16 %v16565_v55, %v16563_v18  ;;  %v6335_v42 = vsub.f32 %v14256_v29, %v15898_v34  ;;  %v6348_v38 = vand.u32 4294901760, %v14284_v15  ;;  %v16569_v55 = vld [vmem:[#allocation69_spill] sm:$0xff] }
 0x783   : > { %v14314_v48 = vsub.f32 %v14165_v51, %v16566_v32  ;;  %10258 = vmatprep.subr.bf16.mxu0 %v10257_v56  ;;  %v14327_v33 = vsub.f32 %v14167_v28, %v16567_v23  ;;  %v10792_v51 = vpack.c.bf16 %v6315_v24, %v6308_v59  ;;  %v6322_v56 = vand.u32 4294901760, %v6321_v30 }
 0x784   : > { %10790 = vmatpush3.bf16.msra.mxu1 %v10789_v7  ;;  %v6329_v18 = vand.u32 4294901760, %v6328_v63  ;;  %v16570_v32 = vand.u32 4294901760, %v16569_v55  ;;  %v16571_v34 = vand.u32 4294901760, %v16388_v9  ;;  %v16573_v41 = vand.u32 4294901760, %v16572_v19 }
 0x785   : > { %10791 = vmatprep.subr.bf16.mxu1 %v16506_v22  ;;  %v16574_v28 = vand.u32 4294901760, %v14185_v62  ;;  %v6336_v59 = vand.u32 4294901760, %v6335_v42  ;;  %v6343_v24 = vand.u32 4294901760, %v6342_v49  ;;  %v6349_v17 = vsub.f32 %v14284_v15, %v6348_v38  ;;  %v16579_v42 = vld [vmem:[#allocation75_spill] sm:$0xff] }
 0x786   : > { %10260 = vmatpush1.bf16.msra.mxu0 %v10259_v40  ;;  %v10263_v27 = vpack.c.bf16 %v16570_v32, %v16568_v6  ;;  %v10265_v37 = vpack.c.bf16 %v16573_v41, %v16571_v34  ;;  %v16575_v30 = vand.u32 4294901760, %v14289_v11  ;;  %v16576_v9 = vand.u32 4294901760, %v14187_v4  ;;  %v16577_v40 = vld [vmem:[#allocation74_spill] sm:$0xff]  ;;  %v16583_v32 = vld [vmem:[#allocation79_spill] sm:$0xff] }
 0x787   : > { %v14341_v7 = vsub.f32 %v14185_v62, %v16574_v28  ;;  %10262 = vmatprep.subr.bf16.mxu0 %v10261_v39  ;;  %v10795_v19 = vpack.c.bf16 %v6329_v18, %v6322_v56  ;;  %v15904_v62 = vand.u32 4294901760, %v14314_v48  ;;  %v15901_v34 = vand.u32 4294901760, %v14327_v33  ;;  %v16581_v6 = vld [vmem:[#allocation78_spill] sm:$0xff] }
 0x788   : > { %v6356_v63 = vsub.f32 %v14289_v11, %v16575_v30  ;;  %v14352_v41 = vsub.f32 %v14187_v4, %v16576_v9  ;;  %10793 = vmatpush3.bf16.msra.mxu1 %v10792_v51  ;;  %v16578_v39 = vand.u32 4294901760, %v16577_v40  ;;  %v16580_v49 = vand.u32 4294901760, %v16579_v42  ;;  %v16585_v40 = vld [vmem:[#allocation80_spill] sm:$0xff]  ;;  %v16591_v42 = vld [vmem:[#allocation85_spill] sm:$0xff] }
 0x789   : > { %10794 = vmatprep.subr.bf16.mxu1 %v16506_v22  ;;  %v16582_v55 = vand.u32 4294901760, %v16581_v6  ;;  %v16584_v4 = vand.u32 4294901760, %v16583_v32  ;;  %v10798_v51 = vpack.c.bf16 %v6343_v24, %v6336_v59  ;;  %v6350_v56 = vand.u32 4294901760, %v6349_v17  ;;  %v16587_v24 = vld [vmem:[#allocation81_spill] sm:$0xff] }
 0x78a   : > { %10264 = vmatpush1.bf16.msra.mxu0 %v10263_v27  ;;  %v10267_v23 = vpack.c.bf16 %v16580_v49, %v16578_v39  ;;  %v6357_v18 = vand.u32 4294901760, %v6356_v63  ;;  %v6363_v30 = vsub.f32 %v14314_v48, %v15904_v62  ;;  %v6370_v27 = vsub.f32 %v14327_v33, %v15901_v34 }
 0x78b   : > { %10266 = vmatprep.subr.bf16.mxu0 %v10265_v37  ;;  %v10269_v28 = vpack.c.bf16 %v16584_v4, %v16582_v55  ;;  %v15903_v9 = vand.u32 4294901760, %v14341_v7  ;;  %v15902_v37 = vand.u32 4294901760, %v14352_v41  ;;  %v16586_v59 = vand.u32 4294901760, %v16585_v40 }
 0x78c   : > { %10796 = vmatpush3.bf16.msra.mxu1 %v10795_v19  ;;  %v16588_v17 = vand.u32 4294901760, %v16587_v24  ;;  %v16589_v19 = vld [vmem:[#allocation84_spill] sm:$0xff]  ;;  %v16592_v49 = vand.u32 4294901760, %v16591_v42  ;;  %v10801_v55 = vpack.c.bf16 %v6357_v18, %v6350_v56  ;;  %v6364_v4 = vand.u32 4294901760, %v6363_v30  ;;  %v16593_v24 = vld [vmem:[#allocation86_spill] sm:$0xff]  ;;  %v16595_v18 = vld [vmem:[#allocation87_spill] sm:$0xff] }
 0x78d   : > { %10797 = vmatprep.subr.bf16.mxu1 %v16506_v22  ;;  %v16590_v39 = vand.u32 4294901760, %v16589_v19  ;;  %v6371_v34 = vand.u32 4294901760, %v6370_v27  ;;  %v6384_v40 = vsub.f32 %v14352_v41, %v15902_v37  ;;  %v16594_v56 = vand.u32 4294901760, %v16593_v24  ;;  %v16597_v27 = vld [vmem:[#allocation91_spill] sm:$0xff]  ;;  %v16599_v19 = vld [vmem:[#allocation92_spill] sm:$0xff] }
 0x78e   : > { %10268 = vmatpush1.bf16.msra.mxu0 %v10267_v23  ;;  %v10271_v63 = vpack.c.bf16 %v16588_v17, %v16586_v59  ;;  %v6377_v23 = vsub.f32 %v14341_v7, %v15903_v9  ;;  %v16598_v17 = vand.u32 4294901760, %v16597_v27  ;;  %v16619_v27 = vand.u32 4294901760, %v16217_v21 }
 0x78f   : > { %10270 = vmatprep.subr.bf16.mxu0 %v10269_v28  ;;  %v10273_v6 = vpack.c.bf16 %v16592_v49, %v16590_v39  ;;  %v16600_v39 = vand.u32 4294901760, %v16599_v19  ;;  %v10804_v49 = vpack.c.bf16 %v6371_v34, %v6364_v4  ;;  %v6385_v9 = vand.u32 4294901760, %v6384_v40 }
 0x790   : > { %v8027_v32 = vpop.f32.mrb[2].mxu1  ;;  %10799 = vmatpush3.bf16.msra.mxu1 %v10798_v51  ;;  %v16596_v51 = vand.u32 4294901760, %v16595_v18  ;;  %v6378_v37 = vand.u32 4294901760, %v6377_v23  ;;  %v16607_v34 = vand.u32 4294901760, %v16414_v5  ;;  %v16609_v23 = vand.u32 4294901760, %v16419_v52 }
 0x791   : > { %v8028_v59 = vpop.f32.mrb[3].mxu1  ;;  %10800 = vmatprep.subr.bf16.mxu1 %v16506_v22  ;;  %v10277_v42 = vpack.c.bf16 %v16600_v39, %v16598_v17  ;;  %v16610_v40 = vand.u32 4294901760, %v16418_v25  ;;  %v16612_v5 = vand.u32 4294901760, %v16423_v2  ;;  %v16614_v52 = vand.u32 4294901760, %v16275_v10  ;;  %v16615_v25 = vld [vmem:[#allocation36_spill] sm:$0xff] }
 0x792   : > { %10272 = vmatpush1.bf16.msra.mxu0 %v10271_v63  ;;  %v14389_v28 = vadd.f32 %v8028_v59, %v8027_v32  ;;  %v10275_v30 = vpack.c.bf16 %v16596_v51, %v16594_v56  ;;  %v16601_v63 = vld [vmem:[#allocation93_spill] sm:$0xff]  ;;  %v16603_v59 = vld [vmem:[#allocation94_spill] sm:$0xff]  ;;  %v16606_v56 = vand.u32 4294901760, %v16405_v35  ;;  %v10807_v51 = vpack.c.bf16 %v6385_v9, %v6378_v37 }
 0x793   : > { %10274 = vmatprep.subr.bf16.mxu0 %v10273_v6  ;;  %v16602_v32 = vand.u32 4294901760, %v16601_v63  ;;  %v16604_v24 = vand.u32 4294901760, %v16603_v59  ;;  %v16605_v6 = vand.u32 4294901760, %v16406_v0  ;;  %v10810_v0 = vpack.c.bf16 %v14158_v53, %v14155_v43 }
 0x794   : > { %10802 = vmatpush3.bf16.msra.mxu1 %v10801_v55  ;;  %v16608_v55 = vand.u32 4294901760, %v16413_v46  ;;  %v16611_v35 = vand.u32 4294901760, %v16424_v54  ;;  %v16613_v46 = vand.u32 4294901760, %v16209_v31  ;;  %v10813_v37 = vpack.c.bf16 %v14176_v16, %v14171_v12 }
 0x795   : > { %10803 = vmatprep.subr.bf16.mxu1 %v16506_v22  ;;  %v10279_v62 = vpack.c.bf16 %v16604_v24, %v16602_v32  ;;  %v10281_v18 = vpack.c.bf16 %v16606_v56, %v16605_v6  ;;  %v16616_v2 = vand.u32 4294901760, %v16276_v8  ;;  %v16617_v54 = vand.u32 4294901760, %v16277_v1  ;;  %v16625_v32 = vld [vmem:[#allocation145_spill] sm:$0xff]  ;;  %v16627_v24 = vld [vmem:[#allocation146_spill] sm:$0xff] }
 0x796   : > { %10276 = vmatpush1.bf16.msra.mxu0 %v10275_v30  ;;  %v10283_v4 = vpack.c.bf16 %v16608_v55, %v16607_v34  ;;  %v10285_v30 = vpack.c.bf16 %v16610_v40, %v16609_v23  ;;  %v10289_v9 = vpack.c.bf16 %v16614_v52, %v16613_v46  ;;  %v16618_v10 = vand.u32 4294901760, %v16279_v44  ;;  %v16634_v40 = vld [vmem:[#allocation154_spill] sm:$0xff] }
 0x797   : > { %10278 = vmatprep.subr.bf16.mxu0 %v10277_v42  ;;  %v10291_v31 = vpack.c.bf16 %v16617_v54, %v16616_v2  ;;  %v10816_v19 = vpack.c.bf16 %v14215_v3, %v14212_v60  ;;  %v16620_v39 = vand.u32 4294901760, %v16219_v36  ;;  %v16621_v8 = vand.u32 4294901760, %v16220_v58  ;;  %v3101_v58 = vld [vmem:[%s15459_s7] sm:$0x7] }
 0x798   : > { %10805 = vmatpush3.bf16.msra.mxu1 %v10804_v49  ;;  %v10293_v17 = vpack.c.bf16 %v16619_v27, %v16618_v10  ;;  %v16622_v1 = vand.u32 4294901760, %v16222_v26  ;;  %v16623_v49 = vld [vmem:[#allocation142_spill] sm:$0xff]  ;;  %v10819_v21 = vpack.c.bf16 %v14241_v47, %v14238_v57  ;;  %v16626_v59 = vand.u32 4294901760, %v16625_v32  ;;  %v16629_v26 = vld [vmem:[#allocation149_spill] sm:$0xff] }
 0x799   : > { %10806 = vmatprep.subr.bf16.mxu1 %v16506_v22  ;;  %v10295_v42 = vpack.c.bf16 %v16621_v8, %v16620_v39  ;;  %v16624_v44 = vand.u32 4294901760, %v16623_v49  ;;  %v16628_v36 = vand.u32 4294901760, %v16627_v24  ;;  %v16630_v56 = vand.u32 4294901760, %v16629_v26  ;;  %v16640_v52 = vld [vmem:[#allocation162_spill] sm:$0xff]  ;;  %v16644_v39 = vld [vmem:[#allocation168_spill] sm:$0xff] }
 0x79a   : > { %10280 = vmatpush1.bf16.msra.mxu0 %v10279_v62  ;;  %v10287_v62 = vpack.c.bf16 %v16612_v5, %v16611_v35  ;;  %v10822_v55 = vpack.c.bf16 %v14259_v61, %v14256_v29  ;;  %v10825_v54 = vpack.c.bf16 %v14289_v11, %v14284_v15  ;;  %v16645_v8 = vand.u32 4294901760, %v16644_v39  ;;  %v16674_v39 = vld [vmem:[#allocation184_spill] sm:$0xff]  ;;  %v14594_v15 = vld [vmem:[#allocation12 + $0x38] sm:$0xff] }
 0x79b   : > { %10282 = vmatprep.subr.bf16.mxu0 %v10281_v18  ;;  %v10297_v63 = vpack.c.bf16 %v16624_v44, %v16622_v1  ;;  %v10299_v6 = vpack.c.bf16 %v16628_v36, %v16626_v59  ;;  %v16631_v18 = vld [vmem:[#allocation150_spill] sm:$0xff]  ;;  %v16646_v1 = vld [vmem:[#allocation173_spill] sm:$0xff]  ;;  %v10828_v59 = vpack.c.bf16 %v14327_v33, %v14314_v48  ;;  %v16652_v36 = vld [vmem:[#allocation180_spill] sm:$0xff]  ;;  %v10831_v26 = vpack.c.bf16 %v14352_v41, %v14341_v7 }
 0x79c   : > { %10808 = vmatpush3.bf16.msra.mxu1 %v10807_v51  ;;  %v16632_v51 = vand.u32 4294901760, %v16631_v18  ;;  %v16647_v49 = vand.u32 4294901760, %v16646_v1  ;;  %v16648_v44 = vld [vmem:[#allocation174_spill] sm:$0xff]  ;;  %v16655_v18 = vld [vmem:[#allocation188_spill] sm:$0xff]  ;;  %v16677_v1 = vld [vmem:[#allocation129_spill] sm:$0xff] }
 0x79d   : > { %10809 = vmatprep.subr.bf16.mxu1 %v16506_v22 }
 0x79e   : > { %10284 = vmatpush1.bf16.msra.mxu0 %v10283_v4  ;;  %v10301_v34 = vpack.c.bf16 %v16632_v51, %v16630_v56  ;;  %v16633_v4 = vld [vmem:[#allocation43_spill] sm:$0xff]  ;;  %v16654_v56 = vld [vmem:[#allocation44_spill] sm:$0xff] }
 0x79f   : > { %10286 = vmatprep.subr.bf16.mxu0 %v10285_v30  ;;  %9161 = vmatmul.mubr.f32.vlgmr.msra.gmra.mrb[14].mxu1 %v16615_v25  ;;  %v3114_v23 = vrot.slane %v3101_v58, %v16633_v4  ;;  %v16635_v30 = vand.u32 4294901760, %v16634_v40  ;;  %v16656_v51 = vld [vmem:[#allocation48_spill] sm:$0xff]  ;;  %v16660_v40 = vld [vmem:[#allocation53_spill] sm:$0xff] }
 0x7a0   : > { %10811 = vmatpush3.bf16.msra.mxu1 %v10810_v0  ;;  %9195 = vmatprep.mubr.msk.f32.mxu1 %vm11512_vm1, %v16510_v13  ;;  %v16636_v0 = vld [vmem:[#allocation156_spill] sm:$0xff] }
 0x7a1   : > { %10812 = vmatprep.subr.bf16.mxu1 %v16506_v22  ;;  %v16637_v35 = vand.u32 4294901760, %v16636_v0  ;;  %v4511_v10 = vadd.f32 %v14389_v28, %v3114_v23  ;;  %v16650_v28 = vld [vmem:[#allocation179_spill] sm:$0xff]  ;;  %v16659_v23 = vld [vmem:[#allocation200_spill] sm:$0xff] }
 0x7a2   : > { %10288 = vmatpush1.bf16.msra.mxu0 %v10287_v62  ;;  %v16638_v62 = vld [vmem:[#allocation160_spill] sm:$0xff]  ;;  %v16651_v24 = vand.u32 4294901760, %v16650_v28 }
 0x7a3   : > { %10290 = vmatprep.subr.bf16.mxu0 %v10289_v9  ;;  %v10303_v5 = vpack.c.bf16 %v16637_v35, %v16635_v30  ;;  %v16639_v46 = vand.u32 4294901760, %v16638_v62  ;;  %v16641_v9 = vand.u32 4294901760, %v16640_v52  ;;  %v16661_v30 = vld [vmem:[#allocation57_spill] sm:$0xff]  ;;  %v16662_v0 = vld [vmem:[#allocation196_spill] sm:$0xff]  ;;  %v16664_v35 = vld [vmem:[#allocation62_spill] sm:$0xff] }
 0x7a4   : > { %10814 = vmatpush3.bf16.msra.mxu1 %v10813_v37  ;;  %v16666_v62 = vld [vmem:[#allocation63_spill] sm:$0xff]  ;;  %v16668_v52 = vld [vmem:[#allocation125_spill] sm:$0xff]  ;;  %v16683_v28 = vld [vmem:[#allocation96_spill] sm:$0xff] }
 0x7a5   : > { %10815 = vmatprep.subr.bf16.mxu1 %v16506_v22  ;;  %v10305_v37 = vpack.c.bf16 %v16641_v9, %v16639_v46  ;;  %v16667_v46 = vld [vmem:[#allocation64_spill] sm:$0xff]  ;;  %v16669_v9 = vld [vmem:[#allocation65_spill] sm:$0xff] }
 0x7a6   : > { %10292 = vmatpush1.bf16.msra.mxu0 %v10291_v31  ;;  %v5298_v4 = vld [vmem:[#allocation12 + $0x110] sm:$0xff] }
 0x7a7   : > { %10294 = vmatprep.subr.bf16.mxu0 %v10293_v17  ;;  %v16642_v17 = vld [vmem:[#allocation167_spill] sm:$0xff] }
 0x7a8   : > { %10817 = vmatpush3.bf16.msra.mxu1 %v10816_v19  ;;  %v16643_v19 = vand.u32 4294901760, %v16642_v17  ;;  %v16673_v17 = vld [vmem:[#allocation76_spill] sm:$0xff] }
 0x7a9   : > { %10818 = vmatprep.subr.bf16.mxu1 %v16506_v22 }
 0x7aa   : > { %10296 = vmatpush1.bf16.msra.mxu0 %v10295_v42  ;;  %v10307_v42 = vpack.c.bf16 %v16645_v8, %v16643_v19  ;;  %v16675_v8 = vld [vmem:[#allocation77_spill] sm:$0xff] }
 0x7ab   : > { %10298 = vmatprep.subr.bf16.mxu0 %v10297_v63  ;;  %v16649_v63 = vand.u32 4294901760, %v16648_v44  ;;  %v16679_v44 = vld [vmem:[#allocation88_spill] sm:$0xff] }
 0x7ac   : > { %10820 = vmatpush3.bf16.msra.mxu1 %v10819_v21 }
 0x7ad   : > { %10821 = vmatprep.subr.bf16.mxu1 %v16506_v22  ;;  %v10309_v21 = vpack.c.bf16 %v16649_v63, %v16647_v49  ;;  %v16678_v49 = vld [vmem:[#allocation83_spill] sm:$0xff]  ;;  %v16680_v63 = vand.u32 4294901760, %v14155_v43  ;;  %v16687_v43 = vld [vmem:[#allocation98_spill] sm:$0xff] }
 0x7ae   : > { %10300 = vmatpush1.bf16.msra.mxu0 %v10299_v6  ;;  %v16653_v6 = vand.u32 4294901760, %v16652_v36  ;;  %v16685_v36 = vand.u32 4294901760, %v14171_v12  ;;  %v16691_v12 = vld [vmem:[#allocation118_spill] sm:$0xff] }
 0x7af   : > { %10302 = vmatprep.subr.bf16.mxu0 %v10301_v34  ;;  %v16657_v34 = vld [vmem:[#allocation50_spill] sm:$0xff] }
 0x7b0   : > { %v8062_v2 = vpop.f32.mrb[4].mxu1  ;;  %10823 = vmatpush3.bf16.msra.mxu1 %v10822_v55  ;;  %v10311_v58 = vpack.c.bf16 %v16653_v6, %v16651_v24  ;;  %v16658_v55 = vld [vmem:[#allocation37_spill] sm:$0xff]  ;;  %v16684_v24 = vld [vmem:[#allocation38_spill] sm:$0xff]  ;;  %v16686_v6 = vand.u32 4294901760, %v14176_v16  ;;  %v16692_v16 = vld [vmem:[#allocation120_spill] sm:$0xff] }
 0x7b1   : > { %v8063_v31 = vpop.f32.mrb[5].mxu1  ;;  %10824 = vmatprep.subr.bf16.mxu1 %v16506_v22 }
 0x7b2   : > { %v8064_v27 = vadd.f32 %v8063_v31, %v8062_v2  ;;  %10304 = vmatpush1.bf16.msra.mxu0 %v10303_v5  ;;  %v16665_v5 = vld [vmem:[#allocation122_spill] sm:$0xff] }
 0x7b3   : > { %10306 = vmatprep.subr.bf16.mxu0 %v10305_v37  ;;  %v16670_v37 = vld [vmem:[#allocation70_spill] sm:$0xff] }
 0x7b4   : > { %v4743_v32 = vadd.f32 %v8064_v27, %v4511_v10  ;;  %10826 = vmatpush3.bf16.msra.mxu1 %v10825_v54  ;;  %v16671_v54 = vld [vmem:[#allocation126_spill] sm:$0xff]  ;;  %v16672_v27 = vld [vmem:[#allocation71_spill] sm:$0xff] }
 0x7b5   : > { %10827 = vmatprep.subr.bf16.mxu1 %v16506_v22 }
 0x7b6   : > { %10308 = vmatpush1.bf16.msra.mxu0 %v10307_v42  ;;  %v16676_v42 = vld [vmem:[#allocation82_spill] sm:$0xff] }
 0x7b7   : > { %10310 = vmatprep.subr.bf16.mxu0 %v10309_v21  ;;  %v16681_v21 = vand.u32 4294901760, %v14158_v53  ;;  %v16688_v53 = vld [vmem:[#allocation108_spill] sm:$0xff] }
 0x7b8   : > { %10829 = vmatpush3.bf16.msra.mxu1 %v10828_v59  ;;  %v16682_v59 = vld [vmem:[#allocation90_spill] sm:$0xff] }
 0x7b9   : > { %10830 = vmatprep.subr.bf16.mxu1 %v16506_v22 }
 0x7ba   : > { %10312 = vmatpush1.bf16.msra.mxu0 %v10311_v58  ;;  %v10861_v58 = vpack.c.bf16 %v16686_v6, %v16685_v36  ;;  %v16707_v36 = vld [vmem:[#allocation172_spill] sm:$0xff] }
 0x7bb   : > { %10314 = vmatprep.subr.bf16.mxu0 %v16654_v56  ;;  %v16690_v56 = vand.u32 4294901760, %v14215_v3  ;;  %v16697_v3 = vand.u32 4294901760, %v14256_v29 }
 0x7bc   : > { %10832 = vmatpush3.bf16.msra.mxu1 %v10831_v26  ;;  %v16689_v26 = vand.u32 4294901760, %v14212_v60  ;;  %v16696_v60 = vld [vmem:[#allocation140_spill] sm:$0xff] }
 0x7bd   : > { %4259 = vmatmul.mubr.f32.vlgmr.msra.gmra.mrb[2].mxu0 %v16655_v18  ;;  %10833 = vmatprep.subr.bf16.mxu1 %v16506_v22 }
 0x7be   : > { %10316 = vmatpush1.bf16.msra.mxu0 %v16656_v51  ;;  %4394 = vmatprep.mubr.f32.mxu0 %v13664_v14  ;;  %v16663_v14 = vld [vmem:[#allocation61_spill] sm:$0xff]  ;;  %v10864_v51 = vpack.c.bf16 %v16690_v56, %v16689_v26  ;;  %v16708_v26 = vand.u32 4294901760, %v14341_v7  ;;  %v16709_v56 = vand.u32 4294901760, %v14352_v41 }
 0x7bf   : > { %10318 = vmatprep.subr.bf16.mxu0 %v16657_v34  ;;  %9196 = vmatmul.mubr.f32.vlgmr.msra.gmra.mrb[14].mxu1 %v16658_v55  ;;  %v16693_v34 = vand.u32 4294901760, %v14238_v57  ;;  %v16700_v57 = vld [vmem:[#allocation148_spill] sm:$0xff]  ;;  %v5283_v7 = vld [vmem:[#allocation12 + $0x98] sm:$0xff] }
 0x7c0   : > { %10835 = vmatpush3.bf16.msra.mxu1 %v16659_v23  ;;  %9230 = vmatprep.mubr.msk.f32.mxu1 %vm11512_vm1, %v16510_v13 }
 0x7c1   : > { %10836 = vmatprep.subr.bf16.mxu1 %v16506_v22 }
 0x7c2   : > { %10320 = vmatpush1.bf16.msra.mxu0 %v16660_v40  ;;  %v16694_v40 = vand.u32 4294901760, %v14241_v47  ;;  %v14577_v47 = vld [vmem:[#allocation12 + $0x8] sm:$0xff] }
 0x7c3   : > { %10322 = vmatprep.subr.bf16.mxu0 %v16661_v30 }
 0x7c4   : > { %10838 = vmatpush3.bf16.msra.mxu1 %v16662_v0  ;;  %v10867_v30 = vpack.c.bf16 %v16694_v40, %v16693_v34 }
 0x7c5   : > { %10839 = vmatprep.subr.bf16.mxu1 %v16506_v22 }
 0x7c6   : > { %10324 = vmatpush1.bf16.msra.mxu0 %v16663_v14  ;;  %v16695_v14 = vld [vmem:[#allocation134_spill] sm:$0xff] }
 0x7c7   : > { %10326 = vmatprep.subr.bf16.mxu0 %v16664_v35  ;;  %v16698_v35 = vand.u32 4294901760, %v14259_v61 }
 0x7c8   : > { %10841 = vmatpush3.bf16.msra.mxu1 %v16665_v5 }
 0x7c9   : > { %10842 = vmatprep.subr.bf16.mxu1 %v16506_v22 }
 0x7ca   : > { %10328 = vmatpush1.bf16.msra.mxu0 %v16666_v62  ;;  %v10870_v62 = vpack.c.bf16 %v16698_v35, %v16697_v3  ;;  %v5279_v3 = vld [vmem:[#allocation12 + $0x78] sm:$0xff]  ;;  %v5286_v35 = vld [vmem:[#allocation12 + $0xb0] sm:$0xff] }
 0x7cb   : > { %10330 = vmatprep.subr.bf16.mxu0 %v16667_v46  ;;  %v16699_v46 = vld [vmem:[#allocation144_spill] sm:$0xff] }
 0x7cc   : > { %10844 = vmatpush3.bf16.msra.mxu1 %v16668_v52 }
 0x7cd   : > { %10845 = vmatprep.subr.bf16.mxu1 %v16506_v22 }
 0x7ce   : > { %10332 = vmatpush1.bf16.msra.mxu0 %v16669_v9  ;;  %v14579_v9 = vld [vmem:[#allocation12 + $0x20] sm:$0xff] }
 0x7cf   : > { %10334 = vmatprep.subr.bf16.mxu0 %v16670_v37  ;;  %v16701_v37 = vand.u32 4294901760, %v14289_v11  ;;  %v14596_v11 = vld [vmem:[#allocation12 + $0x50] sm:$0xff] }
 0x7d0   : > { %v8097_v2 = vpop.f32.mrb[6].mxu1  ;;  %10847 = vmatpush3.bf16.msra.mxu1 %v16671_v54 }
 0x7d1   : > { %v8098_v31 = vpop.f32.mrb[7].mxu1  ;;  %10848 = vmatprep.subr.bf16.mxu1 %v16506_v22 }
 0x7d2   : > { %v8099_v10 = vadd.f32 %v8098_v31, %v8097_v2  ;;  %10336 = vmatpush1.bf16.msra.mxu0 %v16672_v27  ;;  %v10873_v2 = vpack.c.bf16 %v16701_v37, %v6348_v38  ;;  %v16702_v31 = vld [vmem:[#allocation155_spill] sm:$0xff]  ;;  %v16703_v27 = vld [vmem:[#allocation161_spill] sm:$0xff]  ;;  %v16704_v38 = vand.u32 4294901760, %v14314_v48  ;;  %v5337_v48 = vand.u32 4294901760, %v14594_v15 }
 0x7d3   : > { %10338 = vmatprep.subr.bf16.mxu0 %v16673_v17  ;;  %v5329_v17 = vand.u32 4294901760, %v14577_v47  ;;  %v5357_v37 = vand.u32 4294901760, %v5286_v35 }
 0x7d4   : > { %v4881_v19 = vadd.f32 %v8099_v10, %v4743_v32  ;;  %10850 = vmatpush3.bf16.msra.mxu1 %v16674_v39  ;;  %v10858_v32 = vpack.c.bf16 %v16681_v21, %v16680_v63 }
 0x7d5   : > { %10851 = vmatprep.subr.bf16.mxu1 %v16506_v22 }
 0x7d6   : > { %10340 = vmatpush1.bf16.msra.mxu0 %v16675_v8  ;;  %v5333_v8 = vand.u32 4294901760, %v14579_v9 }
 0x7d7   : > { %10342 = vmatprep.subr.bf16.mxu0 %v16676_v42  ;;  %v14590_v42 = vld [vmem:[#allocation12] sm:$0xff] }
 0x7d8   : > { %10853 = vmatpush3.bf16.msra.mxu1 %v16677_v1  ;;  %v14611_v6 = vpack.c.bf16 %v5333_v8, %v5329_v17 }
 0x7d9   : > { %10854 = vmatprep.subr.bf16.mxu1 %v16506_v22 }
 0x7da   : > { %10344 = vmatpush1.bf16.msra.mxu0 %v16678_v49  ;;  %v14592_v49 = vld [vmem:[#allocation12 + $0x18] sm:$0xff] }
 0x7db   : > { %10346 = vmatprep.subr.bf16.mxu0 %v16679_v44  ;;  %v16705_v44 = vand.u32 4294901760, %v14327_v33  ;;  %v5341_v33 = vand.u32 4294901760, %v14596_v11 }
 0x7dc   : > { %10856 = vmatpush3.bf16.msra.mxu1 %v14227_v20 }
 0x7dd   : > { %10857 = vmatprep.subr.bf16.mxu1 %v16506_v22  ;;  %v10876_v63 = vpack.c.bf16 %v16705_v44, %v16704_v38  ;;  %v14624_v40 = vpack.c.bf16 %v5341_v33, %v5337_v48  ;;  %v14644_v38 = vsub.f32 %v14577_v47, %v5329_v17  ;;  %v14661_v47 = vsub.f32 %v14594_v15, %v5337_v48  ;;  %v5295_v17 = vld [vmem:[#allocation12 + $0xf8] sm:$0xff] }
 0x7de   : > { %10348 = vmatpush1.bf16.msra.mxu0 %v16682_v59  ;;  %v5331_v59 = vand.u32 4294901760, %v14590_v42 }
 0x7df   : > { %10350 = vmatprep.subr.bf16.mxu0 %v16683_v28  ;;  %9231 = vmatmul.mubr.f32.vlgmr.msra.gmra.mrb[14].mxu1 %v16684_v24  ;;  %v5335_v28 = vand.u32 4294901760, %v14592_v49  ;;  %16711 = vst [vmem:[#allocation186_spill] sm:$0xff] %v14624_v40  ;;  %v14665_v24 = vsub.f32 %v14596_v11, %v5341_v33  ;;  %v5369_v33 = vand.u32 4294901760, %v5295_v17 }
 0x7e0   : > { %10859 = vmatpush3.bf16.msra.mxu1 %v10858_v32  ;;  %9265 = vmatprep.mubr.msk.f32.mxu1 %vm11512_vm1, %v16510_v13  ;;  %v16706_v32 = vld [vmem:[#allocation166_spill] sm:$0xff] }
 0x7e1   : > { %10860 = vmatprep.subr.bf16.mxu1 %v16506_v22 }
 0x7e2   : > { %10352 = vmatpush1.bf16.msra.mxu0 %v16687_v43  ;;  %v5277_v43 = vld [vmem:[#allocation12 + $0x68] sm:$0xff] }
 0x7e3   : > { %10354 = vmatprep.subr.bf16.mxu0 %v16688_v53  ;;  %v5280_v53 = vld [vmem:[#allocation12 + $0x80] sm:$0xff] }
 0x7e4   : > { %10862 = vmatpush3.bf16.msra.mxu1 %v10861_v58  ;;  %v5273_v58 = vld [vmem:[#allocation12 + $0x48] sm:$0xff] }
 0x7e5   : > { %10863 = vmatprep.subr.bf16.mxu1 %v16506_v22  ;;  %v5343_v34 = vand.u32 4294901760, %v5273_v58 }
 0x7e6   : > { %10356 = vmatpush1.bf16.msra.mxu0 %v16691_v12  ;;  %v14621_v12 = vpack.c.bf16 %v5335_v28, %v5331_v59 }
 0x7e7   : > { %10358 = vmatprep.subr.bf16.mxu0 %v16692_v16 }
 0x7e8   : > { %10865 = vmatpush3.bf16.msra.mxu1 %v10864_v51  ;;  %v10879_v51 = vpack.c.bf16 %v16709_v56, %v16708_v26  ;;  %16710 = vst [vmem:[#allocation185_spill] sm:$0xff] %v14621_v12  ;;  %v14652_v26 = vsub.f32 %v14579_v9, %v5333_v8  ;;  %v14655_v56 = vsub.f32 %v14590_v42, %v5331_v59 }
 0x7e9   : > { %10866 = vmatprep.subr.bf16.mxu1 %v16506_v22  ;;  %v14669_v9 = vsub.f32 %v5273_v58, %v5343_v34 }
 0x7ea   : > { %10360 = vmatpush1.bf16.msra.mxu0 %v16695_v14  ;;  %v5349_v14 = vand.u32 4294901760, %v5280_v53 }
 0x7eb   : > { %10362 = vmatprep.subr.bf16.mxu0 %v16696_v60  ;;  %v5276_v60 = vld [vmem:[#allocation12 + $0x60] sm:$0xff] }
 0x7ec   : > { %10868 = vmatpush3.bf16.msra.mxu1 %v10867_v30  ;;  %v5345_v30 = vand.u32 4294901760, %v5277_v43  ;;  %v5347_v41 = vand.u32 4294901760, %v5276_v60  ;;  %v14674_v42 = vsub.f32 %v5280_v53, %v5349_v14  ;;  %v14688_v53 = vsub.f32 %v5286_v35, %v5357_v37  ;;  %v14707_v35 = vld [vmem:[#allocation12 + $0x120] sm:$0xff] }
 0x7ed   : > { %10869 = vmatprep.subr.bf16.mxu1 %v16506_v22 }
 0x7ee   : > { %10364 = vmatpush1.bf16.msra.mxu0 %v16699_v46  ;;  %v14633_v46 = vpack.c.bf16 %v5349_v14, %v5345_v30  ;;  %v14671_v8 = vsub.f32 %v5277_v43, %v5345_v30  ;;  %v14679_v11 = vsub.f32 %v5276_v60, %v5347_v41  ;;  %v14694_v30 = vld [vmem:[#allocation12 + $0x140] sm:$0xff] }
 0x7ef   : > { %10366 = vmatprep.subr.bf16.mxu0 %v16700_v57  ;;  %v5353_v57 = vand.u32 4294901760, %v5283_v7 }
 0x7f0   : > { %10871 = vmatpush3.bf16.msra.mxu1 %v10870_v62  ;;  %v5351_v62 = vand.u32 4294901760, %v5279_v3  ;;  %16713 = vst [vmem:[#allocation189_spill] sm:$0xff] %v14633_v46 }
 0x7f1   : > { %v8132_v29 = vpop.f32.mrb[8].mxu1  ;;  %10872 = vmatprep.subr.bf16.mxu1 %v16506_v22  ;;  %v14647_v44 = vpack.c.bf16 %v5357_v37, %v5353_v57  ;;  %v14686_v43 = vsub.f32 %v5283_v7, %v5353_v57 }
 0x7f2   : > { %v8133_v61 = vpop.f32.mrb[9].mxu1  ;;  %10368 = vmatpush1.bf16.msra.mxu0 %v16702_v31  ;;  %v14641_v31 = vpack.c.bf16 %v5351_v62, %v5347_v41  ;;  %v14684_v58 = vsub.f32 %v5279_v3, %v5351_v62  ;;  %v14709_v62 = vld [vmem:[#allocation12 + $0x138] sm:$0xff] }
 0x7f3   : > { %v8134_v10 = vadd.f32 %v8133_v61, %v8132_v29  ;;  %10370 = vmatprep.subr.bf16.mxu0 %v16703_v27  ;;  %v5285_v29 = vld [vmem:[#allocation12 + $0xa8] sm:$0xff]  ;;  %v5292_v61 = vld [vmem:[#allocation12 + $0xe0] sm:$0xff]  ;;  %16715 = vst [vmem:[#allocation192_spill] sm:$0xff] %v14647_v44 }
 0x7f4   : > { %10874 = vmatpush3.bf16.msra.mxu1 %v10873_v2  ;;  %v5282_v2 = vld [vmem:[#allocation12 + $0x90] sm:$0xff]  ;;  %16714 = vst [vmem:[#allocation191_spill] sm:$0xff] %v14641_v31  ;;  %v5359_v27 = vand.u32 4294901760, %v5285_v29 }
 0x7f5   : > { %v14602_v21 = vadd.f32 %v8134_v10, %v4881_v19  ;;  %10875 = vmatprep.subr.bf16.mxu1 %v16506_v22  ;;  %v5270_v19 = vld [vmem:[#allocation12 + $0x30] sm:$0xff]  ;;  %v5355_v10 = vand.u32 4294901760, %v5282_v2 }
 0x7f6   : > { %10372 = vmatpush1.bf16.msra.mxu0 %v16706_v32  ;;  %v5339_v16 = vand.u32 4294901760, %v5270_v19  ;;  %v5288_v32 = vld [vmem:[#allocation12 + $0xc0] sm:$0xff]  ;;  %v14697_v14 = vsub.f32 %v5285_v29, %v5359_v27 }
 0x7f7   : > { %10374 = vmatprep.subr.bf16.mxu0 %v16707_v36  ;;  %v5291_v36 = vld [vmem:[#allocation12 + $0xd8] sm:$0xff]  ;;  %v5363_v15 = vand.u32 4294901760, %v5288_v32 }
 0x7f8   : > { %10877 = vmatpush3.bf16.msra.mxu1 %v10876_v63  ;;  %v5367_v59 = vand.u32 4294901760, %v5291_v36 }
 0x7f9   : > { %10878 = vmatprep.subr.bf16.mxu1 %v16506_v22  ;;  %v14714_v37 = vsub.f32 %v5288_v32, %v5363_v15 }
 0x7fa   : > { %10376 = vmatpush1.bf16.msra.mxu0 %v16538_v45  ;;  %v14629_v45 = vpack.c.bf16 %v5343_v34, %v5339_v16  ;;  %v14692_v34 = vld [vmem:[#allocation12 + $0x128] sm:$0xff]  ;;  %v14705_v7 = vpack.c.bf16 %v5367_v59, %v5363_v15  ;;  %v5379_v15 = vand.u32 4294901760, %v14707_v35 }
 0x7fb   : > { %10570 = vmatprep.subr.bf16.mxu0 %v14611_v6  ;;  %v5377_v29 = vand.u32 4294901760, %v14692_v34 }
 0x7fc   : > { %10880 = vmatpush3.bf16.msra.mxu1 %v10879_v51  ;;  %16712 = vst [vmem:[#allocation187_spill] sm:$0xff] %v14629_v45  ;;  %v14658_v51 = vsub.f32 %v14592_v49, %v5335_v28  ;;  %v14677_v49 = vpack.c.bf16 %v5359_v27, %v5355_v10  ;;  %v5297_v28 = vld [vmem:[#allocation12 + $0x108] sm:$0xff]  ;;  %16718 = vst [vmem:[#allocation197_spill] sm:$0xff] %v14705_v7 }
 0x7fd   : > { %4396 = vmatmul.mubr.f32.vlgmr.msra.gmra.mrb[2].mxu0 %v16655_v18  ;;  %10881 = vmatprep.subr.bf16.mxu1 %v16506_v22  ;;  %v5289_v18 = vld [vmem:[#allocation12 + $0xc8] sm:$0xff] }
 0x7fe   : > { %10572 = vmatpush1.bf16.msra.mxu0 %v14621_v12  ;;  %5425 = vmatprep.mubr.f32.mxu0 %v16510_v13  ;;  %v5361_v63 = vand.u32 4294901760, %v5289_v18  ;;  %16716 = vst [vmem:[#allocation194_spill] sm:$0xff] %v14677_v49 }
 0x7ff   : > { %10574 = vmatprep.subr.bf16.mxu0 %v14624_v40  ;;  %9266 = vmatmul.mubr.f32.vlgmr.msra.gmra.mrb[14].mxu1 %v16615_v25 }
 0x800   : > { %10883 = vmatpush3.bf16.msra.mxu1 %v16659_v23  ;;  %9300 = vmatprep.mubr.msk.f32.mxu1 %vm11512_vm1, %v16510_v13  ;;  %v5365_v23 = vand.u32 4294901760, %v5292_v61  ;;  %v14699_v60 = vsub.f32 %v5289_v18, %v5361_v63  ;;  %v16723_v18 = vand.u32 4294901760, %v14655_v56 }
 0x801   : > { %10884 = vmatprep.subr.bf16.mxu1 %v16506_v22 }
 0x802   : > { %10576 = vmatpush1.bf16.msra.mxu0 %v14629_v45  ;;  %v14682_v48 = vpack.c.bf16 %v5365_v23, %v5361_v63  ;;  %v14703_v3 = vsub.f32 %v5292_v61, %v5365_v23  ;;  %v14720_v61 = vsub.f32 %v5291_v36, %v5367_v59  ;;  %v14726_v63 = vld [vmem:[#allocation12 + $0x158] sm:$0xff]  ;;  %v14728_v23 = vld [vmem:[#allocation12 + $0x170] sm:$0xff]  ;;  %v16721_v59 = vand.u32 4294901760, %v14652_v26 }
 0x803   : > { %10578 = vmatprep.subr.bf16.mxu0 %v14633_v46  ;;  %v14667_v46 = vsub.f32 %v5270_v19, %v5339_v16  ;;  %v5373_v19 = vand.u32 4294901760, %v5298_v4  ;;  %v14690_v16 = vsub.f32 %v5282_v2, %v5355_v10  ;;  %v14722_v10 = vsub.f32 %v5295_v17, %v5369_v33  ;;  %v14736_v36 = vld [vmem:[#allocation12 + $0x150] sm:$0xff]  ;;  %v14738_v17 = vld [vmem:[#allocation12 + $0x168] sm:$0xff] }
 0x804   : > { %10886 = vmatpush3.bf16.msra.mxu1 %v16662_v0  ;;  %v5294_v0 = vld [vmem:[#allocation12 + $0xf0] sm:$0xff]  ;;  %16717 = vst [vmem:[#allocation195_spill] sm:$0xff] %v14682_v48 }
 0x805   : > { %10887 = vmatprep.subr.bf16.mxu1 %v16506_v22  ;;  %v5371_v41 = vand.u32 4294901760, %v5294_v0  ;;  %v14716_v2 = vpack.c.bf16 %v5373_v19, %v5369_v33  ;;  %v14724_v27 = vsub.f32 %v5298_v4, %v5373_v19  ;;  %v5452_v33 = vsub.f32 %v14652_v26, %v16721_v59 }
 0x806   : > { %10580 = vmatpush1.bf16.msra.mxu0 %v14641_v31  ;;  %v16722_v4 = vand.u32 4294901760, %v14694_v30  ;;  %v16728_v31 = vand.u32 4294901760, %v14665_v24  ;;  %v16729_v59 = vand.u32 4294901760, %v14726_v63 }
 0x807   : > { %10582 = vmatprep.subr.bf16.mxu0 %v14647_v44  ;;  %v5375_v44 = vand.u32 4294901760, %v5297_v28  ;;  %16719 = vst [vmem:[#allocation198_spill] sm:$0xff] %v14716_v2  ;;  %v14752_v57 = vsub.f32 %v5294_v0, %v5371_v41 }
 0x808   : > { %10889 = vmatpush3.bf16.msra.mxu1 %v16665_v5  ;;  %v15913_v5 = vand.u32 4294901760, %v14644_v38  ;;  %v5476_v45 = vsub.f32 %v14665_v24, %v16728_v31 }
 0x809   : > { %10890 = vmatprep.subr.bf16.mxu1 %v16506_v22  ;;  %v14732_v32 = vpack.c.bf16 %v5375_v44, %v5371_v41  ;;  %v16724_v41 = vand.u32 4294901760, %v14709_v62 }
 0x80a   : > { %10584 = vmatpush1.bf16.msra.mxu0 %v14677_v49  ;;  %v14760_v49 = vsub.f32 %v5297_v28, %v5375_v44  ;;  %v16730_v28 = vand.u32 4294901760, %v14728_v23 }
 0x80b   : > { %10586 = vmatprep.subr.bf16.mxu0 %v14682_v48  ;;  %16720 = vst [vmem:[#allocation201_spill] sm:$0xff] %v14732_v32  ;;  %v14756_v48 = vpack.c.bf16 %v16722_v4, %v5377_v29  ;;  %v14770_v4 = vpack.c.bf16 %v16724_v41, %v5379_v15 }
 0x80c   : > { %10892 = vmatpush3.bf16.msra.mxu1 %v16668_v52  ;;  %v5440_v52 = vsub.f32 %v14644_v38, %v15913_v5  ;;  %v16727_v5 = vand.u32 4294901760, %v14661_v47  ;;  %v14790_v40 = vpack.c.bf16 %v16730_v28, %v16729_v59  ;;  %v16732_v59 = vand.u32 4294901760, %v14667_v46 }
 0x80d   : > { %10893 = vmatprep.subr.bf16.mxu1 %v16506_v22  ;;  %16725 = vst [vmem:[#allocation202_spill] sm:$0xff] %v14770_v4 }
 0x80e   : > { %10588 = vmatpush1.bf16.msra.mxu0 %v14705_v7  ;;  %v16726_v7 = vand.u32 4294901760, %v14658_v51  ;;  %v5464_v41 = vsub.f32 %v14661_v47, %v16727_v5  ;;  %16731 = vst [vmem:[#allocation203_spill] sm:$0xff] %v14790_v40  ;;  %v5470_v28 = vsub.f32 %v14667_v46, %v16732_v59 }
 0x80f   : > { %10590 = vmatprep.subr.bf16.mxu0 %v14716_v2  ;;  %v5446_v2 = vsub.f32 %v14655_v56, %v16723_v18  ;;  %v5441_v18 = vand.u32 4294901760, %v5440_v52  ;;  %v15930_v52 = vand.u32 4294901760, %v14671_v8 }
 0x810   : > { %10895 = vmatpush3.bf16.msra.mxu1 %v16671_v54  ;;  %v5458_v44 = vsub.f32 %v14658_v51, %v16726_v7  ;;  %v5453_v54 = vand.u32 4294901760, %v5452_v33  ;;  %v16733_v33 = vand.u32 4294901760, %v14669_v9 }
 0x811   : > { %v8167_v0 = vpop.f32.mrb[10].mxu1  ;;  %10896 = vmatprep.subr.bf16.mxu1 %v16506_v22  ;;  %v5447_v5 = vand.u32 4294901760, %v5446_v2  ;;  %v16734_v2 = vand.u32 4294901760, %v14736_v36  ;;  %v5488_v59 = vsub.f32 %v14671_v8, %v15930_v52 }
 0x812   : > { %v8168_v19 = vpop.f32.mrb[11].mxu1  ;;  %10592 = vmatpush1.bf16.msra.mxu0 %v14732_v32  ;;  %v14795_v32 = vsub.f32 %v14692_v34, %v5377_v29  ;;  %v5482_v34 = vsub.f32 %v14669_v9, %v16733_v33  ;;  %v16736_v33 = vand.u32 4294901760, %v14674_v42 }
 0x813   : > { %v8169_v7 = vadd.f32 %v8168_v19, %v8167_v0  ;;  %10594 = vmatprep.subr.bf16.mxu0 %v14756_v48  ;;  %v5459_v0 = vand.u32 4294901760, %v5458_v44  ;;  %v5465_v44 = vand.u32 4294901760, %v5464_v41 }
 0x814   : > { %10898 = vmatpush3.bf16.msra.mxu1 %v16674_v39  ;;  %v16735_v39 = vand.u32 4294901760, %v14738_v17  ;;  %v5500_v31 = vsub.f32 %v14674_v42, %v16736_v33  ;;  %v5483_v12 = vand.u32 4294901760, %v5482_v34 }
 0x815   : > { %v14801_v19 = vadd.f32 %v8169_v7, %v14602_v21  ;;  %10899 = vmatprep.subr.bf16.mxu1 %v16506_v22  ;;  %v10601_v21 = vpack.c.bf16 %v5453_v54, %v5441_v18  ;;  %v5477_v7 = vand.u32 4294901760, %v5476_v45  ;;  %v14832_v45 = vsub.f32 %v14707_v35, %v5379_v15 }
 0x816   : > { %10596 = vmatpush1.bf16.msra.mxu0 %v14770_v4  ;;  %v14815_v29 = vpack.c.bf16 %v16735_v39, %v16734_v2  ;;  %v16737_v2 = vand.u32 4294901760, %v14694_v30  ;;  %v16738_v54 = vand.u32 4294901760, %v14679_v11  ;;  %v16739_v39 = vand.u32 4294901760, %v14684_v58 }
 0x817   : > { %10598 = vmatprep.subr.bf16.mxu0 %v14790_v40  ;;  %v10603_v52 = vpack.c.bf16 %v5459_v0, %v5447_v5  ;;  %v5471_v4 = vand.u32 4294901760, %v5470_v28  ;;  %v15933_v35 = vand.u32 4294901760, %v14697_v14  ;;  %v15934_v15 = vand.u32 4294901760, %v14699_v60 }
 0x818   : > { %v14829_v18 = vsub.f32 %v14694_v30, %v16737_v2  ;;  %v5494_v41 = vsub.f32 %v14679_v11, %v16738_v54  ;;  %v5506_v33 = vsub.f32 %v14684_v58, %v16739_v39  ;;  %10901 = vmatpush3.bf16.msra.mxu1 %v16677_v1  ;;  %v10605_v30 = vpack.c.bf16 %v5477_v7, %v5465_v44 }
 0x819   : > { %10902 = vmatprep.subr.bf16.mxu1 %v16506_v22  ;;  %v5489_v54 = vand.u32 4294901760, %v5488_v59  ;;  %v5501_v39 = vand.u32 4294901760, %v5500_v31  ;;  %v16740_v1 = vand.u32 4294901760, %v14686_v43  ;;  %v16741_v0 = vand.u32 4294901760, %v14688_v53 }
 0x81a   : > { %10600 = vmatpush1.bf16.msra.mxu0 %v14815_v29  ;;  %v5495_v34 = vand.u32 4294901760, %v5494_v41  ;;  %v5507_v40 = vand.u32 4294901760, %v5506_v33  ;;  %v15937_v44 = vand.u32 4294901760, %v14714_v37  ;;  %v15935_v7 = vand.u32 4294901760, %v14720_v61 }
 0x81b   : > { %10602 = vmatprep.subr.bf16.mxu0 %v10601_v21  ;;  %v5512_v5 = vsub.f32 %v14686_v43, %v16740_v1  ;;  %v5524_v28 = vsub.f32 %v14688_v53, %v16741_v0  ;;  %v10607_v21 = vpack.c.bf16 %v5483_v12, %v5471_v4  ;;  %v16742_v31 = vand.u32 4294901760, %v14690_v16 }
 0x81c   : > { %10904 = vmatpush3.bf16.msra.mxu1 %v14227_v20  ;;  %v15936_v1 = vand.u32 4294901760, %v14722_v10  ;;  %v5530_v41 = vsub.f32 %v14697_v14, %v15933_v35  ;;  %v5536_v20 = vsub.f32 %v14699_v60, %v15934_v15  ;;  %v16744_v4 = vand.u32 4294901760, %v14709_v62 }
 0x81d   : > { %5431 = vmatmul.mubr.f32.vlgmr.msra.gmra.mrb[2].mxu0 %v16559_v50  ;;  %v5518_v59 = vsub.f32 %v14690_v16, %v16742_v31  ;;  %10905 = vmatprep.subr.bf16.mxu1 %v16506_v22  ;;  %v16743_v50 = vand.u32 4294901760, %v14703_v3  ;;  %v5513_v0 = vand.u32 4294901760, %v5512_v5  ;;  %v5525_v31 = vand.u32 4294901760, %v5524_v28 }
 0x81e   : > { %10604 = vmatpush1.bf16.msra.mxu0 %v10603_v52  ;;  %5661 = vmatprep.mubr.f32.mxu0 %v16510_v13  ;;  %v14876_v33 = vsub.f32 %v14709_v62, %v16744_v4  ;;  %v10609_v52 = vpack.c.bf16 %v5501_v39, %v5489_v54  ;;  %v16745_v35 = vand.u32 4294901760, %v14726_v63  ;;  %v10611_v2 = vpack.c.bf16 %v5507_v40, %v5495_v34 }
 0x81f   : > { %v5548_v12 = vsub.f32 %v14703_v3, %v16743_v50  ;;  %10606 = vmatprep.subr.bf16.mxu0 %v10605_v30  ;;  %9301 = vmatmul.mubr.f32.vlgmr.msra.gmra.mrb[14].mxu1 %v16615_v25  ;;  %v5542_v50 = vsub.f32 %v14714_v37, %v15937_v44  ;;  %v5554_v62 = vsub.f32 %v14720_v61, %v15935_v7  ;;  %v16746_v54 = vand.u32 4294901760, %v14724_v27 }
 0x820   : > { %v14882_v15 = vsub.f32 %v14726_v63, %v16745_v35  ;;  %9335 = vmatprep.mubr.msk.f32.mxu1 %vm11512_vm1, %v16510_v13  ;;  %v5560_v30 = vsub.f32 %v14722_v10, %v15936_v1  ;;  %v5519_v39 = vand.u32 4294901760, %v5518_v59  ;;  %v5531_v5 = vand.u32 4294901760, %v5530_v41 }
 0x821   : > { %v5572_v63 = vsub.f32 %v14724_v27, %v16746_v54  ;;  %v5537_v28 = vand.u32 4294901760, %v5536_v20  ;;  %v5549_v34 = vand.u32 4294901760, %v5548_v12  ;;  %v16747_v4 = vand.u32 4294901760, %v14728_v23 }
 0x822   : > { %10608 = vmatpush1.bf16.msra.mxu0 %v10607_v21  ;;  %v10613_v1 = vpack.c.bf16 %v5525_v31, %v5513_v0  ;;  %v15938_v44 = vand.u32 4294901760, %v14795_v32  ;;  %v16748_v40 = vand.u32 4294901760, %v14736_v36  ;;  %v16749_v21 = vand.u32 4294901760, %v14738_v17 }
 0x823   : > { %v14903_v7 = vsub.f32 %v14728_v23, %v16747_v4  ;;  %10610 = vmatprep.subr.bf16.mxu0 %v10609_v52  ;;  %v5543_v41 = vand.u32 4294901760, %v5542_v50  ;;  %v5555_v20 = vand.u32 4294901760, %v5554_v62  ;;  %v5561_v23 = vand.u32 4294901760, %v5560_v30 }
 0x824   : > { %v14910_v35 = vsub.f32 %v14736_v36, %v16748_v40  ;;  %v14915_v59 = vsub.f32 %v14738_v17, %v16749_v21  ;;  %v5573_v12 = vand.u32 4294901760, %v5572_v63  ;;  %v16750_v52 = vand.u32 4294901760, %v14752_v57 }
 0x825   : > { %v16751_v31 = vand.u32 4294901760, %v14760_v49  ;;  %v10615_v36 = vpack.c.bf16 %v5531_v5, %v5519_v39  ;;  %v10617_v40 = vpack.c.bf16 %v5549_v34, %v5537_v28  ;;  %v5589_v54 = vand.u32 4294901760, %v14832_v45 }
 0x826   : > { %v5566_v0 = vsub.f32 %v14752_v57, %v16750_v52  ;;  %10612 = vmatpush1.bf16.msra.mxu0 %v10611_v2  ;;  %v15940_v17 = vand.u32 4294901760, %v14876_v33  ;;  %v5584_v50 = vsub.f32 %v14795_v32, %v15938_v44  ;;  %v16752_v62 = vand.u32 4294901760, %v14829_v18 }
 0x827   : > { %v5578_v4 = vsub.f32 %v14760_v49, %v16751_v31  ;;  %10614 = vmatprep.subr.bf16.mxu0 %v10613_v1  ;;  %v15939_v63 = vand.u32 4294901760, %v14882_v15  ;;  %v15941_v21 = vand.u32 4294901760, %v14903_v7  ;;  %v10619_v2 = vpack.c.bf16 %v5555_v20, %v5543_v41 }
 0x828   : > { %v5596_v30 = vsub.f32 %v14829_v18, %v16752_v62  ;;  %v10621_v39 = vpack.c.bf16 %v5573_v12, %v5561_v23  ;;  %v5567_v5 = vand.u32 4294901760, %v5566_v0  ;;  %v5590_v1 = vsub.f32 %v14832_v45, %v5589_v54 }
 0x829   : > { %v5579_v28 = vand.u32 4294901760, %v5578_v4  ;;  %v5602_v34 = vsub.f32 %v14876_v33, %v15940_v17  ;;  %v15942_v52 = vand.u32 4294901760, %v14910_v35  ;;  %v5625_v31 = vand.u32 4294901760, %v14915_v59 }
 0x82a   : > { %10616 = vmatpush1.bf16.msra.mxu0 %v10615_v36  ;;  %v5585_v62 = vand.u32 4294901760, %v5584_v50  ;;  %v5597_v44 = vand.u32 4294901760, %v5596_v30  ;;  %v5608_v41 = vsub.f32 %v14882_v15, %v15939_v63  ;;  %v5620_v20 = vsub.f32 %v14903_v7, %v15941_v21 }
 0x82b   : > { %10618 = vmatprep.subr.bf16.mxu0 %v10617_v40  ;;  %v10623_v23 = vpack.c.bf16 %v5579_v28, %v5567_v5  ;;  %v5591_v12 = vand.u32 4294901760, %v5590_v1  ;;  %v5603_v0 = vand.u32 4294901760, %v5602_v34  ;;  %v5614_v4 = vsub.f32 %v14910_v35, %v15942_v52 }
 0x82c   : > { %v5626_v36 = vsub.f32 %v14915_v59, %v5625_v31  ;;  %v10625_v40 = vpack.c.bf16 %v5597_v44, %v5585_v62  ;;  %v5609_v50 = vand.u32 4294901760, %v5608_v41  ;;  %v5621_v30 = vand.u32 4294901760, %v5620_v20 }
 0x82d   : > { %v10627_v21 = vpack.c.bf16 %v5603_v0, %v5591_v12  ;;  %v5615_v5 = vand.u32 4294901760, %v5614_v4  ;;  %v10633_v44 = vpack.c.bf16 %v14652_v26, %v14644_v38  ;;  %v10637_v62 = vpack.c.bf16 %v14665_v24, %v14661_v47 }
 0x82e   : > { %10620 = vmatpush1.bf16.msra.mxu0 %v10619_v2  ;;  %v5627_v2 = vand.u32 4294901760, %v5626_v36  ;;  %v10629_v1 = vpack.c.bf16 %v5621_v30, %v5609_v50  ;;  %v10649_v41 = vpack.c.bf16 %v14703_v3, %v14699_v60  ;;  %v10651_v20 = vpack.c.bf16 %v14720_v61, %v14714_v37  ;;  %v16753_v50 = vld [vmem:[#allocation185_spill] sm:$0xff]  ;;  %v16754_v30 = vld [vmem:[#allocation186_spill] sm:$0xff] }
 0x82f   : > { %10622 = vmatprep.subr.bf16.mxu0 %v10621_v39  ;;  %v10635_v39 = vpack.c.bf16 %v14658_v51, %v14655_v56  ;;  %v10655_v12 = vpack.c.bf16 %v14760_v49, %v14752_v57  ;;  %v10657_v0 = vpack.c.bf16 %v14829_v18, %v14795_v32  ;;  %v10659_v4 = vpack.c.bf16 %v14876_v33, %v14832_v45  ;;  %v6846_v45 = vld [vmem:[#allocation13] sm:$0xff] }
 0x830   : > { %v10631_v52 = vpack.c.bf16 %v5627_v2, %v5615_v5  ;;  %v10661_v36 = vpack.c.bf16 %v14903_v7, %v14882_v15  ;;  %v16755_v5 = vld [vmem:[#allocation187_spill] sm:$0xff]  ;;  %v16756_v2 = vld [vmem:[#allocation189_spill] sm:$0xff] }
 0x831   : > { %v8202_v63 = vpop.f32.mrb[12].mxu1 }
 0x832   : > { %v8203_v17 = vpop.f32.mrb[13].mxu1  ;;  %10624 = vmatpush1.bf16.msra.mxu0 %v10623_v23  ;;  %v10653_v23 = vpack.c.bf16 %v14724_v27, %v14722_v10 }
 0x833   : > { %v8204_v28 = vadd.f32 %v8203_v17, %v8202_v63  ;;  %10626 = vmatprep.subr.bf16.mxu0 %v10625_v40  ;;  %v10641_v17 = vpack.c.bf16 %v14674_v42, %v14671_v8  ;;  %v10643_v63 = vpack.c.bf16 %v14684_v58, %v14679_v11  ;;  %v10663_v40 = vpack.c.bf16 %v14915_v59, %v14910_v35  ;;  %v6849_v59 = vld [vmem:[#allocation13 + $0x18] sm:$0xff] }
 0x835   : > { %v14954_v34 = vadd.f32 %v8204_v28, %v14801_v19  ;;  %v10639_v19 = vpack.c.bf16 %v14669_v9, %v14667_v46  ;;  %v16757_v28 = vld [vmem:[#allocation191_spill] sm:$0xff] }
 0x836   : > { %10628 = vmatpush1.bf16.msra.mxu0 %v10627_v21  ;;  %v10645_v21 = vpack.c.bf16 %v14688_v53, %v14686_v43 }
 0x837   : > { %10630 = vmatprep.subr.bf16.mxu0 %v10629_v1  ;;  %v16758_v1 = vld [vmem:[#allocation192_spill] sm:$0xff] }
 0x83a   : > { %10632 = vmatpush1.bf16.msra.mxu0 %v10631_v52  ;;  %v10647_v52 = vpack.c.bf16 %v14697_v14, %v14690_v16 }
 0x83b   : > { %10634 = vmatprep.subr.bf16.mxu0 %v10633_v44  ;;  %v16759_v44 = vld [vmem:[#allocation194_spill] sm:$0xff] }
 0x83d   : > { %5663 = vmatmul.mubr.f32.vlgmr.msra.gmra.mrb[2].mxu0 %v16615_v25 }
 0x83e   : > { %10636 = vmatpush1.bf16.msra.mxu0 %v10635_v39  ;;  %5797 = vmatprep.mubr.f32.mxu0 %v16510_v13  ;;  %v16760_v39 = vld [vmem:[#allocation195_spill] sm:$0xff] }
 0x83f   : > { %10638 = vmatprep.subr.bf16.mxu0 %v10637_v62  ;;  %v16761_v62 = vld [vmem:[#allocation197_spill] sm:$0xff] }
 0x842   : > { %10640 = vmatpush1.bf16.msra.mxu0 %v10639_v19  ;;  %v16763_v19 = vld [vmem:[#allocation201_spill] sm:$0xff] }
 0x843   : > { %10642 = vmatprep.subr.bf16.mxu0 %v10641_v17  ;;  %v16764_v17 = vld [vmem:[#allocation202_spill] sm:$0xff] }
 0x846   : > { %10644 = vmatpush1.bf16.msra.mxu0 %v10643_v63  ;;  %v16765_v63 = vld [vmem:[#allocation203_spill] sm:$0xff] }
 0x847   : > { %10646 = vmatprep.subr.bf16.mxu0 %v10645_v21  ;;  %v16766_v21 = vand.u32 4294901760, %v14644_v38  ;;  %v16773_v38 = vand.u32 4294901760, %v14667_v46  ;;  %v16779_v46 = vand.u32 4294901760, %v14686_v43  ;;  %v16786_v43 = vand.u32 4294901760, %v14720_v61 }
 0x848   : > { %v16793_v61 = vand.u32 4294901760, %v14876_v33 }
 0x84a   : > { %10648 = vmatpush1.bf16.msra.mxu0 %v10647_v52  ;;  %v16767_v52 = vand.u32 4294901760, %v14652_v26  ;;  %v16774_v26 = vand.u32 4294901760, %v14669_v9  ;;  %v16780_v9 = vand.u32 4294901760, %v14688_v53  ;;  %v16787_v53 = vand.u32 4294901760, %v14722_v10 }
 0x84b   : > { %10650 = vmatprep.subr.bf16.mxu0 %v10649_v41  ;;  %v10723_v10 = vpack.c.bf16 %v16793_v61, %v5589_v54  ;;  %v6848_v54 = vld [vmem:[#allocation13 + $0x10] sm:$0xff] }
 0x84c   : > { %v10697_v41 = vpack.c.bf16 %v16767_v52, %v16766_v21  ;;  %v10703_v21 = vpack.c.bf16 %v16774_v26, %v16773_v38 }
 0x84e   : > { %10652 = vmatpush1.bf16.msra.mxu0 %v10651_v20  ;;  %v16768_v20 = vand.u32 4294901760, %v14655_v56  ;;  %v16775_v56 = vand.u32 4294901760, %v14671_v8  ;;  %v16782_v8 = vand.u32 4294901760, %v14697_v14  ;;  %v16789_v14 = vand.u32 4294901760, %v14752_v57 }
 0x84f   : > { %10654 = vmatprep.subr.bf16.mxu0 %v10653_v23  ;;  %v16769_v23 = vand.u32 4294901760, %v14658_v51  ;;  %v16776_v51 = vand.u32 4294901760, %v14674_v42  ;;  %v16783_v42 = vand.u32 4294901760, %v14699_v60  ;;  %v16790_v60 = vand.u32 4294901760, %v14760_v49 }
 0x850   : > { %v16795_v57 = vand.u32 4294901760, %v14903_v7  ;;  %v16796_v49 = vand.u32 4294901760, %v14910_v35  ;;  %v6870_v7 = vand.u32 4294901760, %v6846_v45 }
 0x851   : > { %v10705_v52 = vpack.c.bf16 %v16776_v51, %v16775_v56  ;;  %v6857_v56 = vld [vmem:[#allocation13 + $0x58] sm:$0xff] }
 0x852   : > { %10656 = vmatpush1.bf16.msra.mxu0 %v10655_v12  ;;  %v10699_v12 = vpack.c.bf16 %v16769_v23, %v16768_v20  ;;  %v10709_v20 = vpack.c.bf16 %v16780_v9, %v16779_v46  ;;  %v16781_v23 = vand.u32 4294901760, %v14690_v16  ;;  %v16788_v16 = vand.u32 4294901760, %v14724_v27 }
 0x853   : > { %10658 = vmatprep.subr.bf16.mxu0 %v10657_v0  ;;  %v16770_v0 = vand.u32 4294901760, %v14661_v47  ;;  %v16778_v47 = vand.u32 4294901760, %v14684_v58  ;;  %v16785_v58 = vand.u32 4294901760, %v14714_v37  ;;  %v16792_v37 = vand.u32 4294901760, %v14829_v18 }
 0x854   : > { %v16794_v27 = vand.u32 4294901760, %v14882_v15  ;;  %v6847_v15 = vld [vmem:[#allocation13 + $0x8] sm:$0xff] }
 0x855   : > { %v6873_v33 = vand.u32 4294901760, %v6847_v15 }
 0x856   : > { %10660 = vmatpush1.bf16.msra.mxu0 %v10659_v4  ;;  %v16771_v4 = vand.u32 4294901760, %v14665_v24  ;;  %v16777_v24 = vand.u32 4294901760, %v14679_v11  ;;  %v16784_v11 = vand.u32 4294901760, %v14703_v3  ;;  %v16791_v3 = vand.u32 4294901760, %v14795_v32 }
 0x857   : > { %10662 = vmatprep.subr.bf16.mxu0 %v10661_v36  ;;  %v10725_v26 = vpack.c.bf16 %v16795_v57, %v16794_v27  ;;  %v10727_v32 = vpack.c.bf16 %v5625_v31, %v16796_v49  ;;  %v15095_v35 = vpack.c.bf16 %v6873_v33, %v6870_v7  ;;  %v6879_v31 = vand.u32 4294901760, %v6849_v59 }
 0x858   : > { %v10701_v36 = vpack.c.bf16 %v16771_v4, %v16770_v0  ;;  %v10713_v0 = vpack.c.bf16 %v16784_v11, %v16783_v42  ;;  %v10715_v4 = vpack.c.bf16 %v16786_v43, %v16785_v58  ;;  %v10721_v38 = vpack.c.bf16 %v16792_v37, %v16791_v3  ;;  %v6861_v58 = vld [vmem:[#allocation13 + $0x78] sm:$0xff] }
 0x859   : > { %10907 = vmatpush3.bf16.msra.mxu1 %v15095_v35 }
 0x85a   : > { %10664 = vmatpush1.bf16.msra.mxu0 %v10663_v40  ;;  %v16772_v40 = vld [vmem:[#allocation38_spill] sm:$0xff]  ;;  %10908 = vmatprep.subr.bf16.mxu1 %v16506_v22 }
 0x85b   : > { %10666 = vmatprep.subr.bf16.mxu0 %v14611_v6 }
 0x85d   : > { %5800 = vmatmul.mubr.f32.vlgmr.msra.gmra.mrb[2].mxu0 %v16658_v55  ;;  %v16762_v55 = vld [vmem:[#allocation198_spill] sm:$0xff] }
 0x85e   : > { %10668 = vmatpush1.bf16.msra.mxu0 %v16753_v50  ;;  %5902 = vmatprep.mubr.f32.mxu0 %v16510_v13 }
 0x85f   : > { %10670 = vmatprep.subr.bf16.mxu0 %v16754_v30 }
 0x862   : > { %10672 = vmatpush1.bf16.msra.mxu0 %v16755_v5 }
 0x863   : > { %10674 = vmatprep.subr.bf16.mxu0 %v16756_v2 }
 0x866   : > { %10676 = vmatpush1.bf16.msra.mxu0 %v16757_v28 }
 0x867   : > { %10678 = vmatprep.subr.bf16.mxu0 %v16758_v1 }
 0x86a   : > { %10680 = vmatpush1.bf16.msra.mxu0 %v16759_v44 }
 0x86b   : > { %10682 = vmatprep.subr.bf16.mxu0 %v16760_v39 }
 0x86e   : > { %10684 = vmatpush1.bf16.msra.mxu0 %v16761_v62 }
 0x86f   : > { %10686 = vmatprep.subr.bf16.mxu0 %v16762_v55 }
 0x872   : > { %10688 = vmatpush1.bf16.msra.mxu0 %v16763_v19 }
 0x873   : > { %10690 = vmatprep.subr.bf16.mxu0 %v14756_v48 }
 0x876   : > { %10692 = vmatpush1.bf16.msra.mxu0 %v16764_v17 }
 0x877   : > { %10694 = vmatprep.subr.bf16.mxu0 %v16765_v63 }
 0x87a   : > { %10696 = vmatpush1.bf16.msra.mxu0 %v14815_v29 }
 0x87b   : > { %10698 = vmatprep.subr.bf16.mxu0 %v10697_v41  ;;  %v10707_v41 = vpack.c.bf16 %v16778_v47, %v16777_v24 }
 0x87d   : > { %5906 = vmatmul.mubr.f32.vlgmr.msra.gmra.mrb[2].mxu0 %v16772_v40  ;;  %v10719_v40 = vpack.c.bf16 %v16790_v60, %v16789_v14 }
 0x87e   : > { %10700 = vmatpush1.bf16.msra.mxu0 %v10699_v12  ;;  %6072 = vmatprep.mubr.f32.mxu0 %v16510_v13  ;;  %v10711_v12 = vpack.c.bf16 %v16782_v8, %v16781_v23  ;;  %v6903_v23 = vand.u32 4294901760, %v6857_v56  ;;  %v6859_v8 = vld [vmem:[#allocation13 + $0x68] sm:$0xff] }
 0x87f   : > { %10702 = vmatprep.subr.bf16.mxu0 %v10701_v36  ;;  %v10717_v36 = vpack.c.bf16 %v16788_v16, %v16787_v53 }
 0x882   : > { %10704 = vmatpush1.bf16.msra.mxu0 %v10703_v21  ;;  %v6856_v21 = vld [vmem:[#allocation13 + $0x50] sm:$0xff] }
 0x883   : > { %10706 = vmatprep.subr.bf16.mxu0 %v10705_v52  ;;  %v6900_v47 = vand.u32 4294901760, %v6856_v21 }
 0x885   : > { %v15125_v43 = vsub.f32 %v6856_v21, %v6900_v47 }
 0x886   : > { %10708 = vmatpush1.bf16.msra.mxu0 %v10707_v41  ;;  %v6858_v41 = vld [vmem:[#allocation13 + $0x60] sm:$0xff] }
 0x887   : > { %10710 = vmatprep.subr.bf16.mxu0 %v10709_v20  ;;  %v6906_v53 = vand.u32 4294901760, %v6858_v41 }
 0x889   : > { %v15133_v60 = vsub.f32 %v6858_v41, %v6906_v53 }
 0x88a   : > { %10712 = vmatpush1.bf16.msra.mxu0 %v10711_v12  ;;  %v6860_v12 = vld [vmem:[#allocation13 + $0x70] sm:$0xff] }
 0x88b   : > { %10714 = vmatprep.subr.bf16.mxu0 %v10713_v0  ;;  %v6912_v14 = vand.u32 4294901760, %v6860_v12 }
 0x88d   : > { %v15137_v37 = vsub.f32 %v6860_v12, %v6912_v14 }
 0x88e   : > { %10716 = vmatpush1.bf16.msra.mxu0 %v10715_v4  ;;  %v15127_v4 = vsub.f32 %v6857_v56, %v6903_v23 }
 0x88f   : > { %10718 = vmatprep.subr.bf16.mxu0 %v10717_v36  ;;  %v6909_v36 = vand.u32 4294901760, %v6859_v8 }
 0x891   : > { %v15135_v3 = vsub.f32 %v6859_v8, %v6909_v36  ;;  %v15150_v27 = vpack.c.bf16 %v6909_v36, %v6906_v53 }
 0x892   : > { %10720 = vmatpush1.bf16.msra.mxu0 %v10719_v40  ;;  %v6915_v40 = vand.u32 4294901760, %v6861_v58 }
 0x893   : > { %10722 = vmatprep.subr.bf16.mxu0 %v10721_v38 }
 0x894   : > { %v15139_v38 = vsub.f32 %v6861_v58, %v6915_v40  ;;  %v15154_v57 = vpack.c.bf16 %v6915_v40, %v6912_v14  ;;  %v15948_v14 = vand.u32 4294901760, %v15125_v43  ;;  %v15947_v40 = vand.u32 4294901760, %v15127_v4 }
 0x896   : > { %10724 = vmatpush1.bf16.msra.mxu0 %v10723_v10  ;;  %v15146_v10 = vpack.c.bf16 %v6903_v23, %v6900_v47 }
 0x897   : > { %10726 = vmatprep.subr.bf16.mxu0 %v10725_v26 }
 0x89a   : > { %10728 = vmatpush1.bf16.msra.mxu0 %v10727_v32 }
 0x89b   : > { %10730 = vmatprep.subr.bf16.mxu0 %v14611_v6 }
 0x89d   : > { %6074 = vmatmul.mubr.f32.vlgmr.msra.gmra.mrb[2].mxu0 %v16615_v25 }
 0x89e   : > { %10732 = vmatpush1.bf16.msra.mxu0 %v16753_v50  ;;  %6176 = vmatprep.mubr.f32.mxu0 %v16510_v13  ;;  %v15098_v50 = vsub.f32 %v6846_v45, %v6870_v7 }
 0x89f   : > { %10734 = vmatprep.subr.bf16.mxu0 %v16754_v30  ;;  %v6851_v30 = vld [vmem:[#allocation13 + $0x28] sm:$0xff] }
 0x8a0   : > { %v15958_v26 = vand.u32 4294901760, %v15098_v50 }
 0x8a2   : > { %10736 = vmatpush1.bf16.msra.mxu0 %v16755_v5  ;;  %v6852_v5 = vld [vmem:[#allocation13 + $0x30] sm:$0xff]  ;;  %v6964_v32 = vsub.f32 %v15098_v50, %v15958_v26  ;;  %v16799_v26 = vld [vmem:[#allocation43_spill] sm:$0xff] }
 0x8a3   : > { %10738 = vmatprep.subr.bf16.mxu0 %v16756_v2 }
 0x8a4   : > { %v6965_v45 = vand.u32 4294901760, %v6964_v32 }
 0x8a6   : > { %10740 = vmatpush1.bf16.msra.mxu0 %v16757_v28 }
 0x8a7   : > { %10742 = vmatprep.subr.bf16.mxu0 %v16758_v1  ;;  %v15107_v1 = vsub.f32 %v6849_v59, %v6879_v31 }
 0x8aa   : > { %10744 = vmatpush1.bf16.msra.mxu0 %v16759_v44 }
 0x8ab   : > { %10746 = vmatprep.subr.bf16.mxu0 %v16760_v39  ;;  %v6853_v39 = vld [vmem:[#allocation13 + $0x38] sm:$0xff] }
 0x8ae   : > { %10748 = vmatpush1.bf16.msra.mxu0 %v16761_v62  ;;  %v6854_v62 = vld [vmem:[#allocation13 + $0x40] sm:$0xff] }
 0x8af   : > { %10750 = vmatprep.subr.bf16.mxu0 %v16762_v55  ;;  %v6855_v55 = vld [vmem:[#allocation13 + $0x48] sm:$0xff]  ;;  %v6894_v52 = vand.u32 4294901760, %v6854_v62 }
 0x8b0   : > { %v6897_v24 = vand.u32 4294901760, %v6855_v55 }
 0x8b1   : > { %v15121_v11 = vsub.f32 %v6854_v62, %v6894_v52 }
 0x8b2   : > { %10752 = vmatpush1.bf16.msra.mxu0 %v16763_v19  ;;  %v6885_v19 = vand.u32 4294901760, %v6851_v30  ;;  %v15123_v0 = vsub.f32 %v6855_v55, %v6897_v24  ;;  %v15142_v61 = vpack.c.bf16 %v6897_v24, %v6894_v52 }
 0x8b3   : > { %10754 = vmatprep.subr.bf16.mxu0 %v14756_v48  ;;  %v6876_v48 = vand.u32 4294901760, %v6848_v54  ;;  %v15950_v41 = vand.u32 4294901760, %v15121_v11 }
 0x8b4   : > { %v15115_v9 = vsub.f32 %v6851_v30, %v6885_v19  ;;  %v15949_v23 = vand.u32 4294901760, %v15123_v0 }
 0x8b5   : > { %v15103_v2 = vpack.c.bf16 %v6879_v31, %v6876_v48  ;;  %v15105_v28 = vsub.f32 %v6848_v54, %v6876_v48  ;;  %v7020_v12 = vsub.f32 %v15121_v11, %v15950_v41 }
 0x8b6   : > { %10756 = vmatpush1.bf16.msra.mxu0 %v16764_v17  ;;  %v6888_v17 = vand.u32 4294901760, %v6852_v5  ;;  %v7027_v58 = vsub.f32 %v15123_v0, %v15949_v23 }
 0x8b7   : > { %10758 = vmatprep.subr.bf16.mxu0 %v16765_v63  ;;  %v6891_v63 = vand.u32 4294901760, %v6853_v39  ;;  %10910 = vmatpush3.bf16.msra.mxu1 %v15103_v2  ;;  %v15956_v7 = vand.u32 4294901760, %v15105_v28  ;;  %v7021_v53 = vand.u32 4294901760, %v7020_v12 }
 0x8b8   : > { %10911 = vmatprep.subr.bf16.mxu1 %v16506_v22  ;;  %v15117_v20 = vsub.f32 %v6852_v5, %v6888_v17  ;;  %v15953_v5 = vand.u32 4294901760, %v15115_v9  ;;  %v7028_v36 = vand.u32 4294901760, %v7027_v58 }
 0x8b9   : > { %v15119_v42 = vsub.f32 %v6853_v39, %v6891_v63  ;;  %v15130_v16 = vpack.c.bf16 %v6891_v63, %v6888_v17  ;;  %v6978_v59 = vsub.f32 %v15105_v28, %v15956_v7 }
 0x8ba   : > { %10760 = vmatpush1.bf16.msra.mxu0 %v14815_v29  ;;  %v15100_v29 = vsub.f32 %v6847_v15, %v6873_v33  ;;  %v15955_v33 = vand.u32 4294901760, %v15107_v1  ;;  %v6999_v62 = vsub.f32 %v15115_v9, %v15953_v5  ;;  %v15952_v17 = vand.u32 4294901760, %v15117_v20 }
 0x8bb   : > { %v6979_v31 = vand.u32 4294901760, %v6978_v59  ;;  %v15951_v63 = vand.u32 4294901760, %v15119_v42  ;;  %v15209_v32 = vpack.c.bf16 %v7028_v36, %v7021_v53 }
 0x8bc   : > { %v15957_v49 = vand.u32 4294901760, %v15100_v29  ;;  %v6985_v48 = vsub.f32 %v15107_v1, %v15955_v33  ;;  %v7006_v56 = vsub.f32 %v15117_v20, %v15952_v17 }
 0x8bd   : > { %6178 = vmatmul.mubr.f32.vlgmr.msra.gmra.mrb[2].mxu0 %v16615_v25  ;;  %v6850_v25 = vld [vmem:[#allocation13 + $0x20] sm:$0xff]  ;;  %v7013_v52 = vsub.f32 %v15119_v42, %v15951_v63 }
 0x8be   : > { %v6882_v44 = vand.u32 4294901760, %v6850_v25  ;;  %v7007_v24 = vand.u32 4294901760, %v7006_v56  ;;  %v15944_v56 = vand.u32 4294901760, %v15137_v37 }
 0x8bf   : > { %v7014_v47 = vand.u32 4294901760, %v7013_v52  ;;  %v15943_v52 = vand.u32 4294901760, %v15139_v38 }
 0x8c0   : > { %v15110_v51 = vsub.f32 %v6850_v25, %v6882_v44  ;;  %v15113_v46 = vpack.c.bf16 %v6885_v19, %v6882_v44  ;;  %v6986_v25 = vand.u32 4294901760, %v6985_v48  ;;  %v7000_v19 = vand.u32 4294901760, %v6999_v62 }
 0x8c1   : > { %v15199_v8 = vpack.c.bf16 %v7014_v47, %v7007_v24  ;;  %v15946_v48 = vand.u32 4294901760, %v15133_v60  ;;  %v7062_v47 = vsub.f32 %v15137_v37, %v15944_v56  ;;  %v7069_v12 = vsub.f32 %v15139_v38, %v15943_v52  ;;  %v16798_v56 = vld [vmem:[#allocation42_spill] sm:$0xff] }
 0x8c2   : > { %10913 = vmatpush3.bf16.msra.mxu1 %v15113_v46  ;;  %v15954_v30 = vand.u32 4294901760, %v15110_v51  ;;  %v15179_v44 = vpack.c.bf16 %v6986_v25, %v6979_v31  ;;  %v15945_v31 = vand.u32 4294901760, %v15135_v3 }
 0x8c3   : > { %10914 = vmatprep.subr.bf16.mxu1 %v16506_v22  ;;  %v7063_v58 = vand.u32 4294901760, %v7062_v47  ;;  %v7070_v53 = vand.u32 4294901760, %v7069_v12  ;;  %v5312_v47 = vld [vmem:[%s15461_s9] sm:$0x7] }
 0x8c4   : > { %v6992_v39 = vsub.f32 %v15110_v51, %v15954_v30  ;;  %v7055_v62 = vsub.f32 %v15135_v3, %v15945_v31  ;;  %v11264_v12 = vld [vmem:[%s15459_s7] sm:$0x7] }
 0x8c5   : > { %v15237_v36 = vpack.c.bf16 %v7070_v53, %v7063_v58  ;;  %v16797_v58 = vld [vmem:[#allocation40_spill] sm:$0xff]  ;;  %v3110_v31 = vrot.slane %v11264_v12, %v16798_v56 }
 0x8c6   : > { %10916 = vmatpush3.bf16.msra.mxu1 %v15130_v16  ;;  %v6993_v55 = vand.u32 4294901760, %v6992_v39  ;;  %v7048_v39 = vsub.f32 %v15133_v60, %v15946_v48  ;;  %v3106_v53 = vrot.slane %v11264_v12, %v16797_v58  ;;  %v5317_v52 = vrot.slane %v5312_v47, %v16797_v58 }
 0x8c7   : > { %10917 = vmatprep.subr.bf16.mxu1 %v16506_v22  ;;  %v5321_v48 = vrot.slane %v5312_v47, %v16798_v56  ;;  %v5325_v58 = vrot.slane %v5312_v47, %v16799_v26 }
 0x8c8   : > { %v15189_v21 = vpack.c.bf16 %v7000_v19, %v6993_v55  ;;  %v7049_v55 = vand.u32 4294901760, %v7048_v39  ;;  %v7056_v19 = vand.u32 4294901760, %v7055_v62  ;;  %v10966_v39 = vpack.c.bf16 %v15123_v0, %v15121_v11 }
 0x8c9   : > { %v10969_v62 = vpack.c.bf16 %v15127_v4, %v15125_v43  ;;  %v11091_v23 = vadd.f32 %v5321_v48, %v3110_v31 }
 0x8ca   : > { %10919 = vmatpush3.bf16.msra.mxu1 %v15142_v61  ;;  %v15229_v24 = vpack.c.bf16 %v7056_v19, %v7049_v55  ;;  %v10972_v55 = vpack.c.bf16 %v15135_v3, %v15133_v60 }
 0x8cb   : > { %10920 = vmatprep.subr.bf16.mxu1 %v16506_v22 }
 0x8ce   : > { %10922 = vmatpush3.bf16.msra.mxu1 %v15146_v10 }
 0x8cf   : > { %10923 = vmatprep.subr.bf16.mxu1 %v16506_v22 }
 0x8d2   : > { %10925 = vmatpush3.bf16.msra.mxu1 %v15150_v27 }
 0x8d3   : > { %10926 = vmatprep.subr.bf16.mxu1 %v16506_v22 }
 0x8d6   : > { %10928 = vmatpush3.bf16.msra.mxu1 %v15154_v57 }
 0x8d7   : > { %10929 = vmatprep.subr.bf16.mxu1 %v16506_v22 }
 0x8f2   : > { %v15093_v6 = vpop.f32.mrb[14].mxu1 }
 0x8f3   : > { %v9302_v18 = vpop.f32.mrb[15].mxu1  ;;  %v11093_v12 = vadd.f32 %v15093_v6, %v5325_v58 }
 0x8f4   : > { %v6971_v18 = vsub.f32 %v15100_v29, %v15957_v49 }
 0x8f6   : > { %v6972_v15 = vand.u32 4294901760, %v6971_v18  ;;  %v7034_v18 = vsub.f32 %v15125_v43, %v15948_v14 }
 0x8f8   : > { %v15169_v54 = vpack.c.bf16 %v6972_v15, %v6965_v45  ;;  %v7041_v45 = vsub.f32 %v15127_v4, %v15947_v40  ;;  %v7035_v15 = vand.u32 4294901760, %v7034_v18  ;;  %v10954_v18 = vpack.c.bf16 %v15100_v29, %v15098_v50 }
 0x8f9   : > { %v11089_v40 = vadd.f32 %v5317_v52, %v3106_v53 }
 0x8fa   : > { %v7042_v59 = vand.u32 4294901760, %v7041_v45  ;;  %v10957_v45 = vpack.c.bf16 %v15107_v1, %v15105_v28 }
 0x8fc   : > { %v15219_v25 = vpack.c.bf16 %v7042_v59, %v7035_v15  ;;  %v10960_v15 = vpack.c.bf16 %v15115_v9, %v15110_v51  ;;  %v10963_v59 = vpack.c.bf16 %v15119_v42, %v15117_v20 }
 0x990   : > { %v6179_v14 = vpop.f32.mrb[2].mxu0 }
 0x991   : > { %v11090_v41 = vadd.f32 %v11089_v40, %v6179_v14  ;;  %v6181_v63 = vpop.f32.mrb[3].mxu0 }
 0x992   : > { %v11092_v5 = vadd.f32 %v11091_v23, %v6181_v63 }
 0x993   : > { %v7642_v17 = vmul.f32 -1.442695, %v11090_v41 }
 0x994   : > { %v7643_v30 = vmul.f32 -1.442695, %v11092_v5  ;;  %v16800_v5 = vld [vmem:[#allocation35_spill] sm:$0xff] }
 0x995   : > { %11250 = vpow2.f32 %v7642_v17 }
 0x996   : > { %11252 = vpow2.f32 %v7643_v30 }
 0x99f   : > { %v11251_v33 = vpop.eup %11250 }
 0x9a0   : > { %v6829_v7 = vadd.f32 1.0, %v11251_v33  ;;  %v11253_v49 = vpop.eup %11252 }
 0x9a1   : > { %v6836_v19 = vadd.f32 1.0, %v11253_v49 }
 0x9a2   : > { %11254 = vrcp.f32 %v6829_v7 }
 0x9a3   : > { %11256 = vrcp.f32 %v6836_v19 }
 0x9ac   : > { %v11255_v56 = vpop.eup %11254 }
 0x9ad   : > { %v6839_v52 = vmul.f32 %v11255_v56, %v11093_v12  ;;  %v11257_v41 = vpop.eup %11256 }
 0x9ae   : > { %v6842_v63 = vsub.f32 1.0, %v11257_v41  ;;  %v6844_v30 = vmul.f32 %v16800_v5, %v11257_v41 }
 0x9af   : > { %v6840_v14 = vadd.f32 %v6839_v52, %v14954_v34  ;;  %v16801_v34 = vpack.c.bf16 %v15139_v38, %v15137_v37 }
 0x9b1   : > { %11258 = vtanh.f32 %v6840_v14 }
 0x9bb   : > { %v11259_v17 = vpop.eup %11258 }
 0x9bc   : > { %v6843_v23 = vmul.f32 %v11259_v17, %v6842_v63 }
 0x9be   : > { %v15269_v33 = vadd.f32 %v6844_v30, %v6843_v23  }
 0x9c0   : > { %v15272_v7 = vand.u32 4294901760, %v15269_v33  ;;  %7584 = vst [vmem:[#allocation17] sm:$0xff] (%p1146_p0), %v15269_v33 }
 0x9c2   : > { %v6951_v6 = vsub.f32 %v15269_v33, %v15272_v7 }
 0x9c4   : > { %v6952_v26 = vand.u32 4294901760, %v6951_v6 }
 0x9c6   : > { %v6953_v49 = vsub.f32 %v6951_v6, %v6952_v26 }
 0x9c8   : > { %v6954_v40 = vand.u32 4294901760, %v6953_v49 }
 0x9ca   : > { %9336 = vmatmul.mubr.f32.vlgmr.msra.gmra.mrb[16].mxu1 %v6954_v40 }
 0x9cb   : > { %10931 = vmatpush3.bf16.msra.mxu1 %v15169_v54  ;;  %9370 = vmatprep.mubr.msk.f32.mxu1 %vm11512_vm1, %v16510_v13  ;;  %v16802_v54 = vand.u32 4294901760, %v15098_v50  ;;  %v16806_v50 = vand.u32 4294901760, %v15110_v51  ;;  %v16812_v51 = vand.u32 4294901760, %v15125_v43 }
 0x9cc   : > { %10932 = vmatprep.subr.bf16.mxu1 %v16506_v22 }
 0x9cf   : > { %10934 = vmatpush3.bf16.msra.mxu1 %v15179_v44  ;;  %v16803_v44 = vand.u32 4294901760, %v15100_v29  ;;  %v16807_v29 = vand.u32 4294901760, %v15115_v9  ;;  %v16813_v9 = vand.u32 4294901760, %v15127_v4 }
 0x9d0   : > { %10935 = vmatprep.subr.bf16.mxu1 %v16506_v22 }
 0x9d1   : > { %v11008_v31 = vpack.c.bf16 %v16807_v29, %v16806_v50 }
 0x9d3   : > { %10937 = vmatpush3.bf16.msra.mxu1 %v15189_v21  ;;  %v11002_v21 = vpack.c.bf16 %v16803_v44, %v16802_v54 }
 0x9d4   : > { %10938 = vmatprep.subr.bf16.mxu1 %v16506_v22 }
 0x9d7   : > { %10940 = vmatpush3.bf16.msra.mxu1 %v15199_v8  ;;  %v16804_v8 = vand.u32 4294901760, %v15105_v28  ;;  %v16809_v28 = vand.u32 4294901760, %v15119_v42  ;;  %v16815_v42 = vand.u32 4294901760, %v15135_v3 }
 0x9d8   : > { %10941 = vmatprep.subr.bf16.mxu1 %v16506_v22 }
 0x9db   : > { %10943 = vmatpush3.bf16.msra.mxu1 %v15209_v32  ;;  %v16805_v32 = vand.u32 4294901760, %v15107_v1 }
 0x9dc   : > { %10944 = vmatprep.subr.bf16.mxu1 %v16506_v22 }
 0x9dd   : > { %v11005_v48 = vpack.c.bf16 %v16805_v32, %v16804_v8 }
 0x9df   : > { %10946 = vmatpush3.bf16.msra.mxu1 %v15219_v25  ;;  %v16808_v25 = vand.u32 4294901760, %v15117_v20  ;;  %v16814_v20 = vand.u32 4294901760, %v15133_v60  ;;  %v16818_v60 = vld [vmem:[#allocation27_spill] sm:$0xff] }
 0x9e0   : > { %10947 = vmatprep.subr.bf16.mxu1 %v16506_v22 }
 0x9e1   : > { %v11011_v1 = vpack.c.bf16 %v16809_v28, %v16808_v25 }
 0x9e3   : > { %10949 = vmatpush3.bf16.msra.mxu1 %v15229_v24  ;;  %v16810_v24 = vand.u32 4294901760, %v15121_v11  ;;  %v16816_v11 = vand.u32 4294901760, %v15137_v37 }
 0x9e4   : > { %10950 = vmatprep.subr.bf16.mxu1 %v16506_v22 }
 0x9e7   : > { %10952 = vmatpush3.bf16.msra.mxu1 %v15237_v36  ;;  %v16811_v36 = vand.u32 4294901760, %v15123_v0  ;;  %v16817_v0 = vand.u32 4294901760, %v15139_v38 }
 0x9e8   : > { %10953 = vmatprep.subr.bf16.mxu1 %v16506_v22 }
 0x9ea   : > { %9371 = vmatmul.mubr.f32.vlgmr.msra.gmra.mrb[16].mxu1 %v15272_v7 }
 0x9eb   : > { %10955 = vmatpush3.bf16.msra.mxu1 %v10954_v18  ;;  %9405 = vmatprep.mubr.msk.f32.mxu1 %vm11512_vm1, %v16510_v13  ;;  %v11014_v18 = vpack.c.bf16 %v16811_v36, %v16810_v24 }
 0x9ec   : > { %10956 = vmatprep.subr.bf16.mxu1 %v16506_v22 }
 0x9ef   : > { %10958 = vmatpush3.bf16.msra.mxu1 %v10957_v45  ;;  %v11017_v45 = vpack.c.bf16 %v16813_v9, %v16812_v51 }
 0x9f0   : > { %10959 = vmatprep.subr.bf16.mxu1 %v16506_v22 }
 0x9f3   : > { %10961 = vmatpush3.bf16.msra.mxu1 %v10960_v15  ;;  %v11020_v15 = vpack.c.bf16 %v16815_v42, %v16814_v20 }
 0x9f4   : > { %10962 = vmatprep.subr.bf16.mxu1 %v16506_v22 }
 0x9f7   : > { %10964 = vmatpush3.bf16.msra.mxu1 %v10963_v59  ;;  %v11023_v59 = vpack.c.bf16 %v16817_v0, %v16816_v11 }
 0x9f8   : > { %10965 = vmatprep.subr.bf16.mxu1 %v16506_v22 }
 0x9fb   : > { %10967 = vmatpush3.bf16.msra.mxu1 %v10966_v39 }
 0x9fc   : > { %10968 = vmatprep.subr.bf16.mxu1 %v16506_v22 }
 0x9ff   : > { %10970 = vmatpush3.bf16.msra.mxu1 %v10969_v62 }
 0xa00   : > { %10971 = vmatprep.subr.bf16.mxu1 %v16506_v22 }
 0xa03   : > { %10973 = vmatpush3.bf16.msra.mxu1 %v10972_v55 }
 0xa04   : > { %10974 = vmatprep.subr.bf16.mxu1 %v16506_v22 }
 0xa07   : > { %10976 = vmatpush3.bf16.msra.mxu1 %v16801_v34 }
 0xa08   : > { %10977 = vmatprep.subr.bf16.mxu1 %v16506_v22 }
 0xa0a   : > { %9406 = vmatmul.mubr.f32.vlgmr.msra.gmra.mrb[16].mxu1 %v6951_v6 }
 0xa0b   : > { %10979 = vmatpush3.bf16.msra.mxu1 %v15095_v35  ;;  %9440 = vmatprep.mubr.msk.f32.mxu1 %vm11512_vm1, %v16510_v13 }
 0xa0c   : > { %10980 = vmatprep.subr.bf16.mxu1 %v16506_v22 }
 0xa0f   : > { %10982 = vmatpush3.bf16.msra.mxu1 %v15103_v2 }
 0xa10   : > { %10983 = vmatprep.subr.bf16.mxu1 %v16506_v22 }
 0xa13   : > { %10985 = vmatpush3.bf16.msra.mxu1 %v15113_v46 }
 0xa14   : > { %10986 = vmatprep.subr.bf16.mxu1 %v16506_v22 }
 0xa17   : > { %10988 = vmatpush3.bf16.msra.mxu1 %v15130_v16 }
 0xa18   : > { %10989 = vmatprep.subr.bf16.mxu1 %v16506_v22 }
 0xa1b   : > { %10991 = vmatpush3.bf16.msra.mxu1 %v15142_v61 }
 0xa1c   : > { %10992 = vmatprep.subr.bf16.mxu1 %v16506_v22 }
 0xa1f   : > { %10994 = vmatpush3.bf16.msra.mxu1 %v15146_v10 }
 0xa20   : > { %10995 = vmatprep.subr.bf16.mxu1 %v16506_v22 }
 0xa23   : > { %10997 = vmatpush3.bf16.msra.mxu1 %v15150_v27 }
 0xa24   : > { %10998 = vmatprep.subr.bf16.mxu1 %v16506_v22 }
 0xa27   : > { %11000 = vmatpush3.bf16.msra.mxu1 %v15154_v57 }
 0xa28   : > { %11001 = vmatprep.subr.bf16.mxu1 %v16506_v22 }
 0xa2a   : > { %9441 = vmatmul.mubr.f32.vlgmr.msra.gmra.mrb[16].mxu1 %v6952_v26 }
 0xa2b   : > { %11003 = vmatpush3.bf16.msra.mxu1 %v11002_v21  ;;  %9475 = vmatprep.mubr.msk.f32.mxu1 %vm11512_vm1, %v16510_v13 }
 0xa2c   : > { %11004 = vmatprep.subr.bf16.mxu1 %v16506_v22 }
 0xa2f   : > { %11006 = vmatpush3.bf16.msra.mxu1 %v11005_v48 }
 0xa30   : > { %11007 = vmatprep.subr.bf16.mxu1 %v16506_v22 }
 0xa33   : > { %11009 = vmatpush3.bf16.msra.mxu1 %v11008_v31 }
 0xa34   : > { %11010 = vmatprep.subr.bf16.mxu1 %v16506_v22 }
 0xa37   : > { %11012 = vmatpush3.bf16.msra.mxu1 %v11011_v1 }
 0xa38   : > { %11013 = vmatprep.subr.bf16.mxu1 %v16506_v22 }
 0xa3b   : > { %11015 = vmatpush3.bf16.msra.mxu1 %v11014_v18  ;;  %v16819_v18 = vmov %v15269_v33 }
 0xa3c   : > { %11016 = vmatprep.subr.bf16.mxu1 %v16506_v22 }
 0xa3f   : > { %11018 = vmatpush3.bf16.msra.mxu1 %v11017_v45 }
 0xa40   : > { %11019 = vmatprep.subr.bf16.mxu1 %v16506_v22 }
 0xa43   : > { %11021 = vmatpush3.bf16.msra.mxu1 %v11020_v15 }
 0xa44   : > { %11022 = vmatprep.subr.bf16.mxu1 %v16506_v22 }
 0xa47   : > { %11024 = vmatpush3.bf16.msra.mxu1 %v11023_v59 }
 0xa48   : > { %11025 = vmatprep.subr.bf16.mxu1 %v16506_v22 }
 0xa4a   : > { %9476 = vmatmul.mubr.f32.vlgmr.msra.gmra.mrb[16].mxu1 %v15272_v7 }
 0xa4b   : > { %11027 = vmatpush3.bf16.msra.mxu1 %v15095_v35  ;;  %9510 = vmatprep.mubr.msk.f32.mxu1 %vm11512_vm1, %v16510_v13  ;;  %v7644_v35 = vld [vmem:[%s15463_s11] ss:$0 sm:$0xff] }
 0xa4c   : > { %11028 = vmatprep.subr.bf16.mxu1 %v16506_v22 }
 0xa4f   : > { %11030 = vmatpush3.bf16.msra.mxu1 %v15103_v2 }
 0xa50   : > { %11031 = vmatprep.subr.bf16.mxu1 %v16506_v22 }
 0xa53   : > { %11033 = vmatpush3.bf16.msra.mxu1 %v15113_v46 }
 0xa54   : > { %11034 = vmatprep.subr.bf16.mxu1 %v16506_v22 }
 0xa57   : > { %11036 = vmatpush3.bf16.msra.mxu1 %v15130_v16 }
 0xa58   : > { %11037 = vmatprep.subr.bf16.mxu1 %v16506_v22 }
 0xa5b   : > { %11039 = vmatpush3.bf16.msra.mxu1 %v15142_v61 }
 0xa5c   : > { %11040 = vmatprep.subr.bf16.mxu1 %v16506_v22 }
 0xa5f   : > { %11042 = vmatpush3.bf16.msra.mxu1 %v15146_v10 }
 0xa60   : > { %11043 = vmatprep.subr.bf16.mxu1 %v16506_v22 }
 0xa63   : > { %11045 = vmatpush3.bf16.msra.mxu1 %v15150_v27 }
 0xa64   : > { %11046 = vmatprep.subr.bf16.mxu1 %v16506_v22 }
 0xa67   : > { %11048 = vmatpush3.bf16.msra.mxu1 %v15154_v57 }
 0xa6a   : > { %9511 = vmatmul.mubr.f32.vlgmr.msra.gmra.mrb[16].mxu1 %v15272_v7 }
 0xb3d   : > { %v7506_v2 = vpop.f32.mrb[16].mxu1 }
 0xb3e   : > { %v11094_v46 = vadd.f32 %v7644_v35, %v7506_v2  ;;  %v9512_v43 = vpop.f32.mrb[17].mxu1 }
 0xb40   : > { %7510 = vmax.xlane.f32.xlu0 %v11094_v46 }
 0xbcd   : > { %v7511_v4 = vpop.xlane.xlu0 %7510 }
 0xbce   : > { %v7512_v16 = vsub.f32 %v11094_v46, %v7511_v4  ;;  %vm7565_vm10 = vcmp.eq.f32.partialorder %v11094_v46, %v7511_v4 }
 0xbcf   : > { %v7566_v3 = vsel %vm7565_vm10, %v16818_v60, 128 }
 0xbd0   : > { %v7513_v37 = vmul.f32 1.442695, %v7512_v16  ;;  %v7568_v38 = vshra.s32 %v7566_v3, 16  ;;  %v7567_v10 = vand.u32 65535, %v7566_v3 }
 0xbd2   : > { %11260 = vpow2.f32 %v7513_v37  ;;  %v7570_v22 = vcvt.s32.f32 %v7568_v38  ;;  %v7569_v27 = vcvt.s32.f32 %v7567_v10 }
 0xbd4   : > { %7571 = vmin.xlane.f32.xlu1 %v7570_v22 }
 0xbdc   : > { %v11261_v61 = vpop.eup %11260 }
 0xbdd   : > { %7515 = vadd.xlane.f32.xlu1 %v11261_v61 }
 0xc61   : > { %v7572_v57 = vpop.xlane.xlu1 %7571 }
 0xc62   : > { %vm7573_vm11 = vcmp.eq.f32.partialorder %v7570_v22, %v7572_v57  ;;  %v7578_v53 = vcvt.f32.s32 %v7572_v57 }
 0xc63   : > { %v7574_v39 = vsel %vm7573_vm11, %v7569_v27, inf }
 0xc64   : > { %7575 = vmin.xlane.f32.xlu1 %v7574_v39  ;;  %v7579_v12 = vshll.u32 %v7578_v53, 16 }
 0xc6a   : > { %v7516_v62 = vpop.xlane.xlu1 %7515 }
 0xc6b   : > { %11262 = vlog2.f32 %v7516_v62 }
 0xc75   : > { %v11263_v55 = vpop.eup %11262 }
 0xc76   : > { %v7518_v19 = vmul.f32 0.6931472, %v11263_v55 }
 0xc78   : > { %v7519_v47 = vsub.f32 %v7512_v16, %v7518_v19 }
 0xc7a   : > { %7522 = vst [vmem:[%s7521_s23] sm:$0xff] %v7519_v47 }
 0xcf1   : > { %v7576_v58 = vpop.xlane.xlu1 %7575  ;;  %1148 = sbr.rel (!%p1146_p0) target bundleno = 466 (0x1d2), region = 129 }
 0xcf2   : > { %v7577_v56 = vcvt.f32.s32 %v7576_v58 }
 0xcf4   : > { %v7580_v52 = vadd.s32 %v7579_v12, %v7577_v56 }
 0xcf6   : > { %vm7581_vm12 = vcmp.eq.s32.totalorder %v16818_v60, %v7580_v52 }
 0xcf7   : > { %v7646_v7 = vsel %vm7581_vm12, 1.0, %v16510_v13  }
 0xcf8   :  { %11430 = shalt.err (!%p11427_p5)
}
 0xcf9   :  { %s11431_s3 = scalar_lea.hbm %s15466_s14, 6400 }
 0xcfa   :  { %p11432_p6 = scmp.ne.s32.totalorder %s15466_s14, %s11431_s3  ;;  %p11435_p7 = scmp.lt.u32.totalorder %s11431_s3, %s15466_s14 }
 0xcfc   :  { %p11437_p8 = pnand %p11435_p7, %p11432_p6 }
 0xcfe   :  { %11440 = shalt.err (!%p11437_p8)
}
 0xcff   :  { %s16820_s11 = smov 128   ;;  %s11441_s29 = scalar_lea.vmem %s7606_s24, 128 }
 0xd00   :  { %7596 = dma.vmem_to_hbm [thread:$0]  %s7591_s8, 6400, %s15466_s14, [#allocation6], %s16820_s11, %s16820_s11, %s11502_s20  }
 0xd01   :  { %p11442_p9 = scmp.ne.s32.totalorder %s7606_s24, %s11441_s29  ;;  %p11446_p10 = scmp.lt.s32.totalorder %s7606_s24, %s7606_s24 }
 0xd02   :  { %p11447_p11 = scmp.lt.s32.totalorder %s11441_s29, %s11441_s29 }
 0xd04   :  { %p11448_p12 = por %p11447_p11, %p11446_p10 }
 0xd06   :  { %p11449_p13 = pnand %p11448_p12, %p11442_p9 }
 0xd08   :  { %11452 = shalt.err (!%p11449_p13)
}
 0xd09   :  { %s11453_s17 = scalar_lea.hbm %s15468_s16, 128 }
 0xd0a   :  { %p11454_p0 = scmp.ne.s32.totalorder %s15468_s16, %s11453_s17  ;;  %p11457_p1 = scmp.lt.u32.totalorder %s11453_s17, %s15468_s16 }
 0xd0c   :  { %p11459_p2 = pnand %p11457_p1, %p11454_p0 }
 0xd0e   :  { %11462 = shalt.err (!%p11459_p2)
}
 0xd0f   :  { %7608 = dma.vmem_to_hbm [thread:$0]  %s7606_s24, 128, %s15468_s16, [#allocation18]  }
 0xd10   :  { %11483 = dma.done.wait [#allocation6], 6400  }
 0xd11   :  { %11484 = vsyncadd [#allocation6], 4294960896 }
 0xd12   :  { %11485 = dma.done.wait [#allocation18], 128  }
 0xd13   :  { %11486 = vsyncadd [#allocation18], 4294967168 }
 0xd14   :  { %7617 = vsyncpa [#allocation5], 1 }
 0xd15   :  { %7618 = vsyncpa [#allocation8], 1 }
 0xd16   :  { %7619 = vsyncpa [#allocation11], 1 }
 0xd17   :  { %7620 = vsyncpa [#allocation14], 1 }
 0xd18   :  { %7621 = vsyncpa [#allocation6], 1 }
 0xd19   :  { %7622 = vsyncpa [#allocation18], 1 }

</bundles_post_ra>
